<compile_context>
chip_gen: v7x
topology: tpu7x:2x2x1
jax: 0.10.0
libtpu: 0.0.40
codegen_flags: <defaults>
</compile_context>

<pallas_src>
import jax
import jax.numpy as jnp
from jax import lax
from jax.experimental import pallas as pl
from jax.experimental.pallas import tpu as pltpu


_INV_SQRT2 = 0.7071067811865476


def _erf_approx(x):
    """erf via Abramowitz & Stegun 7.1.26 (max abs error ~1.5e-7).

    Uses only mul/add/div/exp/abs/where so it always lowers on Mosaic; the
    exp goes to the EUP slot, keeping VALU pressure low.
    """
    p = 0.3275911
    a1, a2, a3, a4, a5 = (0.254829592, -0.284496736, 1.421413741,
                          -1.453152027, 1.061405429)
    ax = jnp.abs(x)
    t = 1.0 / (1.0 + p * ax)
    poly = ((((a5 * t + a4) * t + a3) * t + a2) * t + a1) * t
    y = 1.0 - poly * jnp.exp(-(ax * ax))
    return jnp.where(x >= 0.0, y, -y)


def _gelu_exact(x, erf_fn):
    # (x * 0.5) * (erf(x * 1/sqrt(2)) + 1) -- exactly the torch expression chain
    return (x * 0.5) * (erf_fn(x * _INV_SQRT2) + 1.0)


def fused_conv_gelu_kernel(xp_ref, w1_ref, b1_ref, w2_ref, b2_ref, w3_ref,
                           b3_ref, o_ref):
    # xp_ref: (9,  T) f32 im2col patches (T = lane tile of P, multiple of 128)
    # w1_ref: (16, 9)  f32   b1_ref: (16, 1) f32
    # w2_ref: (98, 16) f32   b2_ref: (98, 1) f32
    # w3_ref: (49, 98) f32   b3_ref: (49, 1) f32
    # o_ref : (49, T) f32  (lane-dense, already CHW-flattened)
    x = xp_ref[...]

    h1 = jnp.dot(w1_ref[...], x, preferred_element_type=jnp.float32) + b1_ref[...]
    h1 = _gelu_exact(h1, _erf_approx)

    h2 = jnp.dot(w2_ref[...], h1, preferred_element_type=jnp.float32) + b2_ref[...]
    h2 = _gelu_exact(h2, _erf_approx)

    o_ref[...] = jnp.dot(w3_ref[...], h2, preferred_element_type=jnp.float32) + b3_ref[...]


def _round_up(x, m):
    return ((x + m - 1) // m) * m


def _choose_tiles(P):
    """Prefer two equal 128-aligned lane blocks (v7x megacore, zero padding),
    otherwise a single block.  For the spec shape P=2304 -> 2 x 1152."""
    p_pad = _round_up(P, 128)
    half = p_pad // 2
    if p_pad % 256 == 0 and half >= 128:
        return half, p_pad
    return p_pad, p_pad


@jax.jit
def model_forward(x_nchw, params):
    """x_nchw: (1, 1, H, W) float32 -> (1, 49, H_out, W_out) float32."""
    w1, b1, w2, b2, w3, b3 = params
    N, Cin, H, W = x_nchw.shape
    assert N == 1 and Cin == 1

    # --- im2col for 3x3 / stride 2 / pad 1, built directly as (9, P) ---------
    H_out = (H + 2 * 1 - 3) // 2 + 1
    W_out = (W + 2 * 1 - 3) // 2 + 1
    P = H_out * W_out

    x_pad = jnp.pad(x_nchw[0, 0], ((1, 1), (1, 1)))
    patches = [x_pad[kh::2, kw::2][:H_out, :W_out]
               for kh in range(3) for kw in range(3)]
    xp = jnp.stack(patches, axis=0).reshape(9, P)        # (9, P), f32

    tile_p, p_pad = _choose_tiles(P)
    if p_pad != P:                                        # no-op for 95x95
        xp = jnp.pad(xp, ((0, 0), (0, p_pad - P)))

    # torch conv weights: (O, I, kh, kw) -> matmul form (O, I*kh*kw), all f32.
    c1, c2, c3 = w1.shape[0], w2.shape[0], w3.shape[0]
    w1m = w1.reshape(c1, -1)
    w2m = w2.reshape(c2, -1)
    w3m = w3.reshape(c3, -1)
    b1c = b1.reshape(c1, 1)
    b2c = b2.reshape(c2, 1)
    b3c = b3.reshape(c3, 1)

    grid = (p_pad // tile_p,)

    def full_spec(arr):
        return pl.BlockSpec(arr.shape, lambda i: (0, 0))

    out = pl.pallas_call(
        fused_conv_gelu_kernel,
        out_shape=jax.ShapeDtypeStruct((c3, p_pad), jnp.float32),
        grid=grid,
        in_specs=[
            pl.BlockSpec((9, tile_p), lambda i: (0, i)),   # xp tile over lanes
            full_spec(w1m), full_spec(b1c),
            full_spec(w2m), full_spec(b2c),
            full_spec(w3m), full_spec(b3c),
        ],
        out_specs=pl.BlockSpec((c3, tile_p), lambda i: (0, i)),
        compiler_params=pltpu.CompilerParams(
            dimension_semantics=("parallel",),        # megacore sharding on v7x
            vmem_limit_bytes=32 * 1024 * 1024,        # working set << limit
        ),
    )(xp, w1m, b1c, w2m, b2c, w3m, b3c)

    # (49, P) is already CHW -> just reshape, no transpose.
    return out[:, :P].reshape(c3, H_out, W_out)[None]


def init_params(key):
    """Deterministic parameter init with PyTorch-default-like scaling."""
    ks = jax.random.split(key, 6)

    def uinit(k, shape, fan_in):
        bound = 1.0 / jnp.sqrt(fan_in)
        return jax.random.uniform(k, shape, jnp.float32, -bound, bound)

    w1 = uinit(ks[0], (16, 1, 3, 3), 1 * 3 * 3)
    b1 = uinit(ks[1], (16,), 1 * 3 * 3)
    w2 = uinit(ks[2], (98, 16, 1, 1), 16)
    b2 = uinit(ks[3], (98,), 16)
    w3 = uinit(ks[4], (49, 98, 1, 1), 98)
    b3 = uinit(ks[5], (49,), 98)
    return (w1, b1, w2, b2, w3, b3)


def reference_forward(x, params):
    """Plain-JAX f32 reference (lax.conv + true lax.erf) for verification."""
    w1, b1, w2, b2, w3, b3 = params
    dn = lax.conv_dimension_numbers(x.shape, w1.shape, ("NCHW", "OIHW", "NCHW"))
    v1 = lax.conv_general_dilated(x, w1, (2, 2), ((1, 1), (1, 1)),
                                  dimension_numbers=dn)
    v1 = v1 + b1[None, :, None, None]
    v6 = _gelu_exact(v1, lax.erf)
    v7 = lax.conv_general_dilated(v6, w2, (1, 1), ((0, 0), (0, 0)),
                                  dimension_numbers=dn)
    v7 = v7 + b2[None, :, None, None]
    v12 = _gelu_exact(v7, lax.erf)
    v13 = lax.conv_general_dilated(v12, w3, (1, 1), ((0, 0), (0, 0)),
                                   dimension_numbers=dn)
    return v13 + b3[None, :, None, None]


if __name__ == "__main__":
    key = jax.random.PRNGKey(0)
    kx, kp = jax.random.split(key)

    # Spec shape from the original module: (1, 1, 95, 95) -> output (1, 49, 48, 48)
    x = jax.random.normal(kx, (1, 1, 95, 95), jnp.float32)
    params = init_params(kp)

    out = jax.block_until_ready(model_forward(x, params))
    ref = jax.block_until_ready(reference_forward(x, params))

    assert out.shape == ref.shape == (1, 49, 48, 48), (out.shape, ref.shape)
    max_err = float(jnp.max(jnp.abs(out - ref)))
    # All-f32 operands; remaining diff is default MXU precision + 1.5e-7 erf poly.
    assert jnp.allclose(out, ref, atol=1e-2, rtol=1e-2), max_err

    print("KERNEL_OK")
</pallas_src>

<mosaic_0001>
module attributes {stable_mosaic.version = 11 : i64} {
  func.func @fused_conv_gelu_kernel(%arg0: i32, %arg1: memref<9x1152xf32, #tpu.memory_space<vmem>>, %arg2: memref<16x9xf32, #tpu.memory_space<vmem>>, %arg3: memref<16x1xf32, #tpu.memory_space<vmem>>, %arg4: memref<98x16xf32, #tpu.memory_space<vmem>>, %arg5: memref<98x1xf32, #tpu.memory_space<vmem>>, %arg6: memref<49x98xf32, #tpu.memory_space<vmem>>, %arg7: memref<49x1xf32, #tpu.memory_space<vmem>>, %arg8: memref<49x1152xf32, #tpu.memory_space<vmem>>) attributes {dimension_semantics = [#tpu.dimension_semantics<parallel>], iteration_bounds = array<i64: 2>, scalar_prefetch = 0 : i64, scratch_operands = 0 : i64, tpu.core_type = #tpu.core_type<tc>, window_params = [{transform_indices = @transform_0, window_bounds = array<i64: 9, 1152>}, {pipeline_mode = #tpu.pipeline_mode<synchronous>, transform_indices = @transform_1, window_bounds = array<i64: 16, 9>}, {pipeline_mode = #tpu.pipeline_mode<synchronous>, transform_indices = @transform_2, window_bounds = array<i64: 16, 1>}, {pipeline_mode = #tpu.pipeline_mode<synchronous>, transform_indices = @transform_3, window_bounds = array<i64: 98, 16>}, {pipeline_mode = #tpu.pipeline_mode<synchronous>, transform_indices = @transform_4, window_bounds = array<i64: 98, 1>}, {pipeline_mode = #tpu.pipeline_mode<synchronous>, transform_indices = @transform_5, window_bounds = array<i64: 49, 98>}, {pipeline_mode = #tpu.pipeline_mode<synchronous>, transform_indices = @transform_6, window_bounds = array<i64: 49, 1>}, {transform_indices = @transform_7, window_bounds = array<i64: 49, 1152>}]} {
    %c0 = arith.constant 0 : index
    %c0_0 = arith.constant 0 : index
    %0 = vector.load %arg1[%c0, %c0_0] : memref<9x1152xf32, #tpu.memory_space<vmem>>, vector<9x1152xf32>
    %c0_1 = arith.constant 0 : index
    %c0_2 = arith.constant 0 : index
    %1 = vector.load %arg2[%c0_1, %c0_2] : memref<16x9xf32, #tpu.memory_space<vmem>>, vector<16x9xf32>
    %cst = arith.constant dense<0.000000e+00> : vector<16x1152xf32>
    %2 = tpu.matmul %1, %0, %cst {dimension_numbers = #tpu.dot_dimension_numbers<[1], [0], [0], [1], [0, 0, 1, 1], [], []>} : vector<16x9xf32>, vector<9x1152xf32>, vector<16x1152xf32> -> vector<16x1152xf32>
    %c0_3 = arith.constant 0 : index
    %c0_4 = arith.constant 0 : index
    %3 = vector.load %arg3[%c0_3, %c0_4] : memref<16x1xf32, #tpu.memory_space<vmem>>, vector<16x1xf32>
    %4 = vector.broadcast %3 : vector<16x1xf32> to vector<16x1152xf32>
    %5 = arith.addf %2, %4 : vector<16x1152xf32>
    %cst_5 = arith.constant 5.000000e-01 : f32
    %6 = vector.broadcast %cst_5 : f32 to vector<16x1152xf32>
    %7 = arith.mulf %5, %6 : vector<16x1152xf32>
    %cst_6 = arith.constant 0.707106769 : f32
    %8 = vector.broadcast %cst_6 : f32 to vector<16x1152xf32>
    %9 = arith.mulf %5, %8 : vector<16x1152xf32>
    %10 = math.absf %9 : vector<16x1152xf32>
    %cst_7 = arith.constant 0.327591091 : f32
    %11 = vector.broadcast %cst_7 : f32 to vector<16x1152xf32>
    %12 = arith.mulf %11, %10 : vector<16x1152xf32>
    %cst_8 = arith.constant 1.000000e+00 : f32
    %13 = vector.broadcast %cst_8 : f32 to vector<16x1152xf32>
    %14 = arith.addf %13, %12 : vector<16x1152xf32>
    %cst_9 = arith.constant 1.000000e+00 : f32
    %15 = vector.broadcast %cst_9 : f32 to vector<16x1152xf32>
    %16 = arith.divf %15, %14 : vector<16x1152xf32>
    %cst_10 = arith.constant 1.06140542 : f32
    %17 = vector.broadcast %cst_10 : f32 to vector<16x1152xf32>
    %18 = arith.mulf %17, %16 : vector<16x1152xf32>
    %cst_11 = arith.constant -1.45315206 : f32
    %19 = vector.broadcast %cst_11 : f32 to vector<16x1152xf32>
    %20 = arith.addf %18, %19 : vector<16x1152xf32>
    %21 = arith.mulf %20, %16 : vector<16x1152xf32>
    %cst_12 = arith.constant 1.42141378 : f32
    %22 = vector.broadcast %cst_12 : f32 to vector<16x1152xf32>
    %23 = arith.addf %21, %22 : vector<16x1152xf32>
    %24 = arith.mulf %23, %16 : vector<16x1152xf32>
    %cst_13 = arith.constant -0.284496725 : f32
    %25 = vector.broadcast %cst_13 : f32 to vector<16x1152xf32>
    %26 = arith.addf %24, %25 : vector<16x1152xf32>
    %27 = arith.mulf %26, %16 : vector<16x1152xf32>
    %cst_14 = arith.constant 0.254829586 : f32
    %28 = vector.broadcast %cst_14 : f32 to vector<16x1152xf32>
    %29 = arith.addf %27, %28 : vector<16x1152xf32>
    %30 = arith.mulf %29, %16 : vector<16x1152xf32>
    %31 = arith.mulf %10, %10 : vector<16x1152xf32>
    %cst_15 = arith.constant 0.000000e+00 : f32
    %32 = vector.broadcast %cst_15 : f32 to vector<16x1152xf32>
    %33 = arith.subf %32, %31 : vector<16x1152xf32>
    %34 = math.exp %33 : vector<16x1152xf32>
    %35 = arith.mulf %30, %34 : vector<16x1152xf32>
    %cst_16 = arith.constant 1.000000e+00 : f32
    %36 = vector.broadcast %cst_16 : f32 to vector<16x1152xf32>
    %37 = arith.subf %36, %35 : vector<16x1152xf32>
    %cst_17 = arith.constant 0.000000e+00 : f32
    %38 = vector.broadcast %cst_17 : f32 to vector<16x1152xf32>
    %39 = arith.cmpf oge, %9, %38 : vector<16x1152xf32>
    %cst_18 = arith.constant 0.000000e+00 : f32
    %40 = vector.broadcast %cst_18 : f32 to vector<16x1152xf32>
    %41 = arith.subf %40, %37 : vector<16x1152xf32>
    %42 = arith.select %39, %37, %41 : vector<16x1152xi1>, vector<16x1152xf32>
    %cst_19 = arith.constant 1.000000e+00 : f32
    %43 = vector.broadcast %cst_19 : f32 to vector<16x1152xf32>
    %44 = arith.addf %42, %43 : vector<16x1152xf32>
    %45 = arith.mulf %7, %44 : vector<16x1152xf32>
    %c0_20 = arith.constant 0 : index
    %c0_21 = arith.constant 0 : index
    %46 = vector.load %arg4[%c0_20, %c0_21] : memref<98x16xf32, #tpu.memory_space<vmem>>, vector<98x16xf32>
    %cst_22 = arith.constant dense<0.000000e+00> : vector<98x1152xf32>
    %47 = tpu.matmul %46, %45, %cst_22 {dimension_numbers = #tpu.dot_dimension_numbers<[1], [0], [0], [1], [0, 0, 1, 1], [], []>} : vector<98x16xf32>, vector<16x1152xf32>, vector<98x1152xf32> -> vector<98x1152xf32>
    %c0_23 = arith.constant 0 : index
    %c0_24 = arith.constant 0 : index
    %48 = vector.load %arg5[%c0_23, %c0_24] : memref<98x1xf32, #tpu.memory_space<vmem>>, vector<98x1xf32>
    %49 = vector.broadcast %48 : vector<98x1xf32> to vector<98x1152xf32>
    %50 = arith.addf %47, %49 : vector<98x1152xf32>
    %cst_25 = arith.constant 5.000000e-01 : f32
    %51 = vector.broadcast %cst_25 : f32 to vector<98x1152xf32>
    %52 = arith.mulf %50, %51 : vector<98x1152xf32>
    %cst_26 = arith.constant 0.707106769 : f32
    %53 = vector.broadcast %cst_26 : f32 to vector<98x1152xf32>
    %54 = arith.mulf %50, %53 : vector<98x1152xf32>
    %55 = math.absf %54 : vector<98x1152xf32>
    %cst_27 = arith.constant 0.327591091 : f32
    %56 = vector.broadcast %cst_27 : f32 to vector<98x1152xf32>
    %57 = arith.mulf %56, %55 : vector<98x1152xf32>
    %cst_28 = arith.constant 1.000000e+00 : f32
    %58 = vector.broadcast %cst_28 : f32 to vector<98x1152xf32>
    %59 = arith.addf %58, %57 : vector<98x1152xf32>
    %cst_29 = arith.constant 1.000000e+00 : f32
    %60 = vector.broadcast %cst_29 : f32 to vector<98x1152xf32>
    %61 = arith.divf %60, %59 : vector<98x1152xf32>
    %cst_30 = arith.constant 1.06140542 : f32
    %62 = vector.broadcast %cst_30 : f32 to vector<98x1152xf32>
    %63 = arith.mulf %62, %61 : vector<98x1152xf32>
    %cst_31 = arith.constant -1.45315206 : f32
    %64 = vector.broadcast %cst_31 : f32 to vector<98x1152xf32>
    %65 = arith.addf %63, %64 : vector<98x1152xf32>
    %66 = arith.mulf %65, %61 : vector<98x1152xf32>
    %cst_32 = arith.constant 1.42141378 : f32
    %67 = vector.broadcast %cst_32 : f32 to vector<98x1152xf32>
    %68 = arith.addf %66, %67 : vector<98x1152xf32>
    %69 = arith.mulf %68, %61 : vector<98x1152xf32>
    %cst_33 = arith.constant -0.284496725 : f32
    %70 = vector.broadcast %cst_33 : f32 to vector<98x1152xf32>
    %71 = arith.addf %69, %70 : vector<98x1152xf32>
    %72 = arith.mulf %71, %61 : vector<98x1152xf32>
    %cst_34 = arith.constant 0.254829586 : f32
    %73 = vector.broadcast %cst_34 : f32 to vector<98x1152xf32>
    %74 = arith.addf %72, %73 : vector<98x1152xf32>
    %75 = arith.mulf %74, %61 : vector<98x1152xf32>
    %76 = arith.mulf %55, %55 : vector<98x1152xf32>
    %cst_35 = arith.constant 0.000000e+00 : f32
    %77 = vector.broadcast %cst_35 : f32 to vector<98x1152xf32>
    %78 = arith.subf %77, %76 : vector<98x1152xf32>
    %79 = math.exp %78 : vector<98x1152xf32>
    %80 = arith.mulf %75, %79 : vector<98x1152xf32>
    %cst_36 = arith.constant 1.000000e+00 : f32
    %81 = vector.broadcast %cst_36 : f32 to vector<98x1152xf32>
    %82 = arith.subf %81, %80 : vector<98x1152xf32>
    %cst_37 = arith.constant 0.000000e+00 : f32
    %83 = vector.broadcast %cst_37 : f32 to vector<98x1152xf32>
    %84 = arith.cmpf oge, %54, %83 : vector<98x1152xf32>
    %cst_38 = arith.constant 0.000000e+00 : f32
    %85 = vector.broadcast %cst_38 : f32 to vector<98x1152xf32>
    %86 = arith.subf %85, %82 : vector<98x1152xf32>
    %87 = arith.select %84, %82, %86 : vector<98x1152xi1>, vector<98x1152xf32>
    %cst_39 = arith.constant 1.000000e+00 : f32
    %88 = vector.broadcast %cst_39 : f32 to vector<98x1152xf32>
    %89 = arith.addf %87, %88 : vector<98x1152xf32>
    %90 = arith.mulf %52, %89 : vector<98x1152xf32>
    %c0_40 = arith.constant 0 : index
    %c0_41 = arith.constant 0 : index
    %91 = vector.load %arg6[%c0_40, %c0_41] : memref<49x98xf32, #tpu.memory_space<vmem>>, vector<49x98xf32>
    %cst_42 = arith.constant dense<0.000000e+00> : vector<49x1152xf32>
    %92 = tpu.matmul %91, %90, %cst_42 {dimension_numbers = #tpu.dot_dimension_numbers<[1], [0], [0], [1], [0, 0, 1, 1], [], []>} : vector<49x98xf32>, vector<98x1152xf32>, vector<49x1152xf32> -> vector<49x1152xf32>
    %c0_43 = arith.constant 0 : index
    %c0_44 = arith.constant 0 : index
    %93 = vector.load %arg7[%c0_43, %c0_44] : memref<49x1xf32, #tpu.memory_space<vmem>>, vector<49x1xf32>
    %94 = vector.broadcast %93 : vector<49x1xf32> to vector<49x1152xf32>
    %95 = arith.addf %92, %94 : vector<49x1152xf32>
    %c0_45 = arith.constant 0 : index
    %c0_46 = arith.constant 0 : index
    %96 = vector.load %arg8[%c0_45, %c0_46] : memref<49x1152xf32, #tpu.memory_space<vmem>>, vector<49x1152xf32>
    tpu.vector_store %arg8[%c0_45, %c0_46], %95 {strides = array<i32>} : memref<49x1152xf32, #tpu.memory_space<vmem>>, vector<49x1152xf32>,
    return
  }
  func.func @transform_0(%arg0: i32) -> (i32, i32) {
    %c0_i32 = arith.constant 0 : i32
    %c0_i32_0 = arith.constant 0 : i32
    return %c0_i32, %arg0 : i32, i32
  }
  func.func @transform_1(%arg0: i32) -> (i32, i32) {
    %c0_i32 = arith.constant 0 : i32
    %c0_i32_0 = arith.constant 0 : i32
    %c0_i32_1 = arith.constant 0 : i32
    return %c0_i32, %c0_i32_0 : i32, i32
  }
  func.func @transform_2(%arg0: i32) -> (i32, i32) {
    %c0_i32 = arith.constant 0 : i32
    %c0_i32_0 = arith.constant 0 : i32
    %c0_i32_1 = arith.constant 0 : i32
    return %c0_i32, %c0_i32_0 : i32, i32
  }
  func.func @transform_3(%arg0: i32) -> (i32, i32) {
    %c0_i32 = arith.constant 0 : i32
    %c0_i32_0 = arith.constant 0 : i32
    %c0_i32_1 = arith.constant 0 : i32
    return %c0_i32, %c0_i32_0 : i32, i32
  }
  func.func @transform_4(%arg0: i32) -> (i32, i32) {
    %c0_i32 = arith.constant 0 : i32
    %c0_i32_0 = arith.constant 0 : i32
    %c0_i32_1 = arith.constant 0 : i32
    return %c0_i32, %c0_i32_0 : i32, i32
  }
  func.func @transform_5(%arg0: i32) -> (i32, i32) {
    %c0_i32 = arith.constant 0 : i32
    %c0_i32_0 = arith.constant 0 : i32
    %c0_i32_1 = arith.constant 0 : i32
    return %c0_i32, %c0_i32_0 : i32, i32
  }
  func.func @transform_6(%arg0: i32) -> (i32, i32) {
    %c0_i32 = arith.constant 0 : i32
    %c0_i32_0 = arith.constant 0 : i32
    %c0_i32_1 = arith.constant 0 : i32
    return %c0_i32, %c0_i32_0 : i32, i32
  }
  func.func @transform_7(%arg0: i32) -> (i32, i32) {
    %c0_i32 = arith.constant 0 : i32
    %c0_i32_0 = arith.constant 0 : i32
    return %c0_i32, %arg0 : i32, i32
  }
}

</mosaic_0001>

<bundles_post_ra>
// kernel: model_forward.1
= control target key start
LH: loop header
LB: loop body
LE: loop exit
PB: predicated region body
PF: predicated region fallthrough
CT: control target
= control target key end

     0   :  { %s7242_s24 = smov 0   ;;  %s7244_s25 = smov 0   ;;  %s12314_s0 = inlined_call_operand.vmem [shape: f32[9,2304], index: 0, kind: input, shape index: {}]   ;;  %s12315_s1 = inlined_call_operand.vmem [shape: f32[16,9], index: 1, kind: input, shape index: {}]   ;;  %s12316_s2 = inlined_call_operand.vmem [shape: f32[16,1], index: 2, kind: input, shape index: {}]   ;;  %s12317_s3 = inlined_call_operand.vmem [shape: f32[98,16], index: 3, kind: input, shape index: {}]   ;;  %s12318_s4 = inlined_call_operand.vmem [shape: f32[98,1], index: 4, kind: input, shape index: {}]   ;;  %s12319_s5 = inlined_call_operand.vmem [shape: f32[49,98], index: 5, kind: input, shape index: {}]   ;;  %s12320_s6 = inlined_call_operand.vmem [shape: f32[49,1], index: 6, kind: input, shape index: {}]   ;;  %s12321_s7 = inlined_call_operand.vmem [shape: f32[49,2304], index: 7, kind: output, shape index: {}]  }
   0x1   :  { %s7246_s26 = smov 0  }
   0x2 LB: > { %s6154_s27 = sadd.s32 4294967295, %s7195_s26   ;;  %s7259_s28 = sadd.s32 1, %s7195_s26   ;;  %s7195_s26 = sphi %s7246_s26, %s12912_s26   ;;  %s7191_s25 = sphi %s7244_s25, %s12911_s25   ;;  %s7187_s24 = sphi %s7242_s24, %s12910_s24  }
   0x3   : > { %s21_s29 = ssub.s32 %s7195_s26, %s7259_s28  ;;  %s24_s30 = sadd.s32 1, %s7191_s25 }
   0x4   : > { %p22_p0 = scmp.eq.s32.totalorder %s21_s29, 0  ;;  %p31_p1 = scmp.ne.s32.totalorder %s7191_s25, %s7187_s24 }
   0x5   : > { %p32_p2 = scmp.eq.s32.totalorder %s7195_s26, 0  ;;  %p187_p3 = scmp.eq.s32.totalorder %s6154_s27, 1 }
   0x6   : > { %s7270_s8 = scalar_select %p22_p0, %s7191_s25, %s24_s30  }
   0x7   : > { %p33_p4 = por %p32_p2, %p31_p1  ;;  %p7272_p5 = por %p187_p3, %p31_p1 }
   0x8   : > { %p6157_p6 = scmp.ge.s32.totalorder %s7195_s26, 2 }
   0xa   : > { %227 = sbr.rel (%p6157_p6) target bundleno = 31 (0x1f), region = 40 }
  0x11   : > { %230 = sbr.rel (!%p33_p4) target bundleno = 31 (0x1f), region = 44  ;;  %s232_s10 = sand.u32 (%p33_p4), 1, %s7191_s25  }
  0x12   : > { %s6291_s11 = smul.u32 (%p33_p4), 72, %s7195_s26 }
  0x13   : > { %s6592_s12 = smul.u32 (%p33_p4), 144, %s232_s10 }
  0x14   : > { %s7282_s15 = scalar_lea.vmem (%p33_p4), %s12314_s0, %s6291_s11 }
  0x15   : > { %v250_v0 = vld [vmem:[%s7282_s15] sm:$0xff] (%p33_p4)  ;;  %v252_v1 = vld [vmem:[%s7282_s15 + $0x8] sm:$0xff] (%p33_p4)  ;;  %v254_v2 = vld [vmem:[%s7282_s15 + $0x10] sm:$0xff] (%p33_p4)  ;;  %s7287_s16 = scalar_lea.vmem (%p33_p4), [#allocation2], %s6592_s12 }
  0x16   : > { %251 = vst [vmem:[%s7287_s16] sm:$0xff] (%p33_p4), %v250_v0  ;;  %253 = vst [vmem:[%s7287_s16 + $0x8] sm:$0xff] (%p33_p4), %v252_v1  ;;  %v256_v3 = vld [vmem:[%s7282_s15 + $0x18] sm:$0xff] (%p33_p4)  ;;  %v258_v4 = vld [vmem:[%s7282_s15 + $0x20] sm:$0xff] (%p33_p4) }
  0x17   : > { %255 = vst [vmem:[%s7287_s16 + $0x10] sm:$0xff] (%p33_p4), %v254_v2  ;;  %v260_v5 = vld [vmem:[%s7282_s15 + $0x28] sm:$0xff] (%p33_p4)  ;;  %257 = vst [vmem:[%s7287_s16 + $0x18] sm:$0xff] (%p33_p4), %v256_v3  ;;  %v262_v6 = vld [vmem:[%s7282_s15 + $0x30] sm:$0xff] (%p33_p4) }
  0x18   : > { %259 = vst [vmem:[%s7287_s16 + $0x20] sm:$0xff] %v258_v4  ;;  %261 = vst [vmem:[%s7287_s16 + $0x28] sm:$0xff] %v260_v5  ;;  %v264_v7 = vld [vmem:[%s7282_s15 + $0x38] sm:$0xff]  ;;  %v266_v8 = vld [vmem:[%s7282_s15 + $0x40] sm:$0xff] }
  0x19   : > { %263 = vst [vmem:[%s7287_s16 + $0x30] sm:$0xff] %v262_v6  ;;  %265 = vst [vmem:[%s7287_s16 + $0x38] sm:$0xff] %v264_v7  ;;  %v268_v9 = vld [vmem:[%s7282_s15 + $0x90] sm:$0xff]  ;;  %v270_v10 = vld [vmem:[%s7282_s15 + $0x98] sm:$0xff] }
  0x1a   : > { %267 = vst [vmem:[%s7287_s16 + $0x40] sm:$0xff] %v266_v8  ;;  %v272_v11 = vld [vmem:[%s7282_s15 + $0xa0] sm:$0xff]  ;;  %269 = vst [vmem:[%s7287_s16 + $0x48] sm:$0xff] %v268_v9  ;;  %v274_v12 = vld [vmem:[%s7282_s15 + $0xa8] sm:$0xff] }
  0x1b   : > { %271 = vst [vmem:[%s7287_s16 + $0x50] sm:$0xff] %v270_v10  ;;  %273 = vst [vmem:[%s7287_s16 + $0x58] sm:$0xff] %v272_v11  ;;  %v276_v13 = vld [vmem:[%s7282_s15 + $0xb0] sm:$0xff]  ;;  %v278_v14 = vld [vmem:[%s7282_s15 + $0xb8] sm:$0xff] }
  0x1c   : > { %275 = vst [vmem:[%s7287_s16 + $0x60] sm:$0xff] %v274_v12  ;;  %277 = vst [vmem:[%s7287_s16 + $0x68] sm:$0xff] %v276_v13  ;;  %v280_v15 = vld [vmem:[%s7282_s15 + $0xc0] sm:$0xff]  ;;  %v282_v16 = vld [vmem:[%s7282_s15 + $0xc8] sm:$0xff] }
  0x1d   : > { %279 = vst [vmem:[%s7287_s16 + $0x70] sm:$0xff] %v278_v14  ;;  %v284_v17 = vld [vmem:[%s7282_s15 + $0xd0] sm:$0xff]  ;;  %281 = vst [vmem:[%s7287_s16 + $0x78] sm:$0xff] %v280_v15 }
  0x1e   : > { %283 = vst [vmem:[%s7287_s16 + $0x80] sm:$0xff] %v282_v16  ;;  %285 = vst [vmem:[%s7287_s16 + $0x88] sm:$0xff] %v284_v17 }
  0x1f PF: > { %p6159_p7 = scmp.ge.s32.totalorder %s7195_s26, 1  ;;  %p290_p8 = scmp.lt.s32.totalorder %s7195_s26, 3 }
  0x21   : > { %p291_p9 = pnand %p6159_p7, %p290_p8 }
  0x23   : > { %294 = sbr.rel (%p291_p9) target bundleno = 1679 (0x68f), region = 67 }
  0x2a   : > { %s297_s17 = sand.u32 1, %s7187_s24   ;;  %vm368_vm0 = vcmask 1040384   ;;  %v12322_v18 = vmov 0.0   ;;  %v349_v19 = vld [vmem:[%s12316_s2] sm:$0xff]  ;;  %v7198_v20 = vmov 0   ;;  %vm7199_vm1 = vmmov 1  }
  0x2b   : > { %s6593_s18 = smul.u32 144, %s297_s17  ;;  %460 = vmatprep.mubr.f32.mxu0 %v12322_v18  ;;  %691 = vmatprep.mubr.f32.mxu1 %v12322_v18  ;;  %vm7332_vm2 = vmpackc.low %vm368_vm0, %vm7199_vm1  ;;  %v350_v22 = vld [vmem:[%s12316_s2 + $0x8] sm:$0xff]  ;;  %v347_v34 = vld [vmem:[%s12315_s1] sm:$0xff]  ;;  %vm361_vm3 = vcmask 72704   ;;  %vm1356_vm0 = vcmask 130048  }
  0x2c   : > { %6624 = vset.pattern.permute.xlu0 %v7198_v20  ;;  %6625 = vset.pattern.permute.xlu1 %v7198_v20  ;;  %v1280_v43 = vld [vmem:[%s12318_s4 + $0x10] sm:$0xff]  ;;  %v348_v46 = vld [vmem:[%s12315_s1 + $0x8] sm:$0xff]  ;;  %v1282_v47 = vld [vmem:[%s12318_s4 + $0x20] sm:$0xff]  ;;  %s6594_s16 = smul.u32 504, %s297_s17 }
  0x2d   : > { %353 = vperm.xlu0 %6624, %v349_v19   ;;  %s7339_s23 = scalar_lea.vmem [#allocation2], %s6593_s18  ;;  %v1284_v53 = vld [vmem:[%s12318_s4 + $0x30] sm:$0xff]  ;;  %v1286_v55 = vld [vmem:[%s12318_s4 + $0x40] sm:$0xff]  ;;  %v5265_v58 = vld [vmem:[%s12320_s6 + $0x8] sm:$0xff]  ;;  %s6292_s24 = smul.u32 (%p7272_p5), 72, %s6154_s27 }
  0x2e   : > { %v330_v23 = vld [vmem:[%s7339_s23 + $0x8] sm:$0xff]  ;;  %v339_v24 = vld [vmem:[%s7339_s23 + $0x50] sm:$0x1]  ;;  %v336_v25 = vld [vmem:[%s7339_s23 + $0x38] sm:$0xff]  ;;  %s12031_s18 = scalar_lea.vmem [#allocation3], %s6594_s16 }
  0x2f   : > { %v6429_v26 = vpack.c.bf16 %v339_v24, %v330_v23  ;;  %v345_v27 = vld [vmem:[%s7339_s23 + $0x80] sm:$0x1]  ;;  %v338_v29 = vld [vmem:[%s7339_s23 + $0x48] sm:$0x1]  ;;  %v335_v32 = vld [vmem:[%s7339_s23 + $0x30] sm:$0xff]  ;;  %s12182_s17 = scalar_lea.vmem (%p7272_p5), %s12321_s7, %s6292_s24 }
  0x30   : > { %v329_v28 = vld [vmem:[%s7339_s23] sm:$0xff]  ;;  %v6447_v30 = vpack.c.bf16 %v345_v27, %v336_v25  ;;  %v344_v33 = vld [vmem:[%s7339_s23 + $0x78] sm:$0x1]  ;;  %v331_v38 = vld [vmem:[%s7339_s23 + $0x10] sm:$0xff] }
  0x31   : > { %v6432_v31 = vpack.c.bf16 %v338_v29, %v329_v28  ;;  %v332_v35 = vld [vmem:[%s7339_s23 + $0x18] sm:$0xff]  ;;  %6431 = vmatprep.subr.msk.bf16.mxu0 %vm7332_vm2, %v6429_v26  ;;  %v6450_v36 = vpack.c.bf16 %v344_v33, %v335_v32  ;;  %v341_v37 = vld [vmem:[%s7339_s23 + $0x60] sm:$0x1]  ;;  %358 = vperm.xlu0 %6624, %v350_v22   ;;  %v334_v41 = vld [vmem:[%s7339_s23 + $0x28] sm:$0xff] }
  0x32   : > { %v340_v39 = vld [vmem:[%s7339_s23 + $0x58] sm:$0x1]  ;;  %6449 = vmatprep.subr.msk.bf16.mxu1 %vm7332_vm2, %v6447_v30  ;;  %v6435_v40 = vpack.c.bf16 %v341_v37, %v332_v35  ;;  %v343_v42 = vld [vmem:[%s7339_s23 + $0x70] sm:$0x1]  ;;  %v333_v48 = vld [vmem:[%s7339_s23 + $0x20] sm:$0xff] }
  0x33   : > { %6434 = vmatpush1.bf16.msk.msra.mxu0 %vm7332_vm2, %v6432_v31  ;;  %6452 = vmatpush1.bf16.msk.msra.mxu1 %vm7332_vm2, %v6450_v36  ;;  %v6438_v44 = vpack.c.bf16 %v340_v39, %v331_v38  ;;  %v6441_v45 = vpack.c.bf16 %v343_v42, %v334_v41  ;;  %v342_v49 = vld [vmem:[%s7339_s23 + $0x68] sm:$0x1]  ;;  %v337_v50 = vld [vmem:[%s7339_s23 + $0x40] sm:$0xff] }
  0x34   : > { %6437 = vmatprep.subr.msk.bf16.mxu0 %vm7332_vm2, %v6435_v40  ;;  %v346_v51 = vld [vmem:[%s7339_s23 + $0x88] sm:$0x1]  ;;  %v6444_v52 = vpack.c.bf16 %v342_v49, %v333_v48  ;;  %v1288_v56 = vld [vmem:[%s12318_s4 + $0x50] sm:$0xff]  ;;  %v1290_v57 = vld [vmem:[%s12318_s4 + $0x60] sm:$0x3] }
  0x35   : > { %1303 = vperm.xlu0 %6624, %v1280_v43   ;;  %v6453_v54 = vpack.c.bf16 %v346_v51, %v337_v50  ;;  %v5267_v59 = vld [vmem:[%s12320_s6 + $0x18] sm:$0xff]  ;;  %v5269_v60 = vld [vmem:[%s12320_s6 + $0x28] sm:$0xff] }
  0x36   : > { %6162 = vmatmul.mubr.msk.f32.vlgmr.msra.gmra.mrb[0].mxu0 %vm361_vm3, %v347_v34  ;;  %6174 = vmatmul.mubr.msk.f32.vlgmr.msra.gmra.mrb[0].mxu1 %vm361_vm3, %v347_v34 }
  0x37   : > { %466 = vmatprep.mubr.f32.mxu0 %v12322_v18  ;;  %697 = vmatprep.mubr.f32.mxu1 %v12322_v18 }
  0x38   : > { %6440 = vmatpush1.bf16.msk.msra.mxu0 %vm7332_vm2, %v6438_v44 }
  0x39   : > { %6443 = vmatprep.subr.msk.bf16.mxu0 %vm7332_vm2, %v6441_v45  ;;  %1313 = vperm.xlu0 %6624, %v1282_v47  }
  0x3a   : > { %6163 = vmatmul.mubr.msk.f32.gmra.mrb[2].mxu0 %vm361_vm3, %v348_v46  ;;  %6175 = vmatmul.mubr.msk.f32.gmra.mrb[2].mxu1 %vm361_vm3, %v348_v46 }
  0x3b   : > { %537 = vmatprep.mubr.f32.mxu0 %v12322_v18  ;;  %1460 = vmatprep.mubr.f32.mxu1 %v12322_v18 }
  0x3d   : > { %1323 = vperm.xlu0 %6624, %v1284_v53  }
  0x3e   : > { %6166 = vmatmul.mubr.msk.f32.vlgmr.msra.gmra.mrb[4].mxu0 %vm361_vm3, %v347_v34 }
  0x3f   : > { %543 = vmatprep.mubr.f32.mxu0 %v12322_v18  ;;  %6446 = vmatpush1.bf16.msk.msra.mxu0 %vm7332_vm2, %v6444_v52 }
  0x40   : > { %6455 = vmatprep.subr.msk.bf16.mxu0 %vm7332_vm2, %v6453_v54 }
  0x41   : > { %1333 = vperm.xlu0 %6624, %v1286_v55  }
  0x42   : > { %6167 = vmatmul.mubr.msk.f32.gmra.mrb[6].mxu0 %vm361_vm3, %v348_v46 }
  0x43   : > { %614 = vmatprep.mubr.f32.mxu0 %v12322_v18 }
  0x45   : > { %1343 = vperm.xlu0 %6624, %v1288_v56  }
  0x46   : > { %6170 = vmatmul.mubr.msk.f32.vlgmr.msra.gmra.mrb[8].mxu0 %vm361_vm3, %v347_v34 }
  0x47   : > { %620 = vmatprep.mubr.f32.mxu0 %v12322_v18  ;;  %6458 = vmatpush3.bf16.msk.msra.mxu0 %vm7332_vm2, %v6453_v54 }
  0x49   : > { %1353 = vperm.xlu0 %6624, %v1290_v57  }
  0x4a   : > { %6171 = vmatmul.mubr.msk.f32.gmra.mrb[10].mxu0 %vm361_vm3, %v348_v46 }
  0x4b   : > { %6336 = vmatprep.mubr.msk.f32.mxu0 %vm361_vm3, %v347_v34 }
  0x4d   : > { %5278 = vperm.xlu0 %6624, %v5265_v58  }
  0x4e   : > { %6337 = vmatmul.mubr.msk.f32.vlgmr.msra.gmra.mrb[12].mxu0 %vm361_vm3, %v348_v46 }
  0x4f   : > { %1603 = vmatprep.mubr.f32.mxu0 %v12322_v18 }
  0x51   : > { %5288 = vperm.xlu0 %6624, %v5267_v59  }
  0x55   : > { %5298 = vperm.xlu0 %6624, %v5269_v60  }
  0xac   : > { %v7430_v61 = vpop.permute.xlu0 %353 }
  0xb0   : > { %v7452_v27 = vpop.permute.xlu0 %358 }
 0x109   : > { %v462_v62 = vpop.f32.mrb[0].mxu0  ;;  %v693_v0 = vpop.f32.mrb[0].mxu1 }
 0x10a   : > { %v463_v63 = vadd.f32 %v462_v62, %v7430_v61  ;;  %v464_v1 = vpop.f32.mrb[1].mxu0  ;;  %v694_v2 = vadd.f32 %v693_v0, %v7430_v61  ;;  %v695_v4 = vpop.f32.mrb[1].mxu1 }
 0x10b   : > { %v465_v3 = vadd.f32 %v464_v1, %v7430_v61  ;;  %v696_v6 = vadd.f32 %v695_v4, %v7430_v61 }
 0x10c   : > { %v7435_v5 = vmul.f32 0.70710677, %v463_v63  ;;  %v7438_v7 = vmul.f32 0.70710677, %v694_v2  ;;  %v7476_v40 = vmul.f32 0.5, %v463_v63  ;;  %v7484_v46 = vmul.f32 0.5, %v694_v2 }
 0x10d   : > { %v7440_v8 = vmul.f32 0.70710677, %v465_v3  ;;  %v7443_v10 = vmul.f32 0.70710677, %v696_v6  ;;  %v468_v15 = vpop.f32.mrb[2].mxu0  ;;  %v699_v19 = vpop.f32.mrb[2].mxu1 }
 0x10e   : > { %v815_v9 = vand.u32 2147483647, %v7435_v5  ;;  %v821_v11 = vand.u32 2147483647, %v7438_v7  ;;  %v470_v20 = vpop.f32.mrb[3].mxu0  ;;  %v701_v23 = vpop.f32.mrb[3].mxu1  ;;  %v7455_v29 = vadd.f32 %v468_v15, %v7452_v27  ;;  %v7460_v33 = vadd.f32 %v699_v19, %v7452_v27 }
 0x10f   : > { %v816_v12 = vand.u32 2147483647, %v7440_v8  ;;  %v822_v14 = vand.u32 2147483647, %v7443_v10  ;;  %v7463_v34 = vadd.f32 %v470_v20, %v7452_v27  ;;  %v7474_v39 = vadd.f32 %v701_v23, %v7452_v27 }
 0x110   : > { %v833_v13 = vmul.f32 0.3275911, %v815_v9  ;;  %v839_v16 = vmul.f32 0.3275911, %v821_v11  ;;  %v1067_v31 = vmul.f32 %v815_v9, %v815_v9  ;;  %v1073_v36 = vmul.f32 %v821_v11, %v821_v11 }
 0x111   : > { %v834_v17 = vmul.f32 0.3275911, %v816_v12  ;;  %v840_v22 = vmul.f32 0.3275911, %v822_v14  ;;  %v7448_v24 = vpop.f32.mrb[4].mxu0  ;;  %v1068_v41 = vmul.f32 %v816_v12, %v816_v12  ;;  %v7489_v50 = vmul.f32 0.5, %v465_v3 }
 0x112   : > { %v851_v21 = vadd.f32 1.0, %v833_v13  ;;  %v857_v25 = vadd.f32 1.0, %v839_v16  ;;  %v7450_v26 = vpop.f32.mrb[5].mxu0  ;;  %v7468_v37 = vmul.f32 0.70710677, %v7455_v29  ;;  %v1085_v45 = vsub.f32 0.0, %v1067_v31 }
 0x113   : > { %v852_v28 = vadd.f32 1.0, %v834_v17  ;;  %v858_v32 = vadd.f32 1.0, %v840_v22  ;;  %v7471_v38 = vmul.f32 0.70710677, %v7460_v33  ;;  %v7480_v43 = vmul.f32 0.70710677, %v7463_v34 }
 0x114   : > { %6626 = vrcp.f32 %v851_v21  ;;  %v824_v42 = vand.u32 2147483647, %v7468_v37  ;;  %v1091_v49 = vsub.f32 0.0, %v1073_v36  ;;  %v7492_v53 = vmul.f32 0.5, %v696_v6 }
 0x115   : > { %6628 = vrcp.f32 %v857_v25  ;;  %v7457_v30 = vpop.f32.mrb[6].mxu0  ;;  %v830_v47 = vand.u32 2147483647, %v7471_v38  ;;  %v825_v52 = vand.u32 2147483647, %v7480_v43  ;;  %v1086_v57 = vsub.f32 0.0, %v1068_v41 }
 0x116   : > { %v7465_v35 = vpop.f32.mrb[7].mxu0  ;;  %6630 = vrcp.f32 %v852_v28  ;;  %v842_v51 = vmul.f32 0.3275911, %v824_v42  ;;  %v1076_v54 = vmul.f32 %v824_v42, %v824_v42  ;;  %v7495_v56 = vmul.f32 0.70710677, %v7474_v39 }
 0x117   : > { %6632 = vrcp.f32 %v858_v32  ;;  %v848_v55 = vmul.f32 0.3275911, %v830_v47  ;;  %v1074_v58 = vmul.f32 %v822_v14, %v822_v14  ;;  %v843_v60 = vmul.f32 0.3275911, %v825_v52 }
 0x118   : > { %v860_v59 = vadd.f32 1.0, %v842_v51  ;;  %v1103_v0 = vmul.f32 1.442695, %v1085_v45  ;;  %v831_v2 = vand.u32 2147483647, %v7495_v56  ;;  %v1094_v13 = vsub.f32 0.0, %v1076_v54 }
 0x119   : > { %v7482_v44 = vpop.f32.mrb[8].mxu0  ;;  %v866_v1 = vadd.f32 1.0, %v848_v55  ;;  %v1115_v9 = vmul.f32 1.442695, %v1091_v49  ;;  %v861_v11 = vadd.f32 1.0, %v843_v60  ;;  %v1082_v14 = vmul.f32 %v830_v47, %v830_v47 }
 0x11a   : > { %v7487_v48 = vpop.f32.mrb[9].mxu0  ;;  %6634 = vrcp.f32 %v860_v59  ;;  %v1092_v16 = vsub.f32 0.0, %v1074_v58  ;;  %v849_v17 = vmul.f32 0.3275911, %v831_v2  ;;  %v1105_v22 = vmul.f32 1.442695, %v1086_v57 }
 0x11b   : > { %6636 = vrcp.f32 %v866_v1  ;;  %v7514_v23 = vadd.f32 %v7448_v24, %v7430_v61  ;;  %v1121_v42 = vmul.f32 1.442695, %v1094_v13  ;;  %v1100_v45 = vsub.f32 0.0, %v1082_v14 }
 0x11c   : > { %6638 = vpow2.f32 %v1103_v0  ;;  %v867_v32 = vadd.f32 1.0, %v849_v17  ;;  %v7523_v47 = vmul.f32 %v825_v52, %v825_v52  ;;  %v1117_v55 = vmul.f32 1.442695, %v1092_v16 }
 0x11d   : > { %v7497_v62 = vpop.f32.mrb[10].mxu0  ;;  %6640 = vrcp.f32 %v861_v11  ;;  %v7527_v57 = vmul.f32 0.70710677, %v7514_v23  ;;  %v1133_v0 = vmul.f32 1.442695, %v1100_v45  ;;  %v1083_v17 = vmul.f32 %v831_v2, %v831_v2 }
 0x11e   : > { %v7499_v63 = vpop.eup %6626  ;;  %v7502_v3 = vpop.f32.mrb[11].mxu0  ;;  %6642 = vrcp.f32 %v867_v32  ;;  %v1095_v1 = vsub.f32 0.0, %v7523_v47  ;;  %vm1175_vm4 = vcmp.ge.f32.partialorder %v7435_v5, 0.0  ;;  %vm1181_vm5 = vcmp.ge.f32.partialorder %v7438_v7, 0.0 }
 0x11f   : > { %v7504_v4 = vpop.eup %6628  ;;  %v905_v6 = vmul.f32 1.0614054, %v7499_v63  ;;  %6644 = vpow2.f32 %v1115_v9  ;;  %vm1184_vm6 = vcmp.ge.f32.partialorder %v7468_v37, 0.0  ;;  %vm1190_vm7 = vcmp.ge.f32.partialorder %v7471_v38, 0.0 }
 0x120   : > { %v911_v12 = vmul.f32 1.0614054, %v7504_v4  ;;  %v7510_v20 = vpop.eup %6630  ;;  %6646 = vpow2.f32 %v1105_v22  ;;  %v7600_v5 = vadd.f32 %v7457_v30, %v7452_v27  ;;  %vm1176_vm8 = vcmp.ge.f32.partialorder %v7440_v8, 0.0 }
 0x121   : > { %v923_v15 = vadd.f32 -1.4531521, %v905_v6  ;;  %v7508_v19 = vpop.f32.mrb[12].mxu0  ;;  %v906_v31 = vmul.f32 1.0614054, %v7510_v20  ;;  %v7520_v36 = vpop.eup %6632  ;;  %6648 = vpow2.f32 %v1121_v42  ;;  %vm1182_vm9 = vcmp.ge.f32.partialorder %v7443_v10, 0.0 }
 0x122   : > { %v929_v21 = vadd.f32 -1.4531521, %v911_v12  ;;  %v7516_v25 = vpop.f32.mrb[13].mxu0  ;;  %v912_v24 = vmul.f32 1.0614054, %v7520_v36  ;;  %6650 = vpow2.f32 %v1133_v0  ;;  %vm1185_vm10 = vcmp.ge.f32.partialorder %v7480_v43, 0.0 }
 0x123   : > { %v941_v28 = vmul.f32 %v7499_v63, %v923_v15  ;;  %v924_v51 = vadd.f32 -1.4531521, %v906_v31  ;;  %v7534_v6 = vand.u32 2147483647, %v7527_v57  ;;  %vm1191_vm11 = vcmp.ge.f32.partialorder %v7495_v56, 0.0  ;;  %v1278_v10 = vld [vmem:[%s12318_s4] sm:$0xff] }
 0x124   : > { %v947_v41 = vmul.f32 %v7504_v4, %v929_v21  ;;  %v930_v60 = vadd.f32 -1.4531521, %v912_v24  ;;  %v7536_v11 = vpop.eup %6634  ;;  %1293 = vperm.xlu1 %6625, %v1278_v10   ;;  %vm1177_vm12 = vcmp.ge.f32.partialorder %v7527_v57, 0.0 }
 0x125   : > { %v959_v49 = vadd.f32 1.4214138, %v941_v28  ;;  %v942_v59 = vmul.f32 %v7510_v20, %v924_v51  ;;  %v7539_v14 = vpop.eup %6636  ;;  %v914_v16 = vmul.f32 1.0614054, %v7536_v11  ;;  %v835_v21 = vmul.f32 0.3275911, %v7534_v6 }
 0x126   : > { %v965_v54 = vadd.f32 1.4214138, %v947_v41  ;;  %v948_v13 = vmul.f32 %v7520_v36, %v930_v60  ;;  %v920_v32 = vmul.f32 1.0614054, %v7539_v14  ;;  %v6639_v41 = vpop.eup %6638 }
 0x127   : > { %v977_v58 = vmul.f32 %v7499_v63, %v959_v49  ;;  %v960_v12 = vadd.f32 1.4214138, %v942_v59  ;;  %v932_v47 = vadd.f32 -1.4531521, %v914_v16  ;;  %v853_v42 = vadd.f32 1.0, %v835_v21  ;;  %v7547_v49 = vpop.eup %6640 }
 0x128   : > { %v983_v52 = vmul.f32 %v7504_v4, %v965_v54  ;;  %v966_v31 = vadd.f32 1.4214138, %v948_v13  ;;  %v938_v54 = vadd.f32 -1.4531521, %v920_v32  ;;  %v915_v60 = vmul.f32 1.0614054, %v7547_v49 }
 0x129   : > { %v995_v9 = vadd.f32 -0.28449672, %v977_v58  ;;  %v978_v28 = vmul.f32 %v7510_v20, %v960_v12  ;;  %v950_v59 = vmul.f32 %v7536_v11, %v932_v47  ;;  %6652 = vrcp.f32 %v853_v42 }
 0x12a   : > { %v1001_v15 = vadd.f32 -0.28449672, %v983_v52  ;;  %v984_v2 = vmul.f32 %v7520_v36, %v966_v31  ;;  %v7552_v52 = vpop.eup %6642  ;;  %v956_v13 = vmul.f32 %v7539_v14, %v938_v54  ;;  %6654 = vpow2.f32 %v1117_v55 }
 0x12b   : > { %v1013_v22 = vmul.f32 %v7499_v63, %v995_v9  ;;  %v996_v24 = vadd.f32 -0.28449672, %v978_v28  ;;  %v968_v21 = vadd.f32 1.4214138, %v950_v59  ;;  %v921_v28 = vmul.f32 1.0614054, %v7552_v52 }
 0x12c   : > { %v1019_v45 = vmul.f32 %v7504_v4, %v1001_v15  ;;  %v1002_v12 = vadd.f32 -0.28449672, %v984_v2  ;;  %v6645_v15 = vpop.eup %6644  ;;  %v974_v42 = vadd.f32 1.4214138, %v956_v13  ;;  %v1123_v54 = vmul.f32 1.442695, %v1095_v1 }
 0x12d   : > { %v1031_v51 = vadd.f32 0.2548296, %v1013_v22  ;;  %v1014_v0 = vmul.f32 %v7510_v20, %v996_v24  ;;  %v933_v22 = vadd.f32 -1.4531521, %v915_v60  ;;  %v6647_v31 = vpop.eup %6646  ;;  %v939_v24 = vadd.f32 -1.4531521, %v921_v28 }
 0x12e   : > { %v1037_v58 = vadd.f32 0.2548296, %v1019_v45  ;;  %v1020_v47 = vmul.f32 %v7520_v36, %v1002_v12  ;;  %v6649_v2 = vpop.eup %6648  ;;  %v7568_v13 = vmul.f32 0.5, %v7455_v29  ;;  %6656 = vpow2.f32 %v1123_v54 }
 0x12f   : > { %v1049_v9 = vmul.f32 %v7499_v63, %v1031_v51  ;;  %v1032_v45 = vadd.f32 0.2548296, %v1014_v0  ;;  %v986_v63 = vmul.f32 %v7536_v11, %v968_v21  ;;  %v951_v51 = vmul.f32 %v7547_v49, %v933_v22 }
 0x130   : > { %v1055_v16 = vmul.f32 %v7504_v4, %v1037_v58  ;;  %v992_v4 = vmul.f32 %v7539_v14, %v974_v42  ;;  %v1101_v58 = vsub.f32 0.0, %v1083_v17  ;;  %v1038_v55 = vadd.f32 0.2548296, %v1020_v47 }
 0x131   : > { %v1139_v32 = vmul.f32 %v6639_v41, %v1049_v9  ;;  %v1004_v41 = vadd.f32 -0.28449672, %v986_v63  ;;  %v969_v60 = vadd.f32 1.4214138, %v951_v51  ;;  %v957_v9 = vmul.f32 %v7552_v52, %v939_v24 }
 0x132   : > { %v1145_v18 = vmul.f32 %v6645_v15, %v1055_v16  ;;  %v1050_v12 = vmul.f32 %v7510_v20, %v1032_v45  ;;  %v1010_v15 = vadd.f32 -0.28449672, %v992_v4  ;;  %v6651_v16 = vpop.eup %6650  ;;  %v1135_v28 = vmul.f32 1.442695, %v1101_v58 }
 0x133   : > { %v1157_v59 = vsub.f32 1.0, %v1139_v32  ;;  %v1022_v21 = vmul.f32 %v7536_v11, %v1004_v41  ;;  %v987_v1 = vmul.f32 %v7547_v49, %v969_v60  ;;  %v975_v17 = vadd.f32 1.4214138, %v957_v9  ;;  %v7575_v32 = vpop.eup %6652 }
 0x134   : > { %v1163_v0 = vsub.f32 1.0, %v1145_v18  ;;  %v1028_v22 = vmul.f32 %v7539_v14, %v1010_v15  ;;  %v1069_v18 = vmul.f32 %v7534_v6, %v7534_v6  ;;  %v794_v45 = vmul.f32 0.5, %v7460_v33  ;;  %v6655_v9 = vpop.eup %6654 }
 0x135   : > { %v1193_v20 = vsub.f32 0.0, %v1157_v59  ;;  %v1040_v29 = vadd.f32 0.2548296, %v1022_v21  ;;  %v1005_v42 = vadd.f32 -0.28449672, %v987_v1  ;;  %v7578_v63 = vmul.f32 %v6647_v31, %v1050_v12 }
 0x136   : > { %v1199_v47 = vsub.f32 0.0, %v1163_v0  ;;  %v1046_v51 = vadd.f32 0.2548296, %v1028_v22  ;;  %v1056_v24 = vmul.f32 %v7520_v36, %v1038_v55  ;;  %v993_v54 = vmul.f32 %v7552_v52, %v975_v17 }
 0x137   : > { %v1058_v4 = vmul.f32 %v7536_v11, %v1040_v29  ;;  %v1023_v6 = vmul.f32 %v7547_v49, %v1005_v42  ;;  %6658 = vpow2.f32 %v1135_v28  ;;  %v1087_v33 = vsub.f32 0.0, %v1069_v18 }
 0x138   : > { %v1064_v58 = vmul.f32 %v7539_v14, %v1046_v51  ;;  %v7589_v31 = vadd.f32 %v7450_v26, %v7430_v61  ;;  %v1211_v41 = vsel %vm1175_vm4, %v1157_v59, %v1193_v20  ;;  %v1011_v11 = vadd.f32 -0.28449672, %v993_v54  ;;  %v6657_v18 = vpop.eup %6656 }
 0x139   : > { %v1148_v36 = vmul.f32 %v6649_v2, %v1058_v4  ;;  %v1041_v60 = vadd.f32 0.2548296, %v1023_v6  ;;  %v1217_v12 = vsel %vm1181_vm5, %v1163_v0, %v1199_v47  ;;  %v1158_v15 = vsub.f32 1.0, %v7578_v63 }
 0x13a   : > { %v1154_v55 = vmul.f32 %v6651_v16, %v1064_v58  ;;  %v907_v14 = vmul.f32 1.0614054, %v7575_v32  ;;  %v1146_v21 = vmul.f32 %v6655_v9, %v1056_v24  ;;  %v1229_v2 = vadd.f32 1.0, %v1211_v41 }
 0x13b   : > { %v1166_v1 = vsub.f32 1.0, %v1148_v36  ;;  %v1059_v26 = vmul.f32 %v7547_v49, %v1041_v60  ;;  %v1029_v17 = vmul.f32 %v7552_v52, %v1011_v11  ;;  %v1235_v7 = vadd.f32 1.0, %v1217_v12 }
 0x13c   : > { %v1172_v59 = vsub.f32 1.0, %v1154_v55  ;;  %v925_v22 = vadd.f32 -1.4531521, %v907_v14  ;;  %v1107_v16 = vmul.f32 1.442695, %v1087_v33  ;;  %v1194_v20 = vsub.f32 0.0, %v1158_v15 }
 0x13d   : > { %v1202_v0 = vsub.f32 0.0, %v1166_v1  ;;  %v7605_v28 = vmul.f32 0.70710677, %v7589_v31  ;;  %v1047_v29 = vadd.f32 0.2548296, %v1029_v17  ;;  %v1164_v42 = vsub.f32 1.0, %v1146_v21 }
 0x13e   : > { %v1208_v49 = vsub.f32 0.0, %v1172_v59  ;;  %v943_v30 = vmul.f32 %v7575_v32, %v925_v22  ;;  %v1149_v63 = vmul.f32 %v6657_v18, %v1059_v26  ;;  %v7612_v24 = vmul.f32 %v1229_v2, %v7476_v40 }
 0x13f   : > { %v1220_v47 = vsel %vm1184_vm6, %v1166_v1, %v1202_v0  ;;  %v818_v51 = vand.u32 2147483647, %v7605_v28  ;;  %v1065_v33 = vmul.f32 %v7552_v52, %v1047_v29  ;;  %6660 = vpow2.f32 %v1107_v16 }
 0x140   : > { %v1238_v4 = vadd.f32 1.0, %v1220_v47  ;;  %v1226_v6 = vsel %vm1190_vm7, %v1172_v59, %v1208_v49  ;;  %v961_v54 = vadd.f32 1.4214138, %v943_v30  ;;  %v7618_v37 = vmul.f32 %v1235_v7, %v7484_v46 }
 0x141   : > { %v1244_v58 = vadd.f32 1.0, %v1226_v6  ;;  %v836_v41 = vmul.f32 0.3275911, %v818_v51  ;;  %v6659_v36 = vpop.eup %6658  ;;  %v7625_v11 = vmul.f32 0.70710677, %v7600_v5  ;;  %v1167_v9 = vsub.f32 1.0, %v1149_v63 }
 0x142   : > { %v7621_v60 = vmul.f32 %v1238_v4, %v7568_v13  ;;  %v979_v40 = vmul.f32 %v7575_v32, %v961_v54  ;;  %v1070_v55 = vmul.f32 %v818_v51, %v818_v51  ;;  %v1200_v52 = vsub.f32 0.0, %v1164_v42 }
 0x143   : > { %v7627_v38 = vmul.f32 %v1244_v58, %v794_v45  ;;  %v854_v12 = vadd.f32 1.0, %v836_v41  ;;  %v1155_v21 = vmul.f32 %v6659_v36, %v1065_v33  ;;  %v826_v1 = vand.u32 2147483647, %v7625_v11  ;;  %v1279_v58 = vld [vmem:[%s12318_s4 + $0x8] sm:$0xff] }
 0x144   : > { %v6461_v46 = vpack.c.bf16 %v7621_v60, %v7612_v24  ;;  %v997_v14 = vadd.f32 -0.28449672, %v979_v40  ;;  %v1212_v45 = vsel %vm1176_vm8, %v1158_v15, %v1194_v20  ;;  %v789_v26 = vmul.f32 0.5, %v7463_v34  ;;  %1298 = vperm.xlu1 %6625, %v1279_v58   ;;  %v1289_v60 = vld [vmem:[%s12318_s4 + $0x58] sm:$0xff] }
 0x145   : > { %v6473_v13 = vpack.c.bf16 %v7627_v38, %v7618_v37  ;;  %6662 = vrcp.f32 %v854_v12  ;;  %v7639_v2 = vmul.f32 0.5, %v7474_v39  ;;  %v1203_v17 = vsub.f32 0.0, %v1167_v9  ;;  %v7901_v37 = vld [vmem:[%s12317_s3 + $0x20] sm:$0xff] }
 0x146   : > { %v1015_v59 = vmul.f32 %v7575_v32, %v997_v14  ;;  %v1088_v22 = vsub.f32 0.0, %v1070_v55  ;;  %v844_v7 = vmul.f32 0.3275911, %v826_v1  ;;  %v548_v0 = vadd.f32 %v7465_v35, %v7452_v27 }
 0x147   : > { %v1218_v16 = vsel %vm1182_vm9, %v1164_v42, %v1200_v52  ;;  %v7649_v34 = vadd.f32 %v7482_v44, %v7430_v61  ;;  %v1173_v39 = vsub.f32 1.0, %v1155_v21  ;;  %v7654_v18 = vadd.f32 %v7487_v48, %v7430_v61 }
 0x148   : > { %v1033_v8 = vadd.f32 0.2548296, %v1015_v59  ;;  %v862_v15 = vadd.f32 1.0, %v844_v7  ;;  %v1230_v35 = vadd.f32 1.0, %v1212_v45  ;;  %v7660_v20 = vmul.f32 0.70710677, %v548_v0 }
 0x149   : > { %v7663_v44 = vmul.f32 0.70710677, %v7649_v34  ;;  %v6661_v49 = vpop.eup %6660  ;;  %v1236_v29 = vadd.f32 1.0, %v1218_v16  ;;  %v1221_v30 = vsel %vm1185_vm10, %v1167_v9, %v1203_v17  ;;  %v1109_v42 = vmul.f32 1.442695, %v1088_v22 }
 0x14a   : > { %v1051_v43 = vmul.f32 %v7575_v32, %v1033_v8  ;;  %6664 = vrcp.f32 %v862_v15  ;;  %v7666_v48 = vmul.f32 0.5, %v7514_v23  ;;  %v827_v63 = vand.u32 2147483647, %v7660_v20 }
 0x14b   : > { %v819_v51 = vand.u32 2147483647, %v7663_v44  ;;  %v1209_v32 = vsub.f32 0.0, %v1173_v39  ;;  %v7671_v4 = vmul.f32 0.5, %v7589_v31  ;;  %v1078_v6 = vmul.f32 %v826_v1, %v826_v1 }
 0x14c   : > { %v1141_v47 = vmul.f32 %v6661_v49, %v1051_v43  ;;  %v7674_v54 = vmul.f32 0.70710677, %v7654_v18  ;;  %v7680_v23 = vmul.f32 %v1230_v35, %v7489_v50  ;;  %v1239_v33 = vadd.f32 1.0, %v1221_v30  ;;  %v1281_v49 = vld [vmem:[%s12318_s4 + $0x18] sm:$0xff] }
 0x14d   : > { %v845_v41 = vmul.f32 0.3275911, %v827_v63  ;;  %v837_v36 = vmul.f32 0.3275911, %v819_v51  ;;  %v7686_v31 = vmul.f32 %v1236_v29, %v7492_v53  ;;  %6666 = vpow2.f32 %v1109_v42  ;;  %1308 = vperm.xlu1 %6625, %v1281_v49  }
 0x14e   : > { %v1159_v9 = vsub.f32 1.0, %v1141_v47  ;;  %v820_v12 = vand.u32 2147483647, %v7674_v54  ;;  %v1079_v50 = vmul.f32 %v827_v63, %v827_v63  ;;  %v7692_v14 = vadd.f32 %v7497_v62, %v7452_v27 }
 0x14f   : > { %v7683_v40 = vpop.eup %6662  ;;  %v863_v52 = vadd.f32 1.0, %v845_v41  ;;  %v1227_v21 = vsel %vm1191_vm11, %v1173_v39, %v1209_v32  ;;  %v1096_v1 = vsub.f32 0.0, %v1078_v6  ;;  %v855_v45 = vadd.f32 1.0, %v837_v36 }
 0x150   : > { %v908_v55 = vmul.f32 1.0614054, %v7683_v40  ;;  %v838_v59 = vmul.f32 0.3275911, %v820_v12  ;;  %v7696_v53 = vmul.f32 %v1239_v33, %v789_v26  ;;  %v7699_v22 = vmul.f32 0.5, %v7600_v5 }
 0x151   : > { %6668 = vrcp.f32 %v863_v52  ;;  %v1195_v7 = vsub.f32 0.0, %v1159_v9  ;;  %v1071_v16 = vmul.f32 %v819_v51, %v819_v51  ;;  %v1245_v15 = vadd.f32 1.0, %v1227_v21 }
 0x152   : > { %v926_v17 = vadd.f32 -1.4531521, %v908_v55  ;;  %6670 = vrcp.f32 %v855_v45  ;;  %v856_v8 = vadd.f32 1.0, %v838_v59  ;;  %v1097_v10 = vsub.f32 0.0, %v1079_v50 }
 0x153   : > { %v7703_v56 = vmul.f32 0.70710677, %v7692_v14  ;;  %v1125_v26 = vmul.f32 1.442695, %v1096_v1  ;;  %v7707_v35 = vmul.f32 0.5, %v548_v0  ;;  %v1072_v43 = vmul.f32 %v820_v12, %v820_v12 }
 0x154   : > { %v944_v62 = vmul.f32 %v7683_v40, %v926_v17  ;;  %v7705_v39 = vpop.eup %6664  ;;  %v7711_v5 = vadd.f32 %v7502_v3, %v7452_v27  ;;  %6672 = vrcp.f32 %v856_v8  ;;  %v7719_v42 = vadd.f32 %v7508_v19, %v7452_v27 }
 0x155   : > { %v916_v30 = vmul.f32 1.0614054, %v7705_v39  ;;  %v1213_v0 = vsel %vm1177_vm12, %v1159_v9, %v1195_v7  ;;  %v1089_v47 = vsub.f32 0.0, %v1071_v16  ;;  %v828_v3 = vand.u32 2147483647, %v7703_v56 }
 0x156   : > { %v962_v29 = vadd.f32 1.4214138, %v944_v62  ;;  %v7725_v63 = vmul.f32 0.70710677, %v7711_v5  ;;  %v7728_v51 = vmul.f32 %v1245_v15, %v7639_v2  ;;  %v1127_v58 = vmul.f32 1.442695, %v1097_v10 }
 0x157   : > { %v934_v6 = vadd.f32 -1.4531521, %v916_v30  ;;  %v6667_v33 = vpop.eup %6666  ;;  %6674 = vpow2.f32 %v1125_v26  ;;  %v1090_v27 = vsub.f32 0.0, %v1072_v43  ;;  %v846_v19 = vmul.f32 0.3275911, %v828_v3  ;;  %v1283_v15 = vld [vmem:[%s12318_s4 + $0x28] sm:$0xff] }
 0x158   : > { %v980_v32 = vmul.f32 %v7683_v40, %v962_v29  ;;  %v829_v57 = vand.u32 2147483647, %v7725_v63  ;;  %v1231_v41 = vadd.f32 1.0, %v1213_v0  ;;  %v7734_v12 = vmul.f32 0.70710677, %v7719_v42  ;;  %1318 = vperm.xlu1 %6625, %v1283_v15  }
 0x159   : > { %v952_v9 = vmul.f32 %v7705_v39, %v934_v6  ;;  %v1111_v55 = vmul.f32 1.442695, %v1089_v47  ;;  %v864_v2 = vadd.f32 1.0, %v846_v19  ;;  %v1080_v52 = vmul.f32 %v828_v3, %v828_v3 }
 0x15a   : > { %v998_v36 = vadd.f32 -0.28449672, %v980_v32  ;;  %v847_v50 = vmul.f32 0.3275911, %v829_v57  ;;  %6676 = vpow2.f32 %v1127_v58  ;;  %v832_v59 = vand.u32 2147483647, %v7734_v12 }
 0x15b   : > { %v7736_v21 = vpop.eup %6668  ;;  %v970_v45 = vadd.f32 1.4214138, %v952_v9  ;;  %v1113_v16 = vmul.f32 1.442695, %v1090_v27  ;;  %6678 = vrcp.f32 %v864_v2  ;;  %v1081_v43 = vmul.f32 %v829_v57, %v829_v57 }
 0x15c   : > { %v1016_v1 = vmul.f32 %v7683_v40, %v998_v36  ;;  %v7740_v17 = vpop.eup %6670  ;;  %v917_v7 = vmul.f32 1.0614054, %v7736_v21  ;;  %v865_v8 = vadd.f32 1.0, %v847_v50  ;;  %v7749_v49 = vmul.f32 %v1231_v41, %v7666_v48 }
 0x15d   : > { %v988_v10 = vmul.f32 %v7705_v39, %v970_v45  ;;  %v909_v26 = vmul.f32 1.0614054, %v7740_v17  ;;  %v1098_v30 = vsub.f32 0.0, %v1080_v52  ;;  %v850_v0 = vmul.f32 0.3275911, %v832_v59 }
 0x15e   : > { %v1034_v62 = vadd.f32 0.2548296, %v1016_v1  ;;  %v935_v29 = vadd.f32 -1.4531521, %v917_v7  ;;  %v7751_v47 = vpop.eup %6672  ;;  %6680 = vrcp.f32 %v865_v8  ;;  %v7758_v57 = vadd.f32 %v7516_v25, %v7430_v61  ;;  %v1285_v61 = vld [vmem:[%s12318_s4 + $0x38] sm:$0xff] }
 0x15f   : > { %v1006_v32 = vadd.f32 -0.28449672, %v988_v10  ;;  %v927_v6 = vadd.f32 -1.4531521, %v909_v26  ;;  %v910_v27 = vmul.f32 1.0614054, %v7751_v47  ;;  %6682 = vpow2.f32 %v1111_v55  ;;  %1328 = vperm.xlu1 %6625, %v1285_v61  }
 0x160   : > { %v1052_v3 = vmul.f32 %v7683_v40, %v1034_v62  ;;  %v953_v58 = vmul.f32 %v7736_v21, %v935_v29  ;;  %v868_v19 = vadd.f32 1.0, %v850_v0  ;;  %v1099_v9 = vsub.f32 0.0, %v1081_v43 }
 0x161   : > { %v1024_v41 = vmul.f32 %v7705_v39, %v1006_v32  ;;  %v945_v36 = vmul.f32 %v7740_v17, %v927_v6  ;;  %v6675_v2 = vpop.eup %6674  ;;  %v928_v52 = vadd.f32 -1.4531521, %v910_v27  ;;  %v1129_v50 = vmul.f32 1.442695, %v1098_v30 }
 0x162   : > { %v1142_v48 = vmul.f32 %v6667_v33, %v1052_v3  ;;  %v971_v40 = vadd.f32 1.4214138, %v953_v58  ;;  %vm1178_vm13 = vcmp.ge.f32.partialorder %v7605_v28, 0.0  ;;  %6684 = vrcp.f32 %v868_v19 }
 0x163   : > { %v1042_v1 = vadd.f32 0.2548296, %v1024_v41  ;;  %v963_v45 = vadd.f32 1.4214138, %v945_v36  ;;  %v7763_v7 = vmul.f32 %v832_v59, %v832_v59  ;;  %vm1186_vm14 = vcmp.ge.f32.partialorder %v7625_v11, 0.0 }
 0x164   : > { %v1160_v25 = vsub.f32 1.0, %v1142_v48  ;;  %v989_v33 = vmul.f32 %v7736_v21, %v971_v40  ;;  %v946_v55 = vmul.f32 %v7751_v47, %v928_v52  ;;  %v7772_v8 = vmul.f32 0.70710677, %v7758_v57  ;;  %v6677_v15 = vpop.eup %6676 }
 0x165   : > { %v1060_v62 = vmul.f32 %v7705_v39, %v1042_v1  ;;  %v981_v59 = vmul.f32 %v7740_v17, %v963_v45  ;;  %v1131_v10 = vmul.f32 1.442695, %v1099_v9  ;;  %v6459_v26 = vpack.c.bf16 %v7696_v53, %v7680_v23  ;;  %v7778_v43 = vpop.eup %6678  ;;  %v1287_v39 = vld [vmem:[%s12318_s4 + $0x48] sm:$0xff] }
 0x166   : > { %v1007_v29 = vadd.f32 -0.28449672, %v989_v33  ;;  %v964_v30 = vadd.f32 1.4214138, %v946_v55  ;;  %6686 = vpow2.f32 %v1113_v16  ;;  %v823_v0 = vand.u32 2147483647, %v7772_v8  ;;  %1338 = vperm.xlu1 %6625, %v1287_v39  }
 0x167   : > { %v1150_v3 = vmul.f32 %v6675_v2, %v1060_v62  ;;  %v999_v32 = vadd.f32 -0.28449672, %v981_v59  ;;  %v918_v6 = vmul.f32 1.0614054, %v7778_v43  ;;  %6688 = vpow2.f32 %v1129_v50  ;;  %6460 = vmatprep.subr.bf16.mxu1 %v6459_v26 }
 0x168   : > { %v1196_v58 = vsub.f32 0.0, %v1160_v25  ;;  %v1025_v23 = vmul.f32 %v7736_v21, %v1007_v29  ;;  %v982_v53 = vmul.f32 %v7751_v47, %v964_v30  ;;  %v841_v27 = vmul.f32 0.3275911, %v823_v0  ;;  %6462 = vmatpush1.bf16.msra.mxu1 %v6461_v46  ;;  %v7790_v16 = vpop.eup %6680 }
 0x169   : > { %v1168_v19 = vsub.f32 1.0, %v1150_v3  ;;  %v1017_v48 = vmul.f32 %v7740_v17, %v999_v32  ;;  %v936_v41 = vadd.f32 -1.4531521, %v918_v6  ;;  %v1102_v36 = vsub.f32 0.0, %v7763_v7  ;;  %v6683_v46 = vpop.eup %6682 }
 0x16a   : > { %v1043_v9 = vadd.f32 0.2548296, %v1025_v23  ;;  %v1000_v2 = vadd.f32 -0.28449672, %v982_v53  ;;  %v919_v40 = vmul.f32 1.0614054, %v7790_v16  ;;  %6690 = vpow2.f32 %v1131_v10  ;;  %1348 = vperm.xlu1 %6625, %v1289_v60  }
 0x16b   : > { %v1204_v52 = vsub.f32 0.0, %v1168_v19  ;;  %v1035_v50 = vadd.f32 0.2548296, %v1017_v48  ;;  %v954_v1 = vmul.f32 %v7778_v43, %v936_v41  ;;  %v859_v24 = vadd.f32 1.0, %v841_v27 }
 0x16c   : > { %v1214_v45 = vsel %vm1178_vm13, %v1160_v25, %v1196_v58  ;;  %v1061_v7 = vmul.f32 %v7736_v21, %v1043_v9  ;;  %v1018_v61 = vmul.f32 %v7751_v47, %v1000_v2  ;;  %v937_v33 = vadd.f32 -1.4531521, %v919_v40  ;;  %v7803_v55 = vpop.eup %6684  ;;  %v5264_v21 = vld [vmem:[%s12320_s6] sm:$0xff] }
 0x16d   : > { %v1222_v62 = vsel %vm1186_vm14, %v1168_v19, %v1204_v52  ;;  %v1053_v59 = vmul.f32 %v7740_v17, %v1035_v50  ;;  %v972_v10 = vadd.f32 1.4214138, %v954_v1  ;;  %6692 = vrcp.f32 %v859_v24 }
 0x16e   : > { %v1240_v26 = vadd.f32 1.0, %v1222_v62  ;;  %v1151_v29 = vmul.f32 %v6677_v15, %v1061_v7  ;;  %v1036_v30 = vadd.f32 0.2548296, %v1018_v61  ;;  %v955_v28 = vmul.f32 %v7790_v16, %v937_v33  ;;  %5273 = vperm.xlu1 %6625, %v5264_v21   ;;  %v7846_v62 = vld [vmem:[%s12317_s3 + $0x8] sm:$0xff] }
 0x16f   : > { %v7812_v25 = vmul.f32 %v6683_v46, %v1053_v59  ;;  %v990_v3 = vmul.f32 %v7778_v43, %v972_v10  ;;  %v922_v11 = vmul.f32 1.0614054, %v7803_v55  ;;  %v1137_v32 = vmul.f32 1.442695, %v1102_v36  ;;  %v5268_v59 = vld [vmem:[%s12320_s6 + $0x20] sm:$0xff] }
 0x170   : > { %v6687_v6 = vpop.eup %6686  ;;  %v7817_v17 = vmul.f32 %v1240_v26, %v7699_v22  ;;  %v1169_v39 = vsub.f32 1.0, %v1151_v29  ;;  %v1054_v15 = vmul.f32 %v7751_v47, %v1036_v30  ;;  %v973_v58 = vadd.f32 1.4214138, %v955_v28  ;;  %v7828_v22 = vld [vmem:[%s12317_s3] sm:$0xff]  ;;  %v5266_v47 = vld [vmem:[%s12320_s6 + $0x10] sm:$0xff] }
 0x171   : > { %v6689_v23 = vpop.eup %6688  ;;  %v1232_v53 = vadd.f32 1.0, %v1214_v45  ;;  %v1008_v27 = vadd.f32 -0.28449672, %v990_v3  ;;  %v940_v19 = vadd.f32 -1.4531521, %v922_v11  ;;  %v1075_v48 = vmul.f32 %v823_v0, %v823_v0  ;;  %6179 = vmatmul.mubr.msk.f32.vlgmr.msra.gmra.mrb[4].mxu1 %vm1356_vm0, %v7828_v22 }
 0x172   : > { %v6465_v41 = vpack.c.bf16 %v7817_v17, %v7749_v49  ;;  %v1205_v9 = vsub.f32 0.0, %v1169_v39  ;;  %v7822_v2 = vmul.f32 %v6687_v6, %v1054_v15  ;;  %v991_v36 = vmul.f32 %v7790_v16, %v973_v58  ;;  %5283 = vperm.xlu1 %6625, %v5266_v47   ;;  %v5270_v6 = vld [vmem:[%s12320_s6 + $0x30] sm:$0x1] }
 0x173   : > { %vm1187_vm15 = vcmp.ge.f32.partialorder %v7660_v20, 0.0  ;;  %v1161_v0 = vsub.f32 1.0, %v7812_v25  ;;  %v1026_v49 = vmul.f32 %v7778_v43, %v1008_v27  ;;  %v958_v40 = vmul.f32 %v7803_v55, %v940_v19 }
 0x174   : > { %v6691_v52 = vpop.eup %6690  ;;  %v1223_v50 = vsel %vm1187_vm15, %v1169_v39, %v1205_v9  ;;  %v1009_v1 = vadd.f32 -0.28449672, %v991_v36  ;;  %6694 = vpow2.f32 %v1137_v32  ;;  %v1250_v24 = vmul.f32 %v1232_v53, %v7671_v4 }
 0x175   : > { %v1241_v60 = vadd.f32 1.0, %v1223_v50  ;;  %v1044_v46 = vadd.f32 0.2548296, %v1026_v49  ;;  %v976_v45 = vadd.f32 1.4214138, %v958_v40  ;;  %v1162_v20 = vsub.f32 1.0, %v7822_v2 }
 0x176   : > { %v1027_v7 = vmul.f32 %v7790_v16, %v1009_v1  ;;  %v1093_v61 = vsub.f32 0.0, %v1075_v48  ;;  %v12445_v33 = vmov 0.0   ;;  %v6471_v4 = vpack.c.bf16 %v7728_v51, %v7686_v31  ;;  %5293 = vperm.xlu1 %6625, %v5268_v59   ;;  %v7864_v51 = vld [vmem:[%s12317_s3 + $0x10] sm:$0xff] }
 0x177   : > { %1466 = vmatprep.mubr.f32.mxu1 %v12445_v33  ;;  %v7853_v10 = vpop.eup %6692  ;;  %v1259_v26 = vmul.f32 %v1241_v60, %v7707_v35  ;;  %v1197_v29 = vsub.f32 0.0, %v1161_v0  ;;  %v1062_v30 = vmul.f32 %v7778_v43, %v1044_v46  ;;  %v994_v28 = vmul.f32 %v7803_v55, %v976_v45 }
 0x178   : > { %v1045_v21 = vadd.f32 0.2548296, %v1027_v7  ;;  %v913_v25 = vmul.f32 1.0614054, %v7853_v10  ;;  %6180 = vmatmul.mubr.msk.f32.gmra.mrb[6].mxu1 %vm1356_vm0, %v7846_v62  ;;  %vm1179_vm1 = vcmp.ge.f32.partialorder %v7663_v44, 0.0  ;;  %v1198_v35 = vsub.f32 0.0, %v1162_v20 }
 0x179   : > { %v1152_v3 = vmul.f32 %v6689_v23, %v1062_v30  ;;  %v1012_v11 = vadd.f32 -0.28449672, %v994_v28  ;;  %v6463_v31 = vpack.c.bf16 %v1259_v26, %v1250_v24  ;;  %1472 = vmatprep.mubr.f32.mxu1 %v12445_v33  ;;  %v1215_v17 = vsel %vm1179_vm1, %v1161_v0, %v1197_v29  ;;  %v7928_v30 = vld [vmem:[%s12317_s3 + $0x30] sm:$0xff] }
 0x17a   : > { %v1063_v43 = vmul.f32 %v7790_v16, %v1045_v21  ;;  %v931_v32 = vadd.f32 -1.4531521, %v913_v25  ;;  %v1119_v58 = vmul.f32 1.442695, %v1093_v61  ;;  %5303 = vperm.xlu1 %6625, %v5270_v6   ;;  %vm1180_vm2 = vcmp.ge.f32.partialorder %v7674_v54, 0.0  ;;  %v7940_v25 = vld [vmem:[%s12317_s3 + $0x38] sm:$0xff] }
 0x17b   : > { %v1170_v39 = vsub.f32 1.0, %v1152_v3  ;;  %v1030_v15 = vmul.f32 %v7803_v55, %v1012_v11  ;;  %6464 = vmatprep.subr.bf16.mxu0 %v6463_v31  ;;  %vm1188_vm3 = vcmp.ge.f32.partialorder %v7703_v56, 0.0  ;;  %v1233_v19 = vadd.f32 1.0, %v1215_v17  ;;  %v7976_v6 = vld [vmem:[%s12317_s3 + $0x50] sm:$0xff]  ;;  %v7987_v17 = vld [vmem:[%s12317_s3 + $0x58] sm:$0xff] }
 0x17c   : > { %v1153_v23 = vmul.f32 %v6691_v52, %v1063_v43  ;;  %v949_v53 = vmul.f32 %v7853_v10, %v931_v32  ;;  %6466 = vmatpush1.bf16.msra.mxu0 %v6465_v41  ;;  %6181 = vmatmul.mubr.msk.f32.gmra.mrb[8].mxu1 %vm1356_vm0, %v7864_v51  ;;  %v1216_v48 = vsel %vm1180_vm2, %v1162_v20, %v1198_v35  ;;  %v7882_v41 = vld [vmem:[%s12317_s3 + $0x18] sm:$0xff]  ;;  %v783_v54 = vmul.f32 0.5, %v7649_v34 }
 0x17d   : > { %v1206_v44 = vsub.f32 0.0, %v1170_v39  ;;  %v1048_v16 = vadd.f32 0.2548296, %v1030_v15  ;;  %6472 = vmatprep.subr.bf16.mxu0 %v6471_v4  ;;  %1478 = vmatprep.mubr.f32.mxu1 %v12445_v33  ;;  %6696 = vpow2.f32 %v1119_v58  ;;  %v792_v47 = vmul.f32 0.5, %v7692_v14 }
 0x17e   : > { %v6695_v27 = vpop.eup %6694  ;;  %v1171_v9 = vsub.f32 1.0, %v1153_v23  ;;  %v967_v2 = vadd.f32 1.4214138, %v949_v53  ;;  %v1234_v34 = vadd.f32 1.0, %v1216_v48  ;;  %vm1189_vm4 = vcmp.ge.f32.partialorder %v7725_v63, 0.0 }
 0x17f   : > { %v1224_v56 = vsel %vm1188_vm3, %v1170_v39, %v1206_v44  ;;  %v1066_v36 = vmul.f32 %v7803_v55, %v1048_v16  ;;  %6192 = vmatmul.mubr.msk.f32.vlgmr.msra.gmra.mrb[14].mxu0 %vm1356_vm0, %v7828_v22  ;;  %v1251_v52 = vmul.f32 %v1233_v19, %v783_v54  ;;  %v784_v38 = vmul.f32 0.5, %v7654_v18  ;;  %v7915_v18 = vld [vmem:[%s12317_s3 + $0x28] sm:$0xff]  ;;  %v7998_v39 = vld [vmem:[%s12317_s3 + $0x60] sm:$0x3] }
 0x180   : > { %v1242_v0 = vadd.f32 1.0, %v1224_v56  ;;  %v1207_v49 = vsub.f32 0.0, %v1171_v9  ;;  %v985_v40 = vmul.f32 %v7853_v10, %v967_v2  ;;  %6474 = vmatpush1.bf16.msra.mxu0 %v6473_v13  ;;  %1609 = vmatprep.mubr.f32.mxu0 %v12445_v33  ;;  %v793_v13 = vmul.f32 0.5, %v7711_v5 }
 0x181   : > { %v1156_v55 = vmul.f32 %v6695_v27, %v1066_v36  ;;  %6182 = vmatmul.mubr.msk.f32.gmra.mrb[10].mxu1 %vm1356_vm0, %v7882_v41  ;;  %v1252_v45 = vmul.f32 %v1234_v34, %v784_v38  ;;  %vm1192_vm5 = vcmp.ge.f32.partialorder %v7734_v12, 0.0  ;;  %v796_v3 = vmul.f32 0.5, %v7719_v42  ;;  %v7954_v42 = vld [vmem:[%s12317_s3 + $0x40] sm:$0xff] }
 0x182   : > { %v1260_v50 = vmul.f32 %v1242_v0, %v792_v47  ;;  %v1225_v14 = vsel %vm1189_vm4, %v1171_v9, %v1207_v49  ;;  %v1003_v1 = vadd.f32 -0.28449672, %v985_v40  ;;  %1484 = vmatprep.mubr.f32.mxu1 %v12445_v33  ;;  %vm1183_vm6 = vcmp.ge.f32.partialorder %v7772_v8, 0.0  ;;  %v8168_v49 = vpop.permute.xlu0 %1303 }
 0x183   : > { %v1243_v63 = vadd.f32 1.0, %v1225_v14  ;;  %v1174_v24 = vsub.f32 1.0, %v1156_v55  ;;  %6193 = vmatmul.mubr.msk.f32.gmra.mrb[16].mxu0 %vm1356_vm0, %v7846_v62  ;;  %v787_v35 = vmul.f32 0.5, %v7758_v57  ;;  %v7965_v57 = vld [vmem:[%s12317_s3 + $0x48] sm:$0xff]  ;;  %vm7201_vm7 = vmmov 0   ;;  %12448 = vst [vmem:[#allocation6_spill] sm:$0xff] %v8168_v49 }
 0x184   : > { %v6469_v60 = vpack.c.bf16 %v1260_v50, %v1251_v52  ;;  %v1021_v46 = vmul.f32 %v7853_v10, %v1003_v1  ;;  %1615 = vmatprep.mubr.f32.mxu0 %v12445_v33 }
 0x185   : > { %v1261_v20 = vmul.f32 %v1243_v63, %v793_v13  ;;  %6183 = vmatmul.mubr.msk.f32.gmra.mrb[12].mxu1 %vm1356_vm0, %v7901_v37  ;;  %v1210_v7 = vsub.f32 0.0, %v1174_v24 }
 0x186   : > { %v1039_v61 = vadd.f32 0.2548296, %v1021_v46  ;;  %1490 = vmatprep.mubr.f32.mxu1 %v12445_v33 }
 0x187   : > { %v6467_v5 = vpack.c.bf16 %v1261_v20, %v1252_v45  ;;  %6194 = vmatmul.mubr.msk.f32.gmra.mrb[18].mxu0 %vm1356_vm0, %v7864_v51  ;;  %v6697_v59 = vpop.eup %6696  ;;  %v1228_v26 = vsel %vm1192_vm5, %v1174_v24, %v1210_v7 }
 0x188   : > { %v1057_v4 = vmul.f32 %v7853_v10, %v1039_v61  ;;  %1621 = vmatprep.mubr.f32.mxu0 %v12445_v33  ;;  %v12324_v10 = vmov 0.0|0.0   ;;  %v1246_v28 = vadd.f32 1.0, %v1228_v26 }
 0x189   : > { %6468 = vmatprep.subr.bf16.mxu1 %v6467_v5  ;;  %6184 = vmatmul.mubr.msk.f32.gmra.mrb[14].mxu1 %vm1356_vm0, %v7915_v18 }
 0x18a   : > { %v1147_v29 = vmul.f32 %v6697_v59, %v1057_v4  ;;  %6470 = vmatpush1.bf16.msra.mxu1 %v6469_v60  ;;  %1496 = vmatprep.mubr.f32.mxu1 %v12445_v33  ;;  %v1264_v31 = vmul.f32 %v1246_v28, %v796_v3 }
 0x18b   : > { %6195 = vmatmul.mubr.msk.f32.gmra.mrb[20].mxu0 %vm1356_vm0, %v7882_v41  ;;  %6475 = vmatprep.subr.bf16.mxu1 %v12324_v10 }
 0x18c   : > { %v1165_v12 = vsub.f32 1.0, %v1147_v29  ;;  %1627 = vmatprep.mubr.f32.mxu0 %v12445_v33 }
 0x18d   : > { %6185 = vmatmul.mubr.msk.f32.gmra.mrb[16].mxu1 %vm1356_vm0, %v7928_v30 }
 0x18e   : > { %v1201_v21 = vsub.f32 0.0, %v1165_v12  ;;  %1502 = vmatprep.mubr.f32.mxu1 %v12445_v33 }
 0x18f   : > { %6196 = vmatmul.mubr.msk.f32.gmra.mrb[22].mxu0 %vm1356_vm0, %v7901_v37 }
 0x190   : > { %v1219_v11 = vsel %vm1183_vm6, %v1165_v12, %v1201_v21  ;;  %1633 = vmatprep.mubr.f32.mxu0 %v12445_v33 }
 0x191   : > { %v1237_v43 = vadd.f32 1.0, %v1219_v11  ;;  %6186 = vmatmul.mubr.msk.f32.gmra.mrb[18].mxu1 %vm1356_vm0, %v7940_v25 }
 0x192   : > { %1508 = vmatprep.mubr.f32.mxu1 %v12445_v33 }
 0x193   : > { %v1255_v8 = vmul.f32 %v1237_v43, %v787_v35  ;;  %6197 = vmatmul.mubr.msk.f32.gmra.mrb[24].mxu0 %vm1356_vm0, %v7915_v18 }
 0x194   : > { %1639 = vmatprep.mubr.f32.mxu0 %v12445_v33 }
 0x195   : > { %v6476_v32 = vpack.c.bf16 %v1264_v31, %v1255_v8  ;;  %6187 = vmatmul.mubr.msk.f32.gmra.mrb[20].mxu1 %vm1356_vm0, %v7954_v42 }
 0x196   : > { %1514 = vmatprep.mubr.f32.mxu1 %v12445_v33 }
 0x197   : > { %6198 = vmatmul.mubr.msk.f32.gmra.mrb[26].mxu0 %vm1356_vm0, %v7928_v30 }
 0x198   : > { %1645 = vmatprep.mubr.f32.mxu0 %v12445_v33 }
 0x199   : > { %6188 = vmatmul.mubr.msk.f32.gmra.mrb[22].mxu1 %vm1356_vm0, %v7965_v57 }
 0x19a   : > { %1520 = vmatprep.mubr.f32.mxu1 %v12445_v33 }
 0x19b   : > { %6199 = vmatmul.mubr.msk.f32.gmra.mrb[28].mxu0 %vm1356_vm0, %v7940_v25 }
 0x19c   : > { %1651 = vmatprep.mubr.f32.mxu0 %v12445_v33 }
 0x19d   : > { %6189 = vmatmul.mubr.msk.f32.gmra.mrb[24].mxu1 %vm1356_vm0, %v7976_v6 }
 0x19e   : > { %1526 = vmatprep.mubr.f32.mxu1 %v12445_v33 }
 0x19f   : > { %6200 = vmatmul.mubr.msk.f32.gmra.mrb[30].mxu0 %vm1356_vm0, %v7954_v42 }
 0x1a0   : > { %1657 = vmatprep.mubr.f32.mxu0 %v12445_v33 }
 0x1a1   : > { %6190 = vmatmul.mubr.msk.f32.gmra.mrb[26].mxu1 %vm1356_vm0, %v7987_v17 }
 0x1a2   : > { %1532 = vmatprep.mubr.f32.mxu1 %v12445_v33 }
 0x1a3   : > { %6201 = vmatmul.mubr.msk.f32.gmra.mrb[32].mxu0 %vm1356_vm0, %v7965_v57 }
 0x1a4   : > { %1663 = vmatprep.mubr.f32.mxu0 %v12445_v33 }
 0x1a5   : > { %6191 = vmatmul.mubr.msk.f32.gmra.mrb[28].mxu1 %vm1356_vm0, %v7998_v39 }
 0x1a6   : > { %1746 = vmatprep.mubr.f32.mxu1 %v12445_v33 }
 0x1a7   : > { %6202 = vmatmul.mubr.msk.f32.gmra.mrb[34].mxu0 %vm1356_vm0, %v7976_v6 }
 0x1a8   : > { %1669 = vmatprep.mubr.f32.mxu0 %v12445_v33 }
 0x1a9   : > { %6205 = vmatmul.mubr.msk.f32.vlgmr.msra.gmra.mrb[30].mxu1 %vm1356_vm0, %v7828_v22 }
 0x1aa   : > { %6477 = vmatpush3.bf16.msra.mxu1 %v6476_v32  ;;  %1752 = vmatprep.mubr.f32.mxu1 %v12445_v33 }
 0x1ab   : > { %6203 = vmatmul.mubr.msk.f32.gmra.mrb[36].mxu0 %vm1356_vm0, %v7987_v17 }
 0x1ac   : > { %1675 = vmatprep.mubr.f32.mxu0 %v12445_v33 }
 0x1ad   : > { %6206 = vmatmul.mubr.msk.f32.gmra.mrb[32].mxu1 %vm1356_vm0, %v7846_v62 }
 0x1ae   : > { %1758 = vmatprep.mubr.f32.mxu1 %v12445_v33 }
 0x1af   : > { %6204 = vmatmul.mubr.msk.f32.gmra.mrb[38].mxu0 %vm1356_vm0, %v7998_v39 }
 0x1b0   : > { %1889 = vmatprep.mubr.f32.mxu0 %v12445_v33 }
 0x1b1   : > { %6207 = vmatmul.mubr.msk.f32.gmra.mrb[34].mxu1 %vm1356_vm0, %v7864_v51 }
 0x1b2   : > { %1764 = vmatprep.mubr.f32.mxu1 %v12445_v33 }
 0x1b3   : > { %6218 = vmatmul.mubr.msk.f32.vlgmr.msra.gmra.mrb[40].mxu0 %vm1356_vm0, %v7828_v22 }
 0x1b4   : > { %1895 = vmatprep.mubr.f32.mxu0 %v12445_v33 }
 0x1b5   : > { %6208 = vmatmul.mubr.msk.f32.gmra.mrb[36].mxu1 %vm1356_vm0, %v7882_v41 }
 0x1b6   : > { %1770 = vmatprep.mubr.f32.mxu1 %v12445_v33 }
 0x1b7   : > { %6219 = vmatmul.mubr.msk.f32.gmra.mrb[42].mxu0 %vm1356_vm0, %v7846_v62 }
 0x1b8   : > { %1901 = vmatprep.mubr.f32.mxu0 %v12445_v33 }
 0x1b9   : > { %6209 = vmatmul.mubr.msk.f32.gmra.mrb[38].mxu1 %vm1356_vm0, %v7901_v37 }
 0x1ba   : > { %1776 = vmatprep.mubr.f32.mxu1 %v12445_v33 }
 0x1bb   : > { %6220 = vmatmul.mubr.msk.f32.gmra.mrb[44].mxu0 %vm1356_vm0, %v7864_v51 }
 0x1bc   : > { %1907 = vmatprep.mubr.f32.mxu0 %v12445_v33 }
 0x1bd   : > { %6210 = vmatmul.mubr.msk.f32.gmra.mrb[40].mxu1 %vm1356_vm0, %v7915_v18 }
 0x1be   : > { %1782 = vmatprep.mubr.f32.mxu1 %v12445_v33 }
 0x1bf   : > { %6221 = vmatmul.mubr.msk.f32.gmra.mrb[46].mxu0 %vm1356_vm0, %v7882_v41 }
 0x1c0   : > { %1913 = vmatprep.mubr.f32.mxu0 %v12445_v33 }
 0x1c1   : > { %6211 = vmatmul.mubr.msk.f32.gmra.mrb[42].mxu1 %vm1356_vm0, %v7928_v30 }
 0x1c2   : > { %1788 = vmatprep.mubr.f32.mxu1 %v12445_v33 }
 0x1c3   : > { %6222 = vmatmul.mubr.msk.f32.gmra.mrb[48].mxu0 %vm1356_vm0, %v7901_v37 }
 0x1c4   : > { %1919 = vmatprep.mubr.f32.mxu0 %v12445_v33 }
 0x1c5   : > { %6212 = vmatmul.mubr.msk.f32.gmra.mrb[44].mxu1 %vm1356_vm0, %v7940_v25 }
 0x1c6   : > { %1794 = vmatprep.mubr.f32.mxu1 %v12445_v33 }
 0x1c7   : > { %6223 = vmatmul.mubr.msk.f32.gmra.mrb[50].mxu0 %vm1356_vm0, %v7915_v18 }
 0x1c8   : > { %1925 = vmatprep.mubr.f32.mxu0 %v12445_v33 }
 0x1c9   : > { %6213 = vmatmul.mubr.msk.f32.gmra.mrb[46].mxu1 %vm1356_vm0, %v7954_v42 }
 0x1ca   : > { %1800 = vmatprep.mubr.f32.mxu1 %v12445_v33 }
 0x1cb   : > { %6224 = vmatmul.mubr.msk.f32.gmra.mrb[52].mxu0 %vm1356_vm0, %v7928_v30 }
 0x1cc   : > { %1931 = vmatprep.mubr.f32.mxu0 %v12445_v33 }
 0x1cd   : > { %6214 = vmatmul.mubr.msk.f32.gmra.mrb[48].mxu1 %vm1356_vm0, %v7965_v57 }
 0x1ce   : > { %1806 = vmatprep.mubr.f32.mxu1 %v12445_v33 }
 0x1cf   : > { %6225 = vmatmul.mubr.msk.f32.gmra.mrb[54].mxu0 %vm1356_vm0, %v7940_v25 }
 0x1d0   : > { %1937 = vmatprep.mubr.f32.mxu0 %v12445_v33 }
 0x1d1   : > { %6215 = vmatmul.mubr.msk.f32.gmra.mrb[50].mxu1 %vm1356_vm0, %v7976_v6 }
 0x1d2   : > { %1812 = vmatprep.mubr.f32.mxu1 %v12445_v33 }
 0x1d3   : > { %6226 = vmatmul.mubr.msk.f32.gmra.mrb[56].mxu0 %vm1356_vm0, %v7954_v42 }
 0x1d4   : > { %1943 = vmatprep.mubr.f32.mxu0 %v12445_v33 }
 0x1d5   : > { %6216 = vmatmul.mubr.msk.f32.gmra.mrb[52].mxu1 %vm1356_vm0, %v7987_v17 }
 0x1d6   : > { %1818 = vmatprep.mubr.f32.mxu1 %v12445_v33 }
 0x1d7   : > { %6227 = vmatmul.mubr.msk.f32.gmra.mrb[58].mxu0 %vm1356_vm0, %v7965_v57 }
 0x1d8   : > { %1949 = vmatprep.mubr.f32.mxu0 %v12445_v33 }
 0x1d9   : > { %6217 = vmatmul.mubr.msk.f32.gmra.mrb[54].mxu1 %vm1356_vm0, %v7998_v39 }
 0x1da   : > { %6343 = vmatprep.mubr.msk.f32.mxu1 %vm7201_vm7, %v12445_v33 }
 0x1db   : > { %6228 = vmatmul.mubr.msk.f32.gmra.mrb[60].mxu0 %vm1356_vm0, %v7976_v6 }
 0x1dc   : > { %1955 = vmatprep.mubr.f32.mxu0 %v12445_v33 }
 0x1dd   : > { %6344 = vmatmul.mubr.msk.f32.vlgmr.msra.gmra.mrb[56].mxu1 %vm1356_vm0, %v7828_v22  ;;  %v8145_v22 = vpop.permute.xlu1 %1293 }
 0x1de   : > { %6346 = vmatprep.mubr.msk.f32.mxu1 %vm7201_vm7, %v12445_v33  ;;  %12446 = vst [vmem:[#allocation4_spill] sm:$0xff] %v8145_v22 }
 0x1df   : > { %6229 = vmatmul.mubr.msk.f32.gmra.mrb[62].mxu0 %vm1356_vm0, %v7987_v17 }
 0x1e0   : > { %1961 = vmatprep.mubr.f32.mxu0 %v12445_v33 }
 0x1e1   : > { %6347 = vmatmul.mubr.msk.f32.gmra.mrb[58].mxu1 %vm1356_vm0, %v7846_v62  ;;  %v8150_v58 = vpop.permute.xlu1 %1298 }
 0x1e2   : > { %6349 = vmatprep.mubr.msk.f32.mxu1 %vm7201_vm7, %v12445_v33  ;;  %12447 = vst [vmem:[#allocation5_spill] sm:$0xff] %v8150_v58 }
 0x1e3   : > { %6230 = vmatmul.mubr.msk.f32.gmra.mrb[64].mxu0 %vm1356_vm0, %v7998_v39 }
 0x1e4   : > { %5420 = vmatprep.mubr.f32.mxu0 %v12445_v33 }
 0x1e5   : > { %6350 = vmatmul.mubr.msk.f32.gmra.mrb[60].mxu1 %vm1356_vm0, %v7864_v51 }
 0x1e6   : > { %6352 = vmatprep.mubr.msk.f32.mxu1 %vm7201_vm7, %v12445_v33 }
 0x1e9   : > { %6353 = vmatmul.mubr.msk.f32.gmra.mrb[62].mxu1 %vm1356_vm0, %v7882_v41 }
 0x1ea   : > { %6355 = vmatprep.mubr.msk.f32.mxu1 %vm7201_vm7, %v12445_v33 }
 0x1ed   : > { %6356 = vmatmul.mubr.msk.f32.gmra.mrb[64].mxu1 %vm1356_vm0, %v7901_v37 }
 0x1ee   : > { %6358 = vmatprep.mubr.msk.f32.mxu1 %vm7201_vm7, %v12445_v33 }
 0x1f1   : > { %6359 = vmatmul.mubr.msk.f32.gmra.mrb[66].mxu1 %vm1356_vm0, %v7915_v18 }
 0x1f2   : > { %6361 = vmatprep.mubr.msk.f32.mxu1 %vm7201_vm7, %v12445_v33 }
 0x1f5   : > { %6362 = vmatmul.mubr.msk.f32.gmra.mrb[68].mxu1 %vm1356_vm0, %v7928_v30 }
 0x1f6   : > { %6364 = vmatprep.mubr.msk.f32.mxu1 %vm7201_vm7, %v12445_v33 }
 0x1f9   : > { %6365 = vmatmul.mubr.msk.f32.gmra.mrb[70].mxu1 %vm1356_vm0, %v7940_v25 }
 0x1fa   : > { %6367 = vmatprep.mubr.msk.f32.mxu1 %vm7201_vm7, %v12445_v33 }
 0x1fd   : > { %6368 = vmatmul.mubr.msk.f32.gmra.mrb[72].mxu1 %vm1356_vm0, %v7954_v42 }
 0x1fe   : > { %6370 = vmatprep.mubr.msk.f32.mxu1 %vm7201_vm7, %v12445_v33 }
 0x201   : > { %6371 = vmatmul.mubr.msk.f32.gmra.mrb[74].mxu1 %vm1356_vm0, %v7965_v57 }
 0x202   : > { %6373 = vmatprep.mubr.msk.f32.mxu1 %vm7201_vm7, %v12445_v33 }
 0x205   : > { %6374 = vmatmul.mubr.msk.f32.gmra.mrb[76].mxu1 %vm1356_vm0, %v7976_v6 }
 0x206   : > { %6376 = vmatprep.mubr.msk.f32.mxu1 %vm7201_vm7, %v12445_v33 }
 0x209   : > { %6377 = vmatmul.mubr.msk.f32.gmra.mrb[78].mxu1 %vm1356_vm0, %v7987_v17 }
 0x20a   : > { %6379 = vmatprep.mubr.msk.f32.mxu1 %vm7201_vm7, %v12445_v33 }
 0x20d   : > { %6380 = vmatmul.mubr.msk.f32.gmra.mrb[80].mxu1 %vm1356_vm0, %v7998_v39 }
 0x20e   : > { %5634 = vmatprep.mubr.f32.mxu1 %v12445_v33 }
 0x244   : > { %v1462_v62 = vpop.f32.mrb[4].mxu1 }
 0x245   : > { %v8148_v51 = vadd.f32 %v1462_v62, %v8145_v22  ;;  %v1464_v15 = vpop.f32.mrb[5].mxu1 }
 0x246   : > { %v8163_v9 = vadd.f32 %v1464_v15, %v8145_v22 }
 0x247   : > { %v8153_v23 = vmul.f32 0.70710677, %v8148_v51 }
 0x248   : > { %v8171_v40 = vmul.f32 0.70710677, %v8163_v9 }
 0x249   : > { %v2332_v44 = vand.u32 2147483647, %v8153_v23  ;;  %vm4672_vm8 = vcmp.ge.f32.partialorder %v8153_v23, 0.0  ;;  %v2098_v23 = vmul.f32 0.5, %v8148_v51 }
 0x24a   : > { %v8191_v13 = vand.u32 2147483647, %v8171_v40  ;;  %vm4673_vm13 = vcmp.ge.f32.partialorder %v8171_v40, 0.0 }
 0x24b   : > { %v1468_v53 = vpop.f32.mrb[6].mxu1  ;;  %v2449_v19 = vmul.f32 0.3275911, %v2332_v44  ;;  %v3970_v24 = vmul.f32 %v2332_v44, %v2332_v44 }
 0x24c   : > { %v8157_v16 = vadd.f32 %v1468_v53, %v8150_v58  ;;  %v1470_v27 = vpop.f32.mrb[7].mxu1  ;;  %v2450_v5 = vmul.f32 0.3275911, %v8191_v13  ;;  %v3971_v51 = vmul.f32 %v8191_v13, %v8191_v13 }
 0x24d   : > { %v2566_v41 = vadd.f32 1.0, %v2449_v19  ;;  %v8203_v20 = vadd.f32 %v1470_v27, %v8150_v58  ;;  %v4087_v26 = vsub.f32 0.0, %v3970_v24 }
 0x24e   : > { %v8160_v48 = vmul.f32 0.70710677, %v8157_v16  ;;  %v2567_v11 = vadd.f32 1.0, %v2450_v5 }
 0x24f   : > { %v1474_v2 = vpop.f32.mrb[8].mxu1  ;;  %6698 = vrcp.f32 %v2566_v41  ;;  %v8217_v21 = vmul.f32 0.70710677, %v8203_v20  ;;  %v4204_v42 = vmul.f32 1.442695, %v4087_v26 }
 0x250   : > { %v2341_v54 = vand.u32 2147483647, %v8160_v48  ;;  %v1476_v56 = vpop.f32.mrb[9].mxu1  ;;  %v8176_v52 = vadd.f32 %v1474_v2, %v8168_v49  ;;  %vm4681_vm9 = vcmp.ge.f32.partialorder %v8160_v48, 0.0 }
 0x251   : > { %v8229_v17 = vadd.f32 %v1476_v56, %v8168_v49  ;;  %v8239_v19 = vand.u32 2147483647, %v8217_v21  ;;  %vm4682_vm14 = vcmp.ge.f32.partialorder %v8217_v21, 0.0 }
 0x252   : > { %v1605_v36 = vpop.f32.mrb[14].mxu0  ;;  %v2458_v47 = vmul.f32 0.3275911, %v2341_v54  ;;  %v8183_v1 = vmul.f32 0.70710677, %v8176_v52  ;;  %v3979_v29 = vmul.f32 %v2341_v54, %v2341_v54 }
 0x253   : > { %v8166_v0 = vpop.f32.mrb[15].mxu0  ;;  %v8186_v37 = vadd.f32 %v1605_v36, %v8145_v22  ;;  %v8244_v36 = vmul.f32 0.70710677, %v8229_v17  ;;  %v2459_v26 = vmul.f32 0.3275911, %v8239_v19 }
 0x254   : > { %v8173_v34 = vpop.f32.mrb[10].mxu1  ;;  %v2575_v55 = vadd.f32 1.0, %v2458_v47  ;;  %v8196_v60 = vand.u32 2147483647, %v8183_v1  ;;  %v4096_v8 = vsub.f32 0.0, %v3979_v29  ;;  %vm4690_vm10 = vcmp.ge.f32.partialorder %v8183_v1, 0.0 }
 0x255   : > { %v8178_v50 = vpop.f32.mrb[11].mxu1  ;;  %v8207_v61 = vmul.f32 0.70710677, %v8186_v37  ;;  %vm4691_vm0 = vcmp.ge.f32.partialorder %v8244_v36, 0.0 }
 0x256   : > { %v8180_v14 = vpop.f32.mrb[16].mxu0  ;;  %6700 = vrcp.f32 %v2575_v55  ;;  %v2467_v7 = vmul.f32 0.3275911, %v8196_v60  ;;  %v4222_v2 = vmul.f32 1.442695, %v4096_v8 }
 0x257   : > { %v8188_v38 = vpop.f32.mrb[17].mxu0  ;;  %v8220_v25 = vand.u32 2147483647, %v8207_v61  ;;  %vm4674_vm11 = vcmp.ge.f32.partialorder %v8207_v61, 0.0  ;;  %v2100_v61 = vmul.f32 0.5, %v8186_v37 }
 0x258   : > { %v8193_v63 = vpop.f32.mrb[12].mxu1  ;;  %v2584_v28 = vadd.f32 1.0, %v2467_v7 }
 0x259   : > { %v8198_v46 = vpop.f32.mrb[13].mxu1  ;;  %v6699_v59 = vpop.eup %6698  ;;  %v2451_v15 = vmul.f32 0.3275911, %v8220_v25 }
 0x25a   : > { %v8200_v45 = vpop.f32.mrb[18].mxu0  ;;  %v2917_v12 = vmul.f32 1.0614054, %v6699_v59  ;;  %6702 = vrcp.f32 %v2584_v28  ;;  %v8252_v28 = vand.u32 2147483647, %v8244_v36 }
 0x25b   : > { %v8209_v18 = vpop.f32.mrb[19].mxu0  ;;  %6704 = vrcp.f32 %v2567_v11  ;;  %v2568_v24 = vadd.f32 1.0, %v2451_v15 }
 0x25c   : > { %v8212_v4 = vpop.f32.mrb[14].mxu1  ;;  %v3034_v3 = vadd.f32 -1.4531521, %v2917_v12  ;;  %6706 = vpow2.f32 %v4204_v42 }
 0x25d   : > { %v8214_v30 = vpop.f32.mrb[15].mxu1  ;;  %6708 = vpow2.f32 %v4222_v2  ;;  %v2468_v2 = vmul.f32 0.3275911, %v8252_v28 }
 0x25e   : > { %v8222_v31 = vpop.f32.mrb[20].mxu0  ;;  %v3151_v57 = vmul.f32 %v6699_v59, %v3034_v3  ;;  %6710 = vrcp.f32 %v2568_v24  ;;  %v8256_v3 = vadd.f32 %v8166_v0, %v8145_v22 }
 0x25f   : > { %v8226_v32 = vpop.f32.mrb[21].mxu0 }
 0x260   : > { %v8224_v35 = vpop.f32.mrb[16].mxu1  ;;  %v6701_v43 = vpop.eup %6700  ;;  %12449 = vst [vmem:[#allocation7_spill] sm:$0xff] %v8226_v32  ;;  %v3268_v44 = vadd.f32 1.4214138, %v3151_v57  ;;  %v2576_v57 = vadd.f32 1.0, %v2459_v26 }
 0x261   : > { %v2926_v6 = vmul.f32 1.0614054, %v6701_v43  ;;  %v8233_v62 = vpop.f32.mrb[17].mxu1  ;;  %v8267_v24 = vmul.f32 0.70710677, %v8256_v3 }
 0x262   : > { %v8231_v39 = vpop.f32.mrb[22].mxu0  ;;  %12451 = vst [vmem:[#allocation9_spill] sm:$0xff] %v8233_v62  ;;  %v3385_v54 = vmul.f32 %v6699_v59, %v3268_v44  ;;  %6712 = vrcp.f32 %v2576_v57 }
 0x263   : > { %12450 = vst [vmem:[#allocation8_spill] sm:$0xff] %v8231_v39  ;;  %v8236_v53 = vpop.f32.mrb[23].mxu0  ;;  %v3043_v27 = vadd.f32 -1.4531521, %v2926_v6  ;;  %v8260_v6 = vpop.permute.xlu1 %1308  ;;  %v8277_v33 = vand.u32 2147483647, %v8267_v24 }
 0x264   : > { %12452 = vst [vmem:[#allocation10_spill] sm:$0xff] %v8236_v53  ;;  %v8241_v41 = vpop.f32.mrb[18].mxu1  ;;  %v3502_v7 = vadd.f32 -0.28449672, %v3385_v54  ;;  %v8258_v11 = vpop.eup %6702  ;;  %12456 = vst [vmem:[#allocation14_spill] sm:$0xff] %v8260_v6  ;;  %v8530_v21 = vadd.f32 %v8222_v31, %v8260_v6  ;;  %vm4675_vm1 = vcmp.ge.f32.partialorder %v8267_v24, 0.0 }
 0x265   : > { %12453 = vst [vmem:[#allocation11_spill] sm:$0xff] %v8241_v41  ;;  %v3160_v56 = vmul.f32 %v6701_v43, %v3043_v27  ;;  %v8248_v55 = vpop.f32.mrb[19].mxu1  ;;  %v8262_v15 = vpop.eup %6704 }
 0x266   : > { %v8246_v47 = vpop.f32.mrb[24].mxu0  ;;  %12455 = vst [vmem:[#allocation13_spill] sm:$0xff] %v8248_v55  ;;  %v3619_v29 = vmul.f32 %v6699_v59, %v3502_v7  ;;  %v6707_v54 = vpop.eup %6706 }
 0x267   : > { %12454 = vst [vmem:[#allocation12_spill] sm:$0xff] %v8246_v47  ;;  %v3277_v5 = vadd.f32 1.4214138, %v3160_v56  ;;  %v2935_v56 = vmul.f32 1.0614054, %v8258_v11  ;;  %v3988_v47 = vmul.f32 %v8196_v60, %v8196_v60 }
 0x268   : > { %v3736_v42 = vadd.f32 0.2548296, %v3619_v29  ;;  %v2918_v29 = vmul.f32 1.0614054, %v8262_v15 }
 0x269   : > { %v3394_v12 = vmul.f32 %v6701_v43, %v3277_v5  ;;  %v8271_v5 = vadd.f32 %v8173_v34, %v8260_v6  ;;  %v3052_v10 = vadd.f32 -1.4531521, %v2935_v56 }
 0x26a   : > { %v3853_v44 = vmul.f32 %v6699_v59, %v3736_v42  ;;  %v8274_v42 = vpop.f32.mrb[25].mxu0 }
 0x26b   : > { %v3511_v8 = vadd.f32 -0.28449672, %v3394_v12  ;;  %v2585_v12 = vadd.f32 1.0, %v2468_v2  ;;  %12457 = vst [vmem:[#allocation15_spill] sm:$0xff] %v8274_v42  ;;  %v8280_v57 = vmul.f32 0.70710677, %v8271_v5  ;;  %v3169_v56 = vmul.f32 %v8258_v11, %v3052_v10 }
 0x26c   : > { %v4438_v0 = vmul.f32 %v6707_v54, %v3853_v44  ;;  %v3035_v2 = vadd.f32 -1.4531521, %v2918_v29  ;;  %v2107_v29 = vmul.f32 0.5, %v8157_v16 }
 0x26d   : > { %v3628_v27 = vmul.f32 %v6701_v43, %v3511_v8  ;;  %v6709_v8 = vpop.eup %6708  ;;  %6714 = vrcp.f32 %v2585_v12  ;;  %v3286_v12 = vadd.f32 1.4214138, %v3169_v56  ;;  %v8310_v56 = vadd.f32 %v8180_v14, %v8150_v58 }
 0x26e   : > { %v4555_v26 = vsub.f32 1.0, %v4438_v0  ;;  %v8284_v34 = vpop.eup %6710  ;;  %v2452_v0 = vmul.f32 0.3275911, %v8277_v33  ;;  %vm4699_vm12 = vcmp.ge.f32.partialorder %v8280_v57, 0.0 }
 0x26f   : > { %v3745_v7 = vadd.f32 0.2548296, %v3628_v27  ;;  %v8282_v27 = vpop.f32.mrb[20].mxu1  ;;  %v8292_v55 = vpop.eup %6712 }
 0x270   : > { %v4789_v22 = vsub.f32 0.0, %v4555_v26  ;;  %12458 = vst [vmem:[#allocation16_spill] sm:$0xff] %v8282_v27  ;;  %v8297_v27 = vpop.f32.mrb[26].mxu0 }
 0x271   : > { %v3862_v59 = vmul.f32 %v6701_v43, %v3745_v7  ;;  %12459 = vst [vmem:[#allocation17_spill] sm:$0xff] %v8297_v27 }
 0x272   : > { %v4906_v43 = vsel %vm4672_vm8, %v4555_v26, %v4789_v22  ;;  %v3152_v22 = vmul.f32 %v8262_v15, %v3035_v2  ;;  %v2927_v2 = vmul.f32 1.0614054, %v8292_v55 }
 0x273   : > { %v4447_v44 = vmul.f32 %v6709_v8, %v3862_v59  ;;  %v2919_v59 = vmul.f32 1.0614054, %v8284_v34  ;;  %v2359_v8 = vand.u32 2147483647, %v8280_v57  ;;  %v5023_v42 = vadd.f32 1.0, %v4906_v43 }
 0x274   : > { %v3269_v16 = vadd.f32 1.4214138, %v3152_v22  ;;  %v3044_v14 = vadd.f32 -1.4531521, %v2927_v2  ;;  %v8333_v2 = vmul.f32 0.5, %v8163_v9 }
 0x275   : > { %v4564_v54 = vsub.f32 1.0, %v4447_v44  ;;  %v2569_v44 = vadd.f32 1.0, %v2452_v0  ;;  %v3036_v43 = vadd.f32 -1.4531521, %v2919_v59  ;;  %v2476_v53 = vmul.f32 0.3275911, %v2359_v8 }
 0x276   : > { %v8301_v48 = vmul.f32 %v5023_v42, %v2098_v23  ;;  %v3403_v0 = vmul.f32 %v8258_v11, %v3286_v12  ;;  %v3972_v42 = vmul.f32 %v8220_v25, %v8220_v25  ;;  %v4088_v23 = vsub.f32 0.0, %v3971_v51 }
 0x277   : > { %v4798_v7 = vsub.f32 0.0, %v4564_v54  ;;  %6716 = vrcp.f32 %v2569_v44  ;;  %v8317_v13 = vpop.eup %6714  ;;  %v3153_v59 = vmul.f32 %v8284_v34, %v3036_v43  ;;  %v3386_v22 = vmul.f32 %v8262_v15, %v3269_v16 }
 0x278   : > { %12460 = vst [vmem:[#allocation18_spill] sm:$0xff] %v8301_v48  ;;  %v3520_v25 = vadd.f32 -0.28449672, %v3403_v0  ;;  %v2936_v12 = vmul.f32 1.0614054, %v8317_v13  ;;  %v3997_v48 = vmul.f32 %v2359_v8, %v2359_v8 }
 0x279   : > { %v4915_v26 = vsel %vm4681_vm9, %v4564_v54, %v4798_v7  ;;  %v2593_v54 = vadd.f32 1.0, %v2476_v53  ;;  %v4105_v7 = vsub.f32 0.0, %v3988_v47  ;;  %v8320_v53 = vpop.f32.mrb[21].mxu1  ;;  %v3989_v47 = vmul.f32 %v8252_v28, %v8252_v28 }
 0x27a   : > { %v5032_v10 = vadd.f32 1.0, %v4915_v26  ;;  %12462 = vst [vmem:[#allocation20_spill] sm:$0xff] %v8320_v53  ;;  %v3980_v26 = vmul.f32 %v8239_v19, %v8239_v19  ;;  %v3270_v43 = vadd.f32 1.4214138, %v3153_v59  ;;  %v4206_v16 = vmul.f32 1.442695, %v4088_v23  ;;  %v8342_v53 = vpop.permute.xlu0 %1313 }
 0x27b   : > { %6718 = vrcp.f32 %v2593_v54  ;;  %v4240_v44 = vmul.f32 1.442695, %v4105_v7  ;;  %v3161_v19 = vmul.f32 %v8292_v55, %v3044_v14  ;;  %v3503_v54 = vadd.f32 -0.28449672, %v3386_v22  ;;  %12464 = vst [vmem:[#allocation22_spill] sm:$0xff] %v8342_v53 }
 0x27c   : > { %v8305_v62 = vmul.f32 %v5032_v10, %v2107_v29  ;;  %v8326_v29 = vmul.f32 0.70710677, %v8310_v56  ;;  %v4089_v10 = vsub.f32 0.0, %v3972_v42  ;;  %v4097_v60 = vsub.f32 0.0, %v3980_v26  ;;  %v8336_v42 = vpop.f32.mrb[27].mxu0 }
 0x27d   : > { %12463 = vst [vmem:[#allocation21_spill] sm:$0xff] %v8336_v42  ;;  %v3637_v28 = vmul.f32 %v8258_v11, %v3520_v25  ;;  %v3053_v7 = vadd.f32 -1.4531521, %v2936_v12  ;;  %v4106_v59 = vsub.f32 0.0, %v3989_v47  ;;  %6720 = vpow2.f32 %v4240_v44  ;;  %v8364_v42 = vpop.f32.mrb[22].mxu1 }
 0x27e   : > { %12461 = vst [vmem:[#allocation19_spill] sm:$0xff] %v8305_v62  ;;  %v2343_v51 = vand.u32 2147483647, %v8326_v29  ;;  %v8339_v62 = vmul.f32 0.5, %v8203_v20  ;;  %v3387_v9 = vmul.f32 %v8284_v34, %v3270_v43  ;;  %v4208_v23 = vmul.f32 1.442695, %v4089_v10 }
 0x27f   : > { %6722 = vpow2.f32 %v4206_v16  ;;  %v3278_v8 = vadd.f32 1.4214138, %v3161_v19  ;;  %v8348_v26 = vmul.f32 0.5, %v8176_v52  ;;  %v8352_v20 = vadd.f32 %v8193_v63, %v8342_v53  ;;  %12465 = vst [vmem:[#allocation23_spill] sm:$0xff] %v8364_v42 }
 0x280   : > { %v2460_v0 = vmul.f32 0.3275911, %v2343_v51  ;;  %v3620_v12 = vmul.f32 %v8262_v15, %v3503_v54  ;;  %v4224_v47 = vmul.f32 1.442695, %v4097_v60  ;;  %v4114_v44 = vsub.f32 0.0, %v3997_v48 }
 0x281   : > { %v8345_v22 = vpop.eup %6716  ;;  %v3754_v10 = vadd.f32 0.2548296, %v3637_v28  ;;  %v3170_v43 = vmul.f32 %v8317_v13, %v3053_v7  ;;  %v3504_v19 = vadd.f32 -0.28449672, %v3387_v9  ;;  %v8362_v63 = vadd.f32 %v8178_v50, %v8260_v6  ;;  %v8376_v50 = vpop.f32.mrb[28].mxu0 }
 0x282   : > { %v2577_v14 = vadd.f32 1.0, %v2460_v0  ;;  %v4242_v0 = vmul.f32 1.442695, %v4106_v59  ;;  %v2920_v52 = vmul.f32 1.0614054, %v8345_v22  ;;  %v3395_v60 = vmul.f32 %v8292_v55, %v3278_v8  ;;  %12468 = vst [vmem:[#allocation26_spill] sm:$0xff] %v8376_v50 }
 0x283   : > { %v3973_v48 = vmul.f32 %v8277_v33, %v8277_v33  ;;  %v8370_v28 = vmul.f32 0.70710677, %v8352_v20  ;;  %v3737_v7 = vadd.f32 0.2548296, %v3620_v12  ;;  %v4258_v59 = vmul.f32 1.442695, %v4114_v44 }
 0x284   : > { %6724 = vrcp.f32 %v2577_v14  ;;  %v3981_v9 = vmul.f32 %v2343_v51, %v2343_v51  ;;  %v3871_v14 = vmul.f32 %v8258_v11, %v3754_v10  ;;  %v3287_v42 = vadd.f32 1.4214138, %v3170_v43  ;;  %v8459_v1 = vpop.f32.mrb[29].mxu0 }
 0x285   : > { %v8354_v25 = vpop.eup %6718  ;;  %6726 = vpow2.f32 %v4208_v23  ;;  %12466 = vst [vmem:[#allocation24_spill] sm:$0xff] %v8370_v28  ;;  %v8374_v23 = vadd.f32 %v8200_v45, %v8168_v49  ;;  %v8381_v33 = vand.u32 2147483647, %v8370_v28  ;;  %v3037_v27 = vadd.f32 -1.4531521, %v2920_v52  ;;  %v8417_v28 = vpop.f32.mrb[23].mxu1 }
 0x286   : > { %v2944_v16 = vmul.f32 1.0614054, %v8354_v25  ;;  %v8385_v12 = vmul.f32 0.70710677, %v8362_v63  ;;  %v3512_v45 = vadd.f32 -0.28449672, %v3395_v60  ;;  %6728 = vpow2.f32 %v4224_v47 }
 0x287   : > { %12467 = vst [vmem:[#allocation25_spill] sm:$0xff] %v8374_v23  ;;  %v8388_v51 = vmul.f32 0.70710677, %v8374_v23  ;;  %v2485_v11 = vmul.f32 0.3275911, %v8381_v33  ;;  %v6721_v10 = vpop.eup %6720  ;;  %v3854_v43 = vmul.f32 %v8262_v15, %v3737_v7  ;;  %6730 = vpow2.f32 %v4258_v59  ;;  %12471 = vst [vmem:[#allocation29_spill] sm:$0xff] %v8417_v28 }
 0x288   : > { %v3061_v54 = vadd.f32 -1.4531521, %v2944_v16  ;;  %v3621_v16 = vmul.f32 %v8284_v34, %v3504_v19  ;;  %12469 = vst [vmem:[#allocation27_spill] sm:$0xff] %v8385_v12  ;;  %v4456_v52 = vmul.f32 %v6721_v10, %v3871_v14  ;;  %v3404_v41 = vmul.f32 %v8317_v13, %v3287_v42  ;;  %12474 = vst [vmem:[#allocation31_spill] sm:$0xff] %v8459_v1 }
 0x289   : > { %12470 = vst [vmem:[#allocation28_spill] sm:$0xff] %v8388_v51  ;;  %v8393_v50 = vand.u32 2147483647, %v8388_v51  ;;  %v6723_v19 = vpop.eup %6722  ;;  %v2602_v39 = vadd.f32 1.0, %v2485_v11  ;;  %v4090_v32 = vsub.f32 0.0, %v3973_v48  ;;  %vm4683_vm15 = vcmp.ge.f32.partialorder %v8326_v29, 0.0 }
 0x28a   : > { %v3178_v8 = vmul.f32 %v8354_v25, %v3061_v54  ;;  %v4098_v54 = vsub.f32 0.0, %v3981_v9  ;;  %v3738_v47 = vadd.f32 0.2548296, %v3621_v16  ;;  %v8401_v15 = vand.u32 2147483647, %v8385_v12 }
 0x28b   : > { %6732 = vrcp.f32 %v2602_v39  ;;  %v2469_v9 = vmul.f32 0.3275911, %v8393_v50  ;;  %v8405_v42 = vmul.f32 %v6723_v19, %v3854_v43  ;;  %v4573_v48 = vsub.f32 1.0, %v4456_v52 }
 0x28c   : > { %v3295_v44 = vadd.f32 1.4214138, %v3178_v8  ;;  %v3154_v8 = vmul.f32 %v8345_v22, %v3037_v27  ;;  %v4226_v16 = vmul.f32 1.442695, %v4098_v54  ;;  %v8411_v27 = vadd.f32 %v8188_v38, %v8150_v58 }
 0x28d   : > { %v3521_v11 = vadd.f32 -0.28449672, %v3404_v41  ;;  %v3855_v39 = vmul.f32 %v8284_v34, %v3738_v47  ;;  %6734 = vpow2.f32 %v4242_v0  ;;  %v2477_v43 = vmul.f32 0.3275911, %v8401_v15 }
 0x28e   : > { %v3412_v23 = vmul.f32 %v8354_v25, %v3295_v44  ;;  %v8397_v60 = vpop.eup %6724  ;;  %v3629_v44 = vmul.f32 %v8292_v55, %v3512_v45  ;;  %v3271_v12 = vadd.f32 1.4214138, %v3154_v8  ;;  %v4210_v19 = vmul.f32 1.442695, %v4090_v32 }
 0x28f   : > { %v2928_v59 = vmul.f32 1.0614054, %v8397_v60  ;;  %v6727_v14 = vpop.eup %6726  ;;  %v2586_v54 = vadd.f32 1.0, %v2469_v9  ;;  %6736 = vpow2.f32 %v4226_v16  ;;  %v8421_v41 = vmul.f32 0.70710677, %v8411_v27 }
 0x290   : > { %v3529_v7 = vadd.f32 -0.28449672, %v3412_v23  ;;  %v3746_v52 = vadd.f32 0.2548296, %v3629_v44  ;;  %v6729_v34 = vpop.eup %6728  ;;  %v4807_v0 = vsub.f32 0.0, %v4573_v48  ;;  %v3638_v47 = vmul.f32 %v8317_v13, %v3521_v11 }
 0x291   : > { %v3045_v10 = vadd.f32 -1.4531521, %v2928_v59  ;;  %v6731_v59 = vpop.eup %6730  ;;  %v8427_v9 = vmul.f32 %v6727_v14, %v3855_v39  ;;  %v2125_v44 = vmul.f32 0.5, %v8271_v5  ;;  %v2594_v16 = vadd.f32 1.0, %v2477_v43 }
 0x292   : > { %v3646_v23 = vmul.f32 %v8354_v25, %v3529_v7  ;;  %v8423_v7 = vpop.permute.xlu1 %1318  ;;  %6738 = vrcp.f32 %v2586_v54  ;;  %v12473_v11 = vsub.f32 1.0, %v8405_v42  ;;  %v8443_v5 = vand.u32 2147483647, %v8421_v41 }
 0x293   : > { %v3162_v51 = vmul.f32 %v8397_v60, %v3045_v10  ;;  %12472 = vst [vmem:[#allocation30_spill] sm:$0xff] %v8423_v7  ;;  %v8434_v58 = vadd.f32 %v8212_v4, %v8423_v7  ;;  %6740 = vpow2.f32 %v4210_v19  ;;  %v4924_v14 = vsel %vm4690_vm10, %v4573_v48, %v4807_v0 }
 0x294   : > { %v3763_v45 = vadd.f32 0.2548296, %v3646_v23  ;;  %v3388_v23 = vmul.f32 %v8345_v22, %v3271_v12  ;;  %v3755_v39 = vadd.f32 0.2548296, %v3638_v47  ;;  %6742 = vrcp.f32 %v2594_v16 }
 0x295   : > { %v3279_v8 = vadd.f32 1.4214138, %v3162_v51  ;;  %v3863_v51 = vmul.f32 %v8292_v55, %v3746_v52  ;;  %v8445_v12 = vpop.eup %6732  ;;  %v8452_v55 = vadd.f32 %v8198_v46, %v8342_v53  ;;  %v4557_v19 = vsub.f32 1.0, %v8427_v9 }
 0x296   : > { %v3880_v32 = vmul.f32 %v8354_v25, %v3763_v45  ;;  %v8438_v25 = vsub.f32 0.0, %v12473_v11  ;;  %v3505_v45 = vadd.f32 -0.28449672, %v3388_v23  ;;  %v2953_v54 = vmul.f32 1.0614054, %v8445_v12 }
 0x297   : > { %v3396_v38 = vmul.f32 %v8397_v60, %v3279_v8  ;;  %v8457_v8 = vmul.f32 0.70710677, %v8434_v58  ;;  %v6735_v48 = vpop.eup %6734  ;;  %v2461_v0 = vmul.f32 0.3275911, %v8443_v5  ;;  %v3872_v46 = vmul.f32 %v8317_v13, %v3755_v39 }
 0x298   : > { %v4465_v10 = vmul.f32 %v6731_v59, %v3880_v32  ;;  %v3070_v47 = vadd.f32 -1.4531521, %v2953_v54  ;;  %v4448_v59 = vmul.f32 %v6729_v34, %v3863_v51  ;;  %v8467_v1 = vmul.f32 0.70710677, %v8452_v55 }
 0x299   : > { %v3513_v43 = vadd.f32 -0.28449672, %v3396_v38  ;;  %v5041_v38 = vadd.f32 1.0, %v4924_v14  ;;  %v6737_v16 = vpop.eup %6736  ;;  %v4791_v14 = vsub.f32 0.0, %v4557_v19  ;;  %v8472_v54 = vadd.f32 %v8209_v18, %v8168_v49 }
 0x29a   : > { %v4582_v4 = vsub.f32 1.0, %v4465_v10  ;;  %v3622_v10 = vmul.f32 %v8345_v22, %v3505_v45  ;;  %v2377_v13 = vand.u32 2147483647, %v8457_v8  ;;  %v2578_v39 = vadd.f32 1.0, %v2461_v0 }
 0x29b   : > { %v3630_v32 = vmul.f32 %v8397_v60, %v3513_v43  ;;  %v3187_v43 = vmul.f32 %v8445_v12, %v3070_v47  ;;  %v8478_v34 = vmul.f32 %v5041_v38, %v8348_v26  ;;  %v4006_v18 = vmul.f32 %v8381_v33, %v8381_v33 }
 0x29c   : > { %v4816_v52 = vsub.f32 0.0, %v4582_v4  ;;  %v8482_v45 = vpop.eup %6738  ;;  %v8489_v26 = vand.u32 2147483647, %v8467_v1  ;;  %v8494_v0 = vmul.f32 0.70710677, %v8472_v54  ;;  %6744 = vrcp.f32 %v2578_v39 }
 0x29d   : > { %v3747_v9 = vadd.f32 0.2548296, %v3630_v32  ;;  %12475 = vst [vmem:[#allocation32_spill] sm:$0xff] %v8478_v34  ;;  %v2494_v32 = vmul.f32 0.3275911, %v2377_v13  ;;  %v6741_v47 = vpop.eup %6740  ;;  %v12478_v37 = vsub.f32 1.0, %v8405_v42 }
 0x29e   : > { %v4933_v23 = vsel %vm4699_vm12, %v4582_v4, %v4816_v52  ;;  %v3304_v4 = vadd.f32 1.4214138, %v3187_v43  ;;  %v8506_v39 = vand.u32 2147483647, %v8494_v0  ;;  %vm4717_vm3 = vcmp.ge.f32.partialorder %v8457_v8, 0.0 }
 0x29f   : > { %v5050_v11 = vadd.f32 1.0, %v4933_v23  ;;  %v3864_v57 = vmul.f32 %v8397_v60, %v3747_v9  ;;  %v4565_v60 = vsub.f32 1.0, %v4448_v59  ;;  %v4457_v23 = vmul.f32 %v6735_v48, %v3872_v46 }
 0x2a0   : > { %v3739_v9 = vadd.f32 0.2548296, %v3622_v10  ;;  %v2611_v59 = vadd.f32 1.0, %v2494_v32  ;;  %v3421_v33 = vmul.f32 %v8445_v12, %v3304_v4  ;;  %v2937_v48 = vmul.f32 1.0614054, %v8482_v45  ;;  %v8508_v4 = vpop.f32.mrb[24].mxu1 }
 0x2a1   : > { %v8480_v51 = vmul.f32 %v5050_v11, %v2125_v44  ;;  %v4449_v52 = vmul.f32 %v6737_v16, %v3864_v57  ;;  %v4908_v44 = vsel %vm4674_vm11, %v4557_v19, %v4791_v14  ;;  %v8496_v16 = vpop.eup %6742  ;;  %v4799_v46 = vsub.f32 0.0, %v4565_v60  ;;  %12477 = vst [vmem:[#allocation34_spill] sm:$0xff] %v8508_v4 }
 0x2a2   : > { %v4123_v11 = vsub.f32 0.0, %v4006_v18  ;;  %6746 = vrcp.f32 %v2611_v59  ;;  %v5025_v19 = vadd.f32 1.0, %v4908_v44  ;;  %v4574_v43 = vsub.f32 1.0, %v4457_v23 }
 0x2a3   : > { %12476 = vst [vmem:[#allocation33_spill] sm:$0xff] %v8480_v51  ;;  %v4566_v38 = vsub.f32 1.0, %v4449_v52  ;;  %v2486_v14 = vmul.f32 0.3275911, %v8489_v26  ;;  %v3856_v57 = vmul.f32 %v8345_v22, %v3739_v9  ;;  %v2945_v29 = vmul.f32 1.0614054, %v8496_v16 }
 0x2a4   : > { %v2109_v32 = vmul.f32 0.5, %v8310_v56  ;;  %v3538_v59 = vadd.f32 -0.28449672, %v3421_v33  ;;  %v3054_v49 = vadd.f32 -1.4531521, %v2937_v48  ;;  %v4907_v23 = vsel %vm4673_vm13, %v12478_v37, %v8438_v25  ;;  %v8523_v33 = vpop.f32.mrb[30].mxu0 }
 0x2a5   : > { %v4800_v10 = vsub.f32 0.0, %v4566_v38  ;;  %v4916_v22 = vsel %vm4682_vm14, %v4565_v60, %v4799_v46  ;;  %v2117_v9 = vmul.f32 0.5, %v8229_v17  ;;  %v4276_v44 = vmul.f32 1.442695, %v4123_v11  ;;  %12481 = vst [vmem:[#allocation37_spill] sm:$0xff] %v8523_v33 }
 0x2a6   : > { %v2603_v56 = vadd.f32 1.0, %v2486_v14  ;;  %v4808_v48 = vsub.f32 0.0, %v4574_v43  ;;  %v8525_v34 = vmul.f32 %v6741_v47, %v3856_v57  ;;  %v2470_v40 = vmul.f32 0.3275911, %v8506_v39  ;;  %v8542_v46 = vpop.eup %6744 }
 0x2a7   : > { %v4917_v52 = vsel %vm4683_vm15, %v4566_v38, %v4800_v10  ;;  %v8519_v38 = vmul.f32 %v5025_v19, %v2100_v61  ;;  %v3062_v42 = vadd.f32 -1.4531521, %v2945_v29  ;;  %v3655_v25 = vmul.f32 %v8445_v12, %v3538_v59 }
 0x2a8   : > { %v5034_v18 = vadd.f32 1.0, %v4917_v52  ;;  %v4015_v52 = vmul.f32 %v2377_v13, %v2377_v13  ;;  %v3171_v60 = vmul.f32 %v8482_v45, %v3054_v49  ;;  %v8538_v13 = vmul.f32 0.5, %v8256_v3 }
 0x2a9   : > { %12479 = vst [vmem:[#allocation35_spill] sm:$0xff] %v8519_v38  ;;  %v3998_v47 = vmul.f32 %v8401_v15, %v8401_v15  ;;  %6748 = vpow2.f32 %v4276_v44  ;;  %v5024_v31 = vadd.f32 1.0, %v4907_v23  ;;  %v5033_v11 = vadd.f32 1.0, %v4916_v22 }
 0x2aa   : > { %v8521_v10 = vmul.f32 %v5034_v18, %v2109_v32  ;;  %6750 = vrcp.f32 %v2603_v56  ;;  %v4132_v61 = vsub.f32 0.0, %v4015_v52  ;;  %v4925_v49 = vsel %vm4691_vm0, %v4574_v43, %v4808_v48  ;;  %v8560_v56 = vpop.f32.mrb[25].mxu1 }
 0x2ab   : > { %v4558_v36 = vsub.f32 1.0, %v8525_v34  ;;  %v2587_v14 = vadd.f32 1.0, %v2470_v40  ;;  %v8549_v3 = vmul.f32 0.70710677, %v8530_v21  ;;  %v3179_v15 = vmul.f32 %v8496_v16, %v3062_v42  ;;  %12483 = vst [vmem:[#allocation39_spill] sm:$0xff] %v8560_v56 }
 0x2ac   : > { %12480 = vst [vmem:[#allocation36_spill] sm:$0xff] %v8521_v10  ;;  %v8545_v19 = vpop.eup %6746  ;;  %v3772_v57 = vadd.f32 0.2548296, %v3655_v25  ;;  %v3288_v29 = vadd.f32 1.4214138, %v3171_v60  ;;  %v4115_v18 = vsub.f32 0.0, %v3998_v47  ;;  %v3990_v37 = vmul.f32 %v8393_v50, %v8393_v50 }
 0x2ad   : > { %v2962_v32 = vmul.f32 1.0614054, %v8545_v19  ;;  %v2929_v59 = vmul.f32 1.0614054, %v8542_v46  ;;  %v2361_v43 = vand.u32 2147483647, %v8549_v3  ;;  %v8558_v34 = vmul.f32 %v5024_v31, %v8333_v2 }
 0x2ae   : > { %v5042_v23 = vadd.f32 1.0, %v4925_v49  ;;  %v4294_v44 = vmul.f32 1.442695, %v4132_v61  ;;  %v4792_v52 = vsub.f32 0.0, %v4558_v36  ;;  %v3982_v48 = vmul.f32 %v8443_v5, %v8443_v5  ;;  %v8567_v2 = vpop.f32.mrb[31].mxu0 }
 0x2af   : > { %12482 = vst [vmem:[#allocation38_spill] sm:$0xff] %v8558_v34  ;;  %v3079_v22 = vadd.f32 -1.4531521, %v2962_v32  ;;  %6752 = vrcp.f32 %v2587_v14  ;;  %v2478_v40 = vmul.f32 0.3275911, %v2361_v43  ;;  %v3889_v25 = vmul.f32 %v8445_v12, %v3772_v57  ;;  %12484 = vst [vmem:[#allocation40_spill] sm:$0xff] %v8567_v2 }
 0x2b0   : > { %v3296_v42 = vadd.f32 1.4214138, %v3179_v15  ;;  %v3405_v50 = vmul.f32 %v8482_v45, %v3288_v29  ;;  %v4260_v47 = vmul.f32 1.442695, %v4115_v18  ;;  %v3046_v31 = vadd.f32 -1.4531521, %v2929_v59 }
 0x2b1   : > { %v3196_v60 = vmul.f32 %v8545_v19, %v3079_v22  ;;  %v4107_v61 = vsub.f32 0.0, %v3990_v37  ;;  %v2595_v49 = vadd.f32 1.0, %v2478_v40  ;;  %v8570_v32 = vmul.f32 %v5033_v11, %v8339_v62 }
 0x2b2   : > { %v8573_v5 = vmul.f32 0.5, %v8362_v63  ;;  %6754 = vpow2.f32 %v4294_v44  ;;  %v8575_v12 = vmul.f32 %v5042_v23, %v2117_v9  ;;  %v8578_v57 = vmul.f32 0.5, %v8411_v27  ;;  %v8584_v63 = vpop.permute.xlu0 %1323 }
 0x2b3   : > { %12485 = vst [vmem:[#allocation41_spill] sm:$0xff] %v8570_v32  ;;  %v3313_v14 = vadd.f32 1.4214138, %v3196_v60  ;;  %v6749_v15 = vpop.eup %6748  ;;  %v4099_v29 = vsub.f32 0.0, %v3982_v48  ;;  %6756 = vrcp.f32 %v2595_v49  ;;  %v3413_v59 = vmul.f32 %v8496_v16, %v3296_v42  ;;  %12487 = vst [vmem:[#allocation43_spill] sm:$0xff] %v8584_v63  ;;  %v12490_v49 = vld [vmem:[#allocation7_spill] sm:$0xff] }
 0x2b4   : > { %12486 = vst [vmem:[#allocation42_spill] sm:$0xff] %v8575_v12  ;;  %v8580_v18 = vpop.eup %6750  ;;  %v4474_v37 = vmul.f32 %v6749_v15, %v3889_v25  ;;  %v3522_v62 = vadd.f32 -0.28449672, %v3405_v50  ;;  %v8588_v22 = vsel %vm4675_vm1, %v4558_v36, %v4792_v52  ;;  %6758 = vpow2.f32 %v4260_v47  ;;  %v12491_v15 = vld [vmem:[#allocation8_spill] sm:$0xff] }
 0x2b5   : > { %v3430_v11 = vmul.f32 %v8545_v19, %v3313_v14  ;;  %v3163_v27 = vmul.f32 %v8542_v46, %v3046_v31  ;;  %v4244_v9 = vmul.f32 1.442695, %v4107_v61  ;;  %v8592_v23 = vmul.f32 0.5, %v8352_v20  ;;  %v8617_v61 = vpop.f32.mrb[26].mxu1 }
 0x2b6   : > { %v8596_v48 = vadd.f32 %v8214_v30, %v8423_v7  ;;  %v8600_v40 = vadd.f32 %v8224_v35, %v8584_v63  ;;  %v8602_v42 = vmul.f32 1.442695, %v4099_v29  ;;  %v2954_v24 = vmul.f32 1.0614054, %v8580_v18  ;;  %v12488_v35 = vld [vmem:[#allocation24_spill] sm:$0xff] }
 0x2b7   : > { %v3547_v44 = vadd.f32 -0.28449672, %v3430_v11  ;;  %v8607_v36 = vmul.f32 %v8489_v26, %v8489_v26  ;;  %v3999_v52 = vmul.f32 %v2361_v43, %v2361_v43  ;;  %v3530_v20 = vadd.f32 -0.28449672, %v3413_v59  ;;  %12489 = vst [vmem:[#allocation24_spill] sm:$0xff] %v8617_v61 }
 0x2b8   : > { %v4591_v25 = vsub.f32 1.0, %v4474_v37  ;;  %v3639_v50 = vmul.f32 %v8482_v45, %v3522_v62  ;;  %v3280_v47 = vadd.f32 1.4214138, %v3163_v27  ;;  %vm4708_vm2 = vcmp.ge.f32.partialorder %v12488_v35, 0.0 }
 0x2b9   : > { %v3664_v30 = vmul.f32 %v8545_v19, %v3547_v44  ;;  %v8611_v60 = vpop.eup %6752  ;;  %6760 = vpow2.f32 %v4244_v9  ;;  %v8615_v31 = vmul.f32 0.70710677, %v8600_v40  ;;  %v8620_v43 = vmul.f32 0.70710677, %v8596_v48 }
 0x2ba   : > { %v8624_v14 = vadd.f32 %v12490_v49, %v8260_v6  ;;  %v8628_v29 = vadd.f32 %v12491_v15, %v8342_v53  ;;  %v3071_v59 = vadd.f32 -1.4531521, %v2954_v24  ;;  %v4124_v37 = vsub.f32 0.0, %v8607_v36  ;;  %v8647_v15 = vpop.f32.mrb[32].mxu0 }
 0x2bb   : > { %v3781_v26 = vadd.f32 0.2548296, %v3664_v30  ;;  %v4116_v62 = vsub.f32 0.0, %v3999_v52  ;;  %v8632_v11 = vand.u32 2147483647, %v8615_v31  ;;  %v4825_v9 = vsub.f32 0.0, %v4591_v25 }
 0x2bc   : > { %v6755_v27 = vpop.eup %6754  ;;  %v3756_v44 = vadd.f32 0.2548296, %v3639_v50  ;;  %v2938_v30 = vmul.f32 1.0614054, %v8611_v60  ;;  %v3647_v38 = vmul.f32 %v8496_v16, %v3530_v20  ;;  %v8641_v24 = vmul.f32 %v8506_v39, %v8506_v39  ;;  %12492 = vst [vmem:[#allocation7_spill] sm:$0xff] %v8647_v15 }
 0x2bd   : > { %v3898_v17 = vmul.f32 %v8545_v19, %v3781_v26  ;;  %v8636_v49 = vpop.eup %6756  ;;  %v2503_v36 = vmul.f32 0.3275911, %v8632_v11  ;;  %v8645_v52 = vmul.f32 0.70710677, %v8628_v29  ;;  %v8651_v19 = vand.u32 2147483647, %v8620_v43 }
 0x2be   : > { %v2946_v10 = vmul.f32 1.0614054, %v8636_v49  ;;  %v8654_v26 = vmul.f32 0.70710677, %v8624_v14  ;;  %v8656_v20 = vpop.eup %6758  ;;  %v3397_v39 = vmul.f32 %v8542_v46, %v3280_v47  ;;  %v4262_v51 = vmul.f32 1.442695, %v4116_v62 }
 0x2bf   : > { %v4483_v50 = vmul.f32 %v6755_v27, %v3898_v17  ;;  %v2620_v12 = vadd.f32 1.0, %v2503_v36  ;;  %v8660_v6 = vand.u32 2147483647, %v8645_v52  ;;  %v4942_v17 = vsel %vm4708_vm2, %v4591_v25, %v4825_v9 }
 0x2c0   : > { %v3055_v27 = vadd.f32 -1.4531521, %v2938_v30  ;;  %v3063_v34 = vadd.f32 -1.4531521, %v2946_v10  ;;  %v3873_v15 = vmul.f32 %v8482_v45, %v3756_v44  ;;  %v3188_v61 = vmul.f32 %v8580_v18, %v3071_v59  ;;  %v8675_v44 = vpop.f32.mrb[27].mxu1 }
 0x2c1   : > { %v4600_v32 = vsub.f32 1.0, %v4483_v50  ;;  %6762 = vrcp.f32 %v2620_v12  ;;  %v2487_v2 = vmul.f32 0.3275911, %v8660_v6  ;;  %v2495_v62 = vmul.f32 0.3275911, %v8651_v19  ;;  %12493 = vst [vmem:[#allocation8_spill] sm:$0xff] %v8675_v44 }
 0x2c2   : > { %v3180_v47 = vmul.f32 %v8636_v49, %v3063_v34  ;;  %v8670_v36 = vand.u32 2147483647, %v8654_v26  ;;  %v5059_v25 = vadd.f32 1.0, %v4942_v17  ;;  %6764 = vpow2.f32 %v4262_v51  ;;  %v8680_v51 = vpop.permute.xlu1 %1328 }
 0x2c3   : > { %v4834_v56 = vsub.f32 0.0, %v4600_v32  ;;  %v6761_v35 = vpop.eup %6760  ;;  %v2604_v10 = vadd.f32 1.0, %v2487_v2  ;;  %v3172_v45 = vmul.f32 %v8611_v60, %v3055_v27  ;;  %v2143_v12 = vmul.f32 0.5, %v8434_v58  ;;  %12494 = vst [vmem:[#allocation44_spill] sm:$0xff] %v8680_v51 }
 0x2c4   : > { %v3297_v9 = vadd.f32 1.4214138, %v3180_v47  ;;  %v3514_v34 = vadd.f32 -0.28449672, %v3397_v39  ;;  %v4458_v30 = vmul.f32 %v6761_v35, %v3873_v15  ;;  %v4108_v33 = vsub.f32 0.0, %v8641_v24  ;;  %v12497_v35 = vld [vmem:[#allocation11_spill] sm:$0xff] }
 0x2c5   : > { %v4951_v59 = vsel %vm4717_vm3, %v4600_v32, %v4834_v56  ;;  %6766 = vrcp.f32 %v2604_v10  ;;  %v2612_v4 = vadd.f32 1.0, %v2495_v62  ;;  %v2479_v8 = vmul.f32 0.3275911, %v8670_v36 }
 0x2c6   : > { %v5068_v50 = vadd.f32 1.0, %v4951_v59  ;;  %v3414_v17 = vmul.f32 %v8636_v49, %v3297_v9  ;;  %v3764_v2 = vadd.f32 0.2548296, %v3647_v38  ;;  %v8683_v58 = vmul.f32 %v5059_v25, %v8592_v23  ;;  %v12498_v25 = vld [vmem:[#allocation9_spill] sm:$0xff] }
 0x2c7   : > { %v3305_v56 = vadd.f32 1.4214138, %v3188_v61  ;;  %6768 = vpow2.f32 %v8602_v42  ;;  %v4278_v15 = vmul.f32 1.442695, %v4124_v37  ;;  %v3289_v39 = vadd.f32 1.4214138, %v3172_v45 }
 0x2c8   : > { %12495 = vst [vmem:[#allocation45_spill] sm:$0xff] %v8683_v58  ;;  %v8685_v32 = vmul.f32 %v5068_v50, %v2143_v12  ;;  %v3531_v27 = vadd.f32 -0.28449672, %v3414_v17  ;;  %v3631_v24 = vmul.f32 %v8542_v46, %v3514_v34  ;;  %v4575_v47 = vsub.f32 1.0, %v4458_v30  ;;  %v12499_v45 = vld [vmem:[#allocation25_spill] sm:$0xff] }
 0x2c9   : > { %v8693_v38 = vadd.f32 %v12497_v35, %v8680_v51  ;;  %6770 = vrcp.f32 %v2612_v4  ;;  %v2596_v61 = vadd.f32 1.0, %v2479_v8  ;;  %v8698_v42 = vadd.f32 %v12498_v25, %v8584_v63 }
 0x2ca   : > { %12496 = vst [vmem:[#allocation46_spill] sm:$0xff] %v8685_v32  ;;  %v3648_v23 = vmul.f32 %v8636_v49, %v3531_v27  ;;  %v3881_v10 = vmul.f32 %v8496_v16, %v3764_v2  ;;  %v2118_v12 = vmul.f32 0.5, %v12499_v45  ;;  %v3422_v59 = vmul.f32 %v8580_v18, %v3305_v56  ;;  %v12500_v27 = vld [vmem:[#allocation10_spill] sm:$0xff]  ;;  %v12506_v32 = vld [vmem:[#allocation12_spill] sm:$0xff] }
 0x2cb   : > { %v8700_v37 = vpop.eup %6762  ;;  %v4246_v9 = vmul.f32 1.442695, %v4108_v33  ;;  %6772 = vpow2.f32 %v4278_v15  ;;  %v3406_v34 = vmul.f32 %v8611_v60, %v3289_v39  ;;  %v3748_v17 = vadd.f32 0.2548296, %v3631_v24  ;;  %v8718_v15 = vpop.f32.mrb[33].mxu0 }
 0x2cc   : > { %v3765_v30 = vadd.f32 0.2548296, %v3648_v23  ;;  %v2971_v4 = vmul.f32 1.0614054, %v8700_v37  ;;  %v6765_v50 = vpop.eup %6764  ;;  %v4809_v8 = vsub.f32 0.0, %v4575_v47  ;;  %v8709_v35 = vadd.f32 %v12500_v27, %v8342_v53  ;;  %12503 = vst [vmem:[#allocation25_spill] sm:$0xff] %v8718_v15 }
 0x2cd   : > { %v8712_v16 = vmul.f32 0.70710677, %v8693_v38  ;;  %6774 = vrcp.f32 %v2596_v61  ;;  %v8716_v56 = vmul.f32 0.70710677, %v8698_v42  ;;  %v8723_v24 = vmul.f32 %v8656_v20, %v3881_v10  ;;  %v12504_v23 = vld [vmem:[#allocation28_spill] sm:$0xff]  ;;  %v12507_v53 = vld [vmem:[#allocation27_spill] sm:$0xff] }
 0x2ce   : > { %12501 = vst [vmem:[#allocation11_spill] sm:$0xff] %v8709_v35  ;;  %v3882_v2 = vmul.f32 %v8636_v49, %v3765_v30  ;;  %v3088_v33 = vadd.f32 -1.4531521, %v2971_v4  ;;  %vm4692_vm4 = vcmp.ge.f32.partialorder %v12504_v23, 0.0  ;;  %v3539_v25 = vadd.f32 -0.28449672, %v3422_v59 }
 0x2cf   : > { %12502 = vst [vmem:[#allocation9_spill] sm:$0xff] %v8716_v56  ;;  %v8720_v39 = vpop.eup %6766  ;;  %6776 = vpow2.f32 %v4246_v9  ;;  %v3523_v45 = vadd.f32 -0.28449672, %v3406_v34  ;;  %v4926_v30 = vsel %vm4692_vm4, %v4575_v47, %v4809_v8  ;;  %v4024_v4 = vmul.f32 %v8632_v11, %v8632_v11 }
 0x2d0   : > { %v4467_v27 = vmul.f32 %v6765_v50, %v3882_v2  ;;  %v3205_v49 = vmul.f32 %v8700_v37, %v3088_v33  ;;  %v2955_v61 = vmul.f32 1.0614054, %v8720_v39  ;;  %v8731_v62 = vmul.f32 0.70710677, %v8709_v35 }
 0x2d1   : > { %v2395_v20 = vand.u32 2147483647, %v8712_v16  ;;  %v6769_v10 = vpop.eup %6768  ;;  %v3865_v23 = vmul.f32 %v8542_v46, %v3748_v17  ;;  %v8736_v34 = vand.u32 2147483647, %v8716_v56  ;;  %v4583_v50 = vsub.f32 1.0, %v8723_v24 }
 0x2d2   : > { %12505 = vst [vmem:[#allocation10_spill] sm:$0xff] %v8731_v62  ;;  %v4584_v59 = vsub.f32 1.0, %v4467_v27  ;;  %v3322_v9 = vadd.f32 1.4214138, %v3205_v49  ;;  %v3656_v47 = vmul.f32 %v8580_v18, %v3539_v25  ;;  %vm4701_vm5 = vcmp.ge.f32.partialorder %v8549_v3, 0.0 }
 0x2d3   : > { %v2512_v11 = vmul.f32 0.3275911, %v2395_v20  ;;  %v8741_v8 = vpop.eup %6770  ;;  %v5043_v2 = vadd.f32 1.0, %v4926_v30  ;;  %v3072_v58 = vadd.f32 -1.4531521, %v2955_v61  ;;  %v8745_v46 = vadd.f32 %v12506_v32, %v8423_v7 }
 0x2d4   : > { %v4818_v33 = vsub.f32 0.0, %v4584_v59  ;;  %v3439_v17 = vmul.f32 %v8700_v37, %v3322_v9  ;;  %v4141_v27 = vsub.f32 0.0, %v4024_v4  ;;  %v8749_v49 = vand.u32 2147483647, %v8731_v62  ;;  %v8758_v4 = vpop.f32.mrb[28].mxu1 }
 0x2d5   : > { %v2629_v24 = vadd.f32 1.0, %v2512_v11  ;;  %v6773_v25 = vpop.eup %6772  ;;  %vm4700_vm6 = vcmp.ge.f32.partialorder %v12507_v53, 0.0  ;;  %v8752_v3 = vmul.f32 %v6769_v10, %v3865_v23  ;;  %v3640_v30 = vmul.f32 %v8611_v60, %v3523_v45  ;;  %12508 = vst [vmem:[#allocation28_spill] sm:$0xff] %v8758_v4 }
 0x2d6   : > { %v4935_v15 = vsel %vm4701_vm5, %v4584_v59, %v4818_v33  ;;  %v2504_v61 = vmul.f32 0.3275911, %v8736_v34  ;;  %v2127_v32 = vmul.f32 0.5, %v8530_v21  ;;  %v2963_v9 = vmul.f32 1.0614054, %v8741_v8 }
 0x2d7   : > { %v5052_v44 = vadd.f32 1.0, %v4935_v15  ;;  %6778 = vrcp.f32 %v2629_v24  ;;  %v8760_v28 = vpop.eup %6774  ;;  %v8762_v11 = vmul.f32 %v5043_v2, %v2118_v12  ;;  %v3773_v62 = vadd.f32 0.2548296, %v3656_v47 }
 0x2d8   : > { %v3189_v10 = vmul.f32 %v8720_v39, %v3072_v58  ;;  %v8766_v45 = vmul.f32 0.70710677, %v8745_v46  ;;  %vm4684_vm8 = vcmp.ge.f32.partialorder %v8421_v41, 0.0  ;;  %v3556_v15 = vadd.f32 -0.28449672, %v3439_v17 }
 0x2d9   : > { %12509 = vst [vmem:[#allocation12_spill] sm:$0xff] %v8762_v11  ;;  %v6777_v23 = vpop.eup %6776  ;;  %v8769_v21 = vmul.f32 %v5052_v44, %v2127_v32  ;;  %v4312_v59 = vmul.f32 1.442695, %v4141_v27  ;;  %v2488_v33 = vmul.f32 0.3275911, %v8749_v49  ;;  %v5026_v24 = vadd.f32 1.0, %v8588_v22 }
 0x2da   : > { %v4817_v4 = vsub.f32 0.0, %v4583_v50  ;;  %v3757_v12 = vadd.f32 0.2548296, %v3640_v30  ;;  %v2621_v2 = vadd.f32 1.0, %v2504_v61  ;;  %v3080_v47 = vadd.f32 -1.4531521, %v2963_v9 }
 0x2db   : > { %12510 = vst [vmem:[#allocation27_spill] sm:$0xff] %v8769_v21  ;;  %v2947_v56 = vmul.f32 1.0614054, %v8760_v28  ;;  %v4008_v35 = vmul.f32 %v8660_v6, %v8660_v6  ;;  %v4567_v44 = vsub.f32 1.0, %v8752_v3  ;;  %v3890_v17 = vmul.f32 %v8580_v18, %v3773_v62  ;;  %v8781_v22 = vpop.f32.mrb[34].mxu0 }
 0x2dc   : > { %v3306_v27 = vadd.f32 1.4214138, %v3189_v10  ;;  %v2379_v32 = vand.u32 2147483647, %v8766_v45  ;;  %v3673_v30 = vmul.f32 %v8700_v37, %v3556_v15  ;;  %6780 = vpow2.f32 %v4312_v59 }
 0x2dd   : > { %v2605_v61 = vadd.f32 1.0, %v2488_v33  ;;  %v4033_v58 = vmul.f32 %v2395_v20, %v2395_v20  ;;  %v8785_v9 = vmul.f32 %v5026_v24, %v8538_v13  ;;  %v3874_v11 = vmul.f32 %v8611_v60, %v3757_v12 }
 0x2de   : > { %6782 = vrcp.f32 %v2621_v2  ;;  %v2496_v6 = vmul.f32 0.3275911, %v2379_v32  ;;  %v4934_v18 = vsel %vm4700_vm6, %v4583_v50, %v4817_v4  ;;  %v8791_v62 = vmul.f32 0.5, %v8452_v55 }
 0x2df   : > { %12511 = vst [vmem:[#allocation47_spill] sm:$0xff] %v8785_v9  ;;  %v3197_v3 = vmul.f32 %v8741_v8, %v3080_v47  ;;  %v4125_v10 = vsub.f32 0.0, %v4008_v35  ;;  %v4801_v15 = vsub.f32 0.0, %v4567_v44  ;;  %v3064_v59 = vadd.f32 -1.4531521, %v2947_v56  ;;  %v8812_v47 = vpop.f32.mrb[29].mxu1 }
 0x2e0   : > { %v3423_v20 = vmul.f32 %v8720_v39, %v3306_v27  ;;  %v2613_v33 = vadd.f32 1.0, %v2496_v6  ;;  %v8797_v24 = vmul.f32 %v6773_v25, %v3890_v17  ;;  %v3790_v60 = vadd.f32 0.2548296, %v3673_v30  ;;  %12512 = vst [vmem:[#allocation48_spill] sm:$0xff] %v8812_v47 }
 0x2e1   : > { %v8795_v13 = vpop.eup %6778  ;;  %6784 = vrcp.f32 %v2605_v61  ;;  %v4150_v12 = vsub.f32 0.0, %v4033_v58  ;;  %v8799_v53 = vmul.f32 %v6777_v23, %v3874_v11  ;;  %v4000_v55 = vmul.f32 %v8670_v36, %v8670_v36 }
 0x2e2   : > { %v2980_v50 = vmul.f32 1.0614054, %v8795_v13  ;;  %6786 = vrcp.f32 %v2613_v33  ;;  %v8805_v35 = vmul.f32 0.5, %v8472_v54  ;;  %v3314_v56 = vadd.f32 1.4214138, %v3197_v3 }
 0x2e3   : > { %v4016_v4 = vmul.f32 %v8651_v19, %v8651_v19  ;;  %v4280_v25 = vmul.f32 1.442695, %v4125_v10  ;;  %v4918_v2 = vsel %vm4684_vm8, %v4567_v44, %v4801_v15  ;;  %v3181_v11 = vmul.f32 %v8760_v28, %v3064_v59 }
 0x2e4   : > { %v3540_v23 = vadd.f32 -0.28449672, %v3423_v20  ;;  %v3097_v58 = vadd.f32 -1.4531521, %v2980_v50  ;;  %v5051_v36 = vadd.f32 1.0, %v4934_v18  ;;  %v12358_v17 = vsub.f32 1.0, %v8797_v24 }
 0x2e5   : > { %v3907_v54 = vmul.f32 %v8700_v37, %v3790_v60  ;;  %v4330_v27 = vmul.f32 1.442695, %v4150_v12  ;;  %v12357_v30 = vsub.f32 1.0, %v8799_v53  ;;  %v4117_v61 = vsub.f32 0.0, %v4000_v55 }
 0x2e6   : > { %v3214_v19 = vmul.f32 %v8795_v13, %v3097_v58  ;;  %v4017_v6 = vmul.f32 %v2379_v32, %v2379_v32  ;;  %v6781_v41 = vpop.eup %6780  ;;  %v8818_v44 = vadd.f32 1.0, %v4918_v2  ;;  %v8821_v3 = vmul.f32 0.5, %v8596_v48 }
 0x2e7   : > { %v3431_v10 = vmul.f32 %v8741_v8, %v3314_v56  ;;  %v4133_v18 = vsub.f32 0.0, %v4016_v4  ;;  %v3298_v59 = vadd.f32 1.4214138, %v3181_v11  ;;  %v3657_v37 = vmul.f32 %v8720_v39, %v3540_v23  ;;  %v8839_v56 = vpop.f32.mrb[35].mxu0 }
 0x2e8   : > { %v8824_v15 = vpop.eup %6782  ;;  %6788 = vpow2.f32 %v4280_v25  ;;  %v3331_v20 = vadd.f32 1.4214138, %v3214_v19  ;;  %v8829_v33 = vsub.f32 0.0, %v12358_v17  ;;  %v8832_v32 = vmul.f32 0.5, %v8600_v40  ;;  %12513 = vst [vmem:[#allocation49_spill] sm:$0xff] %v8839_v56 }
 0x2e9   : > { %v4492_v60 = vmul.f32 %v6781_v41, %v3907_v54  ;;  %6790 = vpow2.f32 %v4330_v27  ;;  %v8836_v48 = vsub.f32 0.0, %v12357_v30  ;;  %v4264_v12 = vmul.f32 1.442695, %v4117_v61 }
 0x2ea   : > { %v3448_v55 = vmul.f32 %v8795_v13, %v3331_v20  ;;  %v4134_v50 = vsub.f32 0.0, %v4017_v6  ;;  %v8844_v25 = vmul.f32 %v5051_v36, %v8573_v5  ;;  %v3548_v2 = vadd.f32 -0.28449672, %v3431_v10 }
 0x2eb   : > { %v8841_v4 = vpop.eup %6784  ;;  %v4296_v40 = vmul.f32 1.442695, %v4133_v18  ;;  %v2972_v11 = vmul.f32 1.0614054, %v8824_v15  ;;  %v3415_v58 = vmul.f32 %v8760_v28, %v3298_v59  ;;  %vm4726_vm9 = vcmp.ge.f32.partialorder %v8615_v31, 0.0  ;;  %v8862_v18 = vpop.permute.xlu0 %1333 }
 0x2ec   : > { %12514 = vst [vmem:[#allocation50_spill] sm:$0xff] %v8844_v25  ;;  %v8847_v23 = vpop.eup %6786  ;;  %v3774_v54 = vadd.f32 0.2548296, %v3657_v37  ;;  %v3565_v27 = vadd.f32 -0.28449672, %v3448_v55  ;;  %v4609_v61 = vsub.f32 1.0, %v4492_v60  ;;  %v8853_v19 = vmul.f32 %v8736_v34, %v8736_v34 }
 0x2ed   : > { %v8857_v5 = vmul.f32 %v8749_v49, %v8749_v49  ;;  %v2964_v36 = vmul.f32 1.0614054, %v8847_v23  ;;  %6792 = vpow2.f32 %v4264_v12  ;;  %v2956_v6 = vmul.f32 1.0614054, %v8841_v4  ;;  %12515 = vst [vmem:[#allocation51_spill] sm:$0xff] %v8862_v18  ;;  %v12516_v12 = vld [vmem:[#allocation16_spill] sm:$0xff] }
 0x2ee   : > { %v3682_v41 = vmul.f32 %v8795_v13, %v3565_v27  ;;  %v4298_v10 = vmul.f32 1.442695, %v4134_v50  ;;  %v3665_v59 = vmul.f32 %v8741_v8, %v3548_v2  ;;  %v3089_v37 = vadd.f32 -1.4531521, %v2972_v11 }
 0x2ef   : > { %v8866_v34 = vmul.f32 0.5, %v8693_v38  ;;  %v3081_v20 = vadd.f32 -1.4531521, %v2964_v36  ;;  %v3532_v60 = vadd.f32 -0.28449672, %v3415_v58  ;;  %v3891_v49 = vmul.f32 %v8720_v39, %v3774_v54  ;;  %v12517_v58 = vld [vmem:[#allocation13_spill] sm:$0xff] }
 0x2f0   : > { %v3799_v55 = vadd.f32 0.2548296, %v3682_v41  ;;  %v8871_v30 = vadd.f32 %v12516_v12, %v8862_v18  ;;  %v4843_v17 = vsub.f32 0.0, %v4609_v61  ;;  %v4142_v50 = vsub.f32 0.0, %v8853_v19  ;;  %v8881_v54 = vpop.f32.mrb[36].mxu0 }
 0x2f1   : > { %v3198_v2 = vmul.f32 %v8847_v23, %v3081_v20  ;;  %v3073_v21 = vadd.f32 -1.4531521, %v2956_v6  ;;  %6794 = vpow2.f32 %v4298_v10  ;;  %v8879_v39 = vadd.f32 %v12517_v58, %v8680_v51  ;;  %12518 = vst [vmem:[#allocation16_spill] sm:$0xff] %v8881_v54  ;;  %v8889_v10 = vpop.f32.mrb[30].mxu1  ;;  %v8932_v54 = vpop.f32.mrb[37].mxu0 }
 0x2f2   : > { %v6789_v11 = vpop.eup %6788  ;;  %v3916_v38 = vmul.f32 %v8795_v13, %v3799_v55  ;;  %v3782_v41 = vadd.f32 0.2548296, %v3665_v59  ;;  %v3206_v12 = vmul.f32 %v8824_v15, %v3089_v37  ;;  %vm4735_vm10 = vcmp.ge.f32.partialorder %v8712_v16, 0.0  ;;  %12519 = vst [vmem:[#allocation13_spill] sm:$0xff] %v8889_v10  ;;  %v12520_v59 = vld [vmem:[#allocation15_spill] sm:$0xff] }
 0x2f3   : > { %v6791_v36 = vpop.eup %6790  ;;  %v3315_v19 = vadd.f32 1.4214138, %v3198_v2  ;;  %v3649_v20 = vmul.f32 %v8760_v28, %v3532_v60  ;;  %v4476_v27 = vmul.f32 %v6789_v11, %v3891_v49  ;;  %v8887_v13 = vmul.f32 0.70710677, %v8871_v30  ;;  %v12521_v2 = vld [vmem:[#allocation17_spill] sm:$0xff] }
 0x2f4   : > { %v4501_v6 = vmul.f32 %v6791_v36, %v3916_v38  ;;  %v4960_v55 = vsel %vm4726_vm9, %v4609_v61, %v4843_v17  ;;  %v8896_v37 = vadd.f32 %v12520_v59, %v8423_v7  ;;  %v8900_v9 = vadd.f32 %v12521_v2, %v8584_v63 }
 0x2f5   : > { %v3432_v58 = vmul.f32 %v8847_v23, %v3315_v19  ;;  %v3190_v60 = vmul.f32 %v8841_v4, %v3073_v21  ;;  %v8904_v11 = vmul.f32 0.70710677, %v8879_v39  ;;  %v8907_v38 = vand.u32 2147483647, %v8887_v13 }
 0x2f6   : > { %v4618_v49 = vsub.f32 1.0, %v4501_v6  ;;  %vm4709_vm11 = vcmp.ge.f32.partialorder %v8467_v1, 0.0  ;;  %vm4693_vm12 = vcmp.ge.f32.partialorder %v8494_v0, 0.0  ;;  %6796 = vpow2.f32 %v4296_v40  ;;  %v12529_v1 = vld [vmem:[#allocation20_spill] sm:$0xff]  ;;  %v12530_v0 = vld [vmem:[#allocation23_spill] sm:$0xff] }
 0x2f7   : > { %v3323_v31 = vadd.f32 1.4214138, %v3206_v12  ;;  %v3549_v17 = vadd.f32 -0.28449672, %v3432_v58  ;;  %v8912_v61 = vmul.f32 0.70710677, %v8900_v9  ;;  %v6793_v36 = vpop.eup %6792 }
 0x2f8   : > { %v5077_v19 = vadd.f32 1.0, %v4960_v55  ;;  %v4593_v21 = vsub.f32 1.0, %v4476_v27  ;;  %v4852_v6 = vsub.f32 0.0, %v4618_v49  ;;  %v2521_v59 = vmul.f32 0.3275911, %v8907_v38 }
 0x2f9   : > { %v3766_v2 = vadd.f32 0.2548296, %v3649_v20  ;;  %v3666_v7 = vmul.f32 %v8847_v23, %v3549_v17  ;;  %v8917_v25 = vmul.f32 0.70710677, %v8896_v37  ;;  %v8920_v10 = vand.u32 2147483647, %v8912_v61 }
 0x2fa   : > { %v3307_v40 = vadd.f32 1.4214138, %v3190_v60  ;;  %v4969_v12 = vsel %vm4735_vm10, %v4618_v49, %v4852_v6  ;;  %v8925_v58 = vand.u32 2147483647, %v8904_v11  ;;  %v2638_v27 = vadd.f32 1.0, %v2521_v59 }
 0x2fb   : > { %v8929_v55 = vmul.f32 %v8818_v44, %v8578_v57  ;;  %v5086_v20 = vadd.f32 1.0, %v4969_v12  ;;  %v3783_v17 = vadd.f32 0.2548296, %v3666_v7  ;;  %v2505_v56 = vmul.f32 0.3275911, %v8920_v10  ;;  %v6795_v47 = vpop.eup %6794 }
 0x2fc   : > { %v8935_v60 = vmul.f32 %v5077_v19, %v8832_v32  ;;  %v4827_v16 = vsub.f32 0.0, %v4593_v21  ;;  %v3440_v49 = vmul.f32 %v8824_v15, %v3323_v31  ;;  %6798 = vrcp.f32 %v2638_v27  ;;  %v8951_v27 = vpop.permute.xlu1 %1338 }
 0x2fd   : > { %12522 = vst [vmem:[#allocation15_spill] sm:$0xff] %v8929_v55  ;;  %v8939_v6 = vmul.f32 %v5086_v20, %v8866_v34  ;;  %v3900_v57 = vmul.f32 %v8847_v23, %v3783_v17  ;;  %v8943_v44 = vand.u32 2147483647, %v8917_v25  ;;  %v2622_v7 = vadd.f32 1.0, %v2505_v56  ;;  %12525 = vst [vmem:[#allocation53_spill] sm:$0xff] %v8951_v27 }
 0x2fe   : > { %12523 = vst [vmem:[#allocation17_spill] sm:$0xff] %v8935_v60  ;;  %v3899_v59 = vmul.f32 %v8741_v8, %v3782_v41  ;;  %v3883_v12 = vmul.f32 %v8760_v28, %v3766_v2  ;;  %v4314_v55 = vmul.f32 1.442695, %v4142_v50  ;;  %v3424_v32 = vmul.f32 %v8841_v4, %v3307_v40 }
 0x2ff   : > { %12524 = vst [vmem:[#allocation52_spill] sm:$0xff] %v8939_v6  ;;  %v4485_v19 = vmul.f32 %v6795_v47, %v3900_v57  ;;  %v2513_v34 = vmul.f32 0.3275911, %v8925_v58  ;;  %6800 = vrcp.f32 %v2622_v7  ;;  %v12526_v23 = vsub.f32 1.0, %v8797_v24 }
 0x300   : > { %v12527_v28 = vsub.f32 1.0, %v8799_v53  ;;  %vm4710_vm13 = vcmp.ge.f32.partialorder %v8645_v52, 0.0  ;;  %v12528_v47 = vsub.f32 0.0, %v8857_v5  ;;  %v6797_v41 = vpop.eup %6796  ;;  %v3557_v40 = vadd.f32 -0.28449672, %v3440_v49 }
 0x301   : > { %v4943_v8 = vsel %vm4709_vm11, %v12526_v23, %v8829_v33  ;;  %v4944_v2 = vsel %vm4710_vm13, %v4593_v21, %v4827_v16  ;;  %v4602_v20 = vsub.f32 1.0, %v4485_v19  ;;  %v2497_v24 = vmul.f32 0.3275911, %v8943_v44 }
 0x302   : > { %v4927_v56 = vsel %vm4693_vm12, %v12527_v28, %v8836_v48  ;;  %v4282_v50 = vmul.f32 1.442695, %v12528_v47  ;;  %v8967_v17 = vmul.f32 %v6797_v41, %v3899_v59  ;;  %6802 = vpow2.f32 %v4314_v55  ;;  %v8981_v55 = vpop.f32.mrb[31].mxu1 }
 0x303   : > { %v8971_v53 = vadd.f32 %v12529_v1, %v8862_v18  ;;  %v8975_v33 = vadd.f32 %v12530_v0, %v8951_v27  ;;  %v8977_v52 = vmul.f32 %v6793_v36, %v3883_v12  ;;  %v3541_v48 = vadd.f32 -0.28449672, %v3424_v32  ;;  %12531 = vst [vmem:[#allocation20_spill] sm:$0xff] %v8981_v55 }
 0x304   : > { %v4836_v5 = vsub.f32 0.0, %v4602_v20  ;;  %v2630_v21 = vadd.f32 1.0, %v2513_v34  ;;  %v2136_v16 = vmul.f32 0.5, %v8628_v29  ;;  %v5061_v49 = vadd.f32 1.0, %v4944_v2 }
 0x305   : > { %6804 = vpow2.f32 %v4282_v50  ;;  %vm4719_vm14 = vcmp.ge.f32.partialorder %v8766_v45, 0.0  ;;  %v3674_v57 = vmul.f32 %v8824_v15, %v3557_v40  ;;  %v2145_v7 = vmul.f32 0.5, %v8745_v46 }
 0x306   : > { %v4953_v59 = vsel %vm4719_vm14, %v4602_v20, %v4836_v5  ;;  %v2614_v19 = vadd.f32 1.0, %v2497_v24  ;;  %v8985_v23 = vpop.eup %6798  ;;  %v4601_v36 = vsub.f32 1.0, %v8967_v17  ;;  %v8989_v32 = vmul.f32 0.70710677, %v8971_v53  ;;  %v12534_v24 = vld [vmem:[#allocation21_spill] sm:$0xff] }
 0x307   : > { %v5070_v12 = vadd.f32 1.0, %v4953_v59  ;;  %v8992_v29 = vmul.f32 0.70710677, %v8975_v33  ;;  %v4585_v45 = vsub.f32 1.0, %v8977_v52  ;;  %v3658_v34 = vmul.f32 %v8841_v4, %v3541_v48 }
 0x308   : > { %6806 = vrcp.f32 %v2630_v21  ;;  %v2989_v46 = vmul.f32 1.0614054, %v8985_v23  ;;  %v8997_v28 = vmul.f32 %v5061_v49, %v2136_v16  ;;  %v4042_v50 = vmul.f32 %v8907_v38, %v8907_v38 }
 0x309   : > { %v8999_v47 = vmul.f32 %v5070_v12, %v2145_v7  ;;  %v2413_v41 = vand.u32 2147483647, %v8992_v29  ;;  %v9004_v2 = vpop.eup %6800  ;;  %v3791_v40 = vadd.f32 0.2548296, %v3674_v57  ;;  %6808 = vrcp.f32 %v2614_v19 }
 0x30a   : > { %12532 = vst [vmem:[#allocation23_spill] sm:$0xff] %v8997_v28  ;;  %v3106_v20 = vadd.f32 -1.4531521, %v2989_v46  ;;  %v9008_v17 = vadd.f32 %v12534_v24, %v8584_v63  ;;  %v2973_v0 = vmul.f32 1.0614054, %v9004_v2  ;;  %v5060_v48 = vadd.f32 1.0, %v4943_v8 }
 0x30b   : > { %12533 = vst [vmem:[#allocation54_spill] sm:$0xff] %v8999_v47  ;;  %v9014_v52 = vand.u32 2147483647, %v8989_v32  ;;  %v2530_v38 = vmul.f32 0.3275911, %v2413_v41  ;;  %vm4702_vm15 = vcmp.ge.f32.partialorder %v8654_v26, 0.0  ;;  %v3908_v8 = vmul.f32 %v8824_v15, %v3791_v40 }
 0x30c   : > { %v3775_v5 = vadd.f32 0.2548296, %v3658_v34  ;;  %v3223_v21 = vmul.f32 %v8985_v23, %v3106_v20  ;;  %v6803_v16 = vpop.eup %6802  ;;  %v5044_v49 = vadd.f32 1.0, %v4927_v56  ;;  %v4159_v57 = vsub.f32 0.0, %v4042_v50  ;;  %v12535_v24 = vld [vmem:[#allocation26_spill] sm:$0xff] }
 0x30d   : > { %v3090_v7 = vadd.f32 -1.4531521, %v2973_v0  ;;  %v2647_v59 = vadd.f32 1.0, %v2530_v38  ;;  %v4835_v19 = vsub.f32 0.0, %v4601_v36  ;;  %v4819_v12 = vsub.f32 0.0, %v4585_v45 }
 0x30e   : > { %v3340_v46 = vadd.f32 1.4214138, %v3223_v21  ;;  %v9020_v1 = vadd.f32 %v12535_v24, %v8680_v51  ;;  %v2522_v28 = vmul.f32 0.3275911, %v9014_v52  ;;  %v9025_v34 = vmul.f32 0.70710677, %v9008_v17 }
 0x30f   : > { %v6805_v31 = vpop.eup %6804  ;;  %6810 = vrcp.f32 %v2647_v59  ;;  %vm4718_vm0 = vcmp.ge.f32.partialorder %v8620_v43, 0.0  ;;  %v3892_v56 = vmul.f32 %v8841_v4, %v3775_v5  ;;  %v3207_v20 = vmul.f32 %v9004_v2, %v3090_v7  ;;  %v9045_v7 = vpop.f32.mrb[38].mxu0 }
 0x310   : > { %v3457_v50 = vmul.f32 %v8985_v23, %v3340_v46  ;;  %v9032_v0 = vmul.f32 %v5060_v48, %v8791_v62  ;;  %v9035_v38 = vmul.f32 %v5044_v49, %v8805_v35  ;;  %v2128_v15 = vmul.f32 0.5, %v8624_v14  ;;  %12538 = vst [vmem:[#allocation55_spill] sm:$0xff] %v9045_v7 }
 0x311   : > { %v4348_v40 = vmul.f32 1.442695, %v4159_v57  ;;  %v4952_v59 = vsel %vm4718_vm0, %v4601_v36, %v4835_v19  ;;  %v4936_v43 = vsel %vm4702_vm15, %v4585_v45, %v4819_v12  ;;  %v9043_v5 = vmul.f32 0.70710677, %v9020_v1  ;;  %v9058_v19 = vpop.f32.mrb[32].mxu1 }
 0x312   : > { %12536 = vst [vmem:[#allocation21_spill] sm:$0xff] %v9032_v0  ;;  %12537 = vst [vmem:[#allocation26_spill] sm:$0xff] %v9035_v38  ;;  %v9038_v21 = vpop.eup %6806  ;;  %v3574_v4 = vadd.f32 -0.28449672, %v3457_v50  ;;  %v4493_v62 = vmul.f32 %v6803_v16, %v3908_v8  ;;  %v4026_v35 = vmul.f32 %v8920_v10, %v8920_v10  ;;  %v2639_v48 = vadd.f32 1.0, %v2522_v28  ;;  %v12540_v16 = vld [vmem:[#allocation11_spill] sm:$0xff] }
 0x313   : > { %v9050_v14 = vand.u32 2147483647, %v9025_v34  ;;  %v9052_v49 = vpop.eup %6808  ;;  %v9055_v36 = vmul.f32 0.5, %v8698_v42  ;;  %v4477_v26 = vmul.f32 %v6805_v31, %v3892_v56  ;;  %v3324_v45 = vadd.f32 1.4214138, %v3207_v20  ;;  %12539 = vst [vmem:[#allocation56_spill] sm:$0xff] %v9058_v19 }
 0x314   : > { %v2397_v57 = vand.u32 2147483647, %v9043_v5  ;;  %v5069_v12 = vadd.f32 1.0, %v4952_v59  ;;  %v9061_v46 = vmul.f32 0.5, %v12540_v16  ;;  %v2981_v10 = vmul.f32 1.0614054, %v9038_v21 }
 0x315   : > { %v4051_v28 = vmul.f32 %v2413_v41, %v2413_v41  ;;  %v5053_v24 = vadd.f32 1.0, %v4936_v43  ;;  %v12541_v8 = vld [vmem:[#allocation9_spill] sm:$0xff]  ;;  %v3691_v50 = vmul.f32 %v8985_v23, %v3574_v4  ;;  %6812 = vpow2.f32 %v4348_v40  ;;  %v12542_v56 = vld [vmem:[#allocation10_spill] sm:$0xff] }
 0x316   : > { %vm4727_vm1 = vcmp.ge.f32.partialorder %v12541_v8, 0.0  ;;  %v2514_v42 = vmul.f32 0.3275911, %v2397_v57  ;;  %v4610_v31 = vsub.f32 1.0, %v4493_v62  ;;  %vm4711_vm2 = vcmp.ge.f32.partialorder %v12542_v56, 0.0 }
 0x317   : > { %v2965_v20 = vmul.f32 1.0614054, %v9052_v49  ;;  %v4143_v47 = vsub.f32 0.0, %v4026_v35  ;;  %6814 = vrcp.f32 %v2639_v48  ;;  %v4594_v59 = vsub.f32 1.0, %v4477_v26  ;;  %v9080_v26 = vpop.f32.mrb[39].mxu0 }
 0x318   : > { %v3441_v16 = vmul.f32 %v9004_v2, %v3324_v45  ;;  %v2506_v38 = vmul.f32 0.3275911, %v9050_v14  ;;  %v2631_v41 = vadd.f32 1.0, %v2514_v42  ;;  %v9073_v60 = vmul.f32 %v5069_v12, %v8821_v3  ;;  %12545 = vst [vmem:[#allocation10_spill] sm:$0xff] %v9080_v26 }
 0x319   : > { %v9070_v43 = vpop.eup %6810  ;;  %v3098_v40 = vadd.f32 -1.4531521, %v2981_v10  ;;  %v4034_v4 = vmul.f32 %v8925_v58, %v8925_v58  ;;  %v4168_v62 = vsub.f32 0.0, %v4051_v28  ;;  %v9077_v6 = vmul.f32 %v5053_v24, %v2128_v15 }
 0x31a   : > { %12543 = vst [vmem:[#allocation11_spill] sm:$0xff] %v9073_v60  ;;  %v3808_v35 = vadd.f32 0.2548296, %v3691_v50  ;;  %v2998_v48 = vmul.f32 1.0614054, %v9070_v43  ;;  %6816 = vrcp.f32 %v2631_v41  ;;  %v4844_v45 = vsub.f32 0.0, %v4610_v31 }
 0x31b   : > { %12544 = vst [vmem:[#allocation9_spill] sm:$0xff] %v9077_v6  ;;  %v9083_v42 = vmul.f32 0.5, %v8879_v39  ;;  %v3082_v63 = vadd.f32 -1.4531521, %v2965_v20  ;;  %v4316_v3 = vmul.f32 1.442695, %v4143_v47  ;;  %v3215_v58 = vmul.f32 %v9038_v21, %v3098_v40 }
 0x31c   : > { %v4828_v12 = vsub.f32 0.0, %v4594_v59  ;;  %v3558_v10 = vadd.f32 -0.28449672, %v3441_v16  ;;  %v2623_v60 = vadd.f32 1.0, %v2506_v38  ;;  %v3115_v0 = vadd.f32 -1.4531521, %v2998_v48 }
 0x31d   : > { %v4151_v15 = vsub.f32 0.0, %v4034_v4  ;;  %v9087_v28 = vmul.f32 0.5, %v8896_v37  ;;  %v4366_v24 = vmul.f32 1.442695, %v4168_v62  ;;  %v3925_v50 = vmul.f32 %v8985_v23, %v3808_v35  ;;  %v12546_v39 = vld [vmem:[#allocation29_spill] sm:$0xff] }
 0x31e   : > { %v3232_v41 = vmul.f32 %v9070_v43, %v3115_v0  ;;  %v4035_v6 = vmul.f32 %v2397_v57, %v2397_v57  ;;  %v9093_v20 = vadd.f32 %v12546_v39, %v8951_v27  ;;  %v4961_v47 = vsel %vm4727_vm1, %v4610_v31, %v4844_v45 }
 0x31f   : > { %v3199_v38 = vmul.f32 %v9052_v49, %v3082_v63  ;;  %v4018_v16 = vmul.f32 %v8943_v44, %v8943_v44  ;;  %6818 = vpow2.f32 %v4316_v3  ;;  %v6813_v37 = vpop.eup %6812  ;;  %v4945_v23 = vsel %vm4711_vm2, %v4594_v59, %v4828_v12  ;;  %v9108_v63 = vpop.f32.mrb[33].mxu1 }
 0x320   : > { %v3675_v0 = vmul.f32 %v9004_v2, %v3558_v10  ;;  %6820 = vrcp.f32 %v2623_v60  ;;  %v3349_v57 = vadd.f32 1.4214138, %v3232_v41  ;;  %v3332_v4 = vadd.f32 1.4214138, %v3215_v58  ;;  %12547 = vst [vmem:[#allocation29_spill] sm:$0xff] %v9108_v63  ;;  %v12550_v63 = vld [vmem:[#allocation37_spill] sm:$0xff] }
 0x321   : > { %v9103_v40 = vpop.eup %6814  ;;  %v4332_v62 = vmul.f32 1.442695, %v4151_v15  ;;  %v9106_v8 = vmul.f32 0.5, %v8871_v30  ;;  %6822 = vpow2.f32 %v4366_v24  ;;  %v4510_v44 = vmul.f32 %v6813_v37, %v3925_v50  ;;  %v9120_v30 = vpop.permute.xlu0 %1343  ;;  %v12549_v50 = vld [vmem:[#allocation34_spill] sm:$0xff] }
 0x322   : > { %v3466_v31 = vmul.f32 %v9070_v43, %v3349_v57  ;;  %v4152_v35 = vsub.f32 0.0, %v4035_v6  ;;  %v9112_v56 = vmul.f32 0.70710677, %v9093_v20  ;;  %v9114_v59 = vadd.f32 1.0, %v4961_v47  ;;  %12548 = vst [vmem:[#allocation57_spill] sm:$0xff] %v9120_v30  ;;  %v9158_v19 = vpop.f32.mrb[34].mxu1 }
 0x323   : > { %v9116_v60 = vadd.f32 1.0, %v4945_v23  ;;  %v3316_v48 = vadd.f32 1.4214138, %v3199_v38  ;;  %v4135_v45 = vsub.f32 0.0, %v4018_v16  ;;  %v3792_v12 = vadd.f32 0.2548296, %v3675_v0 }
 0x324   : > { %v9118_v3 = vpop.eup %6816  ;;  %v2990_v10 = vmul.f32 1.0614054, %v9103_v40  ;;  %v9125_v58 = vmul.f32 %v9014_v52, %v9014_v52  ;;  %v3583_v6 = vadd.f32 -0.28449672, %v3466_v31  ;;  %v3449_v15 = vmul.f32 %v9038_v21, %v3332_v4  ;;  %12551 = vst [vmem:[#allocation34_spill] sm:$0xff] %v9158_v19 }
 0x325   : > { %6824 = vpow2.f32 %v4332_v62  ;;  %v2982_v24 = vmul.f32 1.0614054, %v9118_v3  ;;  %v9131_v41 = vadd.f32 %v12549_v50, %v9120_v30  ;;  %v4627_v39 = vsub.f32 1.0, %v4510_v44 }
 0x326   : > { %v3700_v47 = vmul.f32 %v9070_v43, %v3583_v6  ;;  %v4334_v38 = vmul.f32 1.442695, %v4152_v35  ;;  %v9135_v16 = vand.u32 2147483647, %v9112_v56  ;;  %v3433_v52 = vmul.f32 %v9052_v49, %v3316_v48 }
 0x327   : > { %v4300_v37 = vmul.f32 1.442695, %v4135_v45  ;;  %vm4744_vm3 = vcmp.ge.f32.partialorder %v8887_v13, 0.0  ;;  %v3099_v23 = vadd.f32 -1.4531521, %v2982_v24  ;;  %v3909_v0 = vmul.f32 %v9004_v2, %v3792_v12 }
 0x328   : > { %v3107_v57 = vadd.f32 -1.4531521, %v2990_v10  ;;  %v3817_v62 = vadd.f32 0.2548296, %v3700_v47  ;;  %v3566_v44 = vadd.f32 -0.28449672, %v3449_v15  ;;  %6826 = vpow2.f32 %v4334_v38 }
 0x329   : > { %v6819_v31 = vpop.eup %6818  ;;  %v2179_v6 = vmul.f32 0.5, %v8975_v33  ;;  %v3216_v35 = vmul.f32 %v9118_v3, %v3099_v23  ;;  %v9144_v50 = vmul.f32 0.70710677, %v9131_v41  ;;  %v4861_v45 = vsub.f32 0.0, %v4627_v39 }
 0x32a   : > { %v9146_v48 = vpop.eup %6820  ;;  %v3934_v24 = vmul.f32 %v9070_v43, %v3817_v62  ;;  %v2531_v2 = vmul.f32 0.3275911, %v9135_v16  ;;  %v3550_v10 = vadd.f32 -0.28449672, %v3433_v52  ;;  %6828 = vpow2.f32 %v4300_v37 }
 0x32b   : > { %v6823_v12 = vpop.eup %6822  ;;  %v3333_v47 = vadd.f32 1.4214138, %v3216_v35  ;;  %v9151_v15 = vand.u32 2147483647, %v9144_v50  ;;  %v4494_v33 = vmul.f32 %v6819_v31, %v3909_v0  ;;  %v3224_v23 = vmul.f32 %v9103_v40, %v3107_v57 }
 0x32c   : > { %v4519_v4 = vmul.f32 %v6823_v12, %v3934_v24  ;;  %v9156_v26 = vadd.f32 %v12550_v63, %v8862_v18  ;;  %v2974_v43 = vmul.f32 1.0614054, %v9146_v48  ;;  %v4027_v38 = vmul.f32 %v9050_v14, %v9050_v14  ;;  %v9168_v63 = vpop.f32.mrb[40].mxu0 }
 0x32d   : > { %v3450_v52 = vmul.f32 %v9118_v3, %v3333_v47  ;;  %v2539_v37 = vmul.f32 0.3275911, %v9151_v15  ;;  %v3683_v0 = vmul.f32 %v9038_v21, %v3566_v44  ;;  %v4978_v57 = vsel %vm4744_vm3, %v4627_v39, %v4861_v45  ;;  %12552 = vst [vmem:[#allocation37_spill] sm:$0xff] %v9168_v63 }
 0x32e   : > { %v4636_v62 = vsub.f32 1.0, %v4519_v4  ;;  %v2648_v31 = vadd.f32 1.0, %v2531_v2  ;;  %v3667_v24 = vmul.f32 %v9052_v49, %v3550_v10  ;;  %vm4728_vm4 = vcmp.ge.f32.partialorder %v8912_v61, 0.0  ;;  %v12553_v2 = vld [vmem:[#allocation31_spill] sm:$0xff] }
 0x32f   : > { %v6825_v35 = vpop.eup %6824  ;;  %vm4753_vm5 = vcmp.ge.f32.partialorder %v8992_v29, 0.0  ;;  %v3567_v14 = vadd.f32 -0.28449672, %v3450_v52  ;;  %v2656_v12 = vadd.f32 1.0, %v2539_v37  ;;  %v4611_v47 = vsub.f32 1.0, %v4494_v33  ;;  %v12554_v37 = vld [vmem:[#allocation39_spill] sm:$0xff] }
 0x330   : > { %v3341_v19 = vadd.f32 1.4214138, %v3224_v23  ;;  %v4870_v7 = vsub.f32 0.0, %v4636_v62  ;;  %v9174_v44 = vmul.f32 0.70710677, %v9156_v26  ;;  %v5095_v13 = vadd.f32 1.0, %v4978_v57 }
 0x331   : > { %v3091_v39 = vadd.f32 -1.4531521, %v2974_v43  ;;  %v3684_v4 = vmul.f32 %v9118_v3, %v3567_v14  ;;  %6830 = vrcp.f32 %v2656_v12  ;;  %v9179_v10 = vadd.f32 %v12553_v2, %v8680_v51 }
 0x332   : > { %v4987_v45 = vsel %vm4753_vm5, %v4636_v62, %v4870_v7  ;;  %6832 = vrcp.f32 %v2648_v31  ;;  %v9182_v29 = vand.u32 2147483647, %v9174_v44  ;;  %v3800_v33 = vadd.f32 0.2548296, %v3683_v0  ;;  %v6827_v43 = vpop.eup %6826  ;;  %v9190_v31 = vpop.f32.mrb[35].mxu1 }
 0x333   : > { %v5104_v23 = vadd.f32 1.0, %v4987_v45  ;;  %v3801_v52 = vadd.f32 0.2548296, %v3684_v4  ;;  %v9186_v63 = vadd.f32 %v12554_v37, %v9120_v30  ;;  %v3784_v57 = vadd.f32 0.2548296, %v3667_v24  ;;  %12555 = vst [vmem:[#allocation31_spill] sm:$0xff] %v9190_v31 }
 0x334   : > { %v4845_v14 = vsub.f32 0.0, %v4611_v47  ;;  %v3458_v7 = vmul.f32 %v9103_v40, %v3341_v19  ;;  %v2523_v62 = vmul.f32 0.3275911, %v9182_v29  ;;  %v6829_v12 = vpop.eup %6828  ;;  %v9193_v2 = vmul.f32 %v5095_v13, %v9106_v8 }
 0x335   : > { %v3208_v0 = vmul.f32 %v9146_v48, %v3091_v39  ;;  %v9196_v4 = vmul.f32 %v5104_v23, %v2179_v6  ;;  %v3918_v45 = vmul.f32 %v9118_v3, %v3801_v52  ;;  %v12558_v37 = vsub.f32 0.0, %v9125_v58  ;;  %v9221_v23 = vpop.permute.xlu1 %1348 }
 0x336   : > { %12556 = vst [vmem:[#allocation39_spill] sm:$0xff] %v9193_v2  ;;  %v4144_v51 = vsub.f32 0.0, %v4027_v38  ;;  %v9202_v19 = vmul.f32 0.70710677, %v9179_v10  ;;  %v2640_v55 = vadd.f32 1.0, %v2523_v62  ;;  %v3917_v31 = vmul.f32 %v9038_v21, %v3800_v33  ;;  %12561 = vst [vmem:[#allocation61_spill] sm:$0xff] %v9221_v23 }
 0x337   : > { %12557 = vst [vmem:[#allocation58_spill] sm:$0xff] %v9196_v4  ;;  %v4350_v24 = vmul.f32 1.442695, %v12558_v37  ;;  %v4503_v13 = vmul.f32 %v6827_v43, %v3918_v45  ;;  %v9208_v39 = vmul.f32 0.70710677, %v9186_v63  ;;  %v9212_v3 = vmul.f32 %v9114_v59, %v9055_v36 }
 0x338   : > { %v9216_v58 = vmul.f32 %v9116_v60, %v9061_v46  ;;  %v4962_v6 = vsel %vm4728_vm4, %v4611_v47, %v4845_v14  ;;  %6834 = vrcp.f32 %v2640_v55  ;;  %v3901_v21 = vmul.f32 %v9052_v49, %v3784_v57  ;;  %v9227_v46 = vpop.f32.mrb[41].mxu0 }
 0x339   : > { %12559 = vst [vmem:[#allocation59_spill] sm:$0xff] %v9212_v3  ;;  %v3575_v38 = vadd.f32 -0.28449672, %v3458_v7  ;;  %v3325_v33 = vadd.f32 1.4214138, %v3208_v0  ;;  %v4620_v52 = vsub.f32 1.0, %v4503_v13  ;;  %6836 = vpow2.f32 %v4350_v24 }
 0x33a   : > { %12560 = vst [vmem:[#allocation60_spill] sm:$0xff] %v9216_v58  ;;  %v2154_v43 = vmul.f32 0.5, %v8900_v9  ;;  %v4318_v36 = vmul.f32 1.442695, %v4144_v51  ;;  %v9225_v59 = vand.u32 2147483647, %v9202_v19  ;;  %v9231_v61 = vmul.f32 %v6825_v35, %v3917_v31 }
 0x33b   : > { %12562 = vst [vmem:[#allocation62_spill] sm:$0xff] %v9227_v46  ;;  %v9229_v60 = vpop.eup %6830  ;;  %v5079_v55 = vadd.f32 1.0, %v4962_v6  ;;  %v4854_v49 = vsub.f32 0.0, %v4620_v52  ;;  %v9234_v47 = vand.u32 2147483647, %v9208_v39  ;;  %vm4737_vm6 = vcmp.ge.f32.partialorder %v9043_v5, 0.0 }
 0x33c   : > { %v9236_v57 = vpop.eup %6832  ;;  %v3007_v51 = vmul.f32 1.0614054, %v9229_v60  ;;  %v12563_v9 = vld [vmem:[#allocation40_spill] sm:$0xff]  ;;  %v4486_v35 = vmul.f32 %v6829_v12, %v3901_v21  ;;  %v3692_v31 = vmul.f32 %v9103_v40, %v3575_v38  ;;  %v3442_v0 = vmul.f32 %v9146_v48, %v3325_v33  ;;  %v12567_v58 = vld [vmem:[#allocation7_spill] sm:$0xff] }
 0x33d   : > { %v9242_v14 = vadd.f32 %v12563_v9, %v8862_v18  ;;  %v12564_v7 = vld [vmem:[#allocation24_spill] sm:$0xff]  ;;  %v4971_v45 = vsel %vm4737_vm6, %v4620_v52, %v4854_v49  ;;  %v2163_v37 = vmul.f32 0.5, %v9020_v1  ;;  %v2515_v5 = vmul.f32 0.3275911, %v9225_v59  ;;  %v9283_v49 = vpop.f32.mrb[36].mxu1 }
 0x33e   : > { %v9246_v62 = vadd.f32 %v12564_v7, %v9221_v23  ;;  %v5088_v24 = vadd.f32 1.0, %v4971_v45  ;;  %v3124_v13 = vadd.f32 -1.4531521, %v3007_v51  ;;  %v4619_v6 = vsub.f32 1.0, %v9231_v61  ;;  %12568 = vst [vmem:[#allocation7_spill] sm:$0xff] %v9283_v49 }
 0x33f   : > { %v9253_v9 = vmul.f32 %v5079_v55, %v2154_v43  ;;  %v2999_v8 = vmul.f32 1.0614054, %v9236_v57  ;;  %v2540_v7 = vmul.f32 0.3275911, %v9234_v47  ;;  %vm4736_vm8 = vcmp.ge.f32.partialorder %v8904_v11, 0.0 }
 0x340   : > { %v9258_v12 = vmul.f32 %v5088_v24, %v2163_v37  ;;  %v3241_v21 = vmul.f32 %v9229_v60, %v3124_v13  ;;  %v9262_v1 = vmul.f32 0.70710677, %v9242_v14  ;;  %v9265_v38 = vmul.f32 0.70710677, %v9246_v62 }
 0x341   : > { %12565 = vst [vmem:[#allocation40_spill] sm:$0xff] %v9253_v9  ;;  %v4603_v33 = vsub.f32 1.0, %v4486_v35  ;;  %vm4720_vm9 = vcmp.ge.f32.partialorder %v8917_v25, 0.0  ;;  %v3809_v52 = vadd.f32 0.2548296, %v3692_v31  ;;  %v4060_v61 = vmul.f32 %v9151_v15, %v9151_v15 }
 0x342   : > { %12566 = vst [vmem:[#allocation24_spill] sm:$0xff] %v9258_v12  ;;  %v3559_v43 = vadd.f32 -0.28449672, %v3442_v0  ;;  %v9270_v55 = vpop.eup %6834  ;;  %v2632_v51 = vadd.f32 1.0, %v2515_v5  ;;  %v3358_v45 = vadd.f32 1.4214138, %v3241_v21  ;;  %v9278_v31 = vadd.f32 %v12567_v58, %v8951_v27 }
 0x343   : > { %v2431_v37 = vand.u32 2147483647, %v9265_v38  ;;  %v3116_v24 = vadd.f32 -1.4531521, %v2999_v8  ;;  %v2991_v13 = vmul.f32 1.0614054, %v9270_v55  ;;  %v6837_v0 = vpop.eup %6836  ;;  %6838 = vpow2.f32 %v4318_v36 }
 0x344   : > { %v2657_v35 = vadd.f32 1.0, %v2540_v7  ;;  %v4853_v2 = vsub.f32 0.0, %v4619_v6  ;;  %v9281_v15 = vand.u32 2147483647, %v9262_v1  ;;  %v4837_v5 = vsub.f32 0.0, %v4603_v33 }
 0x345   : > { %v2548_v4 = vmul.f32 0.3275911, %v2431_v37  ;;  %v3926_v21 = vmul.f32 %v9103_v40, %v3809_v52  ;;  %v4177_v8 = vsub.f32 0.0, %v4060_v61  ;;  %v3108_v9 = vadd.f32 -1.4531521, %v2991_v13 }
 0x346   : > { %v4052_v7 = vmul.f32 %v9135_v16, %v9135_v16  ;;  %6840 = vrcp.f32 %v2632_v51  ;;  %v3475_v58 = vmul.f32 %v9229_v60, %v3358_v45  ;;  %v3676_v36 = vmul.f32 %v9146_v48, %v3559_v43 }
 0x347   : > { %v2665_v12 = vadd.f32 1.0, %v2548_v4  ;;  %v3225_v18 = vmul.f32 %v9270_v55, %v3108_v9  ;;  %6842 = vrcp.f32 %v2657_v35  ;;  %v9292_v3 = vmul.f32 0.70710677, %v9278_v31 }
 0x348   : > { %v9295_v49 = vmul.f32 0.5, %v8971_v53  ;;  %v3233_v40 = vmul.f32 %v9236_v57, %v3116_v24  ;;  %v2524_v52 = vmul.f32 0.3275911, %v9281_v15  ;;  %v4970_v16 = vsel %vm4736_vm8, %v4619_v6, %v4853_v2  ;;  %v9304_v53 = vpop.f32.mrb[42].mxu0 }
 0x349   : > { %6844 = vrcp.f32 %v2665_v12  ;;  %v4511_v4 = vmul.f32 %v6837_v0, %v3926_v21  ;;  %v4384_v61 = vmul.f32 1.442695, %v4177_v8  ;;  %v2415_v43 = vand.u32 2147483647, %v9292_v3  ;;  %12569 = vst [vmem:[#allocation63_spill] sm:$0xff] %v9304_v53 }
 0x34a   : > { %v4954_v9 = vsel %vm4720_vm9, %v4603_v33, %v4837_v5  ;;  %v4169_v51 = vsub.f32 0.0, %v4052_v7  ;;  %v3592_v45 = vadd.f32 -0.28449672, %v3475_v58  ;;  %v3342_v13 = vadd.f32 1.4214138, %v3225_v18 }
 0x34b   : > { %v9307_v24 = vmul.f32 0.5, %v9008_v17  ;;  %v3793_v35 = vadd.f32 0.2548296, %v3676_v36  ;;  %v4044_v11 = vmul.f32 %v9182_v29, %v9182_v29  ;;  %v2532_v2 = vmul.f32 0.3275911, %v2415_v43  ;;  %v12570_v36 = vld [vmem:[#allocation8_spill] sm:$0xff] }
 0x34c   : > { %v5087_v6 = vadd.f32 1.0, %v4970_v16  ;;  %vm4745_vm10 = vcmp.ge.f32.partialorder %v8989_v32, 0.0  ;;  %v3350_v12 = vadd.f32 1.4214138, %v3233_v40  ;;  %v2641_v0 = vadd.f32 1.0, %v2524_v52  ;;  %v9319_v40 = vpop.f32.mrb[37].mxu1 }
 0x34d   : > { %v5071_v25 = vadd.f32 1.0, %v4954_v9  ;;  %v4628_v33 = vsub.f32 1.0, %v4511_v4  ;;  %v4069_v5 = vmul.f32 %v2431_v37, %v2431_v37  ;;  %v2649_v21 = vadd.f32 1.0, %v2532_v2  ;;  %v6839_v18 = vpop.eup %6838  ;;  %12571 = vst [vmem:[#allocation8_spill] sm:$0xff] %v9319_v40 }
 0x34e   : > { %v4368_v8 = vmul.f32 1.442695, %v4169_v51  ;;  %v3709_v7 = vmul.f32 %v9229_v60, %v3592_v45  ;;  %6846 = vpow2.f32 %v4384_v61  ;;  %v3459_v17 = vmul.f32 %v9270_v55, %v3342_v13 }
 0x34f   : > { %v3910_v58 = vmul.f32 %v9146_v48, %v3793_v35  ;;  %v4161_v29 = vsub.f32 0.0, %v4044_v11  ;;  %6848 = vrcp.f32 %v2649_v21  ;;  %v9317_v16 = vadd.f32 %v12570_v36, %v9221_v23 }
 0x350   : > { %v9321_v52 = vpop.eup %6840  ;;  %v9324_v37 = vmul.f32 %v5087_v6, %v9083_v42  ;;  %v9327_v4 = vmul.f32 0.5, %v9093_v20  ;;  %v3467_v61 = vmul.f32 %v9236_v57, %v3350_v12  ;;  %6850 = vrcp.f32 %v2641_v0 }
 0x351   : > { %v9330_v48 = vpop.eup %6842  ;;  %v9333_v9 = vmul.f32 %v5071_v25, %v9087_v28  ;;  %v4862_v51 = vsub.f32 0.0, %v4628_v33  ;;  %v9336_v45 = vmul.f32 0.5, %v9179_v10  ;;  %v4186_v13 = vsub.f32 0.0, %v4069_v5  ;;  %v12576_v5 = vld [vmem:[#allocation25_spill] sm:$0xff] }
 0x352   : > { %12572 = vst [vmem:[#allocation64_spill] sm:$0xff] %v9324_v37  ;;  %6852 = vpow2.f32 %v4368_v8  ;;  %v3826_v42 = vadd.f32 0.2548296, %v3709_v7  ;;  %v3576_v11 = vadd.f32 -0.28449672, %v3459_v17  ;;  %v4053_v20 = vmul.f32 %v2415_v43, %v2415_v43 }
 0x353   : > { %12573 = vst [vmem:[#allocation65_spill] sm:$0xff] %v9333_v9  ;;  %12574 = vst [vmem:[#allocation66_spill] sm:$0xff] %v9336_v45  ;;  %v9338_v35 = vpop.eup %6844  ;;  %v9340_v2 = vmul.f32 %v6839_v18, %v3910_v58  ;;  %v4352_v6 = vmul.f32 1.442695, %v4161_v29  ;;  %v9344_v0 = vmul.f32 0.70710677, %v9317_v16  ;;  %v4036_v10 = vmul.f32 %v9225_v59, %v9225_v59 }
 0x354   : > { %v3016_v12 = vmul.f32 1.0614054, %v9338_v35  ;;  %v3584_v28 = vadd.f32 -0.28449672, %v3467_v61  ;;  %v2983_v25 = vmul.f32 1.0614054, %v9321_v52  ;;  %v9351_v21 = vadd.f32 %v12576_v5, %v8951_v27 }
 0x355   : > { %12575 = vst [vmem:[#allocation67_spill] sm:$0xff] %v9344_v0  ;;  %v4979_v43 = vsel %vm4745_vm10, %v4628_v33, %v4862_v51  ;;  %v3008_v18 = vmul.f32 1.0614054, %v9330_v48  ;;  %v4402_v7 = vmul.f32 1.442695, %v4186_v13  ;;  %v9357_v17 = vmul.f32 0.5, %v9131_v41 }
 0x356   : > { %v3133_v8 = vadd.f32 -1.4531521, %v3016_v12  ;;  %v3943_v58 = vmul.f32 %v9229_v60, %v3826_v42  ;;  %v3693_v29 = vmul.f32 %v9270_v55, %v3576_v11  ;;  %v4170_v36 = vsub.f32 0.0, %v4053_v20  ;;  %v9361_v59 = vpop.f32.mrb[43].mxu0 }
 0x357   : > { %12577 = vst [vmem:[#allocation25_spill] sm:$0xff] %v9361_v59  ;;  %6854 = vpow2.f32 %v4352_v6  ;;  %v9366_v33 = vand.u32 2147483647, %v9344_v0  ;;  %v9368_v13 = vadd.f32 1.0, %v4979_v43  ;;  %v3100_v41 = vadd.f32 -1.4531521, %v2983_v25  ;;  %v9394_v59 = vpop.permute.xlu0 %1353 }
 0x358   : > { %v3250_v32 = vmul.f32 %v9338_v35, %v3133_v8  ;;  %v6847_v51 = vpop.eup %6846  ;;  %v4153_v12 = vsub.f32 0.0, %v4036_v10  ;;  %v9371_v60 = vmul.f32 0.70710677, %v9351_v21  ;;  %v3701_v11 = vmul.f32 %v9236_v57, %v3584_v28  ;;  %12580 = vst [vmem:[#allocation69_spill] sm:$0xff] %v9394_v59 }
 0x359   : > { %v9373_v42 = vpop.eup %6848  ;;  %v3125_v20 = vadd.f32 -1.4531521, %v3008_v18  ;;  %6856 = vpow2.f32 %v4402_v7  ;;  %v4528_v8 = vmul.f32 %v6847_v51, %v3943_v58  ;;  %v3810_v61 = vadd.f32 0.2548296, %v3693_v29 }
 0x35a   : > { %12578 = vst [vmem:[#allocation68_spill] sm:$0xff] %v9371_v60  ;;  %v3367_v5 = vadd.f32 1.4214138, %v3250_v32  ;;  %v9376_v6 = vpop.eup %6850  ;;  %v3000_v9 = vmul.f32 1.0614054, %v9373_v42  ;;  %v12579_v25 = vsub.f32 1.0, %v9340_v2  ;;  %v3217_v7 = vmul.f32 %v9321_v52, %v3100_v41 }
 0x35b   : > { %v4370_v43 = vmul.f32 1.442695, %v4170_v36  ;;  %v2549_v37 = vmul.f32 0.3275911, %v9366_v33  ;;  %v9386_v28 = vand.u32 2147483647, %v9371_v60  ;;  %v4061_v58 = vmul.f32 %v9234_v47, %v9234_v47 }
 0x35c   : > { %v9381_v10 = vsub.f32 0.0, %v12579_v25  ;;  %v3484_v27 = vmul.f32 %v9338_v35, %v3367_v5  ;;  %v6853_v18 = vpop.eup %6852  ;;  %v4336_v32 = vmul.f32 1.442695, %v4153_v12  ;;  %v3117_v29 = vadd.f32 -1.4531521, %v3000_v9  ;;  %v9398_v12 = vpop.f32.mrb[38].mxu1 }
 0x35d   : > { %v3818_v36 = vadd.f32 0.2548296, %v3701_v11  ;;  %vm4762_vm11 = vcmp.ge.f32.partialorder %v9144_v50, 0.0  ;;  %v3242_v51 = vmul.f32 %v9330_v48, %v3125_v20  ;;  %v2992_v5 = vmul.f32 1.0614054, %v9376_v6  ;;  %12581 = vst [vmem:[#allocation70_spill] sm:$0xff] %v9398_v12 }
 0x35e   : > { %v3601_v25 = vadd.f32 -0.28449672, %v3484_v27  ;;  %v4645_v40 = vsub.f32 1.0, %v4528_v8  ;;  %v3927_v53 = vmul.f32 %v9270_v55, %v3810_v61  ;;  %v3234_v41 = vmul.f32 %v9373_v42, %v3117_v29  ;;  %v12582_v20 = vld [vmem:[#allocation28_spill] sm:$0xff] }
 0x35f   : > { %6858 = vpow2.f32 %v4370_v43  ;;  %v2666_v9 = vadd.f32 1.0, %v2549_v37  ;;  %v2533_v11 = vmul.f32 0.3275911, %v9386_v28  ;;  %v9404_v46 = vadd.f32 %v12582_v20, %v9394_v59  ;;  %v12584_v50 = vld [vmem:[#allocation48_spill] sm:$0xff] }
 0x360   : > { %v3718_v47 = vmul.f32 %v9338_v35, %v3601_v25  ;;  %v3334_v27 = vadd.f32 1.4214138, %v3217_v7  ;;  %v9407_v60 = vmul.f32 0.5, %v9156_v26  ;;  %v4178_v8 = vsub.f32 0.0, %v4061_v58 }
 0x361   : > { %v3351_v55 = vadd.f32 1.4214138, %v3234_v41  ;;  %v6855_v61 = vpop.eup %6854  ;;  %v3935_v43 = vmul.f32 %v9236_v57, %v3818_v36  ;;  %v3359_v29 = vadd.f32 1.4214138, %v3242_v51  ;;  %v3109_v12 = vadd.f32 -1.4531521, %v2992_v5 }
 0x362   : > { %v3835_v0 = vadd.f32 0.2548296, %v3718_v47  ;;  %v4879_v25 = vsub.f32 0.0, %v4645_v40  ;;  %v4512_v37 = vmul.f32 %v6855_v61, %v3927_v53  ;;  %v9413_v20 = vadd.f32 %v8781_v22, %v9120_v30  ;;  %v9419_v57 = vpop.f32.mrb[44].mxu0 }
 0x363   : > { %v3468_v45 = vmul.f32 %v9373_v42, %v3351_v55  ;;  %v6857_v7 = vpop.eup %6856  ;;  %6860 = vrcp.f32 %v2666_v9  ;;  %v2650_v58 = vadd.f32 1.0, %v2533_v11  ;;  %v9417_v41 = vmul.f32 0.70710677, %v9404_v46  ;;  %12583 = vst [vmem:[#allocation28_spill] sm:$0xff] %v9419_v57 }
 0x364   : > { %v3952_v26 = vmul.f32 %v9338_v35, %v3835_v0  ;;  %v3451_v36 = vmul.f32 %v9321_v52, %v3334_v27  ;;  %6862 = vpow2.f32 %v4336_v32  ;;  %v4386_v53 = vmul.f32 1.442695, %v4178_v8 }
 0x365   : > { %v3585_v51 = vadd.f32 -0.28449672, %v3468_v45  ;;  %vm4746_vm12 = vcmp.ge.f32.partialorder %v9174_v44, 0.0  ;;  %v3476_v22 = vmul.f32 %v9330_v48, %v3359_v29  ;;  %v3226_v5 = vmul.f32 %v9376_v6, %v3109_v12 }
 0x366   : > { %v4045_v35 = vmul.f32 %v9281_v15, %v9281_v15  ;;  %v4537_v0 = vmul.f32 %v6857_v7, %v3952_v26  ;;  %vm4729_vm13 = vcmp.ge.f32.partialorder %v9025_v34, 0.0  ;;  %v4996_v47 = vsel %vm4762_vm11, %v4645_v40, %v4879_v25 }
 0x367   : > { %v4629_v9 = vsub.f32 1.0, %v4512_v37  ;;  %v3702_v32 = vmul.f32 %v9373_v42, %v3585_v51  ;;  %v9432_v45 = vmul.f32 0.70710677, %v9413_v20  ;;  %v9434_v11 = vmul.f32 %v6853_v18, %v3935_v43 }
 0x368   : > { %v4654_v27 = vsub.f32 1.0, %v4537_v0  ;;  %6864 = vrcp.f32 %v2650_v58  ;;  %v9437_v12 = vand.u32 2147483647, %v9417_v41  ;;  %v3568_v8 = vadd.f32 -0.28449672, %v3451_v36 }
 0x369   : > { %v6859_v15 = vpop.eup %6858  ;;  %v3819_v55 = vadd.f32 0.2548296, %v3702_v32  ;;  %v9440_v61 = vand.u32 2147483647, %v9432_v45  ;;  %v9444_v40 = vadd.f32 %v12584_v50, %v9394_v59  ;;  %v5113_v29 = vadd.f32 1.0, %v4996_v47  ;;  %v9451_v32 = vpop.f32.mrb[39].mxu1 }
 0x36a   : > { %v3593_v25 = vadd.f32 -0.28449672, %v3476_v22  ;;  %v3343_v37 = vadd.f32 1.4214138, %v3226_v5  ;;  %v4888_v18 = vsub.f32 0.0, %v4654_v27  ;;  %v4863_v43 = vsub.f32 0.0, %v4629_v9 }
 0x36b   : > { %vm4771_vm14 = vcmp.ge.f32.partialorder %v9265_v38, 0.0  ;;  %v3936_v7 = vmul.f32 %v9373_v42, %v3819_v55  ;;  %v2541_v26 = vmul.f32 0.3275911, %v9440_v61  ;;  %v4162_v58 = vsub.f32 0.0, %v4045_v35 }
 0x36c   : > { %v2197_v36 = vmul.f32 0.5, %v9246_v62  ;;  %v5005_v51 = vsel %vm4771_vm14, %v4654_v27, %v4888_v18  ;;  %v2557_v0 = vmul.f32 0.3275911, %v9437_v12  ;;  %v9454_v5 = vmul.f32 0.70710677, %v9444_v40 }
 0x36d   : > { %v5122_v50 = vadd.f32 1.0, %v5005_v51  ;;  %v4521_v47 = vmul.f32 %v6859_v15, %v3936_v7  ;;  %v2658_v22 = vadd.f32 1.0, %v2541_v26  ;;  %v9456_v57 = vpop.eup %6860  ;;  %v3685_v38 = vmul.f32 %v9321_v52, %v3568_v8  ;;  %v9484_v51 = vpop.f32.mrb[45].mxu0 }
 0x36e   : > { %v9460_v42 = vmul.f32 %v5113_v29, %v9357_v17  ;;  %v3710_v62 = vmul.f32 %v9330_v48, %v3593_v25  ;;  %v3460_v35 = vmul.f32 %v9376_v6, %v3343_v37  ;;  %v6863_v27 = vpop.eup %6862  ;;  %vm4754_vm15 = vcmp.ge.f32.partialorder %v9112_v56, 0.0  ;;  %12588 = vst [vmem:[#allocation72_spill] sm:$0xff] %v9484_v51 }
 0x36f   : > { %v4980_v15 = vsel %vm4746_vm12, %v4629_v9, %v4863_v43  ;;  %v9467_v55 = vmul.f32 %v5122_v50, %v2197_v36  ;;  %v4638_v18 = vsub.f32 1.0, %v4521_v47  ;;  %6866 = vrcp.f32 %v2658_v22 }
 0x370   : > { %12585 = vst [vmem:[#allocation48_spill] sm:$0xff] %v9460_v42  ;;  %v12587_v8 = vsub.f32 1.0, %v9340_v2  ;;  %v4637_v29 = vsub.f32 1.0, %v9434_v11  ;;  %6868 = vpow2.f32 %v4386_v53  ;;  %v2674_v25 = vadd.f32 1.0, %v2557_v0 }
 0x371   : > { %12586 = vst [vmem:[#allocation71_spill] sm:$0xff] %v9467_v55  ;;  %v4872_v7 = vsub.f32 0.0, %v4638_v18  ;;  %v3017_v44 = vmul.f32 1.0614054, %v9456_v57  ;;  %v9479_v9 = vand.u32 2147483647, %v9454_v5 }
 0x372   : > { %v4963_v17 = vsel %vm4729_vm13, %v12587_v8, %v9381_v10  ;;  %v9481_v43 = vpop.eup %6864  ;;  %v3802_v26 = vadd.f32 0.2548296, %v3685_v38  ;;  %v5097_v2 = vadd.f32 1.0, %v4980_v15  ;;  %v4354_v36 = vmul.f32 1.442695, %v4162_v58  ;;  %v12589_v58 = vld [vmem:[#allocation16_spill] sm:$0xff] }
 0x373   : > { %vm4755_vm0 = vcmp.ge.f32.partialorder %v9292_v3, 0.0  ;;  %v5080_v34 = vadd.f32 1.0, %v4963_v17  ;;  %v3827_v10 = vadd.f32 0.2548296, %v3710_v62  ;;  %v3577_v53 = vadd.f32 -0.28449672, %v3460_v35 }
 0x374   : > { %v4989_v11 = vsel %vm4755_vm0, %v4638_v18, %v4872_v7  ;;  %v4871_v0 = vsub.f32 0.0, %v4637_v29  ;;  %v2181_v50 = vmul.f32 0.5, %v9278_v31  ;;  %6870 = vrcp.f32 %v2674_v25  ;;  %v12592_v31 = vld [vmem:[#allocation49_spill] sm:$0xff] }
 0x375   : > { %v5106_v47 = vadd.f32 1.0, %v4989_v11  ;;  %v3134_v22 = vadd.f32 -1.4531521, %v3017_v44  ;;  %v3001_v8 = vmul.f32 1.0614054, %v9481_v43  ;;  %v9491_v15 = vadd.f32 %v12589_v58, %v9221_v23 }
 0x376   : > { %v2558_v38 = vmul.f32 0.3275911, %v9479_v9  ;;  %v3919_v3 = vmul.f32 %v9321_v52, %v3802_v26  ;;  %v9495_v62 = vmul.f32 %v5097_v2, %v9407_v60  ;;  %v9501_v18 = vadd.f32 %v12592_v31, %v9120_v30 }
 0x377   : > { %v9497_v35 = vmul.f32 %v5106_v47, %v2181_v50  ;;  %v9505_v17 = vmul.f32 %v9368_v13, %v9295_v49  ;;  %v9508_v25 = vmul.f32 %v5080_v34, %v9307_v24  ;;  %v3944_v7 = vmul.f32 %v9330_v48, %v3827_v10 }
 0x378   : > { %12590 = vst [vmem:[#allocation16_spill] sm:$0xff] %v9495_v62  ;;  %v3694_v52 = vmul.f32 %v9376_v6, %v3577_v53  ;;  %v4988_v60 = vsel %vm4754_vm15, %v4637_v29, %v4871_v0  ;;  %v9515_v44 = vmul.f32 0.5, %v9186_v63  ;;  %6872 = vpow2.f32 %v4354_v36  ;;  %v12595_v29 = vld [vmem:[#allocation4_spill] sm:$0xff]  ;;  %v12596_v36 = vld [vmem:[#allocation13_spill] sm:$0xff] }
 0x379   : > { %12591 = vst [vmem:[#allocation73_spill] sm:$0xff] %v9497_v35  ;;  %12593 = vst [vmem:[#allocation49_spill] sm:$0xff] %v9505_v17  ;;  %v9519_v2 = vpop.eup %6866  ;;  %v3251_v49 = vmul.f32 %v9456_v57, %v3134_v22  ;;  %v3118_v24 = vadd.f32 -1.4531521, %v3001_v8  ;;  %v2675_v13 = vadd.f32 1.0, %v2558_v38  ;;  %v4504_v10 = vmul.f32 %v6863_v27, %v3919_v3 }
 0x37a   : > { %12594 = vst [vmem:[#allocation74_spill] sm:$0xff] %v9508_v25  ;;  %v9523_v48 = vmul.f32 0.70710677, %v9491_v15  ;;  %v6869_v34 = vpop.eup %6868  ;;  %v3009_v56 = vmul.f32 1.0614054, %v9519_v2  ;;  %v9531_v53 = vadd.f32 %v12596_v36, %v12595_v29  ;;  %v4070_v50 = vmul.f32 %v9366_v33, %v9366_v33 }
 0x37b   : > { %v9527_v63 = vmul.f32 0.70710677, %v9501_v18  ;;  %v4529_v11 = vmul.f32 %v6869_v34, %v3944_v7  ;;  %v3811_v0 = vadd.f32 0.2548296, %v3694_v52  ;;  %v5105_v22 = vadd.f32 1.0, %v4988_v60  ;;  %v9543_v7 = vpop.f32.mrb[40].mxu1 }
 0x37c   : > { %v2433_v47 = vand.u32 2147483647, %v9523_v48  ;;  %v9537_v8 = vmul.f32 0.5, %v9242_v14  ;;  %v3126_v27 = vadd.f32 -1.4531521, %v3009_v56  ;;  %v4062_v38 = vmul.f32 %v9440_v61, %v9440_v61  ;;  %12597 = vst [vmem:[#allocation13_spill] sm:$0xff] %v9543_v7 }
 0x37d   : > { %vm4738_vm1 = vcmp.ge.f32.partialorder %v9202_v19, 0.0  ;;  %v3368_v58 = vadd.f32 1.4214138, %v3251_v49  ;;  %v3235_v3 = vmul.f32 %v9481_v43, %v3118_v24  ;;  %6874 = vrcp.f32 %v2675_v13 }
 0x37e   : > { %v2550_v31 = vmul.f32 0.3275911, %v2433_v47  ;;  %v9545_v33 = vpop.eup %6870  ;;  %v4621_v52 = vsub.f32 1.0, %v4504_v10  ;;  %v3243_v60 = vmul.f32 %v9519_v2, %v3126_v27  ;;  %v9549_v14 = vand.u32 2147483647, %v9527_v63 }
 0x37f   : > { %v9552_v34 = vmul.f32 0.70710677, %v9531_v53  ;;  %v4646_v61 = vsub.f32 1.0, %v4529_v11  ;;  %v3928_v49 = vmul.f32 %v9376_v6, %v3811_v0  ;;  %v4187_v56 = vsub.f32 0.0, %v4070_v50 }
 0x380   : > { %v2667_v24 = vadd.f32 1.0, %v2550_v31  ;;  %v4054_v13 = vmul.f32 %v9386_v28, %v9386_v28  ;;  %v3360_v36 = vadd.f32 1.4214138, %v3243_v60  ;;  %v4179_v26 = vsub.f32 0.0, %v4062_v38  ;;  %v9565_v28 = vpop.f32.mrb[46].mxu0 }
 0x381   : > { %v9558_v10 = vand.u32 2147483647, %v9552_v34  ;;  %v3485_v27 = vmul.f32 %v9456_v57, %v3368_v58  ;;  %v3352_v37 = vadd.f32 1.4214138, %v3235_v3  ;;  %v3025_v62 = vmul.f32 1.0614054, %v9545_v33 }
 0x382   : > { %6876 = vrcp.f32 %v2667_v24  ;;  %v6873_v35 = vpop.eup %6872  ;;  %v4855_v11 = vsub.f32 0.0, %v4621_v52  ;;  %v3477_v6 = vmul.f32 %v9519_v2, %v3360_v36  ;;  %v2542_v0 = vmul.f32 0.3275911, %v9549_v14  ;;  %12598 = vst [vmem:[#allocation75_spill] sm:$0xff] %v9565_v28 }
 0x383   : > { %v2453_v50 = vmul.f32 0.3275911, %v9558_v10  ;;  %vm4763_vm2 = vcmp.ge.f32.partialorder %v9208_v39, 0.0  ;;  %v4880_v38 = vsub.f32 0.0, %v4646_v61  ;;  %v4513_v31 = vmul.f32 %v6873_v35, %v3928_v49 }
 0x384   : > { %v4404_v60 = vmul.f32 1.442695, %v4187_v56  ;;  %v3594_v58 = vadd.f32 -0.28449672, %v3477_v6  ;;  %v4388_v3 = vmul.f32 1.442695, %v4179_v26  ;;  %v9570_v24 = vadd.f32 %v8932_v54, %v9221_v23 }
 0x385   : > { %v2570_v25 = vadd.f32 1.0, %v2453_v50  ;;  %v3602_v42 = vadd.f32 -0.28449672, %v3485_v27  ;;  %v3469_v36 = vmul.f32 %v9481_v43, %v3352_v37  ;;  %v4171_v55 = vsub.f32 0.0, %v4054_v13 }
 0x386   : > { %v3142_v30 = vadd.f32 -1.4531521, %v3025_v62  ;;  %v9574_v17 = vmul.f32 %v5105_v22, %v9327_v4  ;;  %v4972_v28 = vsel %vm4738_vm1, %v4621_v52, %v4855_v11  ;;  %v2659_v35 = vadd.f32 1.0, %v2542_v0  ;;  %v9584_v62 = vpop.f32.mrb[41].mxu1 }
 0x387   : > { %6878 = vrcp.f32 %v2570_v25  ;;  %v9578_v49 = vpop.eup %6874  ;;  %v4997_v26 = vsel %vm4763_vm2, %v4646_v61, %v4880_v38  ;;  %vm4747_vm3 = vcmp.ge.f32.partialorder %v9262_v1, 0.0  ;;  %v3711_v54 = vmul.f32 %v9519_v2, %v3594_v58  ;;  %12600 = vst [vmem:[#allocation77_spill] sm:$0xff] %v9584_v62  ;;  %v12601_v25 = vld [vmem:[#allocation20_spill] sm:$0xff] }
 0x388   : > { %12599 = vst [vmem:[#allocation76_spill] sm:$0xff] %v9574_v17  ;;  %6880 = vpow2.f32 %v4404_v60  ;;  %v4071_v37 = vmul.f32 %v2433_v47, %v2433_v47  ;;  %v4630_v4 = vsub.f32 1.0, %v4513_v31  ;;  %v9587_v19 = vmul.f32 0.70710677, %v9570_v24 }
 0x389   : > { %6882 = vpow2.f32 %v4388_v3  ;;  %v9591_v22 = vadd.f32 %v12601_v25, %v12595_v29  ;;  %v3719_v39 = vmul.f32 %v9456_v57, %v3602_v42  ;;  %v3586_v52 = vadd.f32 -0.28449672, %v3469_v36  ;;  %v12602_v3 = vld [vmem:[#allocation66_spill] sm:$0xff] }
 0x38a   : > { %v4372_v61 = vmul.f32 1.442695, %v4171_v55  ;;  %v3259_v56 = vmul.f32 %v9545_v33, %v3142_v30  ;;  %v5089_v13 = vadd.f32 1.0, %v4972_v28  ;;  %v3026_v47 = vmul.f32 1.0614054, %v9578_v49 }
 0x38b   : > { %6884 = vrcp.f32 %v2659_v35  ;;  %v9597_v27 = vand.u32 2147483647, %v9587_v19  ;;  %v5114_v6 = vadd.f32 1.0, %v4997_v26  ;;  %v9602_v0 = vmul.f32 0.5, %v9317_v16 }
 0x38c   : > { %v9599_v11 = vpop.eup %6876  ;;  %v3828_v50 = vadd.f32 0.2548296, %v3711_v54  ;;  %v4188_v38 = vsub.f32 0.0, %v4071_v37  ;;  %v4864_v42 = vsub.f32 0.0, %v4630_v4  ;;  %v9605_v55 = vmul.f32 0.5, %v9351_v21 }
 0x38d   : > { %v3018_v30 = vmul.f32 1.0614054, %v9599_v11  ;;  %v9609_v28 = vmul.f32 0.70710677, %v9591_v22  ;;  %v3836_v31 = vadd.f32 0.2548296, %v3719_v39  ;;  %v3703_v60 = vmul.f32 %v9481_v43, %v3586_v52 }
 0x38e   : > { %6886 = vpow2.f32 %v4372_v61  ;;  %v3376_v58 = vadd.f32 1.4214138, %v3259_v56  ;;  %v9613_v36 = vmul.f32 %v5089_v13, %v12602_v3  ;;  %v3143_v16 = vadd.f32 -1.4531521, %v3026_v47  ;;  %v9623_v39 = vpop.f32.mrb[47].mxu0 }
 0x38f   : > { %v3135_v35 = vadd.f32 -1.4531521, %v3018_v30  ;;  %v2551_v26 = vmul.f32 0.3275911, %v9597_v27  ;;  %v9617_v21 = vmul.f32 %v5114_v6, %v9515_v44  ;;  %v9620_v54 = vmul.f32 0.5, %v9404_v46  ;;  %12605 = vst [vmem:[#allocation78_spill] sm:$0xff] %v9623_v39 }
 0x390   : > { %12603 = vst [vmem:[#allocation20_spill] sm:$0xff] %v9613_v36  ;;  %v3945_v37 = vmul.f32 %v9519_v2, %v3828_v50  ;;  %v4406_v25 = vmul.f32 1.442695, %v4188_v38  ;;  %v4981_v61 = vsel %vm4747_vm3, %v4630_v4, %v4864_v42  ;;  %v4078_v56 = vmul.f32 %v9437_v12, %v9437_v12 }
 0x391   : > { %12604 = vst [vmem:[#allocation66_spill] sm:$0xff] %v9617_v21  ;;  %v9625_v52 = vpop.eup %6878  ;;  %v3252_v13 = vmul.f32 %v9599_v11, %v3135_v35  ;;  %v9633_v44 = vand.u32 2147483647, %v9609_v28  ;;  %v3953_v47 = vmul.f32 %v9456_v57, %v3836_v31  ;;  %v3820_v2 = vadd.f32 0.2548296, %v3703_v60  ;;  %v12606_v57 = vld [vmem:[#allocation55_spill] sm:$0xff] }
 0x392   : > { %v6881_v46 = vpop.eup %6880  ;;  %v4079_v6 = vmul.f32 %v9479_v9, %v9479_v9  ;;  %v2921_v50 = vmul.f32 1.0614054, %v9625_v52  ;;  %v3493_v1 = vmul.f32 %v9545_v33, %v3376_v58  ;;  %v3260_v4 = vmul.f32 %v9578_v49, %v3143_v16 }
 0x393   : > { %v6883_v38 = vpop.eup %6882  ;;  %v3369_v12 = vadd.f32 1.4214138, %v3252_v13  ;;  %v2668_v42 = vadd.f32 1.0, %v2551_v26  ;;  %v9642_v30 = vmul.f32 0.5, %v9413_v20  ;;  %6888 = vpow2.f32 %v4406_v25 }
 0x394   : > { %v4530_v3 = vmul.f32 %v6883_v38, %v3945_v37  ;;  %v9646_v31 = vadd.f32 %v12606_v57, %v9394_v59  ;;  %v4195_v9 = vsub.f32 0.0, %v4078_v56  ;;  %v3038_v36 = vadd.f32 -1.4531521, %v2921_v50  ;;  %v12607_v50 = vld [vmem:[#allocation5_spill] sm:$0xff] }
 0x395   : > { %v9648_v60 = vpop.eup %6884  ;;  %v3486_v35 = vmul.f32 %v9599_v11, %v3369_v12  ;;  %v2454_v58 = vmul.f32 0.3275911, %v9633_v44  ;;  %v9652_v16 = vadd.f32 1.0, %v4981_v61  ;;  %v4538_v26 = vmul.f32 %v6881_v46, %v3953_v47  ;;  %v12608_v12 = vld [vmem:[#allocation56_spill] sm:$0xff]  ;;  %v12609_v61 = vld [vmem:[#allocation67_spill] sm:$0xff] }
 0x396   : > { %v3937_v20 = vmul.f32 %v9481_v43, %v3820_v2  ;;  %v4196_v13 = vsub.f32 0.0, %v4079_v6  ;;  %v3610_v37 = vadd.f32 -0.28449672, %v3493_v1  ;;  %v3377_v25 = vadd.f32 1.4214138, %v3260_v4 }
 0x397   : > { %v3603_v38 = vadd.f32 -0.28449672, %v3486_v35  ;;  %6890 = vrcp.f32 %v2668_v42  ;;  %v4647_v21 = vsub.f32 1.0, %v4530_v3  ;;  %v3010_v23 = vmul.f32 1.0614054, %v9648_v60 }
 0x398   : > { %v6887_v57 = vpop.eup %6886  ;;  %v9657_v56 = vmul.f32 0.70710677, %v9646_v31  ;;  %v9661_v17 = vadd.f32 %v12608_v12, %v12607_v50  ;;  %vm4772_vm4 = vcmp.ge.f32.partialorder %v12609_v61, 0.0  ;;  %v4420_v46 = vmul.f32 1.442695, %v4195_v9 }
 0x399   : > { %v3720_v43 = vmul.f32 %v9599_v11, %v3603_v38  ;;  %v3155_v47 = vmul.f32 %v9625_v52, %v3038_v36  ;;  %v2571_v2 = vadd.f32 1.0, %v2454_v58  ;;  %v4655_v6 = vsub.f32 1.0, %v4538_v26  ;;  %v9678_v26 = vpop.f32.mrb[42].mxu1 }
 0x39a   : > { %vm4764_vm5 = vcmp.ge.f32.partialorder %v9432_v45, 0.0  ;;  %v4422_v1 = vmul.f32 1.442695, %v4196_v13  ;;  %v9668_v4 = vand.u32 2147483647, %v9657_v56  ;;  %v9670_v42 = vmul.f32 %v6887_v57, %v3937_v20  ;;  %12610 = vst [vmem:[#allocation55_spill] sm:$0xff] %v9678_v26 }
 0x39b   : > { %v3727_v3 = vmul.f32 %v9545_v33, %v3610_v37  ;;  %v3837_v35 = vadd.f32 0.2548296, %v3720_v43  ;;  %v9674_v12 = vmul.f32 0.70710677, %v9661_v17  ;;  %v4881_v9 = vsub.f32 0.0, %v4647_v21  ;;  %v9682_v57 = vpop.f32.mrb[48].mxu0 }
 0x39c   : > { %v3494_v38 = vmul.f32 %v9578_v49, %v3377_v25  ;;  %v3127_v36 = vadd.f32 -1.4531521, %v3010_v23  ;;  %v2559_v58 = vmul.f32 0.3275911, %v9668_v4  ;;  %v3272_v39 = vadd.f32 1.4214138, %v3155_v47 }
 0x39d   : > { %v3954_v13 = vmul.f32 %v9599_v11, %v3837_v35  ;;  %6892 = vrcp.f32 %v2571_v2  ;;  %v2345_v20 = vand.u32 2147483647, %v9674_v12  ;;  %12611 = vst [vmem:[#allocation56_spill] sm:$0xff] %v9682_v57  ;;  %v6889_v37 = vpop.eup %6888  ;;  %v4889_v43 = vsub.f32 0.0, %v4655_v6  ;;  %v12612_v47 = vld [vmem:[#allocation68_spill] sm:$0xff] }
 0x39e   : > { %6894 = vpow2.f32 %v4420_v46  ;;  %v4063_v62 = vmul.f32 %v9549_v14, %v9549_v14  ;;  %v2676_v25 = vadd.f32 1.0, %v2559_v58  ;;  %v4639_v23 = vsub.f32 1.0, %v9670_v42 }
 0x39f   : > { %v4539_v7 = vmul.f32 %v6889_v37, %v3954_v13  ;;  %v3974_v26 = vmul.f32 %v9558_v10, %v9558_v10  ;;  %v2462_v11 = vmul.f32 0.3275911, %v2345_v20  ;;  %vm4756_vm6 = vcmp.ge.f32.partialorder %v12612_v47, 0.0 }
 0x3a0   : > { %v3844_v2 = vadd.f32 0.2548296, %v3727_v3  ;;  %v3611_v35 = vadd.f32 -0.28449672, %v3494_v38  ;;  %6896 = vpow2.f32 %v4422_v1  ;;  %v3244_v57 = vmul.f32 %v9648_v60, %v3127_v36  ;;  %v12613_v36 = vld [vmem:[#allocation10_spill] sm:$0xff] }
 0x3a1   : > { %v9691_v51 = vpop.eup %6890  ;;  %v4998_v14 = vsel %vm4764_vm5, %v4647_v21, %v4881_v9  ;;  %v4656_v46 = vsub.f32 1.0, %v4539_v7  ;;  %v3389_v42 = vmul.f32 %v9625_v52, %v3272_v39  ;;  %v2579_v58 = vadd.f32 1.0, %v2462_v11  ;;  %v9705_v39 = vpop.f32.mrb[43].mxu1 }
 0x3a2   : > { %v5006_v10 = vsel %vm4772_vm4, %v4655_v6, %v4889_v43  ;;  %v4180_v13 = vsub.f32 0.0, %v4063_v62  ;;  %vm4773_vm8 = vcmp.ge.f32.partialorder %v9523_v48, 0.0  ;;  %6898 = vrcp.f32 %v2676_v25 }
 0x3a3   : > { %v4873_v3 = vsub.f32 0.0, %v4639_v23  ;;  %v4890_v1 = vsub.f32 0.0, %v4656_v46  ;;  %v4091_v38 = vsub.f32 0.0, %v3974_v26  ;;  %v9701_v37 = vadd.f32 %v12613_v36, %v9394_v59 }
 0x3a4   : > { %v5115_v45 = vadd.f32 1.0, %v4998_v14  ;;  %v3728_v7 = vmul.f32 %v9578_v49, %v3611_v35  ;;  %v3019_v21 = vmul.f32 1.0614054, %v9691_v51  ;;  %6900 = vrcp.f32 %v2579_v58 }
 0x3a5   : > { %v3961_v62 = vmul.f32 %v9545_v33, %v3844_v2  ;;  %v3361_v61 = vadd.f32 1.4214138, %v3244_v57  ;;  %v5007_v48 = vsel %vm4773_vm8, %v4656_v46, %v4890_v1  ;;  %v3506_v6 = vadd.f32 -0.28449672, %v3389_v42 }
 0x3a6   : > { %v9710_v9 = vmul.f32 %v9652_v16, %v9537_v8  ;;  %v4390_v26 = vmul.f32 1.442695, %v4180_v13  ;;  %v2199_v43 = vmul.f32 0.5, %v9491_v15  ;;  %v5124_v25 = vadd.f32 1.0, %v5007_v48  ;;  %v9730_v13 = vpop.f32.mrb[49].mxu0 }
 0x3a7   : > { %v9713_v11 = vpop.eup %6892  ;;  %v5123_v35 = vadd.f32 1.0, %v5006_v10  ;;  %v9716_v14 = vmul.f32 0.5, %v9444_v40  ;;  %v4212_v58 = vmul.f32 1.442695, %v4091_v38  ;;  %v9719_v33 = vmul.f32 0.70710677, %v9701_v37 }
 0x3a8   : > { %12614 = vst [vmem:[#allocation67_spill] sm:$0xff] %v9710_v9  ;;  %v6895_v57 = vpop.eup %6894  ;;  %v9722_v2 = vmul.f32 %v5115_v45, %v9642_v30  ;;  %v3845_v8 = vadd.f32 0.2548296, %v3728_v7  ;;  %v9724_v16 = vmul.f32 %v5124_v25, %v2199_v43  ;;  %v3136_v46 = vadd.f32 -1.4531521, %v3019_v21  ;;  %12617 = vst [vmem:[#allocation79_spill] sm:$0xff] %v9730_v13 }
 0x3a9   : > { %v4990_v15 = vsel %vm4756_vm6, %v4639_v23, %v4873_v3  ;;  %v4546_v42 = vmul.f32 %v6895_v57, %v3961_v62  ;;  %v3478_v10 = vmul.f32 %v9648_v60, %v3361_v61  ;;  %v3623_v40 = vmul.f32 %v9625_v52, %v3506_v6  ;;  %v12618_v45 = vld [vmem:[#allocation38_spill] sm:$0xff]  ;;  %v12619_v7 = vld [vmem:[#allocation41_spill] sm:$0xff] }
 0x3aa   : > { %12615 = vst [vmem:[#allocation68_spill] sm:$0xff] %v9722_v2  ;;  %12616 = vst [vmem:[#allocation10_spill] sm:$0xff] %v9724_v16  ;;  %v6897_v1 = vpop.eup %6896  ;;  %v2922_v30 = vmul.f32 1.0614054, %v9713_v11  ;;  %v3983_v36 = vmul.f32 %v2345_v20, %v2345_v20  ;;  %v6478_v21 = vpack.c.bf16 %v12619_v7, %v12618_v45  ;;  %v9738_v47 = vmul.f32 0.5, %v9501_v18  ;;  %v12621_v43 = vld [vmem:[#allocation29_spill] sm:$0xff] }
 0x3ab   : > { %v9741_v23 = vmul.f32 0.5, %v9531_v53  ;;  %6902 = vpow2.f32 %v4212_v58  ;;  %v9744_v3 = vand.u32 2147483647, %v9719_v33  ;;  %v5107_v61 = vadd.f32 1.0, %v4990_v15  ;;  %v12622_v58 = vld [vmem:[#allocation19_spill] sm:$0xff]  ;;  %v12623_v57 = vld [vmem:[#allocation18_spill] sm:$0xff] }
 0x3ac   : > { %v9746_v62 = vpop.eup %6898  ;;  %vm4780_vm9 = vcmp.ge.f32.partialorder %v9417_v41, 0.0  ;;  %v3962_v20 = vmul.f32 %v9578_v49, %v3845_v8  ;;  %6904 = vpow2.f32 %v4390_v26  ;;  %v3253_v48 = vmul.f32 %v9691_v51, %v3136_v46  ;;  %6479 = vmatprep.subr.bf16.mxu0 %v6478_v21  ;;  %v12626_v7 = vld [vmem:[#allocation34_spill] sm:$0xff] }
 0x3ad   : > { %v9752_v18 = vmul.f32 %v5123_v35, %v9602_v0  ;;  %v4663_v53 = vsub.f32 1.0, %v4546_v42  ;;  %v3595_v6 = vadd.f32 -0.28449672, %v3478_v10  ;;  %v9756_v25 = vadd.f32 %v12621_v43, %v12607_v50  ;;  %v12625_v10 = vld [vmem:[#allocation6_spill] sm:$0xff] }
 0x3ae   : > { %v12624_v15 = vpack.c.bf16 %v12622_v58, %v12623_v57  ;;  %v9761_v45 = vpop.eup %6900  ;;  %v3740_v49 = vadd.f32 0.2548296, %v3623_v40  ;;  %v9764_v26 = vmul.f32 0.5, %v9570_v24  ;;  %v3039_v8 = vadd.f32 -1.4531521, %v2922_v30 }
 0x3af   : > { %12620 = vst [vmem:[#allocation38_spill] sm:$0xff] %v9752_v18  ;;  %v4100_v46 = vsub.f32 0.0, %v3983_v36  ;;  %v3027_v0 = vmul.f32 1.0614054, %v9746_v62  ;;  %v2930_v35 = vmul.f32 1.0614054, %v9761_v45  ;;  %v9771_v21 = vadd.f32 %v12626_v7, %v12625_v10 }
 0x3b0   : > { %6481 = vmatpush1.bf16.msra.mxu0 %v12624_v15  ;;  %v2560_v42 = vmul.f32 0.3275911, %v9744_v3  ;;  %v9774_v43 = vmul.f32 %v5107_v61, %v9605_v55  ;;  %v9776_v58 = vmul.f32 %v6897_v1, %v3962_v20  ;;  %v3370_v40 = vadd.f32 1.4214138, %v3253_v48 }
 0x3b1   : > { %v4072_v24 = vmul.f32 %v9597_v27, %v9597_v27  ;;  %v4897_v30 = vsub.f32 0.0, %v4663_v53  ;;  %v3712_v36 = vmul.f32 %v9648_v60, %v3595_v6  ;;  %v3047_v57 = vadd.f32 -1.4531521, %v2930_v35  ;;  %v12628_v27 = vld [vmem:[#allocation37_spill] sm:$0xff] }
 0x3b2   : > { %12627 = vst [vmem:[#allocation41_spill] sm:$0xff] %v9774_v43  ;;  %v9782_v15 = vmul.f32 0.70710677, %v9756_v25  ;;  %v3857_v38 = vmul.f32 %v9625_v52, %v3740_v49  ;;  %v3156_v7 = vmul.f32 %v9713_v11, %v3039_v8  ;;  %v4230_v2 = vmul.f32 1.442695, %v4100_v46 }
 0x3b3   : > { %v9787_v55 = vmul.f32 0.70710677, %v9771_v21  ;;  %v3144_v1 = vadd.f32 -1.4531521, %v3027_v0  ;;  %v3164_v61 = vmul.f32 %v9761_v45, %v3047_v57  ;;  %v2677_v20 = vadd.f32 1.0, %v2560_v42 }
 0x3b4   : > { %v9792_v48 = vadd.f32 %v12628_v27, %v12595_v29  ;;  %v4664_v6 = vsub.f32 1.0, %v9776_v58  ;;  %v3487_v35 = vmul.f32 %v9691_v51, %v3370_v40  ;;  %v4189_v16 = vsub.f32 0.0, %v4072_v24  ;;  %v9806_v24 = vpop.f32.mrb[44].mxu1 }
 0x3b5   : > { %v9797_v52 = vand.u32 2147483647, %v9787_v55  ;;  %v6903_v49 = vpop.eup %6902  ;;  %v5014_v8 = vsel %vm4780_vm9, %v4663_v53, %v4897_v30  ;;  %vm4781_vm10 = vcmp.ge.f32.partialorder %v9454_v5, 0.0  ;;  %v3829_v46 = vadd.f32 0.2548296, %v3712_v36  ;;  %12629 = vst [vmem:[#allocation29_spill] sm:$0xff] %v9806_v24 }
 0x3b6   : > { %v3281_v0 = vadd.f32 1.4214138, %v3164_v61  ;;  %v9803_v42 = vand.u32 2147483647, %v9782_v15  ;;  %v6905_v57 = vpop.eup %6904  ;;  %v4442_v27 = vmul.f32 %v6903_v49, %v3857_v38  ;;  %v3273_v58 = vadd.f32 1.4214138, %v3156_v7 }
 0x3b7   : > { %6906 = vpow2.f32 %v4230_v2  ;;  %v2471_v40 = vmul.f32 0.3275911, %v9797_v52  ;;  %v3261_v43 = vmul.f32 %v9746_v62, %v3144_v1  ;;  %v9811_v53 = vmul.f32 0.70710677, %v9792_v48 }
 0x3b8   : > { %v3398_v41 = vmul.f32 %v9761_v45, %v3281_v0  ;;  %6908 = vrcp.f32 %v2677_v20  ;;  %v3604_v30 = vadd.f32 -0.28449672, %v3487_v35  ;;  %v9814_v36 = vmul.f32 0.5, %v9591_v22  ;;  %v9824_v22 = vpop.f32.mrb[50].mxu0 }
 0x3b9   : > { %v3975_v38 = vmul.f32 %v9633_v44, %v9633_v44  ;;  %v2588_v2 = vadd.f32 1.0, %v2471_v40  ;;  %v3946_v7 = vmul.f32 %v9648_v60, %v3829_v46  ;;  %vm4676_vm11 = vcmp.ge.f32.partialorder %v9552_v34, 0.0  ;;  %12630 = vst [vmem:[#allocation19_spill] sm:$0xff] %v9824_v22  ;;  %v12631_v60 = vld [vmem:[#allocation31_spill] sm:$0xff] }
 0x3ba   : > { %v4408_v61 = vmul.f32 1.442695, %v4189_v16  ;;  %v3515_v1 = vadd.f32 -0.28449672, %v3398_v41  ;;  %v2463_v49 = vmul.f32 0.3275911, %v9803_v42  ;;  %v3390_v9 = vmul.f32 %v9713_v11, %v3273_v58 }
 0x3bb   : > { %v4898_v20 = vsub.f32 0.0, %v4664_v6  ;;  %v4559_v0 = vsub.f32 1.0, %v4442_v27  ;;  %6910 = vrcp.f32 %v2588_v2  ;;  %v9822_v35 = vand.u32 2147483647, %v9811_v53 }
 0x3bc   : > { %v3378_v44 = vadd.f32 1.4214138, %v3261_v43  ;;  %v3632_v40 = vmul.f32 %v9761_v45, %v3515_v1  ;;  %v9830_v46 = vadd.f32 %v12631_v60, %v12625_v10  ;;  %v3721_v16 = vmul.f32 %v9691_v51, %v3604_v30 }
 0x3bd   : > { %v4092_v41 = vsub.f32 0.0, %v3975_v38  ;;  %v4080_v27 = vmul.f32 %v9668_v4, %v9668_v4  ;;  %v2455_v2 = vmul.f32 0.3275911, %v9822_v35  ;;  %v4531_v59 = vmul.f32 %v6905_v57, %v3946_v7 }
 0x3be   : > { %6912 = vpow2.f32 %v4408_v61  ;;  %v3749_v18 = vadd.f32 0.2548296, %v3632_v40  ;;  %v2580_v22 = vadd.f32 1.0, %v2463_v49  ;;  %v5131_v58 = vadd.f32 1.0, %v5014_v8 }
 0x3bf   : > { %v5015_v43 = vsel %vm4781_vm10, %v4664_v6, %v4898_v20  ;;  %v4793_v1 = vsub.f32 0.0, %v4559_v0  ;;  %v2572_v24 = vadd.f32 1.0, %v2455_v2  ;;  %v3507_v60 = vadd.f32 -0.28449672, %v3390_v9  ;;  %v12632_v9 = vld [vmem:[#allocation62_spill] sm:$0xff] }
 0x3c0   : > { %v3495_v13 = vmul.f32 %v9746_v62, %v3378_v44  ;;  %v3866_v30 = vmul.f32 %v9761_v45, %v3749_v18  ;;  %v9841_v38 = vmul.f32 0.70710677, %v9830_v46  ;;  %vm4765_vm12 = vcmp.ge.f32.partialorder %v9527_v63, 0.0  ;;  %v9850_v18 = vpop.f32.mrb[45].mxu1  ;;  %v12640_v63 = vld [vmem:[#allocation7_spill] sm:$0xff] }
 0x3c1   : > { %v6907_v4 = vpop.eup %6906  ;;  %v3838_v57 = vadd.f32 0.2548296, %v3721_v16  ;;  %v4214_v7 = vmul.f32 1.442695, %v4092_v41  ;;  %v4197_v61 = vsub.f32 0.0, %v4080_v27  ;;  %6914 = vrcp.f32 %v2572_v24  ;;  %12633 = vst [vmem:[#allocation18_spill] sm:$0xff] %v9850_v18 }
 0x3c2   : > { %v9844_v8 = vpop.eup %6908  ;;  %v4648_v5 = vsub.f32 1.0, %v4531_v59  ;;  %v4451_v6 = vmul.f32 %v6907_v4, %v3866_v30  ;;  %6916 = vrcp.f32 %v2580_v22  ;;  %v9848_v49 = vadd.f32 %v12632_v9, %v12595_v29 }
 0x3c3   : > { %v9853_v45 = vmul.f32 %v5131_v58, %v9620_v54  ;;  %v5132_v20 = vadd.f32 1.0, %v5015_v43  ;;  %v4910_v44 = vsel %vm4676_vm11, %v4559_v0, %v4793_v1  ;;  %v9858_v24 = vmul.f32 0.5, %v9646_v31 }
 0x3c4   : > { %v3624_v59 = vmul.f32 %v9713_v11, %v3507_v60  ;;  %v3612_v40 = vadd.f32 -0.28449672, %v3495_v13  ;;  %v4568_v22 = vsub.f32 1.0, %v4451_v6  ;;  %v9862_v16 = vand.u32 2147483647, %v9841_v38 }
 0x3c5   : > { %12634 = vst [vmem:[#allocation34_spill] sm:$0xff] %v9853_v45  ;;  %v9864_v41 = vpop.eup %6910  ;;  %v3955_v27 = vmul.f32 %v9691_v51, %v3838_v57  ;;  %6918 = vpow2.f32 %v4214_v7  ;;  %v4424_v54 = vmul.f32 1.442695, %v4197_v61  ;;  %v3028_v2 = vmul.f32 1.0614054, %v9844_v8  ;;  %v9877_v51 = vpop.f32.mrb[51].mxu0 }
 0x3c6   : > { %v4882_v34 = vsub.f32 0.0, %v4648_v5  ;;  %v4802_v0 = vsub.f32 0.0, %v4568_v22  ;;  %v2939_v31 = vmul.f32 1.0614054, %v9864_v41  ;;  %v9870_v58 = vmul.f32 0.70710677, %v9848_v49 }
 0x3c7   : > { %v9873_v13 = vmul.f32 %v5132_v20, %v9716_v14  ;;  %v5027_v43 = vadd.f32 1.0, %v4910_v44  ;;  %v2111_v1 = vmul.f32 0.5, %v9661_v17  ;;  %vm4685_vm13 = vcmp.ge.f32.partialorder %v9674_v12, 0.0  ;;  %12636 = vst [vmem:[#allocation31_spill] sm:$0xff] %v9877_v51 }
 0x3c8   : > { %v6913_v60 = vpop.eup %6912  ;;  %v3741_v30 = vadd.f32 0.2548296, %v3624_v59  ;;  %v3729_v4 = vmul.f32 %v9746_v62, %v3612_v40  ;;  %v4919_v57 = vsel %vm4685_vm13, %v4568_v22, %v4802_v0  ;;  %v2472_v7 = vmul.f32 0.3275911, %v9862_v16 }
 0x3c9   : > { %12635 = vst [vmem:[#allocation37_spill] sm:$0xff] %v9873_v13  ;;  %v4540_v61 = vmul.f32 %v6913_v60, %v3955_v27  ;;  %6920 = vpow2.f32 %v4424_v54  ;;  %v5036_v6 = vadd.f32 1.0, %v4919_v57  ;;  %v3056_v9 = vadd.f32 -1.4531521, %v2939_v31  ;;  %v12639_v27 = vld [vmem:[#allocation14_spill] sm:$0xff] }
 0x3ca   : > { %v4999_v14 = vsel %vm4765_vm12, %v4648_v5, %v4882_v34  ;;  %v3145_v20 = vadd.f32 -1.4531521, %v3028_v2  ;;  %v4081_v17 = vmul.f32 %v9744_v3, %v9744_v3  ;;  %v9886_v12 = vand.u32 2147483647, %v9870_v58 }
 0x3cb   : > { %v9888_v44 = vpop.eup %6914  ;;  %v9891_v59 = vmul.f32 %v5027_v43, %v9741_v23  ;;  %v9893_v40 = vmul.f32 %v5036_v6, %v2111_v1  ;;  %v3984_v22 = vmul.f32 %v9803_v42, %v9803_v42  ;;  %v9899_v5 = vadd.f32 %v12640_v63, %v12639_v27 }
 0x3cc   : > { %v9901_v54 = vpop.eup %6916  ;;  %vm4774_vm14 = vcmp.ge.f32.partialorder %v9587_v19, 0.0  ;;  %v3858_v3 = vmul.f32 %v9713_v11, %v3741_v30  ;;  %v3846_v2 = vadd.f32 0.2548296, %v3729_v4  ;;  %v2923_v34 = vmul.f32 1.0614054, %v9888_v44 }
 0x3cd   : > { %12637 = vst [vmem:[#allocation62_spill] sm:$0xff] %v9891_v59  ;;  %12638 = vst [vmem:[#allocation80_spill] sm:$0xff] %v9893_v40  ;;  %v2589_v23 = vadd.f32 1.0, %v2472_v7  ;;  %v5116_v0 = vadd.f32 1.0, %v4999_v14  ;;  %v4657_v31 = vsub.f32 1.0, %v4540_v61  ;;  %v3173_v42 = vmul.f32 %v9864_v41, %v3056_v9  ;;  %v12641_v61 = vld [vmem:[#allocation63_spill] sm:$0xff] }
 0x3ce   : > { %v9910_v1 = vmul.f32 0.5, %v9701_v37  ;;  %v3262_v60 = vmul.f32 %v9844_v8, %v3145_v20  ;;  %v3040_v57 = vadd.f32 -1.4531521, %v2923_v34  ;;  %v2456_v6 = vmul.f32 0.3275911, %v9886_v12 }
 0x3cf   : > { %v6919_v11 = vpop.eup %6918  ;;  %v4198_v30 = vsub.f32 0.0, %v4081_v17  ;;  %v2931_v4 = vmul.f32 1.0614054, %v9901_v54  ;;  %v9916_v7 = vmul.f32 0.70710677, %v9899_v5  ;;  %v9920_v14 = vadd.f32 %v12641_v61, %v12607_v50 }
 0x3d0   : > { %v4443_v9 = vmul.f32 %v6919_v11, %v3858_v3  ;;  %v3963_v37 = vmul.f32 %v9746_v62, %v3846_v2  ;;  %v4101_v63 = vsub.f32 0.0, %v3984_v22  ;;  %6922 = vrcp.f32 %v2589_v23 }
 0x3d1   : > { %v4891_v20 = vsub.f32 0.0, %v4657_v31  ;;  %v9924_v34 = vmul.f32 0.5, %v9756_v25  ;;  %v3290_v43 = vadd.f32 1.4214138, %v3173_v42  ;;  %v2363_v17 = vand.u32 2147483647, %v9916_v7 }
 0x3d2   : > { %v3379_v59 = vadd.f32 1.4214138, %v3262_v60  ;;  %v3992_v40 = vmul.f32 %v9797_v52, %v9797_v52  ;;  %v3157_v29 = vmul.f32 %v9888_v44, %v3040_v57  ;;  %v2573_v61 = vadd.f32 1.0, %v2456_v6 }
 0x3d3   : > { %v6921_v45 = vpop.eup %6920  ;;  %v9931_v3 = vmul.f32 %v5116_v0, %v9738_v47  ;;  %vm4677_vm15 = vcmp.ge.f32.partialorder %v9609_v28, 0.0  ;;  %v3048_v62 = vadd.f32 -1.4531521, %v2931_v4  ;;  %v2480_v22 = vmul.f32 0.3275911, %v2363_v17 }
 0x3d4   : > { %v9935_v25 = vmul.f32 0.70710677, %v9920_v14  ;;  %v4560_v2 = vsub.f32 1.0, %v4443_v9  ;;  %v4548_v23 = vmul.f32 %v6921_v45, %v3963_v37  ;;  %v4426_v42 = vmul.f32 1.442695, %v4198_v30  ;;  %v12643_v30 = vld [vmem:[#allocation8_spill] sm:$0xff] }
 0x3d5   : > { %12642 = vst [vmem:[#allocation7_spill] sm:$0xff] %v9931_v3  ;;  %v4232_v60 = vmul.f32 1.442695, %v4101_v63  ;;  %v5008_v52 = vsel %vm4774_vm14, %v4657_v31, %v4891_v20  ;;  %v3407_v57 = vmul.f32 %v9864_v41, %v3290_v43  ;;  %v2597_v6 = vadd.f32 1.0, %v2480_v22  ;;  %v9949_v31 = vpop.f32.mrb[46].mxu1  ;;  %v9951_v43 = vpop.f32.mrb[52].mxu0 }
 0x3d6   : > { %v2347_v47 = vand.u32 2147483647, %v9935_v25  ;;  %v3496_v0 = vmul.f32 %v9844_v8, %v3379_v59  ;;  %v4109_v11 = vsub.f32 0.0, %v3992_v40  ;;  %v3274_v4 = vadd.f32 1.4214138, %v3157_v29  ;;  %12644 = vst [vmem:[#allocation63_spill] sm:$0xff] %v9949_v31 }
 0x3d7   : > { %6924 = vrcp.f32 %v2573_v61  ;;  %v3165_v3 = vmul.f32 %v9901_v54, %v3048_v62  ;;  %v3976_v45 = vmul.f32 %v9822_v35, %v9822_v35  ;;  %v9947_v19 = vadd.f32 %v12643_v30, %v12639_v27  ;;  %12645 = vst [vmem:[#allocation8_spill] sm:$0xff] %v9951_v43 }
 0x3d8   : > { %6926 = vrcp.f32 %v2597_v6  ;;  %v4794_v9 = vsub.f32 0.0, %v4560_v2  ;;  %v4665_v37 = vsub.f32 1.0, %v4548_v23  ;;  %vm4782_vm0 = vcmp.ge.f32.partialorder %v9657_v56, 0.0 }
 0x3d9   : > { %6928 = vpow2.f32 %v4426_v42  ;;  %v2464_v29 = vmul.f32 0.3275911, %v2347_v47  ;;  %v5125_v59 = vadd.f32 1.0, %v5008_v52  ;;  %v9955_v40 = vmul.f32 0.5, %v9771_v21  ;;  %v9966_v52 = vpop.f32.mrb[47].mxu1 }
 0x3da   : > { %v3524_v35 = vadd.f32 -0.28449672, %v3407_v57  ;;  %v9958_v63 = vmul.f32 0.5, %v9792_v48  ;;  %v9960_v20 = vpop.eup %6922  ;;  %v3613_v61 = vadd.f32 -0.28449672, %v3496_v0  ;;  %v3391_v22 = vmul.f32 %v9888_v44, %v3274_v4  ;;  %12646 = vst [vmem:[#allocation81_spill] sm:$0xff] %v9966_v52 }
 0x3db   : > { %v4248_v62 = vmul.f32 1.442695, %v4109_v11  ;;  %v2581_v6 = vadd.f32 1.0, %v2464_v29  ;;  %v3282_v23 = vadd.f32 1.4214138, %v3165_v3  ;;  %6930 = vpow2.f32 %v4232_v60  ;;  %v12647_v3 = vld [vmem:[#allocation42_spill] sm:$0xff] }
 0x3dc   : > { %v4093_v30 = vsub.f32 0.0, %v3976_v45  ;;  %v9964_v42 = vmul.f32 0.70710677, %v9947_v19  ;;  %v4911_v21 = vsel %vm4677_vm15, %v4560_v2, %v4794_v9  ;;  %v4899_v48 = vsub.f32 0.0, %v4665_v37  ;;  %v12648_v60 = vld [vmem:[#allocation50_spill] sm:$0xff] }
 0x3dd   : > { %v4001_v57 = vmul.f32 %v2363_v17, %v2363_v17  ;;  %6932 = vrcp.f32 %v2581_v6  ;;  %v3641_v0 = vmul.f32 %v9864_v41, %v3524_v35  ;;  %v2940_v11 = vmul.f32 1.0614054, %v9960_v20  ;;  %v12650_v35 = vld [vmem:[#allocation25_spill] sm:$0xff] }
 0x3de   : > { %v9973_v4 = vand.u32 2147483647, %v9964_v42  ;;  %v6482_v45 = vpack.c.bf16 %v12648_v60, %v12647_v3  ;;  %v9978_v29 = vmul.f32 %v5125_v59, %v9764_v26  ;;  %6934 = vpow2.f32 %v4248_v62  ;;  %v12651_v62 = vld [vmem:[#allocation33_spill] sm:$0xff] }
 0x3df   : > { %v3508_v13 = vadd.f32 -0.28449672, %v3391_v22  ;;  %v3993_v28 = vmul.f32 %v9862_v16, %v9862_v16  ;;  %v3730_v17 = vmul.f32 %v9844_v8, %v3613_v61  ;;  %v3399_v2 = vmul.f32 %v9901_v54, %v3282_v23  ;;  %v12652_v61 = vld [vmem:[#allocation32_spill] sm:$0xff] }
 0x3e0   : > { %12649 = vst [vmem:[#allocation42_spill] sm:$0xff] %v9978_v29  ;;  %v4216_v9 = vmul.f32 1.442695, %v4093_v30  ;;  %v9986_v6 = vadd.f32 %v12650_v35, %v12607_v50  ;;  %6483 = vmatprep.subr.bf16.mxu0 %v6482_v45  ;;  %v5028_v3 = vadd.f32 1.0, %v4911_v21  ;;  %v9991_v26 = vmul.f32 0.5, %v9830_v46  ;;  %v10008_v50 = vpop.f32.mrb[53].mxu0 }
 0x3e1   : > { %v9988_v52 = vpop.eup %6924  ;;  %v9994_v59 = vmul.f32 0.5, %v9848_v49  ;;  %v4118_v16 = vsub.f32 0.0, %v4001_v57  ;;  %v12653_v22 = vpack.c.bf16 %v12651_v62, %v12652_v61  ;;  %v5016_v30 = vsel %vm4782_vm0, %v4665_v37, %v4899_v48  ;;  %12654 = vst [vmem:[#allocation50_spill] sm:$0xff] %v10008_v50 }
 0x3e2   : > { %v9999_v23 = vpop.eup %6926  ;;  %v3758_v60 = vadd.f32 0.2548296, %v3641_v0  ;;  %v3057_v45 = vadd.f32 -1.4531521, %v2940_v11  ;;  %v2481_v21 = vmul.f32 0.3275911, %v9973_v4  ;;  %v3625_v46 = vmul.f32 %v9888_v44, %v3508_v13 }
 0x3e3   : > { %6485 = vmatpush1.bf16.msra.mxu0 %v12653_v22  ;;  %v10004_v35 = vpop.eup %6928  ;;  %v4110_v49 = vsub.f32 0.0, %v3993_v28  ;;  %v2948_v57 = vmul.f32 1.0614054, %v9999_v23  ;;  %v3985_v29 = vmul.f32 %v2347_v47, %v2347_v47  ;;  %v3847_v62 = vadd.f32 0.2548296, %v3730_v17 }
 0x3e4   : > { %v3516_v61 = vadd.f32 -0.28449672, %v3399_v2  ;;  %6936 = vpow2.f32 %v4216_v9  ;;  %v10011_v56 = vmul.f32 0.70710677, %v9986_v6  ;;  %v10014_v37 = vmul.f32 %v5028_v3, %v9814_v36  ;;  %v12657_v3 = vld [vmem:[#allocation22_spill] sm:$0xff] }
 0x3e5   : > { %v2924_v48 = vmul.f32 1.0614054, %v9988_v52  ;;  %v3065_v0 = vadd.f32 -1.4531521, %v2948_v57  ;;  %v4266_v11 = vmul.f32 1.442695, %v4118_v16  ;;  %v10017_v13 = vpop.eup %6930  ;;  %v3875_v47 = vmul.f32 %v9864_v41, %v3758_v60 }
 0x3e6   : > { %12655 = vst [vmem:[#allocation25_spill] sm:$0xff] %v10011_v56  ;;  %12656 = vst [vmem:[#allocation33_spill] sm:$0xff] %v10014_v37  ;;  %v10019_v28 = vadd.f32 1.0, %v5016_v30  ;;  %v3174_v17 = vmul.f32 %v9960_v20, %v3057_v45  ;;  %v2598_v2 = vadd.f32 1.0, %v2481_v21  ;;  %v3742_v22 = vadd.f32 0.2548296, %v3625_v46 }
 0x3e7   : > { %v10023_v9 = vpop.eup %6932  ;;  %v3182_v50 = vmul.f32 %v9999_v23, %v3065_v0  ;;  %v4102_v36 = vsub.f32 0.0, %v3985_v29  ;;  %v12658_v37 = vld [vmem:[#allocation70_spill] sm:$0xff]  ;;  %v3964_v16 = vmul.f32 %v9844_v8, %v3847_v62  ;;  %v4250_v57 = vmul.f32 1.442695, %v4110_v49 }
 0x3e8   : > { %v10028_v43 = vadd.f32 %v12658_v37, %v12657_v3  ;;  %v2932_v30 = vmul.f32 1.0614054, %v10023_v9  ;;  %v10033_v41 = vand.u32 2147483647, %v10011_v56  ;;  %v6935_v60 = vpop.eup %6934  ;;  %v3633_v45 = vmul.f32 %v9901_v54, %v3516_v61 }
 0x3e9   : > { %v3041_v21 = vadd.f32 -1.4531521, %v2924_v48  ;;  %v3299_v46 = vadd.f32 1.4214138, %v3182_v50  ;;  %6938 = vpow2.f32 %v4266_v11  ;;  %v4460_v0 = vmul.f32 %v6935_v60, %v3875_v47  ;;  %v12659_v50 = vld [vmem:[#allocation28_spill] sm:$0xff] }
 0x3ea   : > { %v3049_v29 = vadd.f32 -1.4531521, %v2932_v30  ;;  %6940 = vrcp.f32 %v2598_v2  ;;  %v10037_v37 = vmul.f32 0.70710677, %v10028_v43  ;;  %v3859_v8 = vmul.f32 %v9888_v44, %v3742_v22 }
 0x3eb   : > { %v3291_v49 = vadd.f32 1.4214138, %v3174_v17  ;;  %v3416_v62 = vmul.f32 %v9999_v23, %v3299_v46  ;;  %v4234_v31 = vmul.f32 1.442695, %v4102_v36  ;;  %v2465_v18 = vmul.f32 0.3275911, %v10033_v41 }
 0x3ec   : > { %v3166_v51 = vmul.f32 %v10023_v9, %v3049_v29  ;;  %v10044_v61 = vand.u32 2147483647, %v10037_v37  ;;  %v10048_v48 = vadd.f32 %v12659_v50, %v12625_v10  ;;  %v3750_v11 = vadd.f32 0.2548296, %v3633_v45 }
 0x3ed   : > { %6942 = vpow2.f32 %v4250_v57  ;;  %v3158_v47 = vmul.f32 %v9988_v52, %v3041_v21  ;;  %v3533_v44 = vadd.f32 -0.28449672, %v3416_v62  ;;  %v4577_v2 = vsub.f32 1.0, %v4460_v0  ;;  %v10063_v62 = vpop.f32.mrb[48].mxu1 }
 0x3ee   : > { %v6937_v17 = vpop.eup %6936  ;;  %vm4694_vm1 = vcmp.ge.f32.partialorder %v9787_v55, 0.0  ;;  %v3977_v22 = vmul.f32 %v9886_v12, %v9886_v12  ;;  %v3283_v36 = vadd.f32 1.4214138, %v3166_v51  ;;  %v2489_v30 = vmul.f32 0.3275911, %v10044_v61  ;;  %12660 = vst [vmem:[#allocation32_spill] sm:$0xff] %v10063_v62 }
 0x3ef   : > { %v10055_v60 = vmul.f32 %v6937_v17, %v3859_v8  ;;  %v3408_v46 = vmul.f32 %v9960_v20, %v3291_v49  ;;  %v3650_v45 = vmul.f32 %v9999_v23, %v3533_v44  ;;  %6944 = vpow2.f32 %v4234_v31 }
 0x3f0   : > { %v3400_v57 = vmul.f32 %v10023_v9, %v3283_v36  ;;  %v2582_v21 = vadd.f32 1.0, %v2465_v18  ;;  %v2606_v29 = vadd.f32 1.0, %v2489_v30  ;;  %v10061_v0 = vmul.f32 0.70710677, %v10048_v48 }
 0x3f1   : > { %v10066_v51 = vmul.f32 %v10004_v35, %v3964_v16  ;;  %v3867_v12 = vmul.f32 %v9901_v54, %v3750_v11  ;;  %v3275_v8 = vadd.f32 1.4214138, %v3158_v47  ;;  %v3767_v50 = vadd.f32 0.2548296, %v3650_v45  ;;  %v10075_v16 = vpop.f32.mrb[54].mxu0 }
 0x3f2   : > { %v4094_v49 = vsub.f32 0.0, %v3977_v22  ;;  %v3517_v17 = vadd.f32 -0.28449672, %v3400_v57  ;;  %6946 = vrcp.f32 %v2606_v29  ;;  %v10070_v31 = vand.u32 2147483647, %v10061_v0  ;;  %12661 = vst [vmem:[#allocation70_spill] sm:$0xff] %v10075_v16 }
 0x3f3   : > { %v6939_v18 = vpop.eup %6938  ;;  %v4811_v44 = vsub.f32 0.0, %v4577_v2  ;;  %v4561_v36 = vsub.f32 1.0, %v10055_v60  ;;  %vm4678_vm2 = vcmp.ge.f32.partialorder %v9811_v53, 0.0  ;;  %v3525_v30 = vadd.f32 -0.28449672, %v3408_v46 }
 0x3f4   : > { %v3884_v35 = vmul.f32 %v9999_v23, %v3767_v50  ;;  %v10077_v54 = vpop.eup %6940  ;;  %v3634_v11 = vmul.f32 %v10023_v9, %v3517_v17  ;;  %6948 = vrcp.f32 %v2582_v21  ;;  %v2473_v47 = vmul.f32 0.3275911, %v10070_v31 }
 0x3f5   : > { %v10083_v22 = vadd.f32 %v9451_v32, %v12657_v3  ;;  %v4666_v60 = vsub.f32 1.0, %v10066_v51  ;;  %v10087_v45 = vmul.f32 %v10017_v13, %v3867_v12  ;;  %v3392_v23 = vmul.f32 %v9988_v52, %v3275_v8 }
 0x3f6   : > { %v4469_v46 = vmul.f32 %v6939_v18, %v3884_v35  ;;  %v4218_v57 = vmul.f32 1.442695, %v4094_v49  ;;  %v2129_v29 = vmul.f32 0.5, %v9899_v5  ;;  %v3751_v50 = vadd.f32 0.2548296, %v3634_v11  ;;  %v12662_v49 = vld [vmem:[#allocation72_spill] sm:$0xff] }
 0x3f7   : > { %v2590_v17 = vadd.f32 1.0, %v2473_v47  ;;  %v6943_v21 = vpop.eup %6942  ;;  %v4928_v16 = vsel %vm4694_vm1, %v4577_v2, %v4811_v44  ;;  %v3642_v32 = vmul.f32 %v9960_v20, %v3525_v30  ;;  %v2949_v51 = vmul.f32 1.0614054, %v10077_v54  ;;  %v10107_v35 = vpop.f32.mrb[49].mxu1 }
 0x3f8   : > { %v4586_v62 = vsub.f32 1.0, %v4469_v46  ;;  %v4795_v56 = vsub.f32 0.0, %v4561_v36  ;;  %v3868_v13 = vmul.f32 %v10023_v9, %v3751_v50  ;;  %v10097_v12 = vmul.f32 0.70710677, %v10083_v22 }
 0x3f9   : > { %6950 = vrcp.f32 %v2590_v17  ;;  %v6945_v8 = vpop.eup %6944  ;;  %vm4783_vm3 = vcmp.ge.f32.partialorder %v9719_v33, 0.0  ;;  %v4569_v5 = vsub.f32 1.0, %v10087_v45  ;;  %vm4686_vm4 = vcmp.ge.f32.partialorder %v9782_v15, 0.0  ;;  %v12668_v15 = vld [vmem:[#allocation13_spill] sm:$0xff] }
 0x3fa   : > { %v3509_v55 = vadd.f32 -0.28449672, %v3392_v23  ;;  %v4820_v2 = vsub.f32 0.0, %v4586_v62  ;;  %v10104_v18 = vadd.f32 %v12662_v49, %v12625_v10  ;;  %v4900_v44 = vsub.f32 0.0, %v4666_v60 }
 0x3fb   : > { %v5045_v30 = vadd.f32 1.0, %v4928_v16  ;;  %vm4703_vm5 = vcmp.ge.f32.partialorder %v9916_v7, 0.0  ;;  %v4453_v9 = vmul.f32 %v6945_v8, %v3868_v13  ;;  %v3759_v11 = vadd.f32 0.2548296, %v3642_v32 }
 0x3fc   : > { %6952 = vpow2.f32 %v4218_v57  ;;  %v4937_v47 = vsel %vm4703_vm5, %v4586_v62, %v4820_v2  ;;  %v3066_v46 = vadd.f32 -1.4531521, %v2949_v51  ;;  %v10109_v45 = vpop.eup %6946  ;;  %v4912_v23 = vsel %vm4678_vm2, %v4561_v36, %v4795_v56  ;;  %v10129_v36 = vpop.f32.mrb[55].mxu0 }
 0x3fd   : > { %v5054_v50 = vadd.f32 1.0, %v4937_v47  ;;  %v4570_v17 = vsub.f32 1.0, %v4453_v9  ;;  %v10114_v49 = vand.u32 2147483647, %v10097_v12  ;;  %v4803_v16 = vsub.f32 0.0, %v4569_v5  ;;  %v10209_v9 = vpop.f32.mrb[56].mxu0 }
 0x3fe   : > { %v3626_v7 = vmul.f32 %v9988_v52, %v3509_v55  ;;  %v2957_v13 = vmul.f32 1.0614054, %v10109_v45  ;;  %v10119_v32 = vmul.f32 0.70710677, %v10104_v18  ;;  %v10121_v62 = vpop.eup %6948  ;;  %v10124_v57 = vmul.f32 %v5045_v30, %v9955_v40  ;;  %12674 = vst [vmem:[#allocation86_spill] sm:$0xff] %v10209_v9  ;;  %v12685_v9 = vld [vmem:[#allocation43_spill] sm:$0xff] }
 0x3ff   : > { %v10126_v53 = vmul.f32 %v5054_v50, %v2129_v29  ;;  %vm4687_vm6 = vcmp.ge.f32.partialorder %v9935_v25, 0.0  ;;  %v4804_v56 = vsub.f32 0.0, %v4570_v17  ;;  %v5029_v51 = vadd.f32 1.0, %v4912_v23 }
 0x400   : > { %12663 = vst [vmem:[#allocation28_spill] sm:$0xff] %v10124_v57  ;;  %v3876_v8 = vmul.f32 %v9960_v20, %v3759_v11  ;;  %v3183_v55 = vmul.f32 %v10077_v54, %v3066_v46  ;;  %v10134_v2 = vand.u32 2147483647, %v10119_v32  ;;  %v3074_v30 = vadd.f32 -1.4531521, %v2957_v13  ;;  %v12680_v57 = vld [vmem:[#allocation21_spill] sm:$0xff] }
 0x401   : > { %12664 = vst [vmem:[#allocation72_spill] sm:$0xff] %v10126_v53  ;;  %v4921_v40 = vsel %vm4687_vm6, %v4570_v17, %v4804_v56  ;;  %v2490_v29 = vmul.f32 0.3275911, %v10114_v49  ;;  %v3743_v47 = vadd.f32 0.2548296, %v3626_v7  ;;  %v2113_v25 = vmul.f32 0.5, %v9920_v14 }
 0x402   : > { %v5038_v50 = vadd.f32 1.0, %v4921_v40  ;;  %v2933_v23 = vmul.f32 1.0614054, %v10121_v62  ;;  %v5017_v20 = vsel %vm4783_vm3, %v4666_v60, %v4900_v44  ;;  %v4920_v11 = vsel %vm4686_vm4, %v4569_v5, %v4803_v16  ;;  %v12667_v44 = vld [vmem:[#allocation30_spill] sm:$0xff] }
 0x403   : > { %v10141_v10 = vpop.eup %6950  ;;  %v4002_v46 = vmul.f32 %v9973_v4, %v9973_v4  ;;  %v2474_v17 = vmul.f32 0.3275911, %v10134_v2  ;;  %v10151_v7 = vmul.f32 %v5029_v51, %v9958_v63  ;;  %v4461_v14 = vmul.f32 %v6943_v21, %v3876_v8  ;;  %v10198_v21 = vpop.f32.mrb[50].mxu1 }
 0x404   : > { %v10153_v13 = vmul.f32 %v5038_v50, %v2113_v25  ;;  %v3300_v56 = vadd.f32 1.4214138, %v3183_v55  ;;  %v3191_v40 = vmul.f32 %v10109_v45, %v3074_v30  ;;  %v2941_v33 = vmul.f32 1.0614054, %v10141_v10  ;;  %12673 = vst [vmem:[#allocation85_spill] sm:$0xff] %v10198_v21 }
 0x405   : > { %12665 = vst [vmem:[#allocation82_spill] sm:$0xff] %v10151_v7  ;;  %v2607_v60 = vadd.f32 1.0, %v2490_v29  ;;  %v10159_v5 = vadd.f32 %v12668_v15, %v12667_v44  ;;  %v10163_v4 = vmul.f32 %v10019_v28, %v9858_v24  ;;  %v3860_v63 = vmul.f32 %v9988_v52, %v3743_v47  ;;  %v12670_v47 = vld [vmem:[#allocation75_spill] sm:$0xff] }
 0x406   : > { %12666 = vst [vmem:[#allocation83_spill] sm:$0xff] %v10153_v13  ;;  %v6953_v16 = vpop.eup %6952  ;;  %v3050_v51 = vadd.f32 -1.4531521, %v2933_v23  ;;  %v5134_v8 = vadd.f32 1.0, %v5017_v20  ;;  %v5037_v55 = vadd.f32 1.0, %v4920_v11  ;;  %v2591_v25 = vadd.f32 1.0, %v2474_v17 }
 0x407   : > { %12669 = vst [vmem:[#allocation13_spill] sm:$0xff] %v10163_v4  ;;  %v3058_v30 = vadd.f32 -1.4531521, %v2941_v33  ;;  %vm4695_vm8 = vcmp.ge.f32.partialorder %v9841_v38, 0.0  ;;  %v3417_v29 = vmul.f32 %v10077_v54, %v3300_v56  ;;  %v4119_v50 = vsub.f32 0.0, %v4002_v46  ;;  %v12675_v38 = vld [vmem:[#allocation77_spill] sm:$0xff] }
 0x408   : > { %v3986_v15 = vmul.f32 %v10033_v41, %v10033_v41  ;;  %v10173_v24 = vmul.f32 0.70710677, %v10159_v5  ;;  %v4578_v52 = vsub.f32 1.0, %v4461_v14  ;;  %v3308_v28 = vadd.f32 1.4214138, %v3191_v40 }
 0x409   : > { %6954 = vrcp.f32 %v2607_v60  ;;  %v10177_v23 = vadd.f32 %v12670_v47, %v12639_v27  ;;  %v4445_v20 = vmul.f32 %v6953_v16, %v3860_v63  ;;  %v3167_v11 = vmul.f32 %v10121_v62, %v3050_v51 }
 0x40a   : > { %v4010_v17 = vmul.f32 %v10044_v61, %v10044_v61  ;;  %v2381_v46 = vand.u32 2147483647, %v10173_v24  ;;  %v10184_v41 = vmul.f32 %v5134_v8, %v9910_v1  ;;  %v3175_v56 = vmul.f32 %v10141_v10, %v3058_v30 }
 0x40b   : > { %6956 = vrcp.f32 %v2591_v25  ;;  %v10188_v14 = vmul.f32 0.70710677, %v10177_v23  ;;  %v10191_v40 = vmul.f32 %v5037_v55, %v9924_v34  ;;  %v3534_v33 = vadd.f32 -0.28449672, %v3417_v29 }
 0x40c   : > { %12671 = vst [vmem:[#allocation75_spill] sm:$0xff] %v10184_v41  ;;  %v4268_v60 = vmul.f32 1.442695, %v4119_v50  ;;  %v4103_v16 = vsub.f32 0.0, %v3986_v15  ;;  %v4812_v63 = vsub.f32 0.0, %v4578_v52  ;;  %vm4679_vm9 = vcmp.ge.f32.partialorder %v9870_v58, 0.0 }
 0x40d   : > { %12672 = vst [vmem:[#allocation84_spill] sm:$0xff] %v10191_v40  ;;  %v3425_v61 = vmul.f32 %v10109_v45, %v3308_v28  ;;  %v2498_v51 = vmul.f32 0.3275911, %v2381_v46  ;;  %v2365_v1 = vand.u32 2147483647, %v10188_v14  ;;  %v4562_v8 = vsub.f32 1.0, %v4445_v20 }
 0x40e   : > { %v3284_v30 = vadd.f32 1.4214138, %v3167_v11  ;;  %v4127_v25 = vsub.f32 0.0, %v4010_v17  ;;  %v3994_v47 = vmul.f32 %v10070_v31, %v10070_v31  ;;  %v10201_v34 = vmul.f32 0.5, %v9947_v19 }
 0x40f   : > { %v3292_v55 = vadd.f32 1.4214138, %v3175_v56  ;;  %v2615_v29 = vadd.f32 1.0, %v2498_v51  ;;  %v2482_v50 = vmul.f32 0.3275911, %v2365_v1  ;;  %v3651_v15 = vmul.f32 %v10077_v54, %v3534_v33 }
 0x410   : > { %6958 = vpow2.f32 %v4268_v60  ;;  %v10205_v28 = vmul.f32 0.5, %v9986_v6  ;;  %v4236_v20 = vmul.f32 1.442695, %v4103_v16  ;;  %v4929_v11 = vsel %vm4695_vm8, %v4578_v52, %v4812_v63 }
 0x411   : > { %v3542_v17 = vadd.f32 -0.28449672, %v3425_v61  ;;  %6960 = vrcp.f32 %v2615_v29  ;;  %v2599_v31 = vadd.f32 1.0, %v2482_v50  ;;  %v4796_v19 = vsub.f32 0.0, %v4562_v8  ;;  %v12676_v61 = vld [vmem:[#allocation78_spill] sm:$0xff] }
 0x412   : > { %v10212_v56 = vmul.f32 0.5, %v10028_v43  ;;  %v4284_v51 = vmul.f32 1.442695, %v4127_v25  ;;  %v4111_v7 = vsub.f32 0.0, %v3994_v47  ;;  %v3401_v6 = vmul.f32 %v10121_v62, %v3284_v30 }
 0x413   : > { %v10214_v33 = vpop.eup %6954  ;;  %v3409_v60 = vmul.f32 %v10141_v10, %v3292_v55  ;;  %6962 = vrcp.f32 %v2599_v31  ;;  %v10220_v52 = vadd.f32 %v12675_v38, %v12667_v44  ;;  %v5046_v16 = vadd.f32 1.0, %v4929_v11  ;;  %v10240_v11 = vpop.f32.mrb[51].mxu1 }
 0x414   : > { %v3768_v63 = vadd.f32 0.2548296, %v3651_v15  ;;  %6964 = vpow2.f32 %v4236_v20  ;;  %v10224_v43 = vadd.f32 %v12676_v61, %v12639_v27  ;;  %v3659_v47 = vmul.f32 %v10109_v45, %v3542_v17  ;;  %12677 = vst [vmem:[#allocation77_spill] sm:$0xff] %v10240_v11 }
 0x415   : > { %v10226_v25 = vpop.eup %6956  ;;  %v10230_v30 = vmul.f32 0.5, %v10048_v48  ;;  %v4011_v55 = vmul.f32 %v10114_v49, %v10114_v49  ;;  %v10235_v29 = vmul.f32 0.70710677, %v10220_v52  ;;  %v4913_v50 = vsel %vm4679_vm9, %v4562_v8, %v4796_v19 }
 0x416   : > { %6966 = vpow2.f32 %v4284_v51  ;;  %v4252_v15 = vmul.f32 1.442695, %v4111_v7  ;;  %v2958_v20 = vmul.f32 1.0614054, %v10214_v33  ;;  %v3518_v31 = vadd.f32 -0.28449672, %v3401_v6 }
 0x417   : > { %v3526_v17 = vadd.f32 -0.28449672, %v3409_v60  ;;  %v4019_v38 = vmul.f32 %v2381_v46, %v2381_v46  ;;  %v10243_v48 = vand.u32 2147483647, %v10235_v29  ;;  %v10246_v49 = vmul.f32 %v5046_v16, %v9991_v26  ;;  %v10253_v7 = vpop.f32.mrb[57].mxu0 }
 0x418   : > { %v3885_v61 = vmul.f32 %v10077_v54, %v3768_v63  ;;  %v2942_v58 = vmul.f32 1.0614054, %v10226_v25  ;;  %v10251_v8 = vmul.f32 0.70710677, %v10224_v43  ;;  %12679 = vst [vmem:[#allocation87_spill] sm:$0xff] %v10253_v7  ;;  %v4128_v51 = vsub.f32 0.0, %v4011_v55 }
 0x419   : > { %12678 = vst [vmem:[#allocation78_spill] sm:$0xff] %v10246_v49  ;;  %v3776_v19 = vadd.f32 0.2548296, %v3659_v47  ;;  %v4003_v6 = vmul.f32 %v2365_v1, %v2365_v1  ;;  %v2499_v46 = vmul.f32 0.3275911, %v10243_v48  ;;  %v10256_v13 = vadd.f32 1.0, %v4913_v50 }
 0x41a   : > { %v6959_v60 = vpop.eup %6958  ;;  %6968 = vpow2.f32 %v4252_v15  ;;  %v3075_v26 = vadd.f32 -1.4531521, %v2958_v20  ;;  %v10259_v16 = vand.u32 2147483647, %v10251_v8  ;;  %v3643_v63 = vmul.f32 %v10141_v10, %v3526_v17  ;;  %v12681_v47 = vld [vmem:[#allocation11_spill] sm:$0xff] }
 0x41b   : > { %v10261_v54 = vpop.eup %6960  ;;  %v4136_v4 = vsub.f32 0.0, %v4019_v38  ;;  %v2616_v41 = vadd.f32 1.0, %v2499_v46  ;;  %v6486_v55 = vpack.c.bf16 %v12681_v47, %v12680_v57  ;;  %v10266_v1 = vmul.f32 %v6959_v60, %v3885_v61  ;;  %v12682_v60 = vld [vmem:[#allocation46_spill] sm:$0xff]  ;;  %v12683_v47 = vld [vmem:[#allocation45_spill] sm:$0xff] }
 0x41c   : > { %v3635_v53 = vmul.f32 %v10121_v62, %v3518_v31  ;;  %v3059_v50 = vadd.f32 -1.4531521, %v2942_v58  ;;  %v2966_v15 = vmul.f32 1.0614054, %v10261_v54  ;;  %v3893_v49 = vmul.f32 %v10109_v45, %v3776_v19 }
 0x41d   : > { %v10270_v20 = vpop.eup %6962  ;;  %v10274_v27 = vmul.f32 0.5, %v10083_v22  ;;  %v10276_v17 = vmul.f32 1.442695, %v4128_v51  ;;  %v4120_v38 = vsub.f32 0.0, %v4003_v6  ;;  %6487 = vmatprep.subr.bf16.mxu0 %v6486_v55  ;;  %v3192_v57 = vmul.f32 %v10214_v33, %v3075_v26 }
 0x41e   : > { %v6965_v46 = vpop.eup %6964  ;;  %v3995_v31 = vmul.f32 %v10134_v2, %v10134_v2  ;;  %v3083_v61 = vadd.f32 -1.4531521, %v2966_v15  ;;  %v2483_v58 = vmul.f32 0.3275911, %v10259_v16  ;;  %v12684_v40 = vpack.c.bf16 %v12682_v60, %v12683_v47  ;;  %v12686_v60 = vld [vmem:[#allocation55_spill] sm:$0xff] }
 0x41f   : > { %v3760_v45 = vadd.f32 0.2548296, %v3643_v63  ;;  %v4302_v22 = vmul.f32 1.442695, %v4136_v4  ;;  %v2950_v19 = vmul.f32 1.0614054, %v10270_v20  ;;  %6970 = vrcp.f32 %v2616_v41 }
 0x420   : > { %6489 = vmatpush1.bf16.msra.mxu0 %v12684_v40  ;;  %v6967_v51 = vpop.eup %6966  ;;  %v12406_v6 = vsub.f32 1.0, %v10266_v1  ;;  %v3752_v55 = vadd.f32 0.2548296, %v3635_v53  ;;  %v3176_v26 = vmul.f32 %v10226_v25, %v3059_v50  ;;  %v3200_v2 = vmul.f32 %v10261_v54, %v3083_v61  ;;  %v12687_v41 = vld [vmem:[#allocation56_spill] sm:$0xff] }
 0x421   : > { %v10289_v15 = vmul.f32 %v6967_v51, %v3893_v49  ;;  %v3067_v7 = vadd.f32 -1.4531521, %v2950_v19  ;;  %v4270_v11 = vmul.f32 1.442695, %v4120_v38  ;;  %v10293_v40 = vadd.f32 %v12686_v60, %v12685_v9 }
 0x422   : > { %v3309_v4 = vadd.f32 1.4214138, %v3192_v57  ;;  %v3317_v63 = vadd.f32 1.4214138, %v3200_v2  ;;  %v2600_v47 = vadd.f32 1.0, %v2483_v58  ;;  %v10297_v21 = vadd.f32 %v12687_v41, %v12657_v3 }
 0x423   : > { %v3877_v53 = vmul.f32 %v10141_v10, %v3760_v45  ;;  %6972 = vpow2.f32 %v4302_v22  ;;  %v3184_v50 = vmul.f32 %v10270_v20, %v3067_v7  ;;  %v10302_v49 = vmul.f32 0.70710677, %v10293_v40 }
 0x424   : > { %v6969_v38 = vpop.eup %6968  ;;  %v3869_v61 = vmul.f32 %v10121_v62, %v3752_v55  ;;  %v3293_v19 = vadd.f32 1.4214138, %v3176_v26  ;;  %v4112_v51 = vsub.f32 0.0, %v3995_v31  ;;  %v3434_v57 = vmul.f32 %v10261_v54, %v3317_v63  ;;  %v10316_v31 = vpop.f32.mrb[52].mxu1 }
 0x425   : > { %vm4704_vm10 = vcmp.ge.f32.partialorder %v9964_v42, 0.0  ;;  %v4595_v58 = vsub.f32 1.0, %v10289_v15  ;;  %v3301_v2 = vadd.f32 1.4214138, %v3184_v50  ;;  %6974 = vpow2.f32 %v4270_v11  ;;  %12688 = vst [vmem:[#allocation21_spill] sm:$0xff] %v10316_v31 }
 0x426   : > { %v10309_v10 = vand.u32 2147483647, %v10302_v49  ;;  %vm4712_vm11 = vcmp.ge.f32.partialorder %v10037_v37, 0.0  ;;  %v3426_v7 = vmul.f32 %v10214_v33, %v3309_v4  ;;  %v3551_v45 = vadd.f32 -0.28449672, %v3434_v57 }
 0x427   : > { %6976 = vrcp.f32 %v2600_v47  ;;  %v10314_v62 = vmul.f32 0.70710677, %v10297_v21  ;;  %v4821_v22 = vsub.f32 0.0, %v12406_v6  ;;  %v4462_v55 = vmul.f32 %v6969_v38, %v3877_v53  ;;  %v10329_v6 = vpop.f32.mrb[58].mxu0 }
 0x428   : > { %v3418_v11 = vmul.f32 %v10270_v20, %v3301_v2  ;;  %v2507_v26 = vmul.f32 0.3275911, %v10309_v10  ;;  %v3410_v15 = vmul.f32 %v10226_v25, %v3293_v19  ;;  %v4254_v60 = vmul.f32 1.442695, %v4112_v51 }
 0x429   : > { %v3668_v4 = vmul.f32 %v10261_v54, %v3551_v45  ;;  %v10325_v63 = vand.u32 2147483647, %v10314_v62  ;;  %v10327_v47 = vpop.eup %6970  ;;  %v4454_v41 = vmul.f32 %v6965_v46, %v3869_v61  ;;  %v4829_v50 = vsub.f32 0.0, %v4595_v58  ;;  %v12690_v61 = vld [vmem:[#allocation25_spill] sm:$0xff] }
 0x42a   : > { %v3535_v57 = vadd.f32 -0.28449672, %v3418_v11  ;;  %v2624_v31 = vadd.f32 1.0, %v2507_v26  ;;  %v10333_v53 = vmul.f32 %v10256_v13, %v9994_v59  ;;  %vm4696_vm12 = vcmp.ge.f32.partialorder %v10061_v0, 0.0 }
 0x42b   : > { %v3543_v38 = vadd.f32 -0.28449672, %v3426_v7  ;;  %v3785_v19 = vadd.f32 0.2548296, %v3668_v4  ;;  %v2491_v51 = vmul.f32 0.3275911, %v10325_v63  ;;  %v10340_v46 = vadd.f32 %v9705_v39, %v12685_v9 }
 0x42c   : > { %12689 = vst [vmem:[#allocation11_spill] sm:$0xff] %v10333_v53  ;;  %v4579_v2 = vsub.f32 1.0, %v4462_v55  ;;  %v3652_v45 = vmul.f32 %v10270_v20, %v3535_v57  ;;  %6978 = vrcp.f32 %v2624_v31  ;;  %vm4688_vm13 = vcmp.ge.f32.partialorder %v12690_v61, 0.0 }
 0x42d   : > { %v3527_v11 = vadd.f32 -0.28449672, %v3410_v15  ;;  %v3902_v59 = vmul.f32 %v10261_v54, %v3785_v19  ;;  %v2967_v13 = vmul.f32 1.0614054, %v10327_v47  ;;  %v2608_v26 = vadd.f32 1.0, %v2491_v51  ;;  %v6973_v7 = vpop.eup %6972 }
 0x42e   : > { %v4571_v4 = vsub.f32 1.0, %v4454_v41  ;;  %6980 = vpow2.f32 %v10276_v17  ;;  %v2147_v55 = vmul.f32 0.5, %v10159_v5  ;;  %v3769_v57 = vadd.f32 0.2548296, %v3652_v45 }
 0x42f   : > { %v12691_v31 = vsub.f32 1.0, %v10266_v1  ;;  %v3660_v15 = vmul.f32 %v10214_v33, %v3543_v38  ;;  %v4487_v53 = vmul.f32 %v6973_v7, %v3902_v59  ;;  %6982 = vrcp.f32 %v2608_v26  ;;  %v6975_v54 = vpop.eup %6974  ;;  %v10363_v38 = vpop.f32.mrb[53].mxu1 }
 0x430   : > { %v4946_v19 = vsel %vm4712_vm11, %v4595_v58, %v4829_v50  ;;  %v4813_v41 = vsub.f32 0.0, %v4579_v2  ;;  %v3886_v17 = vmul.f32 %v10270_v20, %v3769_v57  ;;  %v10358_v5 = vmul.f32 0.70710677, %v10340_v46  ;;  %v12692_v58 = vld [vmem:[#allocation79_spill] sm:$0xff] }
 0x431   : > { %v10351_v39 = vsel %vm4704_vm10, %v12691_v31, %v4821_v22  ;;  %v10360_v51 = vpop.eup %6976  ;;  %v3644_v42 = vmul.f32 %v10226_v25, %v3527_v11  ;;  %6984 = vpow2.f32 %v4254_v60  ;;  %v4604_v1 = vsub.f32 1.0, %v4487_v53 }
 0x432   : > { %v3084_v22 = vadd.f32 -1.4531521, %v2967_v13  ;;  %v4805_v45 = vsub.f32 0.0, %v4571_v4  ;;  %vm4721_vm14 = vcmp.ge.f32.partialorder %v10173_v24, 0.0  ;;  %v4471_v37 = vmul.f32 %v6975_v54, %v3886_v17 }
 0x433   : > { %v10368_v50 = vadd.f32 %v12692_v58, %v12657_v3  ;;  %v5063_v20 = vadd.f32 1.0, %v4946_v19  ;;  %v3777_v59 = vadd.f32 0.2548296, %v3660_v15  ;;  %v4838_v26 = vsub.f32 0.0, %v4604_v1 }
 0x434   : > { %v2131_v7 = vmul.f32 0.5, %v10177_v23  ;;  %v4930_v60 = vsel %vm4696_vm12, %v4579_v2, %v4813_v41  ;;  %v4588_v53 = vsub.f32 1.0, %v4471_v37  ;;  %v2951_v11 = vmul.f32 1.0614054, %v10360_v51 }
 0x435   : > { %v10375_v13 = vand.u32 2147483647, %v10358_v5  ;;  %v3761_v24 = vadd.f32 0.2548296, %v3644_v42  ;;  %v4955_v57 = vsel %vm4721_vm14, %v4604_v1, %v4838_v26  ;;  %vm4705_vm15 = vcmp.ge.f32.partialorder %v10188_v14, 0.0 }
 0x436   : > { %v3201_v31 = vmul.f32 %v10327_v47, %v3084_v22  ;;  %v10379_v54 = vpop.eup %6978  ;;  %v4922_v23 = vsel %vm4688_vm13, %v4571_v4, %v4805_v45  ;;  %v5072_v15 = vadd.f32 1.0, %v4955_v57  ;;  %v4822_v0 = vsub.f32 0.0, %v4588_v53  ;;  %v10394_v4 = vpop.f32.mrb[59].mxu0 }
 0x437   : > { %v10384_v2 = vmul.f32 0.70710677, %v10368_v50  ;;  %v10387_v19 = vmul.f32 %v5063_v20, %v10212_v56  ;;  %v5047_v41 = vadd.f32 1.0, %v4930_v60  ;;  %v3894_v17 = vmul.f32 %v10214_v33, %v3777_v59  ;;  %12695 = vst [vmem:[#allocation55_spill] sm:$0xff] %v10394_v4 }
 0x438   : > { %v2975_v14 = vmul.f32 1.0614054, %v10379_v54  ;;  %v6981_v42 = vpop.eup %6980  ;;  %v10391_v1 = vmul.f32 %v5072_v15, %v2147_v55  ;;  %v4939_v22 = vsel %vm4705_vm15, %v4588_v53, %v4822_v0  ;;  %v3068_v37 = vadd.f32 -1.4531521, %v2951_v11 }
 0x439   : > { %12693 = vst [vmem:[#allocation46_spill] sm:$0xff] %v10387_v19  ;;  %v2508_v61 = vmul.f32 0.3275911, %v10375_v13  ;;  %v10396_v45 = vpop.eup %6982  ;;  %v3878_v58 = vmul.f32 %v10226_v25, %v3761_v24  ;;  %v5056_v56 = vadd.f32 1.0, %v4939_v22  ;;  %v3318_v20 = vadd.f32 1.4214138, %v3201_v31 }
 0x43a   : > { %12694 = vst [vmem:[#allocation45_spill] sm:$0xff] %v10391_v1  ;;  %v3092_v26 = vadd.f32 -1.4531521, %v2975_v14  ;;  %v4020_v55 = vmul.f32 %v10243_v48, %v10243_v48  ;;  %v2959_v59 = vmul.f32 1.0614054, %v10396_v45  ;;  %v10408_v11 = vmul.f32 %v5047_v41, %v10230_v30  ;;  %v12698_v24 = vld [vmem:[#allocation44_spill] sm:$0xff] }
 0x43b   : > { %v10405_v60 = vand.u32 2147483647, %v10384_v2  ;;  %v6985_v53 = vpop.eup %6984  ;;  %v10410_v57 = vmul.f32 %v5056_v56, %v2131_v7  ;;  %v12699_v31 = vld [vmem:[#allocation29_spill] sm:$0xff]  ;;  %v4479_v0 = vmul.f32 %v6981_v42, %v3894_v17  ;;  %v3185_v48 = vmul.f32 %v10360_v51, %v3068_v37 }
 0x43c   : > { %12696 = vst [vmem:[#allocation56_spill] sm:$0xff] %v10408_v11  ;;  %v3209_v25 = vmul.f32 %v10379_v54, %v3092_v26  ;;  %v10415_v15 = vadd.f32 %v12699_v31, %v12698_v24  ;;  %v2625_v14 = vadd.f32 1.0, %v2508_v61  ;;  %v4463_v33 = vmul.f32 %v6985_v53, %v3878_v58 }
 0x43d   : > { %12697 = vst [vmem:[#allocation25_spill] sm:$0xff] %v10410_v57  ;;  %v2492_v22 = vmul.f32 0.3275911, %v10405_v60  ;;  %v3435_v30 = vmul.f32 %v10327_v47, %v3318_v20  ;;  %v4004_v7 = vmul.f32 %v10259_v16, %v10259_v16  ;;  %v10425_v41 = vmul.f32 0.5, %v10104_v18  ;;  %v10435_v16 = vpop.f32.mrb[54].mxu1 }
 0x43e   : > { %v4137_v56 = vsub.f32 0.0, %v4020_v55  ;;  %v3076_v26 = vadd.f32 -1.4531521, %v2959_v59  ;;  %v5055_v42 = vadd.f32 1.0, %v10351_v39  ;;  %v5039_v37 = vadd.f32 1.0, %v4922_v23  ;;  %12700 = vst [vmem:[#allocation79_spill] sm:$0xff] %v10435_v16 }
 0x43f   : > { %v2609_v17 = vadd.f32 1.0, %v2492_v22  ;;  %vm4713_vm0 = vcmp.ge.f32.partialorder %v10097_v12, 0.0  ;;  %v3326_v61 = vadd.f32 1.4214138, %v3209_v25  ;;  %v10430_v58 = vmul.f32 0.70710677, %v10415_v15 }
 0x440   : > { %v4596_v53 = vsub.f32 1.0, %v4479_v0  ;;  %vm4697_vm1 = vcmp.ge.f32.partialorder %v10119_v32, 0.0  ;;  %v3302_v20 = vadd.f32 1.4214138, %v3185_v48  ;;  %v4028_v18 = vmul.f32 %v10309_v10, %v10309_v10  ;;  %v12701_v0 = vld [vmem:[#allocation19_spill] sm:$0xff] }
 0x441   : > { %6986 = vrcp.f32 %v2625_v14  ;;  %v4580_v55 = vsub.f32 1.0, %v4463_v33  ;;  %v3552_v59 = vadd.f32 -0.28449672, %v3435_v30  ;;  %v4121_v39 = vsub.f32 0.0, %v4004_v7 }
 0x442   : > { %v2399_v23 = vand.u32 2147483647, %v10430_v58  ;;  %v4304_v31 = vmul.f32 1.442695, %v4137_v56  ;;  %v3193_v25 = vmul.f32 %v10396_v45, %v3076_v26  ;;  %6988 = vrcp.f32 %v2609_v17 }
 0x443   : > { %v10441_v22 = vadd.f32 %v12701_v0, %v12667_v44  ;;  %v10444_v48 = vmul.f32 %v5055_v42, %v10201_v34  ;;  %v10447_v10 = vmul.f32 %v5039_v37, %v10205_v28  ;;  %v3443_v33 = vmul.f32 %v10379_v54, %v3326_v61  ;;  %v10460_v37 = vpop.f32.mrb[60].mxu0 }
 0x444   : > { %v2516_v14 = vmul.f32 0.3275911, %v2399_v23  ;;  %v4830_v30 = vsub.f32 0.0, %v4596_v53  ;;  %v10451_v7 = vmul.f32 0.5, %v10220_v52  ;;  %v3419_v56 = vmul.f32 %v10360_v51, %v3302_v20  ;;  %12704 = vst [vmem:[#allocation88_spill] sm:$0xff] %v10460_v37  ;;  %v12705_v20 = vld [vmem:[#allocation18_spill] sm:$0xff] }
 0x445   : > { %12702 = vst [vmem:[#allocation29_spill] sm:$0xff] %v10444_v48  ;;  %12703 = vst [vmem:[#allocation19_spill] sm:$0xff] %v10447_v10  ;;  %v4145_v26 = vsub.f32 0.0, %v4028_v18  ;;  %v4814_v17 = vsub.f32 0.0, %v4580_v55  ;;  %v3669_v0 = vmul.f32 %v10327_v47, %v3552_v59  ;;  %v4272_v19 = vmul.f32 1.442695, %v4121_v39 }
 0x446   : > { %v2633_v11 = vadd.f32 1.0, %v2516_v14  ;;  %6990 = vpow2.f32 %v4304_v31  ;;  %v3310_v34 = vadd.f32 1.4214138, %v3193_v25  ;;  %v4012_v28 = vmul.f32 %v10325_v63, %v10325_v63  ;;  %v12713_v48 = vld [vmem:[#allocation51_spill] sm:$0xff] }
 0x447   : > { %v10458_v42 = vmul.f32 0.70710677, %v10441_v22  ;;  %v10463_v52 = vmul.f32 0.5, %v10224_v43  ;;  %v3560_v61 = vadd.f32 -0.28449672, %v3443_v33  ;;  %v10467_v18 = vadd.f32 %v12705_v20, %v12698_v24  ;;  %v12707_v20 = vld [vmem:[#allocation31_spill] sm:$0xff] }
 0x448   : > { %6992 = vrcp.f32 %v2633_v11  ;;  %v4947_v59 = vsel %vm4713_vm0, %v4596_v53, %v4830_v30  ;;  %v3536_v39 = vadd.f32 -0.28449672, %v3419_v56  ;;  %v4320_v31 = vmul.f32 1.442695, %v4145_v26 }
 0x449   : > { %v2383_v63 = vand.u32 2147483647, %v10458_v42  ;;  %v4931_v25 = vsel %vm4697_vm1, %v4580_v55, %v4814_v17  ;;  %v3786_v14 = vadd.f32 0.2548296, %v3669_v0  ;;  %6994 = vpow2.f32 %v4272_v19  ;;  %v10492_v0 = vpop.f32.mrb[55].mxu1 }
 0x44a   : > { %v10475_v43 = vmul.f32 0.5, %v10293_v40  ;;  %v10480_v33 = vmul.f32 0.5, %v10297_v21  ;;  %v3427_v12 = vmul.f32 %v10396_v45, %v3310_v34  ;;  %v4129_v53 = vsub.f32 0.0, %v4012_v28  ;;  %12706 = vst [vmem:[#allocation18_spill] sm:$0xff] %v10492_v0 }
 0x44b   : > { %v10477_v11 = vpop.eup %6986  ;;  %v2500_v30 = vmul.f32 0.3275911, %v2383_v63  ;;  %v5064_v56 = vadd.f32 1.0, %v4947_v59  ;;  %v3677_v26 = vmul.f32 %v10379_v54, %v3560_v61  ;;  %v4029_v32 = vmul.f32 %v10375_v13, %v10375_v13 }
 0x44c   : > { %v10487_v19 = vmul.f32 0.70710677, %v10467_v18  ;;  %v10489_v40 = vpop.eup %6988  ;;  %v5048_v55 = vadd.f32 1.0, %v4931_v25  ;;  %v3653_v17 = vmul.f32 %v10360_v51, %v3536_v39  ;;  %6996 = vpow2.f32 %v4320_v31 }
 0x44d   : > { %v2617_v21 = vadd.f32 1.0, %v2500_v30  ;;  %v3903_v34 = vmul.f32 %v10327_v47, %v3786_v14  ;;  %v2976_v28 = vmul.f32 1.0614054, %v10477_v11  ;;  %v4037_v61 = vmul.f32 %v2399_v23, %v2399_v23 }
 0x44e   : > { %v10498_v13 = vadd.f32 %v12707_v20, %v12667_v44  ;;  %v3544_v59 = vadd.f32 -0.28449672, %v3427_v12  ;;  %v4288_v57 = vmul.f32 1.442695, %v4129_v53  ;;  %v10501_v25 = vand.u32 2147483647, %v10487_v19 }
 0x44f   : > { %6998 = vrcp.f32 %v2617_v21  ;;  %v10504_v39 = vmul.f32 %v5064_v56, %v10274_v27  ;;  %v3794_v31 = vadd.f32 0.2548296, %v3677_v26  ;;  %v4146_v30 = vsub.f32 0.0, %v4029_v32 }
 0x450   : > { %v2960_v47 = vmul.f32 1.0614054, %v10489_v40  ;;  %v6991_v14 = vpop.eup %6990  ;;  %v10508_v23 = vmul.f32 %v5048_v55, %v10425_v41  ;;  %v3770_v10 = vadd.f32 0.2548296, %v3653_v17  ;;  %v10511_v20 = vmul.f32 0.5, %v10340_v46 }
 0x451   : > { %12708 = vst [vmem:[#allocation31_spill] sm:$0xff] %v10504_v39  ;;  %v2517_v12 = vmul.f32 0.3275911, %v10501_v25  ;;  %v10516_v21 = vmul.f32 %v6991_v14, %v3903_v34  ;;  %v3093_v27 = vadd.f32 -1.4531521, %v2976_v28  ;;  %v4154_v56 = vsub.f32 0.0, %v4037_v61 }
 0x452   : > { %12709 = vst [vmem:[#allocation89_spill] sm:$0xff] %v10508_v23  ;;  %v10514_v53 = vpop.eup %6992  ;;  %v10519_v26 = vmul.f32 0.70710677, %v10498_v13  ;;  %v3661_v32 = vmul.f32 %v10396_v45, %v3544_v59  ;;  %7000 = vpow2.f32 %v4288_v57  ;;  %v3911_v46 = vmul.f32 %v10379_v54, %v3794_v31  ;;  %v10528_v28 = vpop.f32.mrb[61].mxu0 }
 0x453   : > { %v2984_v41 = vmul.f32 1.0614054, %v10514_v53  ;;  %v2634_v55 = vadd.f32 1.0, %v2517_v12  ;;  %v6995_v17 = vpop.eup %6994  ;;  %v4322_v23 = vmul.f32 1.442695, %v4146_v30  ;;  %v10526_v34 = vmul.f32 %v10405_v60, %v10405_v60  ;;  %12710 = vst [vmem:[#allocation90_spill] sm:$0xff] %v10528_v28 }
 0x454   : > { %v3077_v1 = vadd.f32 -1.4531521, %v2960_v47  ;;  %v4021_v14 = vmul.f32 %v2383_v63, %v2383_v63  ;;  %v10531_v59 = vand.u32 2147483647, %v10519_v26  ;;  %v4605_v57 = vsub.f32 1.0, %v10516_v21  ;;  %v12711_v63 = vld [vmem:[#allocation59_spill] sm:$0xff] }
 0x455   : > { %v3101_v61 = vadd.f32 -1.4531521, %v2984_v41  ;;  %7002 = vrcp.f32 %v2634_v55  ;;  %vm4722_vm2 = vcmp.ge.f32.partialorder %v10235_v29, 0.0  ;;  %v3887_v54 = vmul.f32 %v10360_v51, %v3770_v10  ;;  %v12712_v55 = vld [vmem:[#allocation64_spill] sm:$0xff]  ;;  %v12714_v28 = vld [vmem:[#allocation63_spill] sm:$0xff] }
 0x456   : > { %v3210_v31 = vmul.f32 %v10477_v11, %v3093_v27  ;;  %v4338_v30 = vmul.f32 1.442695, %v4154_v56  ;;  %v6997_v47 = vpop.eup %6996  ;;  %v3778_v60 = vadd.f32 0.2548296, %v3661_v32  ;;  %v2501_v41 = vmul.f32 0.3275911, %v10531_v59 }
 0x457   : > { %v3218_v12 = vmul.f32 %v10514_v53, %v3101_v61  ;;  %v6490_v44 = vpack.c.bf16 %v12712_v55, %v12711_v63  ;;  %v4496_v39 = vmul.f32 %v6997_v47, %v3911_v46  ;;  %v3194_v3 = vmul.f32 %v10489_v40, %v3077_v1  ;;  %v12715_v1 = vld [vmem:[#allocation52_spill] sm:$0xff]  ;;  %v12716_v47 = vld [vmem:[#allocation17_spill] sm:$0xff] }
 0x458   : > { %v4130_v21 = vsub.f32 0.0, %v10526_v34  ;;  %v10545_v51 = vadd.f32 %v12714_v28, %v12713_v48  ;;  %v10550_v27 = vmul.f32 0.5, %v10415_v15  ;;  %v4138_v32 = vsub.f32 0.0, %v4021_v14  ;;  %v12718_v28 = vld [vmem:[#allocation8_spill] sm:$0xff] }
 0x459   : > { %v10547_v10 = vpop.eup %6998  ;;  %v3335_v56 = vadd.f32 1.4214138, %v3218_v12  ;;  %v2618_v61 = vadd.f32 1.0, %v2501_v41  ;;  %6491 = vmatprep.subr.bf16.mxu0 %v6490_v44  ;;  %v3327_v0 = vadd.f32 1.4214138, %v3210_v31  ;;  %7004 = vpow2.f32 %v4338_v30  ;;  %v10566_v41 = vpop.f32.mrb[62].mxu0 }
 0x45a   : > { %v2968_v46 = vmul.f32 1.0614054, %v10547_v10  ;;  %v12717_v34 = vpack.c.bf16 %v12715_v1, %v12716_v47  ;;  %v10558_v63 = vadd.f32 %v12718_v28, %v12685_v9  ;;  %v4839_v55 = vsub.f32 0.0, %v4605_v57  ;;  %12719 = vst [vmem:[#allocation59_spill] sm:$0xff] %v10566_v41 }
 0x45b   : > { %vm4730_vm3 = vcmp.ge.f32.partialorder %v10302_v49, 0.0  ;;  %v3895_v15 = vmul.f32 %v10396_v45, %v3778_v60  ;;  %v3452_v14 = vmul.f32 %v10514_v53, %v3335_v56  ;;  %v10564_v44 = vmul.f32 0.70710677, %v10545_v51 }
 0x45c   : > { %6493 = vmatpush1.bf16.msra.mxu0 %v12717_v34  ;;  %v4613_v31 = vsub.f32 1.0, %v4496_v39  ;;  %7006 = vpow2.f32 %v4322_v23  ;;  %v3311_v30 = vadd.f32 1.4214138, %v3194_v3  ;;  %v3085_v12 = vadd.f32 -1.4531521, %v2968_v46  ;;  %v7001_v1 = vpop.eup %7000 }
 0x45d   : > { %v3569_v47 = vadd.f32 -0.28449672, %v3452_v14  ;;  %v4306_v34 = vmul.f32 1.442695, %v4138_v32  ;;  %7008 = vrcp.f32 %v2618_v61  ;;  %v10569_v28 = vand.u32 2147483647, %v10564_v44 }
 0x45e   : > { %v4472_v37 = vmul.f32 %v6995_v17, %v3887_v54  ;;  %v3444_v45 = vmul.f32 %v10477_v11, %v3327_v0  ;;  %v3202_v60 = vmul.f32 %v10547_v10, %v3085_v12  ;;  %v10574_v56 = vmul.f32 0.70710677, %v10558_v63 }
 0x45f   : > { %v10576_v39 = vpop.eup %7002  ;;  %v4956_v3 = vsel %vm4722_vm2, %v4605_v57, %v4839_v55  ;;  %v4480_v23 = vmul.f32 %v7001_v1, %v3895_v15  ;;  %v3686_v32 = vmul.f32 %v10514_v53, %v3569_v47  ;;  %v2525_v61 = vmul.f32 0.3275911, %v10569_v28 }
 0x460   : > { %v4847_v46 = vsub.f32 0.0, %v4613_v31  ;;  %v3428_v17 = vmul.f32 %v10489_v40, %v3311_v30  ;;  %v3319_v54 = vadd.f32 1.4214138, %v3202_v60  ;;  %v2985_v0 = vmul.f32 1.0614054, %v10576_v39  ;;  %v10592_v60 = vpop.f32.mrb[56].mxu1 }
 0x461   : > { %vm4706_vm4 = vcmp.ge.f32.partialorder %v10251_v8, 0.0  ;;  %v3803_v14 = vadd.f32 0.2548296, %v3686_v32  ;;  %7010 = vpow2.f32 %v4306_v34  ;;  %v2642_v12 = vadd.f32 1.0, %v2525_v61  ;;  %12720 = vst [vmem:[#allocation64_spill] sm:$0xff] %v10592_v60 }
 0x462   : > { %v10586_v41 = vand.u32 2147483647, %v10574_v56  ;;  %v4589_v29 = vsub.f32 1.0, %v4472_v37  ;;  %vm4714_vm5 = vcmp.ge.f32.partialorder %v10314_v62, 0.0  ;;  %v3561_v57 = vadd.f32 -0.28449672, %v3444_v45 }
 0x463   : > { %v4290_v55 = vmul.f32 1.442695, %v4130_v21  ;;  %v3436_v15 = vmul.f32 %v10547_v10, %v3319_v54  ;;  %v4597_v1 = vsub.f32 1.0, %v4480_v23  ;;  %v3920_v30 = vmul.f32 %v10514_v53, %v3803_v14  ;;  %v7005_v34 = vpop.eup %7004  ;;  %v6345_v45 = vpop.f32.mrb[57].mxu1  ;;  %v12721_v23 = vld [vmem:[#allocation81_spill] sm:$0xff] }
 0x464   : > { %7012 = vrcp.f32 %v2642_v12  ;;  %v2509_v47 = vmul.f32 0.3275911, %v10586_v41  ;;  %v10594_v32 = vadd.f32 1.0, %v4956_v3  ;;  %v4964_v37 = vsel %vm4730_vm3, %v4613_v31, %v4847_v46 }
 0x465   : > { %v3545_v61 = vadd.f32 -0.28449672, %v3428_v17  ;;  %v3553_v16 = vadd.f32 -0.28449672, %v3436_v15  ;;  %v4505_v21 = vmul.f32 %v7005_v34, %v3920_v30  ;;  %v3102_v4 = vadd.f32 -1.4531521, %v2985_v0 }
 0x466   : > { %v2626_v54 = vadd.f32 1.0, %v2509_v47  ;;  %v10600_v53 = vadd.f32 %v12721_v23, %v12713_v48  ;;  %v10602_v14 = vpop.eup %7006  ;;  %v4823_v12 = vsub.f32 0.0, %v4589_v29  ;;  %7014 = vpow2.f32 %v4290_v55 }
 0x467   : > { %vm4739_vm6 = vcmp.ge.f32.partialorder %v10430_v58, 0.0  ;;  %v3670_v3 = vmul.f32 %v10547_v10, %v3553_v16  ;;  %v10606_v49 = vpop.eup %7008  ;;  %v4831_v31 = vsub.f32 0.0, %v4597_v1  ;;  %v3678_v46 = vmul.f32 %v10477_v11, %v3561_v57  ;;  %v12722_v16 = vld [vmem:[#allocation50_spill] sm:$0xff] }
 0x468   : > { %v4622_v17 = vsub.f32 1.0, %v4505_v21  ;;  %7016 = vrcp.f32 %v2626_v54  ;;  %v5081_v0 = vadd.f32 1.0, %v4964_v37  ;;  %v3662_v15 = vmul.f32 %v10489_v40, %v3545_v61 }
 0x469   : > { %v2149_v30 = vmul.f32 0.5, %v10441_v22  ;;  %v3787_v47 = vadd.f32 0.2548296, %v3670_v3  ;;  %v3219_v55 = vmul.f32 %v10576_v39, %v3102_v4  ;;  %v10613_v45 = vmul.f32 0.70710677, %v10600_v53 }
 0x46a   : > { %v4856_v34 = vsub.f32 0.0, %v4622_v17  ;;  %v10617_v23 = vadd.f32 %v12722_v16, %v12685_v9  ;;  %v4940_v57 = vsel %vm4706_vm4, %v4589_v29, %v4823_v12  ;;  %vm4723_vm8 = vcmp.ge.f32.partialorder %v10458_v42, 0.0 }
 0x46b   : > { %v3904_v37 = vmul.f32 %v10547_v10, %v3787_v47  ;;  %v2969_v22 = vmul.f32 1.0614054, %v10606_v49  ;;  %v7011_v61 = vpop.eup %7010  ;;  %v4948_v4 = vsel %vm4714_vm5, %v4597_v1, %v4831_v31  ;;  %v3795_v21 = vadd.f32 0.2548296, %v3678_v46 }
 0x46c   : > { %v4973_v54 = vsel %vm4739_vm6, %v4622_v17, %v4856_v34  ;;  %v10629_v3 = vand.u32 2147483647, %v10613_v45  ;;  %v3779_v16 = vadd.f32 0.2548296, %v3662_v15  ;;  %v4038_v10 = vmul.f32 %v10501_v25, %v10501_v25 }
 0x46d   : > { %v5090_v8 = vadd.f32 1.0, %v4973_v54  ;;  %v4489_v29 = vmul.f32 %v7011_v61, %v3904_v37  ;;  %v10636_v47 = vmul.f32 %v5081_v0, %v10475_v43  ;;  %v3336_v62 = vadd.f32 1.4214138, %v3219_v55 }
 0x46e   : > { %v10633_v12 = vpop.eup %7012  ;;  %v2526_v1 = vmul.f32 0.3275911, %v10629_v3  ;;  %v10640_v58 = vmul.f32 0.70710677, %v10617_v23  ;;  %v5065_v31 = vadd.f32 1.0, %v4948_v4  ;;  %v3912_v34 = vmul.f32 %v10477_v11, %v3795_v21 }
 0x46f   : > { %12723 = vst [vmem:[#allocation51_spill] sm:$0xff] %v10636_v47  ;;  %v10643_v46 = vmul.f32 %v5090_v8, %v10550_v27  ;;  %v4606_v17 = vsub.f32 1.0, %v4489_v29  ;;  %v3086_v15 = vadd.f32 -1.4531521, %v2969_v22  ;;  %v2993_v25 = vmul.f32 1.0614054, %v10633_v12 }
 0x470   : > { %v2643_v37 = vadd.f32 1.0, %v2526_v1  ;;  %v10648_v43 = vand.u32 2147483647, %v10640_v58  ;;  %v7015_v0 = vpop.eup %7014  ;;  %v3896_v55 = vmul.f32 %v10489_v40, %v3779_v16  ;;  %v4155_v54 = vsub.f32 0.0, %v4038_v10  ;;  %v12725_v47 = vld [vmem:[#allocation53_spill] sm:$0xff] }
 0x471   : > { %12724 = vst [vmem:[#allocation63_spill] sm:$0xff] %v10643_v46  ;;  %v4840_v4 = vsub.f32 0.0, %v4606_v17  ;;  %v3453_v22 = vmul.f32 %v10576_v39, %v3336_v62  ;;  %v3110_v8 = vadd.f32 -1.4531521, %v2993_v25  ;;  %v3203_v29 = vmul.f32 %v10606_v49, %v3086_v15  ;;  %v12726_v62 = vld [vmem:[#allocation32_spill] sm:$0xff] }
 0x472   : > { %v10653_v27 = vpop.eup %7016  ;;  %7018 = vrcp.f32 %v2643_v37  ;;  %v2510_v11 = vmul.f32 0.3275911, %v10648_v43  ;;  %v4046_v40 = vmul.f32 %v10569_v28, %v10569_v28  ;;  %v10666_v25 = vadd.f32 %v12726_v62, %v12725_v47 }
 0x473   : > { %v4957_v21 = vsel %vm4723_vm8, %v4606_v17, %v4840_v4  ;;  %v2977_v16 = vmul.f32 1.0614054, %v10653_v27  ;;  %v3227_v10 = vmul.f32 %v10633_v12, %v3110_v8  ;;  %v5057_v37 = vadd.f32 1.0, %v4940_v57  ;;  %v12736_v57 = vld [vmem:[#allocation58_spill] sm:$0xff] }
 0x474   : > { %v5074_v1 = vadd.f32 1.0, %v4957_v21  ;;  %v2627_v61 = vadd.f32 1.0, %v2510_v11  ;;  %v10669_v46 = vmul.f32 %v5065_v31, %v10480_v33  ;;  %v4497_v42 = vmul.f32 %v10602_v14, %v3912_v34 }
 0x475   : > { %v3094_v17 = vadd.f32 -1.4531521, %v2977_v16  ;;  %v4481_v15 = vmul.f32 %v7015_v0, %v3896_v55  ;;  %v3570_v28 = vadd.f32 -0.28449672, %v3453_v22  ;;  %v3344_v9 = vadd.f32 1.4214138, %v3227_v10 }
 0x476   : > { %12727 = vst [vmem:[#allocation52_spill] sm:$0xff] %v10669_v46  ;;  %v10672_v4 = vmul.f32 %v5074_v1, %v2149_v30  ;;  %v4340_v21 = vmul.f32 1.442695, %v4155_v54  ;;  %v3320_v60 = vadd.f32 1.4214138, %v3203_v29  ;;  %v4163_v8 = vsub.f32 0.0, %v4046_v40 }
 0x477   : > { %v3211_v11 = vmul.f32 %v10653_v27, %v3094_v17  ;;  %vm4731_vm9 = vcmp.ge.f32.partialorder %v10358_v5, 0.0  ;;  %v3461_v33 = vmul.f32 %v10633_v12, %v3344_v9  ;;  %7020 = vrcp.f32 %v2627_v61  ;;  %v12730_v54 = vld [vmem:[#allocation70_spill] sm:$0xff] }
 0x478   : > { %12728 = vst [vmem:[#allocation17_spill] sm:$0xff] %v10672_v4  ;;  %v10680_v14 = vmul.f32 0.70710677, %v10666_v25  ;;  %v10684_v30 = vmul.f32 %v10594_v32, %v10451_v7  ;;  %v4614_v31 = vsub.f32 1.0, %v4497_v42  ;;  %v10687_v34 = vmul.f32 0.5, %v10368_v50 }
 0x479   : > { %v4022_v0 = vmul.f32 %v10531_v59, %v10531_v59  ;;  %v4598_v55 = vsub.f32 1.0, %v4481_v15  ;;  %vm4715_vm10 = vcmp.ge.f32.partialorder %v10384_v2, 0.0  ;;  %v3687_v9 = vmul.f32 %v10576_v39, %v3570_v28 }
 0x47a   : > { %12729 = vst [vmem:[#allocation8_spill] sm:$0xff] %v10684_v30  ;;  %v2417_v61 = vand.u32 2147483647, %v10680_v14  ;;  %v10696_v22 = vadd.f32 %v12730_v54, %v12698_v24  ;;  %7022 = vpow2.f32 %v4340_v21  ;;  %v3578_v7 = vadd.f32 -0.28449672, %v3461_v33 }
 0x47b   : > { %v4356_v32 = vmul.f32 1.442695, %v4163_v8  ;;  %v3328_v29 = vadd.f32 1.4214138, %v3211_v11  ;;  %v10701_v40 = vmul.f32 %v5057_v37, %v10463_v52  ;;  %v3437_v59 = vmul.f32 %v10606_v49, %v3320_v60 }
 0x47c   : > { %v10698_v50 = vpop.eup %7018  ;;  %v4030_v16 = vmul.f32 %v10586_v41, %v10586_v41  ;;  %v2534_v1 = vmul.f32 0.3275911, %v2417_v61  ;;  %v4848_v10 = vsub.f32 0.0, %v4614_v31  ;;  %v10707_v62 = vmul.f32 0.5, %v10467_v18 }
 0x47d   : > { %12731 = vst [vmem:[#allocation81_spill] sm:$0xff] %v10701_v40  ;;  %v4139_v42 = vsub.f32 0.0, %v4022_v0  ;;  %v2994_v17 = vmul.f32 1.0614054, %v10698_v50  ;;  %v3804_v15 = vadd.f32 0.2548296, %v3687_v9  ;;  %v3695_v37 = vmul.f32 %v10633_v12, %v3578_v7 }
 0x47e   : > { %v10711_v28 = vmul.f32 0.5, %v10498_v13  ;;  %v2651_v21 = vadd.f32 1.0, %v2534_v1  ;;  %v10714_v52 = vmul.f32 0.70710677, %v10696_v22  ;;  %v4832_v60 = vsub.f32 0.0, %v4598_v55 }
 0x47f   : > { %7024 = vpow2.f32 %v4356_v32  ;;  %v3445_v41 = vmul.f32 %v10653_v27, %v3328_v29  ;;  %v3554_v8 = vadd.f32 -0.28449672, %v3437_v59  ;;  %v4147_v18 = vsub.f32 0.0, %v4030_v16 }
 0x480   : > { %7026 = vrcp.f32 %v2651_v21  ;;  %v10720_v11 = vadd.f32 %v10107_v35, %v12725_v47  ;;  %v4965_v13 = vsel %vm4731_vm9, %v4614_v31, %v4848_v10  ;;  %v4308_v33 = vmul.f32 1.442695, %v4139_v42 }
 0x481   : > { %v3111_v0 = vadd.f32 -1.4531521, %v2994_v17  ;;  %v2401_v9 = vand.u32 2147483647, %v10714_v52  ;;  %v10725_v54 = vpop.eup %7020  ;;  %v3921_v7 = vmul.f32 %v10576_v39, %v3804_v15  ;;  %v10729_v32 = vmul.f32 0.5, %v10545_v51 }
 0x482   : > { %v10732_v29 = vmul.f32 0.5, %v10558_v63  ;;  %v4047_v35 = vmul.f32 %v10629_v3, %v10629_v3  ;;  %v4949_v5 = vsel %vm4715_vm10, %v4598_v55, %v4832_v60  ;;  %v3812_v31 = vadd.f32 0.2548296, %v3695_v37 }
 0x483   : > { %v3562_v59 = vadd.f32 -0.28449672, %v3445_v41  ;;  %v2518_v16 = vmul.f32 0.3275911, %v2401_v9  ;;  %v10738_v1 = vadd.f32 1.0, %v4965_v13  ;;  %v3671_v10 = vmul.f32 %v10606_v49, %v3554_v8 }
 0x484   : > { %v4324_v39 = vmul.f32 1.442695, %v4147_v18  ;;  %v10742_v51 = vmul.f32 0.70710677, %v10720_v11  ;;  %v7023_v42 = vpop.eup %7022  ;;  %7028 = vpow2.f32 %v4308_v33  ;;  %v3228_v63 = vmul.f32 %v10698_v50, %v3111_v0 }
 0x485   : > { %v2978_v3 = vmul.f32 1.0614054, %v10725_v54  ;;  %v2635_v17 = vadd.f32 1.0, %v2518_v16  ;;  %v10746_v2 = vadd.f32 1.0, %v4949_v5  ;;  %v4506_v55 = vmul.f32 %v7023_v42, %v3921_v7 }
 0x486   : > { %v4164_v15 = vsub.f32 0.0, %v4047_v35  ;;  %v10749_v21 = vand.u32 2147483647, %v10742_v51  ;;  %v3929_v60 = vmul.f32 %v10633_v12, %v3812_v31  ;;  %v3679_v37 = vmul.f32 %v10653_v27, %v3562_v59 }
 0x487   : > { %v4055_v41 = vmul.f32 %v2417_v61, %v2417_v61  ;;  %7030 = vrcp.f32 %v2635_v17  ;;  %v3788_v8 = vadd.f32 0.2548296, %v3671_v10  ;;  %v10754_v18 = vmul.f32 0.5, %v10600_v53 }
 0x488   : > { %7032 = vpow2.f32 %v4324_v39  ;;  %v2535_v13 = vmul.f32 0.3275911, %v10749_v21  ;;  %vm4740_vm11 = vcmp.ge.f32.partialorder %v10487_v19, 0.0  ;;  %v3345_v0 = vadd.f32 1.4214138, %v3228_v63 }
 0x489   : > { %v7025_v33 = vpop.eup %7024  ;;  %v10759_v7 = vmul.f32 0.5, %v10617_v23  ;;  %v3095_v35 = vadd.f32 -1.4531521, %v2978_v3  ;;  %v10763_v12 = vadd.f32 %v10129_v36, %v12698_v24  ;;  %v4623_v5 = vsub.f32 1.0, %v4506_v55  ;;  %v12732_v55 = vld [vmem:[#allocation49_spill] sm:$0xff] }
 0x48a   : > { %v10765_v61 = vpop.eup %7026  ;;  %v4358_v31 = vmul.f32 1.442695, %v4164_v15  ;;  %v10768_v53 = vmul.f32 0.5, %v10666_v25  ;;  %v2652_v59 = vadd.f32 1.0, %v2535_v13  ;;  %v4514_v16 = vmul.f32 %v7025_v33, %v3929_v60  ;;  %v12733_v15 = vld [vmem:[#allocation76_spill] sm:$0xff] }
 0x48b   : > { %v3796_v10 = vadd.f32 0.2548296, %v3679_v37  ;;  %v4031_v39 = vmul.f32 %v10648_v43, %v10648_v43  ;;  %v4172_v23 = vsub.f32 0.0, %v4055_v41  ;;  %v3905_v42 = vmul.f32 %v10606_v49, %v3788_v8  ;;  %v12734_v49 = vld [vmem:[#allocation57_spill] sm:$0xff] }
 0x48c   : > { %v3002_v63 = vmul.f32 1.0614054, %v10765_v61  ;;  %v4039_v36 = vmul.f32 %v2401_v9, %v2401_v9  ;;  %7034 = vrcp.f32 %v2652_v59  ;;  %v3462_v3 = vmul.f32 %v10698_v50, %v3345_v0  ;;  %v12735_v41 = vld [vmem:[#allocation85_spill] sm:$0xff] }
 0x48d   : > { %v3212_v17 = vmul.f32 %v10725_v54, %v3095_v35  ;;  %v10777_v25 = vmul.f32 0.70710677, %v10763_v12  ;;  %v6494_v60 = vpack.c.bf16 %v12733_v15, %v12732_v55  ;;  %v4857_v37 = vsub.f32 0.0, %v4623_v5 }
 0x48e   : > { %vm4748_vm12 = vcmp.ge.f32.partialorder %v10564_v44, 0.0  ;;  %7036 = vpow2.f32 %v4358_v31  ;;  %v3119_v43 = vadd.f32 -1.4531521, %v3002_v63  ;;  %v10784_v8 = vadd.f32 %v12735_v41, %v12734_v49  ;;  %v7029_v9 = vpop.eup %7028  ;;  %v12737_v31 = vld [vmem:[#allocation39_spill] sm:$0xff]  ;;  %v10832_v44 = vpop.f32.mrb[63].mxu0 }
 0x48f   : > { %v4631_v13 = vsub.f32 1.0, %v4514_v16  ;;  %v3913_v33 = vmul.f32 %v10653_v27, %v3796_v10  ;;  %v4374_v0 = vmul.f32 1.442695, %v4172_v23  ;;  %v10788_v35 = vand.u32 2147483647, %v10777_v25  ;;  %6495 = vmatprep.subr.bf16.mxu0 %v6494_v60  ;;  %12741 = vst [vmem:[#allocation50_spill] sm:$0xff] %v10832_v44 }
 0x490   : > { %v4148_v59 = vsub.f32 0.0, %v4031_v39  ;;  %v3236_v55 = vmul.f32 %v10765_v61, %v3119_v43  ;;  %v4156_v15 = vsub.f32 0.0, %v4039_v36  ;;  %v12738_v63 = vpack.c.bf16 %v12736_v57, %v12737_v31 }
 0x491   : > { %v10795_v41 = vmul.f32 0.70710677, %v10784_v8  ;;  %v10797_v46 = vpop.eup %7030  ;;  %v10799_v16 = vmul.f32 %v7029_v9, %v3905_v42  ;;  %v3579_v27 = vadd.f32 -0.28449672, %v3462_v3  ;;  %v3329_v10 = vadd.f32 1.4214138, %v3212_v17 }
 0x492   : > { %6497 = vmatpush1.bf16.msra.mxu0 %v12738_v63  ;;  %v2519_v23 = vmul.f32 0.3275911, %v10788_v35  ;;  %v7033_v60 = vpop.eup %7032  ;;  %v4974_v39 = vsel %vm4740_vm11, %v4623_v5, %v4857_v37  ;;  %v3353_v36 = vadd.f32 1.4214138, %v3236_v55  ;;  %v2986_v43 = vmul.f32 1.0614054, %v10797_v46 }
 0x493   : > { %v10806_v57 = vand.u32 2147483647, %v10795_v41  ;;  %v4865_v31 = vsub.f32 0.0, %v4631_v13  ;;  %v10808_v63 = vmul.f32 %v7033_v60, %v3913_v33  ;;  %7038 = vpow2.f32 %v4374_v0 }
 0x494   : > { %v2636_v42 = vadd.f32 1.0, %v2519_v23  ;;  %v4326_v9 = vmul.f32 1.442695, %v4148_v59  ;;  %v3470_v3 = vmul.f32 %v10765_v61, %v3353_v36  ;;  %v3103_v17 = vadd.f32 -1.4531521, %v2986_v43  ;;  %v12739_v43 = vld [vmem:[#allocation86_spill] sm:$0xff] }
 0x495   : > { %v2543_v4 = vmul.f32 0.3275911, %v10806_v57  ;;  %v3696_v5 = vmul.f32 %v10698_v50, %v3579_v27  ;;  %v4342_v37 = vmul.f32 1.442695, %v4156_v15  ;;  %v3446_v40 = vmul.f32 %v10725_v54, %v3329_v10 }
 0x496   : > { %7040 = vrcp.f32 %v2636_v42  ;;  %v10814_v55 = vpop.eup %7034  ;;  %v3587_v33 = vadd.f32 -0.28449672, %v3470_v3  ;;  %v3220_v0 = vmul.f32 %v10797_v46, %v3103_v17  ;;  %v4982_v59 = vsel %vm4748_vm12, %v4631_v13, %v4865_v31 }
 0x497   : > { %v2660_v23 = vadd.f32 1.0, %v2543_v4  ;;  %v4615_v60 = vsub.f32 1.0, %v10808_v63  ;;  %v3003_v36 = vmul.f32 1.0614054, %v10814_v55  ;;  %v10824_v27 = vadd.f32 %v12739_v43, %v12713_v48  ;;  %v12740_v4 = vld [vmem:[#allocation77_spill] sm:$0xff] }
 0x498   : > { %v7037_v15 = vpop.eup %7036  ;;  %vm4732_vm13 = vcmp.ge.f32.partialorder %v10574_v56, 0.0  ;;  %v3704_v10 = vmul.f32 %v10765_v61, %v3587_v33  ;;  %v3337_v42 = vadd.f32 1.4214138, %v3220_v0  ;;  %v10830_v3 = vadd.f32 %v12740_v4, %v12734_v49 }
 0x499   : > { %7042 = vrcp.f32 %v2660_v23  ;;  %v3813_v13 = vadd.f32 0.2548296, %v3696_v5  ;;  %v3120_v31 = vadd.f32 -1.4531521, %v3003_v36  ;;  %v4056_v63 = vmul.f32 %v10749_v21, %v10749_v21 }
 0x49a   : > { %7044 = vpow2.f32 %v4342_v37  ;;  %v10836_v17 = vadd.f32 1.0, %v4974_v39  ;;  %v3563_v43 = vadd.f32 -0.28449672, %v3446_v40  ;;  %v3821_v19 = vadd.f32 0.2548296, %v3704_v10 }
 0x49b   : > { %v3454_v33 = vmul.f32 %v10797_v46, %v3337_v42  ;;  %v12742_v0 = vsub.f32 1.0, %v10799_v16  ;;  %vm4757_vm14 = vcmp.ge.f32.partialorder %v10680_v14, 0.0  ;;  %v10845_v4 = vmul.f32 0.5, %v10696_v22 }
 0x49c   : > { %v3237_v5 = vmul.f32 %v10814_v55, %v3120_v31  ;;  %v10849_v37 = vmul.f32 0.70710677, %v10824_v27  ;;  %v5099_v21 = vadd.f32 1.0, %v4982_v59  ;;  %v3938_v40 = vmul.f32 %v10765_v61, %v3821_v19 }
 0x49d   : > { %v10841_v23 = vsub.f32 0.0, %v12742_v0  ;;  %v3571_v39 = vadd.f32 -0.28449672, %v3454_v33  ;;  %v10853_v36 = vmul.f32 0.70710677, %v10830_v3  ;;  %v7039_v10 = vpop.eup %7038  ;;  %v4849_v42 = vsub.f32 0.0, %v4615_v60 }
 0x49e   : > { %12743 = vst [vmem:[#allocation32_spill] sm:$0xff] %v10849_v37  ;;  %v3930_v0 = vmul.f32 %v10698_v50, %v3813_v13  ;;  %v4173_v24 = vsub.f32 0.0, %v4056_v63  ;;  %v10857_v22 = vand.u32 2147483647, %v10849_v37  ;;  %v3680_v31 = vmul.f32 %v10725_v54, %v3563_v43  ;;  %v10871_v63 = vpop.f32.mrb[64].mxu0  ;;  %v10873_v33 = vpop.f32.mrb[58].mxu1 }
 0x49f   : > { %12744 = vst [vmem:[#allocation70_spill] sm:$0xff] %v10853_v36  ;;  %v4523_v30 = vmul.f32 %v7039_v10, %v3938_v40  ;;  %v3688_v44 = vmul.f32 %v10797_v46, %v3571_v39  ;;  %v10862_v59 = vand.u32 2147483647, %v10853_v36  ;;  %v10868_v19 = vmul.f32 %v10738_v1, %v10511_v20  ;;  %12746 = vst [vmem:[#allocation76_spill] sm:$0xff] %v10871_v63  ;;  %v10879_v36 = vpop.f32.mrb[65].mxu0 }
 0x4a0   : > { %v10864_v61 = vpop.eup %7040  ;;  %7046 = vpow2.f32 %v4326_v9  ;;  %v3354_v50 = vadd.f32 1.4214138, %v3237_v5  ;;  %v2527_v13 = vmul.f32 0.3275911, %v10857_v22  ;;  %12747 = vst [vmem:[#allocation85_spill] sm:$0xff] %v10873_v33  ;;  %v10876_v43 = vmul.f32 %v5099_v21, %v10729_v32  ;;  %12749 = vst [vmem:[#allocation39_spill] sm:$0xff] %v10879_v36 }
 0x4a1   : > { %12745 = vst [vmem:[#allocation49_spill] sm:$0xff] %v10868_v19  ;;  %v4640_v40 = vsub.f32 1.0, %v4523_v30  ;;  %v3805_v39 = vadd.f32 0.2548296, %v3688_v44  ;;  %v2987_v10 = vmul.f32 1.0614054, %v10864_v61  ;;  %v4966_v20 = vsel %vm4732_vm13, %v4615_v60, %v4849_v42 }
 0x4a2   : > { %12748 = vst [vmem:[#allocation58_spill] sm:$0xff] %v10876_v43  ;;  %vm4724_vm15 = vcmp.ge.f32.partialorder %v10519_v26, 0.0  ;;  %v10884_v1 = vmul.f32 %v7037_v15, %v3930_v0  ;;  %vm4741_vm0 = vcmp.ge.f32.partialorder %v10714_v52, 0.0  ;;  %v2644_v9 = vadd.f32 1.0, %v2527_v13  ;;  %v6348_v36 = vpop.f32.mrb[59].mxu1  ;;  %v12750_v60 = vld [vmem:[#allocation87_spill] sm:$0xff] }
 0x4a3   : > { %v2544_v5 = vmul.f32 0.3275911, %v10862_v59  ;;  %v10888_v32 = vpop.eup %7042  ;;  %v3797_v30 = vadd.f32 0.2548296, %v3680_v31  ;;  %v4874_v44 = vsub.f32 0.0, %v4640_v40  ;;  %v3922_v21 = vmul.f32 %v10797_v46, %v3805_v39 }
 0x4a4   : > { %v3104_v19 = vadd.f32 -1.4531521, %v2987_v10  ;;  %v7045_v33 = vpop.eup %7044  ;;  %v3471_v63 = vmul.f32 %v10814_v55, %v3354_v50  ;;  %v3011_v56 = vmul.f32 1.0614054, %v10888_v32  ;;  %7048 = vrcp.f32 %v2644_v9 }
 0x4a5   : > { %v10895_v15 = vadd.f32 %v12750_v60, %v12713_v48  ;;  %v4991_v42 = vsel %vm4757_vm14, %v4640_v40, %v4874_v44  ;;  %v4507_v0 = vmul.f32 %v7045_v33, %v3922_v21  ;;  %v2661_v13 = vadd.f32 1.0, %v2544_v5  ;;  %v10911_v40 = vpop.f32.mrb[60].mxu1  ;;  %v12753_v21 = vld [vmem:[#allocation61_spill] sm:$0xff] }
 0x4a6   : > { %v3221_v31 = vmul.f32 %v10864_v61, %v3104_v19  ;;  %v5083_v46 = vadd.f32 1.0, %v4966_v20  ;;  %v5108_v39 = vadd.f32 1.0, %v4991_v42  ;;  %v4376_v36 = vmul.f32 1.442695, %v4173_v24 }
 0x4a7   : > { %v3128_v10 = vadd.f32 -1.4531521, %v3011_v56  ;;  %v4632_v50 = vsub.f32 1.0, %v10884_v1  ;;  %v3914_v37 = vmul.f32 %v10725_v54, %v3797_v30  ;;  %v4624_v9 = vsub.f32 1.0, %v4507_v0  ;;  %v6351_v1 = vpop.f32.mrb[61].mxu1  ;;  %v12754_v56 = vld [vmem:[#allocation21_spill] sm:$0xff] }
 0x4a8   : > { %7050 = vrcp.f32 %v2661_v13  ;;  %v10903_v60 = vmul.f32 %v5108_v39, %v10768_v53  ;;  %v4064_v33 = vmul.f32 %v10806_v57, %v10806_v57  ;;  %v10909_v19 = vmul.f32 0.70710677, %v10895_v15  ;;  %v10938_v1 = vpop.f32.mrb[62].mxu1 }
 0x4a9   : > { %v3245_v14 = vmul.f32 %v10888_v32, %v3128_v10  ;;  %v10915_v24 = vmul.f32 %v10746_v2, %v10687_v34  ;;  %vm4749_vm1 = vcmp.ge.f32.partialorder %v10613_v45, 0.0  ;;  %v4858_v54 = vsub.f32 0.0, %v4624_v9  ;;  %v6354_v52 = vpop.f32.mrb[63].mxu1 }
 0x4aa   : > { %12751 = vst [vmem:[#allocation86_spill] sm:$0xff] %v10903_v60  ;;  %v3588_v20 = vadd.f32 -0.28449672, %v3471_v63  ;;  %v3338_v53 = vadd.f32 1.4214138, %v3221_v31  ;;  %v7047_v5 = vpop.eup %7046  ;;  %v10925_v42 = vadd.f32 %v12754_v56, %v12753_v21  ;;  %v12755_v34 = vsub.f32 1.0, %v10799_v16 }
 0x4ab   : > { %12752 = vst [vmem:[#allocation77_spill] sm:$0xff] %v10915_v24  ;;  %v3362_v57 = vadd.f32 1.4214138, %v3245_v14  ;;  %v10921_v44 = vand.u32 2147483647, %v10909_v19  ;;  %v4499_v63 = vmul.f32 %v7047_v5, %v3914_v37  ;;  %v4975_v0 = vsel %vm4741_vm0, %v4624_v9, %v4858_v54 }
 0x4ac   : > { %v4958_v2 = vsel %vm4724_vm15, %v12755_v34, %v10841_v23  ;;  %v4040_v31 = vmul.f32 %v10788_v35, %v10788_v35  ;;  %v5092_v13 = vadd.f32 1.0, %v4975_v0  ;;  %v4181_v10 = vsub.f32 0.0, %v4064_v33 }
 0x4ad   : > { %v3479_v39 = vmul.f32 %v10888_v32, %v3362_v57  ;;  %v2528_v14 = vmul.f32 0.3275911, %v10921_v44  ;;  %v10941_v16 = vmul.f32 %v5083_v46, %v10732_v29  ;;  %v4866_v26 = vsub.f32 0.0, %v4632_v50 }
 0x4ae   : > { %v3705_v23 = vmul.f32 %v10814_v55, %v3588_v20  ;;  %7052 = vpow2.f32 %v4376_v36  ;;  %v10944_v37 = vpop.eup %7048  ;;  %vm4733_vm2 = vcmp.ge.f32.partialorder %v10640_v58, 0.0  ;;  %v10948_v35 = vmul.f32 %v5092_v13, %v10845_v4 }
 0x4af   : > { %12756 = vst [vmem:[#allocation87_spill] sm:$0xff] %v10941_v16  ;;  %v3455_v9 = vmul.f32 %v10864_v61, %v3338_v53  ;;  %v2645_v33 = vadd.f32 1.0, %v2528_v14  ;;  %v10952_v54 = vmul.f32 0.70710677, %v10925_v42  ;;  %v4616_v29 = vsub.f32 1.0, %v4499_v63 }
 0x4b0   : > { %12757 = vst [vmem:[#allocation21_spill] sm:$0xff] %v10948_v35  ;;  %v4157_v46 = vsub.f32 0.0, %v4040_v31  ;;  %v3596_v5 = vadd.f32 -0.28449672, %v3479_v39  ;;  %v2995_v20 = vmul.f32 1.0614054, %v10944_v37  ;;  %v10957_v36 = vmul.f32 %v10836_v17, %v10707_v62 }
 0x4b1   : > { %v4392_v4 = vmul.f32 1.442695, %v4181_v10  ;;  %7054 = vrcp.f32 %v2645_v33  ;;  %v5075_v53 = vadd.f32 1.0, %v4958_v2  ;;  %v3822_v34 = vadd.f32 0.2548296, %v3705_v23  ;;  %v10975_v23 = vpop.f32.mrb[64].mxu1 }
 0x4b2   : > { %v10961_v56 = vpop.eup %7050  ;;  %v3112_v0 = vadd.f32 -1.4531521, %v2995_v20  ;;  %v10965_v63 = vadd.f32 %v10329_v6, %v12725_v47  ;;  %v4983_v31 = vsel %vm4749_vm1, %v4632_v50, %v4866_v26  ;;  %v10970_v62 = vmul.f32 0.5, %v10720_v11  ;;  %v6357_v11 = vpop.f32.mrb[65].mxu1 }
 0x4b3   : > { %v3572_v17 = vadd.f32 -0.28449672, %v3455_v9  ;;  %v2435_v13 = vand.u32 2147483647, %v10952_v54  ;;  %v4850_v39 = vsub.f32 0.0, %v4616_v29  ;;  %v3713_v14 = vmul.f32 %v10888_v32, %v3596_v5 }
 0x4b4   : > { %v4344_v10 = vmul.f32 1.442695, %v4157_v46  ;;  %v3229_v2 = vmul.f32 %v10944_v37, %v3112_v0  ;;  %7056 = vpow2.f32 %v4392_v4  ;;  %v4048_v6 = vmul.f32 %v10857_v22, %v10857_v22  ;;  %v10991_v4 = vpop.f32.mrb[66].mxu1 }
 0x4b5   : > { %v3012_v45 = vmul.f32 1.0614054, %v10961_v56  ;;  %v2552_v50 = vmul.f32 0.3275911, %v2435_v13  ;;  %v10981_v26 = vmul.f32 %v5075_v53, %v10711_v28  ;;  %v5100_v52 = vadd.f32 1.0, %v4983_v31 }
 0x4b6   : > { %v3939_v9 = vmul.f32 %v10814_v55, %v3822_v34  ;;  %v10985_v33 = vmul.f32 0.70710677, %v10965_v63  ;;  %v10988_v46 = vmul.f32 0.5, %v10763_v12  ;;  %v3689_v5 = vmul.f32 %v10864_v61, %v3572_v17  ;;  %v6360_v34 = vpop.f32.mrb[67].mxu1 }
 0x4b7   : > { %12758 = vst [vmem:[#allocation91_spill] sm:$0xff] %v10981_v26  ;;  %v3346_v20 = vadd.f32 1.4214138, %v3229_v2  ;;  %v2669_v22 = vadd.f32 1.0, %v2552_v50  ;;  %v4967_v28 = vsel %vm4733_vm2, %v4616_v29, %v4850_v39  ;;  %7058 = vpow2.f32 %v4344_v10 }
 0x4b8   : > { %v7053_v0 = vpop.eup %7052  ;;  %v3830_v53 = vadd.f32 0.2548296, %v3713_v14  ;;  %v2419_v55 = vand.u32 2147483647, %v10985_v33  ;;  %v4165_v31 = vsub.f32 0.0, %v4048_v6  ;;  %v4065_v12 = vmul.f32 %v10862_v59, %v10862_v59  ;;  %v11013_v59 = vpop.f32.mrb[68].mxu1 }
 0x4b9   : > { %v3129_v11 = vadd.f32 -1.4531521, %v3012_v45  ;;  %7060 = vrcp.f32 %v2669_v22  ;;  %v10999_v17 = vmul.f32 %v5100_v52, %v10754_v18  ;;  %v11001_v2 = vmul.f32 %v7053_v0, %v3939_v9  ;;  %v6363_v9 = vpop.f32.mrb[69].mxu1 }
 0x4ba   : > { %v11004_v50 = vmul.f32 0.5, %v10784_v8  ;;  %v2536_v58 = vmul.f32 0.3275911, %v2419_v55  ;;  %v5084_v39 = vadd.f32 1.0, %v4967_v28  ;;  %v3806_v10 = vadd.f32 0.2548296, %v3689_v5 }
 0x4bb   : > { %12759 = vst [vmem:[#allocation92_spill] sm:$0xff] %v10999_v17  ;;  %v11006_v29 = vpop.eup %7054  ;;  %v3463_v14 = vmul.f32 %v10944_v37, %v3346_v20  ;;  %v11011_v6 = vadd.f32 %v10363_v38, %v12753_v21  ;;  %v3947_v18 = vmul.f32 %v10888_v32, %v3830_v53  ;;  %v11017_v45 = vmul.f32 0.5, %v10824_v27 }
 0x4bc   : > { %v2996_v8 = vmul.f32 1.0614054, %v11006_v29  ;;  %v2653_v52 = vadd.f32 1.0, %v2536_v58  ;;  %vm4758_vm3 = vcmp.ge.f32.partialorder %v10742_v51, 0.0  ;;  %v4360_v5 = vmul.f32 1.442695, %v4165_v31 }
 0x4bd   : > { %v11022_v20 = vmul.f32 0.5, %v10830_v3  ;;  %v3246_v38 = vmul.f32 %v10961_v56, %v3129_v11  ;;  %v4182_v22 = vsub.f32 0.0, %v4065_v12  ;;  %v4641_v0 = vsub.f32 1.0, %v11001_v2  ;;  %v12760_v31 = vld [vmem:[#allocation55_spill] sm:$0xff]  ;;  %v11034_v3 = vpop.f32.mrb[70].mxu1  ;;  %v12762_v2 = vld [vmem:[#allocation66_spill] sm:$0xff] }
 0x4be   : > { %v3113_v28 = vadd.f32 -1.4531521, %v2996_v8  ;;  %v4073_v32 = vmul.f32 %v2435_v13, %v2435_v13  ;;  %7062 = vrcp.f32 %v2653_v52  ;;  %v7057_v27 = vpop.eup %7056  ;;  %v3923_v53 = vmul.f32 %v10864_v61, %v3806_v10  ;;  %v12763_v8 = vld [vmem:[#allocation38_spill] sm:$0xff]  ;;  %v6366_v10 = vpop.f32.mrb[71].mxu1 }
 0x4bf   : > { %v3580_v34 = vadd.f32 -0.28449672, %v3463_v14  ;;  %v11028_v58 = vmul.f32 0.70710677, %v11011_v6  ;;  %v11032_v9 = vadd.f32 %v12760_v31, %v12725_v47  ;;  %v11037_v11 = vmul.f32 %v5084_v39, %v10759_v7 }
 0x4c0   : > { %v4532_v12 = vmul.f32 %v7057_v27, %v3947_v18  ;;  %v11040_v13 = vmul.f32 0.5, %v10895_v15  ;;  %v6498_v61 = vpack.c.bf16 %v12763_v8, %v12762_v2  ;;  %v3363_v14 = vadd.f32 1.4214138, %v3246_v38  ;;  %v12765_v2 = vld [vmem:[#allocation48_spill] sm:$0xff] }
 0x4c1   : > { %12761 = vst [vmem:[#allocation55_spill] sm:$0xff] %v11037_v11  ;;  %v4394_v52 = vmul.f32 1.442695, %v4182_v22  ;;  %v4049_v57 = vmul.f32 %v10921_v44, %v10921_v44  ;;  %v11047_v31 = vand.u32 2147483647, %v11028_v58  ;;  %v7059_v30 = vpop.eup %7058  ;;  %v4875_v16 = vsub.f32 0.0, %v4641_v0 }
 0x4c2   : > { %v3230_v7 = vmul.f32 %v11006_v29, %v3113_v28  ;;  %v4190_v39 = vsub.f32 0.0, %v4073_v32  ;;  %v11051_v15 = vmul.f32 0.70710677, %v11032_v9  ;;  %6499 = vmatprep.subr.bf16.mxu0 %v6498_v61  ;;  %v11055_v27 = vmul.f32 %v7059_v30, %v3923_v53  ;;  %v12764_v22 = vld [vmem:[#allocation71_spill] sm:$0xff]  ;;  %v11063_v28 = vpop.f32.mrb[72].mxu1 }
 0x4c3   : > { %v11053_v18 = vpop.eup %7060  ;;  %vm4766_vm4 = vcmp.ge.f32.partialorder %v10795_v41, 0.0  ;;  %v3697_v44 = vmul.f32 %v10944_v37, %v3580_v34  ;;  %7064 = vpow2.f32 %v4360_v5  ;;  %v2553_v38 = vmul.f32 0.3275911, %v11047_v31  ;;  %v6369_v53 = vpop.f32.mrb[73].mxu1 }
 0x4c4   : > { %v12766_v8 = vpack.c.bf16 %v12764_v22, %v12765_v2  ;;  %v4649_v32 = vsub.f32 1.0, %v4532_v12  ;;  %v3020_v61 = vmul.f32 1.0614054, %v11053_v18  ;;  %v4057_v10 = vmul.f32 %v2419_v55, %v2419_v55  ;;  %v11074_v11 = vpop.f32.mrb[74].mxu1 }
 0x4c5   : > { %v11067_v30 = vand.u32 2147483647, %v11051_v15  ;;  %v3480_v35 = vmul.f32 %v10961_v56, %v3363_v14  ;;  %7066 = vpow2.f32 %v4394_v52  ;;  %v4166_v5 = vsub.f32 0.0, %v4049_v57  ;;  %12767 = vst [vmem:[#allocation66_spill] sm:$0xff] %v11074_v11 }
 0x4c6   : > { %6501 = vmatpush1.bf16.msra.mxu0 %v12766_v8  ;;  %v2670_v34 = vadd.f32 1.0, %v2553_v38  ;;  %v4992_v43 = vsel %vm4758_vm3, %v4641_v0, %v4875_v16  ;;  %v3347_v22 = vadd.f32 1.4214138, %v3230_v7  ;;  %v3137_v2 = vadd.f32 -1.4531521, %v3020_v61  ;;  %v6372_v0 = vpop.f32.mrb[75].mxu1 }
 0x4c7   : > { %v4410_v8 = vmul.f32 1.442695, %v4190_v39  ;;  %v4625_v12 = vsub.f32 1.0, %v11055_v27  ;;  %v3814_v60 = vadd.f32 0.2548296, %v3697_v44  ;;  %vm4742_vm5 = vcmp.ge.f32.partialorder %v10777_v25, 0.0 }
 0x4c8   : > { %7068 = vrcp.f32 %v2670_v34  ;;  %v2537_v55 = vmul.f32 0.3275911, %v11067_v30  ;;  %v11076_v53 = vpop.eup %7062  ;;  %v4883_v57 = vsub.f32 0.0, %v4649_v32  ;;  %v11080_v14 = vmul.f32 0.5, %v10925_v42  ;;  %v12768_v27 = vld [vmem:[#allocation69_spill] sm:$0xff]  ;;  %v12769_v44 = vld [vmem:[#allocation79_spill] sm:$0xff] }
 0x4c9   : > { %v3254_v51 = vmul.f32 %v11053_v18, %v3137_v2  ;;  %v4174_v16 = vsub.f32 0.0, %v4057_v10  ;;  %v5109_v52 = vadd.f32 1.0, %v4992_v43  ;;  %v3597_v7 = vadd.f32 -0.28449672, %v3480_v35  ;;  %v11090_v10 = vpop.f32.mrb[76].mxu1 }
 0x4ca   : > { %v3004_v39 = vmul.f32 1.0614054, %v11076_v53  ;;  %v11086_v38 = vadd.f32 %v12769_v44, %v12768_v27  ;;  %v3464_v61 = vmul.f32 %v11006_v29, %v3347_v22  ;;  %v4362_v34 = vmul.f32 1.442695, %v4166_v5  ;;  %12770 = vst [vmem:[#allocation38_spill] sm:$0xff] %v11090_v10  ;;  %v6375_v44 = vpop.f32.mrb[77].mxu1 }
 0x4cb   : > { %v3371_v17 = vadd.f32 1.4214138, %v3254_v51  ;;  %v2654_v11 = vadd.f32 1.0, %v2537_v55  ;;  %v4859_v47 = vsub.f32 0.0, %v4625_v12  ;;  %v3931_v42 = vmul.f32 %v10944_v37, %v3814_v60  ;;  %v12771_v60 = vld [vmem:[#allocation88_spill] sm:$0xff] }
 0x4cc   : > { %7070 = vpow2.f32 %v4410_v8  ;;  %v3121_v2 = vadd.f32 -1.4531521, %v3004_v39  ;;  %v5000_v43 = vsel %vm4766_vm4, %v4649_v32, %v4883_v57  ;;  %v4378_v0 = vmul.f32 1.442695, %v4174_v16  ;;  %v12773_v16 = vld [vmem:[#allocation37_spill] sm:$0xff] }
 0x4cd   : > { %v3488_v35 = vmul.f32 %v11053_v18, %v3371_v17  ;;  %7072 = vrcp.f32 %v2654_v11  ;;  %v7065_v26 = vpop.eup %7064  ;;  %v3714_v5 = vmul.f32 %v10961_v56, %v3597_v7  ;;  %v11098_v55 = vmul.f32 0.70710677, %v11086_v38 }
 0x4ce   : > { %v3238_v22 = vmul.f32 %v11076_v53, %v3121_v2  ;;  %v11102_v37 = vadd.f32 %v12771_v60, %v12734_v49  ;;  %v11105_v41 = vmul.f32 %v5109_v52, %v10970_v62  ;;  %v3581_v32 = vadd.f32 -0.28449672, %v3464_v61  ;;  %v12774_v52 = vld [vmem:[#allocation34_spill] sm:$0xff] }
 0x4cf   : > { %v3605_v17 = vadd.f32 -0.28449672, %v3488_v35  ;;  %vm5328_vm6 = vcmask 1041408   ;;  %v7067_v11 = vpop.eup %7066  ;;  %v11107_v8 = vmul.f32 %v7065_v26, %v3931_v42  ;;  %7074 = vpow2.f32 %v4362_v34  ;;  %v11120_v26 = vpop.f32.mrb[78].mxu1 }
 0x4d0   : > { %12772 = vst [vmem:[#allocation71_spill] sm:$0xff] %v11105_v41  ;;  %v3355_v57 = vadd.f32 1.4214138, %v3238_v22  ;;  %v11110_v51 = vand.u32 2147483647, %v11098_v55  ;;  %6244 = vmatprep.subr.msk.mxu0 %vm5328_vm6, %v12773_v16  ;;  %v5117_v7 = vadd.f32 1.0, %v5000_v43  ;;  %7076 = vpow2.f32 %v4378_v0 }
 0x4d1   : > { %v3722_v39 = vmul.f32 %v11053_v18, %v3605_v17  ;;  %v11116_v62 = vmul.f32 0.70710677, %v11102_v37  ;;  %6245 = vmatpush1.msk.msra.mxu0 %vm5328_vm6, %v12774_v52  ;;  %12775 = vst [vmem:[#allocation48_spill] sm:$0xff] %v11120_v26  ;;  %v4976_v34 = vsel %vm4742_vm5, %v4625_v12, %v4859_v47  ;;  %v3831_v42 = vadd.f32 0.2548296, %v3714_v5  ;;  %v6378_v35 = vpop.f32.mrb[79].mxu1 }
 0x4d2   : > { %v11122_v61 = vpop.eup %7068  ;;  %v3472_v2 = vmul.f32 %v11076_v53, %v3355_v57  ;;  %v2561_v43 = vmul.f32 0.3275911, %v11110_v51  ;;  %v3698_v0 = vmul.f32 %v11006_v29, %v3581_v32  ;;  %v11130_v22 = vmul.f32 0.5, %v10965_v63  ;;  %v12776_v16 = vld [vmem:[#allocation32_spill] sm:$0xff] }
 0x4d3   : > { %v3839_v44 = vadd.f32 0.2548296, %v3722_v39  ;;  %v3021_v60 = vmul.f32 1.0614054, %v11122_v61  ;;  %v4633_v17 = vsub.f32 1.0, %v11107_v8  ;;  %vm4750_vm8 = vcmp.ge.f32.partialorder %v12776_v16, 0.0 }
 0x4d4   : > { %vm4775_vm9 = vcmp.ge.f32.partialorder %v10952_v54, 0.0  ;;  %v3589_v47 = vadd.f32 -0.28449672, %v3472_v2  ;;  %v2678_v25 = vadd.f32 1.0, %v2561_v43  ;;  %v11137_v12 = vand.u32 2147483647, %v11116_v62 }
 0x4d5   : > { %v11139_v5 = vadd.f32 1.0, %v4976_v34  ;;  %v11142_v32 = vmul.f32 %v5117_v7, %v11004_v50  ;;  %v3956_v63 = vmul.f32 %v11053_v18, %v3839_v44  ;;  %v3138_v57 = vadd.f32 -1.4531521, %v3021_v60  ;;  %v12778_v2 = vld [vmem:[#allocation18_spill] sm:$0xff]  ;;  %v11155_v18 = vpop.f32.mrb[80].mxu1 }
 0x4d6   : > { %v7071_v39 = vpop.eup %7070  ;;  %v3948_v8 = vmul.f32 %v10961_v56, %v3831_v42  ;;  %v3706_v52 = vmul.f32 %v11076_v53, %v3589_v47  ;;  %7078 = vrcp.f32 %v2678_v25  ;;  %v11149_v43 = vadd.f32 %v12778_v2, %v12768_v27  ;;  %12779 = vst [vmem:[#allocation88_spill] sm:$0xff] %v11155_v18  ;;  %v6381_v47 = vpop.f32.mrb[81].mxu1 }
 0x4d7   : > { %12777 = vst [vmem:[#allocation79_spill] sm:$0xff] %v11142_v32  ;;  %v11151_v35 = vpop.eup %7072  ;;  %v3815_v34 = vadd.f32 0.2548296, %v3698_v0  ;;  %v4541_v26 = vmul.f32 %v7071_v39, %v3956_v63  ;;  %v3255_v50 = vmul.f32 %v11122_v61, %v3138_v57  ;;  %v2545_v7 = vmul.f32 0.3275911, %v11137_v12  ;;  %v12780_v63 = vld [vmem:[#allocation90_spill] sm:$0xff] }
 0x4d8   : > { %v4867_v44 = vsub.f32 0.0, %v4633_v17  ;;  %v3823_v60 = vadd.f32 0.2548296, %v3706_v52  ;;  %v4074_v56 = vmul.f32 %v11047_v31, %v11047_v31  ;;  %v3005_v42 = vmul.f32 1.0614054, %v11151_v35 }
 0x4d9   : > { %v4658_v25 = vsub.f32 1.0, %v4541_v26  ;;  %vm4759_vm10 = vcmp.ge.f32.partialorder %v10985_v33, 0.0  ;;  %v3372_v2 = vadd.f32 1.4214138, %v3255_v50  ;;  %v2662_v0 = vadd.f32 1.0, %v2545_v7  ;;  %v7075_v39 = vpop.eup %7074 }
 0x4da   : > { %v11163_v57 = vadd.f32 %v12780_v63, %v12734_v49  ;;  %v11165_v10 = vmul.f32 %v7067_v11, %v3948_v8  ;;  %v3940_v52 = vmul.f32 %v11076_v53, %v3823_v60  ;;  %v3122_v18 = vadd.f32 -1.4531521, %v3005_v42  ;;  %v7077_v41 = vpop.eup %7076 }
 0x4db   : > { %v11169_v31 = vmul.f32 0.70710677, %v11149_v43  ;;  %v4892_v47 = vsub.f32 0.0, %v4658_v25  ;;  %v3489_v26 = vmul.f32 %v11122_v61, %v3372_v2  ;;  %v4058_v50 = vmul.f32 %v11067_v30, %v11067_v30 }
 0x4dc   : > { %7080 = vrcp.f32 %v2662_v0  ;;  %v4525_v7 = vmul.f32 %v7077_v41, %v3940_v52  ;;  %v4191_v63 = vsub.f32 0.0, %v4074_v56  ;;  %v3239_v49 = vmul.f32 %v11151_v35, %v3122_v18 }
 0x4dd   : > { %v11176_v11 = vand.u32 2147483647, %v11169_v31  ;;  %v4984_v53 = vsel %vm4750_vm8, %v4633_v17, %v4867_v44  ;;  %v3932_v8 = vmul.f32 %v11006_v29, %v3815_v34  ;;  %v5009_v60 = vsel %vm4775_vm9, %v4658_v25, %v4892_v47  ;;  %v12781_v29 = vld [vmem:[#allocation70_spill] sm:$0xff] }
 0x4de   : > { %v11184_v42 = vmul.f32 0.70710677, %v11163_v57  ;;  %v5126_v30 = vadd.f32 1.0, %v5009_v60  ;;  %v4642_v2 = vsub.f32 1.0, %v4525_v7  ;;  %v3356_v41 = vadd.f32 1.4214138, %v3239_v49 }
 0x4df   : > { %v2562_v56 = vmul.f32 0.3275911, %v11176_v11  ;;  %v4650_v18 = vsub.f32 1.0, %v11165_v10  ;;  %v3606_v0 = vadd.f32 -0.28449672, %v3489_v26  ;;  %v4175_v52 = vsub.f32 0.0, %v4058_v50 }
 0x4e0   : > { %v11189_v16 = vand.u32 2147483647, %v11184_v42  ;;  %v11191_v17 = vpop.eup %7078  ;;  %vm4767_vm11 = vcmp.ge.f32.partialorder %v12781_v29, 0.0  ;;  %v11195_v54 = vmul.f32 %v5126_v30, %v11080_v14  ;;  %v4876_v34 = vsub.f32 0.0, %v4642_v2 }
 0x4e1   : > { %v3473_v44 = vmul.f32 %v11151_v35, %v3356_v41  ;;  %v2679_v49 = vadd.f32 1.0, %v2562_v56  ;;  %v5101_v25 = vadd.f32 1.0, %v4984_v53  ;;  %v4517_v47 = vmul.f32 %v7075_v39, %v3932_v8  ;;  %v12784_v8 = vld [vmem:[#allocation59_spill] sm:$0xff] }
 0x4e2   : > { %12782 = vst [vmem:[#allocation37_spill] sm:$0xff] %v11195_v54  ;;  %v4412_v7 = vmul.f32 1.442695, %v4191_v63  ;;  %v3029_v10 = vmul.f32 1.0614054, %v11191_v17  ;;  %v4993_v50 = vsel %vm4759_vm10, %v4642_v2, %v4876_v34  ;;  %v11205_v14 = vmul.f32 %v11139_v5, %v10988_v46 }
 0x4e3   : > { %v3590_v60 = vadd.f32 -0.28449672, %v3473_v44  ;;  %7082 = vrcp.f32 %v2679_v49  ;;  %v5110_v30 = vadd.f32 1.0, %v4993_v50  ;;  %v4380_v41 = vmul.f32 1.442695, %v4175_v52 }
 0x4e4   : > { %12783 = vst [vmem:[#allocation34_spill] sm:$0xff] %v11205_v14  ;;  %v3146_v56 = vadd.f32 -1.4531521, %v3029_v10  ;;  %v4884_v53 = vsub.f32 0.0, %v4650_v18  ;;  %v3723_v39 = vmul.f32 %v11122_v61, %v3606_v0  ;;  %v2546_v63 = vmul.f32 0.3275911, %v11189_v16 }
 0x4e5   : > { %v11211_v26 = vadd.f32 %v12784_v8, %v12753_v21  ;;  %v11216_v2 = vmul.f32 %v5101_v25, %v11017_v45  ;;  %vm4751_vm12 = vcmp.ge.f32.partialorder %v10909_v19, 0.0  ;;  %v11220_v46 = vmul.f32 %v5110_v30, %v11130_v22  ;;  %v12787_v30 = vld [vmem:[#allocation4_spill] sm:$0xff] }
 0x4e6   : > { %v11213_v33 = vpop.eup %7080  ;;  %7084 = vpow2.f32 %v4412_v7  ;;  %v3263_v5 = vmul.f32 %v11191_v17, %v3146_v56  ;;  %v4634_v0 = vsub.f32 1.0, %v4517_v47  ;;  %v3707_v52 = vmul.f32 %v11151_v35, %v3590_v60 }
 0x4e7   : > { %12785 = vst [vmem:[#allocation32_spill] sm:$0xff] %v11216_v2  ;;  %12786 = vst [vmem:[#allocation18_spill] sm:$0xff] %v11220_v46  ;;  %v3013_v34 = vmul.f32 1.0614054, %v11213_v33  ;;  %v2663_v44 = vadd.f32 1.0, %v2546_v63  ;;  %7086 = vpow2.f32 %v4380_v41  ;;  %v4082_v45 = vmul.f32 %v11110_v51, %v11110_v51  ;;  %v12788_v41 = vld [vmem:[#allocation64_spill] sm:$0xff] }
 0x4e8   : > { %v4066_v22 = vmul.f32 %v11137_v12, %v11137_v12  ;;  %v3840_v25 = vadd.f32 0.2548296, %v3723_v39  ;;  %v11232_v47 = vmul.f32 0.70710677, %v11211_v26  ;;  %v5001_v10 = vsel %vm4767_vm11, %v4650_v18, %v4884_v53 }
 0x4e9   : > { %v3130_v7 = vadd.f32 -1.4531521, %v3013_v34  ;;  %7088 = vrcp.f32 %v2663_v44  ;;  %v11237_v50 = vmul.f32 0.5, %v11011_v6  ;;  %v3380_v60 = vadd.f32 1.4214138, %v3263_v5 }
 0x4ea   : > { %v11241_v56 = vadd.f32 %v12788_v41, %v12787_v30  ;;  %v4868_v51 = vsub.f32 0.0, %v4634_v0  ;;  %v3824_v63 = vadd.f32 0.2548296, %v3707_v52  ;;  %v2437_v39 = vand.u32 2147483647, %v11232_v47 }
 0x4eb   : > { %v3247_v12 = vmul.f32 %v11213_v33, %v3130_v7  ;;  %v11246_v8 = vmul.f32 0.5, %v11032_v9  ;;  %v4199_v34 = vsub.f32 0.0, %v4082_v45  ;;  %v4183_v29 = vsub.f32 0.0, %v4066_v22 }
 0x4ec   : > { %v11249_v18 = vmul.f32 0.70710677, %v11241_v56  ;;  %v3957_v53 = vmul.f32 %v11122_v61, %v3840_v25  ;;  %v11255_v5 = vmul.f32 0.5, %v11086_v38  ;;  %v2554_v44 = vmul.f32 0.3275911, %v2437_v39 }
 0x4ed   : > { %v11251_v6 = vpop.eup %7082  ;;  %v3364_v52 = vadd.f32 1.4214138, %v3247_v12  ;;  %v5118_v7 = vadd.f32 1.0, %v5001_v10  ;;  %v3497_v30 = vmul.f32 %v11191_v17, %v3380_v60  ;;  %v4985_v22 = vsel %vm4751_vm12, %v4634_v0, %v4868_v51 }
 0x4ee   : > { %v3030_v9 = vmul.f32 1.0614054, %v11251_v6  ;;  %v11260_v45 = vand.u32 2147483647, %v11249_v18  ;;  %v3941_v41 = vmul.f32 %v11151_v35, %v3824_v63  ;;  %v2671_v25 = vadd.f32 1.0, %v2554_v44 }
 0x4ef   : > { %v3481_v61 = vmul.f32 %v11213_v33, %v3364_v52  ;;  %v4428_v49 = vmul.f32 1.442695, %v4199_v34  ;;  %v4396_v12 = vmul.f32 1.442695, %v4183_v29  ;;  %v4083_v10 = vmul.f32 %v11176_v11, %v11176_v11 }
 0x4f0   : > { %v7085_v38 = vpop.eup %7084  ;;  %v3147_v2 = vadd.f32 -1.4531521, %v3030_v9  ;;  %7090 = vrcp.f32 %v2671_v25  ;;  %v2457_v32 = vmul.f32 0.3275911, %v11260_v45  ;;  %v11272_v0 = vmul.f32 %v5118_v7, %v11022_v20  ;;  %v11288_v20 = vld [vmem:[%s12319_s5] sm:$0xff] }
 0x4f1   : > { %v11268_v60 = vmul.f32 %v7085_v38, %v3957_v53  ;;  %v3598_v46 = vadd.f32 -0.28449672, %v3481_v61  ;;  %v7087_v19 = vpop.eup %7086  ;;  %v3614_v35 = vadd.f32 -0.28449672, %v3497_v30  ;;  %v11275_v51 = vmul.f32 0.5, %v11102_v37  ;;  %v12792_v25 = vld [vmem:[#allocation50_spill] sm:$0xff] }
 0x4f2   : > { %12789 = vst [vmem:[#allocation90_spill] sm:$0xff] %v11272_v0  ;;  %v3264_v63 = vmul.f32 %v11251_v6, %v3147_v2  ;;  %v5102_v29 = vadd.f32 1.0, %v4985_v22  ;;  %v11280_v11 = vmul.f32 %v7087_v19, %v3941_v41  ;;  %v11283_v53 = vmul.f32 0.5, %v11149_v43  ;;  %v12790_v22 = vld [vmem:[#allocation47_spill] sm:$0xff]  ;;  %v12804_v0 = vld [vmem:[#allocation12_spill] sm:$0xff] }
 0x4f3   : > { %v11278_v34 = vpop.eup %7088  ;;  %v2574_v52 = vadd.f32 1.0, %v2457_v32  ;;  %7092 = vpow2.f32 %v4428_v49  ;;  %v3715_v37 = vmul.f32 %v11213_v33, %v3598_v46  ;;  %v4659_v7 = vsub.f32 1.0, %v11268_v60  ;;  %v12791_v41 = vld [vmem:[#allocation15_spill] sm:$0xff] }
 0x4f4   : > { %v3381_v44 = vadd.f32 1.4214138, %v3264_v63  ;;  %v3014_v2 = vmul.f32 1.0614054, %v11278_v34  ;;  %7094 = vpow2.f32 %v4396_v12  ;;  %v4200_v30 = vsub.f32 0.0, %v4083_v10  ;;  %v12795_v63 = vld [vmem:[#allocation9_spill] sm:$0xff] }
 0x4f5   : > { %vm5306_vm13 = vcmask 801792   ;;  %vm4776_vm14 = vcmp.ge.f32.partialorder %v11028_v58, 0.0  ;;  %vm4760_vm15 = vcmp.ge.f32.partialorder %v11051_v15, 0.0  ;;  %v3731_v32 = vmul.f32 %v11191_v17, %v3614_v35  ;;  %v12794_v35 = vld [vmem:[#allocation26_spill] sm:$0xff]  ;;  %v11382_v58 = vld [vmem:[%s12319_s5 + $0x18] sm:$0xff] }
 0x4f6   : > { %v3498_v43 = vmul.f32 %v11251_v6, %v3381_v44  ;;  %v3131_v9 = vadd.f32 -1.4531521, %v3014_v2  ;;  %7096 = vrcp.f32 %v2574_v52  ;;  %6246 = vmatmul.mubr.msk.f32.vlgmr.msra.gmra.mrb[66].mxu0 %vm5306_vm13, %v11288_v20  ;;  %v4643_v46 = vsub.f32 1.0, %v11280_v11 }
 0x4f7   : > { %v4075_v49 = vmul.f32 %v2437_v39, %v2437_v39  ;;  %v6502_v61 = vpack.c.bf16 %v12791_v41, %v12790_v22  ;;  %v11304_v38 = vadd.f32 %v12792_v25, %v12753_v21  ;;  %v12793_v12 = vmov 0.0   ;;  %v11315_v39 = vld [vmem:[%s12319_s5 + $0x8] sm:$0xff]  ;;  %v12797_v41 = vld [vmem:[#allocation36_spill] sm:$0xff] }
 0x4f8   : > { %5426 = vmatprep.mubr.f32.mxu0 %v12793_v12  ;;  %v3832_v10 = vadd.f32 0.2548296, %v3715_v37  ;;  %v3248_v60 = vmul.f32 %v11278_v34, %v3131_v9  ;;  %v4067_v19 = vmul.f32 %v11189_v16, %v11189_v16  ;;  %v6506_v52 = vpack.c.bf16 %v12795_v63, %v12794_v35  ;;  %v12798_v25 = vld [vmem:[#allocation35_spill] sm:$0xff]  ;;  %v12800_v63 = vld [vmem:[#allocation76_spill] sm:$0xff] }
 0x4f9   : > { %v11318_v11 = vmul.f32 %v5102_v29, %v11040_v13  ;;  %v4430_v44 = vmul.f32 1.442695, %v4200_v30  ;;  %v11321_v2 = vmul.f32 0.5, %v11163_v57  ;;  %6503 = vmatprep.subr.bf16.mxu0 %v6502_v61  ;;  %v11324_v37 = vmul.f32 0.70710677, %v11304_v38 }
 0x4fa   : > { %v3848_v16 = vadd.f32 0.2548296, %v3731_v32  ;;  %v3615_v9 = vadd.f32 -0.28449672, %v3498_v43  ;;  %v3365_v22 = vadd.f32 1.4214138, %v3248_v60  ;;  %v12799_v35 = vpack.c.bf16 %v12797_v41, %v12798_v25  ;;  %v11333_v13 = vpop.eup %7090  ;;  %6247 = vmatmul.mubr.msk.f32.gmra.mrb[68].mxu0 %vm5306_vm13, %v11315_v39 }
 0x4fb   : > { %12796 = vst [vmem:[#allocation70_spill] sm:$0xff] %v11318_v11  ;;  %v11331_v54 = vadd.f32 %v12800_v63, %v12768_v27  ;;  %v4893_v29 = vsub.f32 0.0, %v4659_v7  ;;  %v4877_v57 = vsub.f32 0.0, %v4643_v46  ;;  %v4192_v30 = vsub.f32 0.0, %v4075_v49  ;;  %5432 = vmatprep.mubr.f32.mxu0 %v12793_v12  ;;  %v11348_v49 = vld [vmem:[%s12319_s5 + $0x10] sm:$0xff]  ;;  %v12803_v11 = vld [vmem:[#allocation27_spill] sm:$0xff] }
 0x4fc   : > { %6505 = vmatpush1.bf16.msra.mxu0 %v12799_v35  ;;  %v11336_v61 = vand.u32 2147483647, %v11324_v37  ;;  %v3949_v32 = vmul.f32 %v11213_v33, %v3832_v10  ;;  %v4184_v43 = vsub.f32 0.0, %v4067_v19  ;;  %v3022_v60 = vmul.f32 1.0614054, %v11333_v13 }
 0x4fd   : > { %12801 = vst [vmem:[#allocation59_spill] sm:$0xff] %v11331_v54  ;;  %6507 = vmatprep.subr.bf16.mxu0 %v6506_v52  ;;  %v3978_v41 = vmul.f32 %v11260_v45, %v11260_v45  ;;  %7098 = vpow2.f32 %v4430_v44  ;;  %v3482_v52 = vmul.f32 %v11278_v34, %v3365_v22  ;;  %v11352_v25 = vmul.f32 0.5, %v11211_v26  ;;  %v7093_v10 = vpop.eup %7092 }
 0x4fe   : > { %v2555_v33 = vmul.f32 0.3275911, %v11336_v61  ;;  %v3965_v19 = vmul.f32 %v11191_v17, %v3848_v16  ;;  %v3732_v45 = vmul.f32 %v11251_v6, %v3615_v9  ;;  %v3139_v35 = vadd.f32 -1.4531521, %v3022_v60  ;;  %v7095_v44 = vpop.eup %7094  ;;  %6248 = vmatmul.mubr.msk.f32.gmra.mrb[70].mxu0 %vm5306_vm13, %v11348_v49 }
 0x4ff   : > { %v11358_v63 = vmul.f32 0.70710677, %v11331_v54  ;;  %v12805_v21 = vpack.c.bf16 %v12803_v11, %v12804_v0  ;;  %v5010_v26 = vsel %vm4776_vm14, %v4659_v7, %v4893_v29  ;;  %v4994_v22 = vsel %vm4760_vm15, %v4643_v46, %v4877_v57  ;;  %v12807_v11 = vld [vmem:[#allocation85_spill] sm:$0xff]  ;;  %5438 = vmatprep.mubr.f32.mxu0 %v12793_v12 }
 0x500   : > { %v4414_v14 = vmul.f32 1.442695, %v4192_v30  ;;  %v2672_v24 = vadd.f32 1.0, %v2555_v33  ;;  %v11369_v17 = vpop.eup %7096  ;;  %v11371_v16 = vmul.f32 %v7095_v44, %v3949_v32  ;;  %v3256_v9 = vmul.f32 %v11333_v13, %v3139_v35 }
 0x501   : > { %12802 = vst [vmem:[#allocation4_spill] sm:$0xff] %v11358_v63  ;;  %6509 = vmatpush1.bf16.msra.mxu0 %v12805_v21  ;;  %v4095_v0 = vsub.f32 0.0, %v3978_v41  ;;  %v12806_v21 = vld [vmem:[#allocation5_spill] sm:$0xff]  ;;  %v3599_v15 = vadd.f32 -0.28449672, %v3482_v52  ;;  %v11388_v29 = vmul.f32 %v7093_v10, %v3965_v19  ;;  %v5127_v41 = vadd.f32 1.0, %v5010_v26 }
 0x502   : > { %v11376_v60 = vadd.f32 %v12807_v11, %v12806_v21  ;;  %v2925_v7 = vmul.f32 1.0614054, %v11369_v17  ;;  %7100 = vrcp.f32 %v2672_v24  ;;  %v11386_v46 = vand.u32 2147483647, %v11358_v63  ;;  %6249 = vmatmul.mubr.msk.f32.gmra.mrb[72].mxu0 %vm5306_vm13, %v11382_v58 }
 0x503   : > { %v3849_v57 = vadd.f32 0.2548296, %v3732_v45  ;;  %v4398_v30 = vmul.f32 1.442695, %v4184_v43  ;;  %v3373_v32 = vadd.f32 1.4214138, %v3256_v9  ;;  %7102 = vpow2.f32 %v4414_v14  ;;  %5444 = vmatprep.mubr.f32.mxu0 %v12793_v12 }
 0x504   : > { %v3042_v33 = vadd.f32 -1.4531521, %v2925_v7  ;;  %v2563_v35 = vmul.f32 0.3275911, %v11386_v46  ;;  %v5111_v52 = vadd.f32 1.0, %v4994_v22  ;;  %v4651_v44 = vsub.f32 1.0, %v11371_v16 }
 0x505   : > { %vm4768_vm0 = vcmp.ge.f32.partialorder %v11116_v62, 0.0  ;;  %v3490_v24 = vmul.f32 %v11333_v13, %v3373_v32  ;;  %v4220_v10 = vmul.f32 1.442695, %v4095_v0  ;;  %v11400_v14 = vld [vmem:[%s12319_s5 + $0x20] sm:$0xff]  ;;  %v3716_v43 = vmul.f32 %v11278_v34, %v3599_v15  ;;  %v12808_v15 = vld [vmem:[#allocation39_spill] sm:$0xff] }
 0x506   : > { %v3159_v19 = vmul.f32 %v11369_v17, %v3042_v33  ;;  %v2680_v45 = vadd.f32 1.0, %v2563_v35  ;;  %v11405_v26 = vmul.f32 0.70710677, %v11376_v60  ;;  %v4667_v22 = vsub.f32 1.0, %v11388_v29  ;;  %6250 = vmatmul.mubr.msk.f32.gmra.mrb[74].mxu0 %vm5306_vm13, %v11400_v14  ;;  %v12821_v62 = vld [vmem:[#allocation54_spill] sm:$0xff] }
 0x507   : > { %vm4784_vm1 = vcmp.ge.f32.partialorder %v11098_v55, 0.0  ;;  %v3966_v16 = vmul.f32 %v11251_v6, %v3849_v57  ;;  %7104 = vpow2.f32 %v4398_v30  ;;  %v3607_v9 = vadd.f32 -0.28449672, %v3490_v24  ;;  %v7099_v0 = vpop.eup %7098  ;;  %5450 = vmatprep.mubr.f32.mxu0 %v12793_v12  ;;  %v11431_v30 = vld [vmem:[%s12319_s5 + $0x28] sm:$0xff] }
 0x508   : > { %v11411_v21 = vmul.f32 0.5, %v11241_v56  ;;  %v3276_v11 = vadd.f32 1.4214138, %v3159_v19  ;;  %7106 = vrcp.f32 %v2680_v45  ;;  %v11415_v7 = vadd.f32 %v12808_v15, %v12768_v27 }
 0x509   : > { %v11420_v29 = vmul.f32 %v5127_v41, %v11237_v50  ;;  %v11423_v6 = vmul.f32 %v5111_v52, %v11246_v8  ;;  %v3724_v57 = vmul.f32 %v11333_v13, %v3607_v9  ;;  %v2349_v56 = vand.u32 2147483647, %v11405_v26  ;;  %v12812_v9 = vld [vmem:[#allocation60_spill] sm:$0xff] }
 0x50a   : > { %v4885_v32 = vsub.f32 0.0, %v4651_v44  ;;  %v3833_v33 = vadd.f32 0.2548296, %v3716_v43  ;;  %v3393_v35 = vmul.f32 %v11369_v17, %v3276_v11  ;;  %7108 = vpow2.f32 %v4220_v10  ;;  %v12813_v43 = vld [vmem:[#allocation65_spill] sm:$0xff]  ;;  %v12815_v10 = vld [vmem:[#allocation84_spill] sm:$0xff]  ;;  %6251 = vmatmul.mubr.msk.f32.gmra.mrb[76].mxu0 %vm5306_vm13, %v11431_v30 }
 0x50b   : > { %12809 = vst [vmem:[#allocation64_spill] sm:$0xff] %v11420_v29  ;;  %12810 = vst [vmem:[#allocation47_spill] sm:$0xff] %v11423_v6  ;;  %v4901_v50 = vsub.f32 0.0, %v4667_v22  ;;  %v11434_v41 = vmul.f32 %v7099_v0, %v3966_v16  ;;  %v3841_v8 = vadd.f32 0.2548296, %v3724_v57  ;;  %vm4777_vm2 = vcmp.ge.f32.partialorder %v11232_v47, 0.0  ;;  %5456 = vmatprep.mubr.f32.mxu0 %v12793_v12 }
 0x50c   : > { %v2466_v52 = vmul.f32 0.3275911, %v2349_v56  ;;  %v11436_v24 = vpop.eup %7100  ;;  %v4076_v19 = vmul.f32 %v11336_v61, %v11336_v61  ;;  %v11442_v45 = vmul.f32 0.70710677, %v11415_v7  ;;  %v6510_v15 = vpack.c.bf16 %v12813_v43, %v12812_v9  ;;  %v12814_v11 = vld [vmem:[#allocation33_spill] sm:$0xff]  ;;  %v12819_v29 = vld [vmem:[#allocation62_spill] sm:$0xff] }
 0x50d   : > { %v6526_v54 = vpack.c.bf16 %v12815_v10, %v12814_v11  ;;  %v11453_v16 = vld [vmem:[%s12319_s5 + $0x30] sm:$0x1]  ;;  %v3958_v0 = vmul.f32 %v11333_v13, %v3841_v8  ;;  %v3510_v61 = vadd.f32 -0.28449672, %v3393_v35  ;;  %v3023_v57 = vmul.f32 1.0614054, %v11436_v24  ;;  %v7103_v9 = vpop.eup %7102 }
 0x50e   : > { %12811 = vst [vmem:[#allocation15_spill] sm:$0xff] %v11442_v45  ;;  %12816 = vst [vmem:[#allocation50_spill] sm:$0xff] %v11453_v16  ;;  %v2583_v27 = vadd.f32 1.0, %v2466_v52  ;;  %v5002_v43 = vsel %vm4768_vm0, %v4651_v44, %v4885_v32  ;;  %v3950_v11 = vmul.f32 %v11278_v34, %v3833_v33  ;;  %v11462_v10 = vmul.f32 0.5, %v11304_v38  ;;  %6511 = vmatprep.subr.bf16.mxu0 %v6510_v15  ;;  %v12818_v52 = vld [vmem:[#allocation80_spill] sm:$0xff]  ;;  %v12822_v44 = vld [vmem:[#allocation23_spill] sm:$0xff] }
 0x50f   : > { %v11465_v6 = vand.u32 2147483647, %v11442_v45  ;;  %6527 = vmatprep.subr.bf16.mxu1 %v6526_v54  ;;  %v4668_v13 = vsub.f32 1.0, %v11434_v41  ;;  %v4543_v35 = vmul.f32 %v7103_v9, %v3958_v0  ;;  %v3140_v8 = vadd.f32 -1.4531521, %v3023_v57  ;;  %6252 = vmatmul.mubr.msk.f32.gmra.mrb[78].mxu0 %vm5306_vm13, %v11453_v16  ;;  %v12824_v15 = vld [vmem:[#allocation6_spill] sm:$0xff] }
 0x510   : > { %12817 = vst [vmem:[#allocation26_spill] sm:$0xff] %v11462_v10  ;;  %7110 = vrcp.f32 %v2583_v27  ;;  %v12820_v63 = vpack.c.bf16 %v12818_v52, %v12819_v29  ;;  %v12823_v34 = vpack.c.bf16 %v12821_v62, %v12822_v44  ;;  %v5018_v38 = vsel %vm4784_vm1, %v4667_v22, %v4901_v50  ;;  %5527 = vmatprep.mubr.f32.mxu0 %v12793_v12  ;;  %v12825_v0 = vld [vmem:[#allocation74_spill] sm:$0xff]  ;;  %v12826_v57 = vld [vmem:[#allocation20_spill] sm:$0xff] }
 0x511   : > { %vm4785_vm3 = vcmp.ge.f32.partialorder %v11169_v31, 0.0  ;;  %v4193_v32 = vsub.f32 0.0, %v4076_v19  ;;  %v4084_v54 = vmul.f32 %v11386_v46, %v11386_v46  ;;  %v2564_v33 = vmul.f32 0.3275911, %v11465_v6  ;;  %v7105_v27 = vpop.eup %7104  ;;  %v12830_v16 = vld [vmem:[#allocation14_spill] sm:$0xff] }
 0x512   : > { %6529 = vmatpush1.bf16.msra.mxu1 %v12820_v63  ;;  %6513 = vmatpush1.bf16.msra.mxu0 %v12823_v34  ;;  %v4660_v63 = vsub.f32 1.0, %v4543_v35  ;;  %v3627_v29 = vmul.f32 %v11369_v17, %v3510_v61  ;;  %v3257_v41 = vmul.f32 %v11436_v24, %v3140_v8  ;;  %v11486_v55 = vadd.f32 %v10911_v40, %v12824_v15  ;;  %v11489_v22 = vpop.eup %7106  ;;  %v12828_v15 = vld [vmem:[#allocation40_spill] sm:$0xff] }
 0x513   : > { %v5119_v46 = vadd.f32 1.0, %v5002_v43  ;;  %v4535_v50 = vmul.f32 %v7105_v27, %v3950_v11  ;;  %v2681_v19 = vadd.f32 1.0, %v2564_v33  ;;  %v6514_v9 = vpack.c.bf16 %v12826_v57, %v12825_v0 }
 0x514   : > { %v4902_v52 = vsub.f32 0.0, %v4668_v13  ;;  %v4894_v35 = vsub.f32 0.0, %v4660_v63  ;;  %v3374_v62 = vadd.f32 1.4214138, %v3257_v41  ;;  %v3031_v61 = vmul.f32 1.0614054, %v11489_v22  ;;  %v7109_v8 = vpop.eup %7108 }
 0x515   : > { %v4201_v44 = vsub.f32 0.0, %v4084_v54  ;;  %v3987_v34 = vmul.f32 %v2349_v56, %v2349_v56  ;;  %7112 = vrcp.f32 %v2681_v19  ;;  %v11495_v40 = vmul.f32 0.70710677, %v11486_v55  ;;  %6515 = vmatprep.subr.bf16.mxu0 %v6514_v9  ;;  %v12827_v41 = vld [vmem:[#allocation24_spill] sm:$0xff] }
 0x516   : > { %vm4769_vm4 = vcmp.ge.f32.partialorder %v11184_v42, 0.0  ;;  %v5011_v43 = vsel %vm4777_vm2, %v4660_v63, %v4894_v35  ;;  %v3744_v11 = vadd.f32 0.2548296, %v3627_v29  ;;  %v3491_v33 = vmul.f32 %v11436_v24, %v3374_v62 }
 0x517   : > { %v3148_v27 = vadd.f32 -1.4531521, %v3031_v61  ;;  %v12829_v0 = vpack.c.bf16 %v12827_v41, %v12828_v15  ;;  %v5135_v54 = vadd.f32 1.0, %v5018_v38  ;;  %v4652_v56 = vsub.f32 1.0, %v4535_v50  ;;  %v12831_v41 = vld [vmem:[#allocation67_spill] sm:$0xff]  ;;  %v12832_v15 = vld [vmem:[#allocation41_spill] sm:$0xff] }
 0x518   : > { %v5128_v19 = vadd.f32 1.0, %v5011_v43  ;;  %v2358_v57 = vand.u32 2147483647, %v11495_v40  ;;  %v3608_v10 = vadd.f32 -0.28449672, %v3491_v33  ;;  %v11508_v47 = vadd.f32 %v10938_v1, %v12830_v16 }
 0x519   : > { %6517 = vmatpush1.bf16.msra.mxu0 %v12829_v0  ;;  %v4416_v9 = vmul.f32 1.442695, %v4193_v32  ;;  %v3265_v45 = vmul.f32 %v11489_v22, %v3148_v27  ;;  %v11511_v63 = vmul.f32 %v5119_v46, %v11275_v51  ;;  %v4104_v35 = vsub.f32 0.0, %v3987_v34 }
 0x51a   : > { %v11514_v29 = vmul.f32 %v5128_v19, %v11352_v25  ;;  %v2475_v38 = vmul.f32 0.3275911, %v2358_v57  ;;  %v11516_v50 = vpop.eup %7110  ;;  %v5019_v62 = vsel %vm4785_vm3, %v4668_v13, %v4902_v52  ;;  %v3861_v32 = vmul.f32 %v11369_v17, %v3744_v11 }
 0x51b   : > { %v4432_v61 = vmul.f32 1.442695, %v4201_v44  ;;  %v11522_v43 = vmul.f32 0.70710677, %v11508_v47  ;;  %v4886_v1 = vsub.f32 0.0, %v4652_v56  ;;  %v11528_v46 = vmul.f32 %v5135_v54, %v11255_v5 }
 0x51c   : > { %v6572_v51 = vpack.c.bf16 %v11514_v29, %v11511_v63  ;;  %v2934_v25 = vmul.f32 1.0614054, %v11516_v50  ;;  %v2592_v16 = vadd.f32 1.0, %v2475_v38  ;;  %v3725_v34 = vmul.f32 %v11436_v24, %v3608_v10 }
 0x51d   : > { %7114 = vpow2.f32 %v4416_v9  ;;  %v3382_v31 = vadd.f32 1.4214138, %v3265_v45  ;;  %v4238_v17 = vmul.f32 1.442695, %v4104_v35  ;;  %v2367_v52 = vand.u32 2147483647, %v11522_v43 }
 0x51e   : > { %v3051_v13 = vadd.f32 -1.4531521, %v2934_v25  ;;  %7116 = vrcp.f32 %v2592_v16  ;;  %v5136_v44 = vadd.f32 1.0, %v5019_v62  ;;  %v11532_v11 = vmul.f32 %v7109_v8, %v3861_v32  ;;  %v12834_v35 = vld [vmem:[#allocation29_spill] sm:$0xff] }
 0x51f   : > { %7118 = vpow2.f32 %v4432_v61  ;;  %v11535_v33 = vmul.f32 0.5, %v11376_v60  ;;  %v11537_v27 = vpop.eup %7112  ;;  %v5003_v5 = vsel %vm4769_vm4, %v4652_v56, %v4886_v1  ;;  %v2484_v45 = vmul.f32 0.3275911, %v2367_v52  ;;  %v12833_v56 = vld [vmem:[#allocation78_spill] sm:$0xff]  ;;  %v12836_v16 = vld [vmem:[#allocation73_spill] sm:$0xff] }
 0x520   : > { %v3168_v10 = vmul.f32 %v11516_v50, %v3051_v13  ;;  %v6518_v0 = vpack.c.bf16 %v12832_v15, %v12831_v41  ;;  %v3842_v54 = vadd.f32 0.2548296, %v3725_v34  ;;  %v3499_v19 = vmul.f32 %v11489_v22, %v3382_v31  ;;  %v12835_v1 = vld [vmem:[#allocation22_spill] sm:$0xff]  ;;  %v12837_v34 = vld [vmem:[#allocation16_spill] sm:$0xff] }
 0x521   : > { %v3032_v8 = vmul.f32 1.0614054, %v11537_v27  ;;  %v4085_v60 = vmul.f32 %v11465_v6, %v11465_v6  ;;  %vm4680_vm5 = vcmp.ge.f32.partialorder %v11249_v18, 0.0  ;;  %7120 = vpow2.f32 %v4238_v17  ;;  %v12839_v17 = vld [vmem:[#allocation7_spill] sm:$0xff]  ;;  %v12841_v15 = vld [vmem:[#allocation72_spill] sm:$0xff] }
 0x522   : > { %v3285_v9 = vadd.f32 1.4214138, %v3168_v10  ;;  %v2601_v42 = vadd.f32 1.0, %v2484_v45  ;;  %6519 = vmatprep.subr.bf16.mxu0 %v6518_v0  ;;  %v6530_v38 = vpack.c.bf16 %v12834_v35, %v12833_v56  ;;  %v4563_v62 = vsub.f32 1.0, %v11532_v11  ;;  %v12840_v10 = vld [vmem:[#allocation42_spill] sm:$0xff]  ;;  %v12842_v0 = vld [vmem:[#allocation28_spill] sm:$0xff] }
 0x523   : > { %v3149_v32 = vadd.f32 -1.4531521, %v3032_v8  ;;  %v3996_v61 = vmul.f32 %v2358_v57, %v2358_v57  ;;  %v11554_v25 = vadd.f32 %v10975_v23, %v12835_v1  ;;  %v12838_v6 = vpack.c.bf16 %v12836_v16, %v12837_v34  ;;  %v12848_v1 = vld [vmem:[#allocation8_spill] sm:$0xff] }
 0x524   : > { %v11560_v31 = vmul.f32 %v5136_v44, %v11283_v53  ;;  %v3402_v13 = vmul.f32 %v11516_v50, %v3285_v9  ;;  %7122 = vrcp.f32 %v2601_v42  ;;  %6531 = vmatprep.subr.bf16.mxu1 %v6530_v38  ;;  %v6522_v11 = vpack.c.bf16 %v12840_v10, %v12839_v17  ;;  %v12845_v38 = vld [vmem:[#allocation68_spill] sm:$0xff] }
 0x525   : > { %6521 = vmatpush1.bf16.msra.mxu0 %v12838_v6  ;;  %v3959_v57 = vmul.f32 %v11436_v24, %v3842_v54  ;;  %v3616_v45 = vadd.f32 -0.28449672, %v3499_v19  ;;  %v3266_v23 = vmul.f32 %v11537_v27, %v3149_v32  ;;  %v4202_v41 = vsub.f32 0.0, %v4085_v60  ;;  %v12844_v19 = vld [vmem:[#allocation10_spill] sm:$0xff]  ;;  %v12847_v32 = vld [vmem:[#allocation31_spill] sm:$0xff] }
 0x526   : > { %v12843_v8 = vpack.c.bf16 %v12841_v15, %v12842_v0  ;;  %v5120_v56 = vadd.f32 1.0, %v5003_v5  ;;  %v3519_v53 = vadd.f32 -0.28449672, %v3402_v13  ;;  %v11571_v44 = vmul.f32 0.5, %v11415_v7  ;;  %6523 = vmatprep.subr.bf16.mxu0 %v6522_v11  ;;  %v12849_v13 = vld [vmem:[#allocation30_spill] sm:$0xff] }
 0x527   : > { %v11574_v9 = vmul.f32 0.70710677, %v11554_v25  ;;  %v7115_v42 = vpop.eup %7114  ;;  %v4797_v35 = vsub.f32 0.0, %v4563_v62  ;;  %v4113_v24 = vsub.f32 0.0, %v3996_v61  ;;  %v4005_v54 = vmul.f32 %v2367_v52, %v2367_v52  ;;  %v12850_v61 = vld [vmem:[#allocation75_spill] sm:$0xff] }
 0x528   : > { %6533 = vmatpush1.bf16.msra.mxu1 %v12843_v8  ;;  %v12846_v60 = vpack.c.bf16 %v12844_v19, %v12845_v38  ;;  %v6534_v16 = vpack.c.bf16 %v12848_v1, %v12847_v32  ;;  %v11581_v5 = vpop.eup %7116  ;;  %v3636_v7 = vmul.f32 %v11516_v50, %v3519_v53  ;;  %v3383_v34 = vadd.f32 1.4214138, %v3266_v23  ;;  %v12851_v19 = vld [vmem:[#allocation45_spill] sm:$0xff]  ;;  %v12852_v38 = vld [vmem:[#allocation46_spill] sm:$0xff] }
 0x529   : > { %v2376_v6 = vand.u32 2147483647, %v11574_v9  ;;  %v11587_v17 = vadd.f32 %v10991_v4, %v12849_v13  ;;  %v11591_v52 = vpop.eup %7118  ;;  %v11593_v10 = vmul.f32 %v7115_v42, %v3959_v57  ;;  %v3733_v11 = vmul.f32 %v11489_v22, %v3616_v45  ;;  %v12854_v32 = vld [vmem:[#allocation13_spill] sm:$0xff] }
 0x52a   : > { %6525 = vmatpush1.bf16.msra.mxu0 %v12846_v60  ;;  %v4434_v15 = vmul.f32 1.442695, %v4202_v41  ;;  %v2943_v0 = vmul.f32 1.0614054, %v11581_v5  ;;  %6535 = vmatprep.subr.bf16.mxu1 %v6534_v16  ;;  %v11598_v23 = vmul.f32 %v5120_v56, %v11321_v2  ;;  %v3753_v8 = vadd.f32 0.2548296, %v3636_v7 }
 0x52b   : > { %6253 = vmatprep.subr.msk.mxu0 %vm5328_vm6, %v12850_v61  ;;  %v11601_v4 = vmul.f32 0.5, %v11486_v55  ;;  %v2493_v53 = vmul.f32 0.3275911, %v2376_v6  ;;  %v12853_v60 = vpack.c.bf16 %v12851_v19, %v12852_v38  ;;  %v4914_v57 = vsel %vm4680_vm5, %v4563_v62, %v4797_v35  ;;  %v7121_v2 = vpop.eup %7120  ;;  %v12855_v7 = vld [vmem:[#allocation43_spill] sm:$0xff] }
 0x52c   : > { %vm4689_vm8 = vcmp.ge.f32.partialorder %v11405_v26, 0.0  ;;  %v3060_v45 = vadd.f32 -1.4531521, %v2943_v0  ;;  %v4256_v41 = vmul.f32 1.442695, %v4113_v24  ;;  %v4122_v42 = vsub.f32 0.0, %v4005_v54 }
 0x52d   : > { %6537 = vmatpush1.bf16.msra.mxu1 %v12853_v60  ;;  %vm4778_vm9 = vcmp.ge.f32.partialorder %v11324_v37, 0.0  ;;  %v3870_v55 = vmul.f32 %v11516_v50, %v3753_v8  ;;  %v3500_v56 = vmul.f32 %v11537_v27, %v3383_v34  ;;  %v2610_v1 = vadd.f32 1.0, %v2493_v53 }
 0x52e   : > { %6254 = vmatpush1.msk.msra.mxu0 %vm5328_vm6, %v12854_v32  ;;  %v11615_v16 = vmul.f32 0.70710677, %v11587_v17  ;;  %v4661_v18 = vsub.f32 1.0, %v11593_v10  ;;  %v3850_v62 = vadd.f32 0.2548296, %v3733_v11  ;;  %7124 = vpow2.f32 %v4434_v15  ;;  %v11622_v24 = vpop.eup %7122  ;;  %v12856_v10 = vld [vmem:[#allocation11_spill] sm:$0xff] }
 0x52f   : > { %6255 = vmatmul.mubr.msk.f32.vlgmr.msra.gmra.mrb[80].mxu0 %vm5306_vm13, %v11288_v20  ;;  %v3177_v35 = vmul.f32 %v11581_v5, %v3060_v45  ;;  %v5031_v50 = vadd.f32 1.0, %v4914_v57  ;;  %v4455_v54 = vmul.f32 %v7121_v2, %v3870_v55  ;;  %7126 = vrcp.f32 %v2610_v1  ;;  %v12857_v11 = vld [vmem:[#allocation19_spill] sm:$0xff]  ;;  %v12859_v2 = vld [vmem:[#allocation82_spill] sm:$0xff] }
 0x530   : > { %5533 = vmatprep.mubr.f32.mxu0 %v12793_v12  ;;  %v11626_v34 = vadd.f32 %v11013_v59, %v12855_v7  ;;  %v2952_v20 = vmul.f32 1.0614054, %v11622_v24  ;;  %v4274_v61 = vmul.f32 1.442695, %v4122_v42  ;;  %v6550_v15 = vpack.c.bf16 %v12857_v11, %v12856_v10 }
 0x531   : > { %v3294_v13 = vadd.f32 1.4214138, %v3177_v35  ;;  %v4572_v0 = vsub.f32 1.0, %v4455_v54  ;;  %v3617_v8 = vadd.f32 -0.28449672, %v3500_v56  ;;  %7128 = vpow2.f32 %v4256_v41  ;;  %v12858_v41 = vld [vmem:[#allocation83_spill] sm:$0xff] }
 0x532   : > { %v2385_v53 = vand.u32 2147483647, %v11615_v16  ;;  %v4895_v19 = vsub.f32 0.0, %v4661_v18  ;;  %v3967_v38 = vmul.f32 %v11489_v22, %v3850_v62  ;;  %v3069_v60 = vadd.f32 -1.4531521, %v2952_v20  ;;  %6551 = vmatprep.subr.bf16.mxu0 %v6550_v15 }
 0x533   : > { %6256 = vmatmul.mubr.msk.f32.gmra.mrb[82].mxu0 %vm5306_vm13, %v11315_v39  ;;  %v3411_v59 = vmul.f32 %v11581_v5, %v3294_v13  ;;  %v4806_v57 = vsub.f32 0.0, %v4572_v0  ;;  %v4014_v45 = vmul.f32 %v2376_v6, %v2376_v6  ;;  %v11638_v32 = vmul.f32 0.70710677, %v11626_v34 }
 0x534   : > { %5539 = vmatprep.mubr.f32.mxu0 %v12793_v12  ;;  %v2502_v42 = vmul.f32 0.3275911, %v2385_v53  ;;  %v12860_v55 = vpack.c.bf16 %v12858_v41, %v12859_v2  ;;  %v11644_v39 = vmul.f32 %v5031_v50, %v11411_v21  ;;  %v3186_v56 = vmul.f32 %v11622_v24, %v3069_v60 }
 0x535   : > { %v3528_v22 = vadd.f32 -0.28449672, %v3411_v59  ;;  %7130 = vpow2.f32 %v4274_v61  ;;  %v4923_v1 = vsel %vm4689_vm8, %v4572_v0, %v4806_v57  ;;  %v3734_v6 = vmul.f32 %v11537_v27, %v3617_v8 }
 0x536   : > { %6553 = vmatpush1.bf16.msra.mxu0 %v12860_v55  ;;  %v2619_v62 = vadd.f32 1.0, %v2502_v42  ;;  %v2394_v35 = vand.u32 2147483647, %v11638_v32  ;;  %v5012_v54 = vsel %vm4778_vm9, %v4661_v18, %v4895_v19  ;;  %v5040_v21 = vadd.f32 1.0, %v4923_v1  ;;  %v12861_v18 = vld [vmem:[#allocation44_spill] sm:$0xff]  ;;  %v12862_v55 = vld [vmem:[#allocation89_spill] sm:$0xff] }
 0x537   : > { %6257 = vmatmul.mubr.msk.f32.gmra.mrb[84].mxu0 %vm5306_vm13, %v11348_v49  ;;  %v3645_v50 = vmul.f32 %v11581_v5, %v3528_v22  ;;  %v3303_v7 = vadd.f32 1.4214138, %v3186_v56  ;;  %v11658_v26 = vmul.f32 %v11591_v52, %v3967_v38  ;;  %v4131_v13 = vsub.f32 0.0, %v4014_v45  ;;  %v12863_v22 = vld [vmem:[#allocation81_spill] sm:$0xff] }
 0x538   : > { %5545 = vmatprep.mubr.f32.mxu0 %v12793_v12  ;;  %7132 = vrcp.f32 %v2619_v62  ;;  %v2511_v20 = vmul.f32 0.3275911, %v2394_v35  ;;  %v7125_v61 = vpop.eup %7124  ;;  %v11661_v10 = vmul.f32 %v5040_v21, %v11535_v33  ;;  %v11666_v11 = vadd.f32 %v11034_v3, %v12861_v18 }
 0x539   : > { %v3762_v49 = vadd.f32 0.2548296, %v3645_v50  ;;  %v3420_v37 = vmul.f32 %v11622_v24, %v3303_v7  ;;  %v11668_v15 = vpop.eup %7126  ;;  %v3851_v0 = vadd.f32 0.2548296, %v3734_v6  ;;  %v11671_v52 = vmul.f32 0.5, %v11508_v47  ;;  %v12864_v50 = vld [vmem:[#allocation49_spill] sm:$0xff] }
 0x53a   : > { %v4023_v8 = vmul.f32 %v2385_v53, %v2385_v53  ;;  %v2628_v19 = vadd.f32 1.0, %v2511_v20  ;;  %v6575_v33 = vpack.c.bf16 %v11661_v10, %v11644_v39  ;;  %v11679_v3 = vmul.f32 0.5, %v11554_v25  ;;  %v12866_v20 = vld [vmem:[#allocation91_spill] sm:$0xff] }
 0x53b   : > { %6258 = vmatmul.mubr.msk.f32.gmra.mrb[86].mxu0 %vm5306_vm13, %v11382_v58  ;;  %v3879_v38 = vmul.f32 %v11581_v5, %v3762_v49  ;;  %v3537_v59 = vadd.f32 -0.28449672, %v3420_v37  ;;  %v7129_v60 = vpop.eup %7128  ;;  %v11682_v57 = vadd.f32 1.0, %v5012_v54  ;;  %v4669_v47 = vsub.f32 1.0, %v11658_v26 }
 0x53c   : > { %5551 = vmatprep.mubr.f32.mxu0 %v12793_v12  ;;  %vm4698_vm10 = vcmp.ge.f32.partialorder %v11495_v40, 0.0  ;;  %v2961_v58 = vmul.f32 1.0614054, %v11668_v15  ;;  %7134 = vrcp.f32 %v2628_v19  ;;  %v4292_v5 = vmul.f32 1.442695, %v4131_v13  ;;  %v12868_v19 = vld [vmem:[#allocation56_spill] sm:$0xff] }
 0x53d   : > { %v4464_v53 = vmul.f32 %v7129_v60, %v3879_v38  ;;  %v3654_v45 = vmul.f32 %v11622_v24, %v3537_v59  ;;  %v11689_v42 = vmul.f32 0.70710677, %v11666_v11  ;;  %v3968_v25 = vmul.f32 %v11537_v27, %v3851_v0 }
 0x53e   : > { %v3078_v41 = vadd.f32 -1.4531521, %v2961_v58  ;;  %v4140_v2 = vsub.f32 0.0, %v4023_v8  ;;  %v6554_v56 = vpack.c.bf16 %v12863_v22, %v12862_v55  ;;  %v4032_v54 = vmul.f32 %v2394_v35, %v2394_v35  ;;  %v12867_v8 = vld [vmem:[#allocation25_spill] sm:$0xff] }
 0x53f   : > { %6259 = vmatmul.mubr.msk.f32.gmra.mrb[88].mxu0 %vm5306_vm13, %v11400_v14  ;;  %v7131_v1 = vpop.eup %7130  ;;  %v4581_v6 = vsub.f32 1.0, %v4464_v53  ;;  %v3771_v62 = vadd.f32 0.2548296, %v3654_v45  ;;  %v2403_v21 = vand.u32 2147483647, %v11689_v42  ;;  %vm4707_vm11 = vcmp.ge.f32.partialorder %v11522_v43, 0.0 }
 0x540   : > { %5557 = vmatprep.mubr.f32.mxu0 %v12793_v12  ;;  %v3195_v27 = vmul.f32 %v11668_v15, %v3078_v41  ;;  %6555 = vmatprep.subr.bf16.mxu0 %v6554_v56  ;;  %v6538_v7 = vpack.c.bf16 %v10957_v36, %v12864_v50  ;;  %v11704_v13 = vadd.f32 %v11063_v28, %v12713_v48  ;;  %v12865_v14 = vld [vmem:[#allocation77_spill] sm:$0xff]  ;;  %v11710_v18 = vmul.f32 0.5, %v11587_v17  ;;  %v12870_v53 = vld [vmem:[#allocation63_spill] sm:$0xff] }
 0x541   : > { %v6558_v49 = vpack.c.bf16 %v12866_v20, %v12865_v14  ;;  %v4815_v35 = vsub.f32 0.0, %v4581_v6  ;;  %v3888_v37 = vmul.f32 %v11622_v24, %v3771_v62  ;;  %v2520_v0 = vmul.f32 0.3275911, %v2403_v21  ;;  %v12871_v45 = vld [vmem:[#allocation51_spill] sm:$0xff]  ;;  %v12873_v62 = vld [vmem:[#allocation17_spill] sm:$0xff] }
 0x542   : > { %v12869_v38 = vpack.c.bf16 %v12867_v8, %v12868_v19  ;;  %v11715_v59 = vpop.eup %7132  ;;  %v11717_v36 = vmul.f32 %v7125_v61, %v3968_v25  ;;  %v3312_v48 = vadd.f32 1.4214138, %v3195_v27  ;;  %7136 = vpow2.f32 %v4292_v5  ;;  %6539 = vmatprep.subr.bf16.mxu1 %v6538_v7  ;;  %v12876_v20 = vld [vmem:[#allocation53_spill] sm:$0xff]  ;;  %v12878_v8 = vld [vmem:[#allocation50_spill] sm:$0xff]  ;;  %v12879_v19 = vld [vmem:[#allocation4_spill] sm:$0xff] }
 0x543   : > { %v11720_v28 = vmul.f32 0.70710677, %v11704_v13  ;;  %v4473_v24 = vmul.f32 %v7131_v1, %v3888_v37  ;;  %v2970_v17 = vmul.f32 1.0614054, %v11715_v59  ;;  %v4149_v60 = vsub.f32 0.0, %v4032_v54  ;;  %6260 = vmatmul.mubr.msk.f32.gmra.mrb[90].mxu0 %vm5306_vm13, %v11431_v30  ;;  %v12874_v54 = vld [vmem:[#allocation52_spill] sm:$0xff] }
 0x544   : > { %6557 = vmatpush1.bf16.msra.mxu0 %v12869_v38  ;;  %v2637_v58 = vadd.f32 1.0, %v2520_v0  ;;  %v12872_v41 = vpack.c.bf16 %v12870_v53, %v12871_v45  ;;  %v11730_v61 = vsub.f32 0.0, %v4669_v47  ;;  %v3429_v5 = vmul.f32 %v11668_v15, %v3312_v48  ;;  %5563 = vmatprep.mubr.f32.mxu0 %v12793_v12 }
 0x545   : > { %6559 = vmatprep.subr.bf16.mxu0 %v6558_v49  ;;  %v4310_v25 = vmul.f32 1.442695, %v4140_v2  ;;  %v2412_v55 = vand.u32 2147483647, %v11720_v28  ;;  %v4932_v22 = vsel %vm4698_vm10, %v4581_v6, %v4815_v35  ;;  %v4590_v56 = vsub.f32 1.0, %v4473_v24  ;;  %v12877_v49 = vld [vmem:[#allocation66_spill] sm:$0xff] }
 0x546   : > { %6541 = vmatpush1.bf16.msra.mxu1 %v12872_v41  ;;  %v3087_v1 = vadd.f32 -1.4531521, %v2970_v17  ;;  %7138 = vrcp.f32 %v2637_v58  ;;  %v12875_v27 = vpack.c.bf16 %v12873_v62, %v12874_v54  ;;  %v11740_v50 = vpop.eup %7134  ;;  %v4670_v7 = vsub.f32 1.0, %v11717_v36  ;;  %v12881_v62 = vld [vmem:[#allocation92_spill] sm:$0xff]  ;;  %v12882_v54 = vld [vmem:[#allocation71_spill] sm:$0xff] }
 0x547   : > { %v3546_v14 = vadd.f32 -0.28449672, %v3429_v5  ;;  %v2529_v2 = vmul.f32 0.3275911, %v2412_v55  ;;  %v11745_v37 = vadd.f32 %v12877_v49, %v12876_v20  ;;  %v4824_v0 = vsub.f32 0.0, %v4590_v56  ;;  %6261 = vmatmul.mubr.msk.f32.gmra.mrb[92].mxu0 %vm5306_vm13, %v12878_v8 }
 0x548   : > { %6561 = vmatpush1.bf16.msra.mxu0 %v12875_v27  ;;  %v3204_v40 = vmul.f32 %v11715_v59, %v3087_v1  ;;  %v2979_v6 = vmul.f32 1.0614054, %v11740_v50  ;;  %v4328_v35 = vmul.f32 1.442695, %v4149_v60  ;;  %vm4786_vm12 = vcmp.ge.f32.partialorder %v12879_v19, 0.0  ;;  %5741 = vmatprep.mubr.f32.mxu0 %v12793_v12  ;;  %v12880_v1 = vld [vmem:[#allocation15_spill] sm:$0xff] }
 0x549   : > { %v5049_v38 = vadd.f32 1.0, %v4932_v22  ;;  %v3663_v48 = vmul.f32 %v11668_v15, %v3546_v14  ;;  %7140 = vpow2.f32 %v4310_v25  ;;  %v2646_v24 = vadd.f32 1.0, %v2529_v2 }
 0x54a   : > { %v4941_v17 = vsel %vm4707_vm11, %v4590_v56, %v4824_v0  ;;  %v3321_v58 = vadd.f32 1.4214138, %v3204_v40  ;;  %v3096_v53 = vadd.f32 -1.4531521, %v2979_v6  ;;  %v4041_v45 = vmul.f32 %v2403_v21, %v2403_v21  ;;  %v12883_v40 = vld [vmem:[#allocation55_spill] sm:$0xff]  ;;  %v12884_v6 = vld [vmem:[#allocation34_spill] sm:$0xff] }
 0x54b   : > { %v5058_v41 = vadd.f32 1.0, %v4941_v17  ;;  %v3780_v60 = vadd.f32 0.2548296, %v3663_v48  ;;  %7142 = vrcp.f32 %v2646_v24  ;;  %v11757_v5 = vmul.f32 0.70710677, %v11745_v37  ;;  %v12886_v17 = vld [vmem:[#allocation58_spill] sm:$0xff] }
 0x54c   : > { %vm4787_vm14 = vcmp.ge.f32.partialorder %v12880_v1, 0.0  ;;  %v3438_v22 = vmul.f32 %v11715_v59, %v3321_v58  ;;  %v3213_v25 = vmul.f32 %v11740_v50, %v3096_v53  ;;  %7144 = vpow2.f32 %v4328_v35  ;;  %v7137_v56 = vpop.eup %7136 }
 0x54d   : > { %v6542_v43 = vpack.c.bf16 %v12882_v54, %v12881_v62  ;;  %v11765_v27 = vmul.f32 %v5049_v38, %v11601_v4  ;;  %v11768_v21 = vmul.f32 %v5058_v41, %v11671_v52  ;;  %v3897_v14 = vmul.f32 %v11668_v15, %v3780_v60  ;;  %v12885_v38 = vld [vmem:[#allocation86_spill] sm:$0xff]  ;;  %v12888_v60 = vld [vmem:[#allocation57_spill] sm:$0xff] }
 0x54e   : > { %v2421_v2 = vand.u32 2147483647, %v11757_v5  ;;  %v3555_v20 = vadd.f32 -0.28449672, %v3438_v22  ;;  %v3330_v49 = vadd.f32 1.4214138, %v3213_v25  ;;  %v6562_v35 = vpack.c.bf16 %v12884_v6, %v12883_v40 }
 0x54f   : > { %v4158_v0 = vsub.f32 0.0, %v4041_v45  ;;  %6543 = vmatprep.subr.bf16.mxu1 %v6542_v43  ;;  %v6578_v48 = vpack.c.bf16 %v11768_v21, %v11765_v27  ;;  %v4482_v24 = vmul.f32 %v7137_v56, %v3897_v14  ;;  %vm4716_vm15 = vcmp.ge.f32.partialorder %v11574_v9, 0.0  ;;  %v12889_v22 = vld [vmem:[#allocation38_spill] sm:$0xff]  ;;  %v12890_v43 = vld [vmem:[#allocation21_spill] sm:$0xff]  ;;  %v12891_v56 = vld [vmem:[#allocation87_spill] sm:$0xff] }
 0x550   : > { %v4050_v4 = vmul.f32 %v2412_v55, %v2412_v55  ;;  %v2538_v52 = vmul.f32 0.3275911, %v2421_v2  ;;  %v12887_v15 = vpack.c.bf16 %v12885_v38, %v12886_v17  ;;  %v11780_v58 = vpop.eup %7138  ;;  %v4904_v53 = vsub.f32 0.0, %v4670_v7  ;;  %6563 = vmatprep.subr.bf16.mxu0 %v6562_v35  ;;  %v12893_v40 = vld [vmem:[#allocation61_spill] sm:$0xff]  ;;  %v12894_v6 = vld [vmem:[#allocation48_spill] sm:$0xff] }
 0x551   : > { %v3672_v45 = vmul.f32 %v11715_v59, %v3555_v20  ;;  %v3447_v41 = vmul.f32 %v11740_v50, %v3330_v49  ;;  %v11788_v25 = vadd.f32 %v12889_v22, %v12888_v60  ;;  %v4599_v55 = vsub.f32 1.0, %v4482_v24 }
 0x552   : > { %6545 = vmatpush1.bf16.msra.mxu1 %v12887_v15  ;;  %v2988_v62 = vmul.f32 1.0614054, %v11780_v58  ;;  %v2655_v54 = vadd.f32 1.0, %v2538_v52  ;;  %v12892_v14 = vpack.c.bf16 %v12890_v43, %v12891_v56  ;;  %v11796_v38 = vadd.f32 %v12894_v6, %v12893_v40 }
 0x553   : > { %v11803_v20 = vsel %vm4786_vm12, %v4669_v47, %v11730_v61  ;;  %v3789_v49 = vadd.f32 0.2548296, %v3672_v45  ;;  %v3564_v35 = vadd.f32 -0.28449672, %v3447_v41  ;;  %v4346_v24 = vmul.f32 1.442695, %v4158_v0  ;;  %v7141_v17 = vpop.eup %7140 }
 0x554   : > { %6565 = vmatpush1.bf16.msra.mxu0 %v12892_v14  ;;  %vm4725_vm0 = vcmp.ge.f32.partialorder %v11615_v16, 0.0  ;;  %v3105_v52 = vadd.f32 -1.4531521, %v2988_v62  ;;  %v4167_v15 = vsub.f32 0.0, %v4050_v4  ;;  %7146 = vrcp.f32 %v2655_v54  ;;  %v12895_v4 = vld [vmem:[#allocation90_spill] sm:$0xff]  ;;  %v12896_v45 = vld [vmem:[#allocation64_spill] sm:$0xff] }
 0x555   : > { %v4833_v60 = vsub.f32 0.0, %v4599_v55  ;;  %v3906_v22 = vmul.f32 %v11715_v59, %v3789_v49  ;;  %v3681_v43 = vmul.f32 %v11740_v50, %v3564_v35  ;;  %v11809_v26 = vmul.f32 0.70710677, %v11788_v25  ;;  %v11811_v19 = vpop.eup %7142  ;;  %v12897_v35 = vld [vmem:[#allocation37_spill] sm:$0xff]  ;;  %v11857_v16 = vld [vmem:[%s12319_s5] sm:$0xff] }
 0x556   : > { %v5021_v47 = vsel %vm4787_vm14, %v4670_v7, %v4904_v53  ;;  %v3222_v61 = vmul.f32 %v11780_v58, %v3105_v52  ;;  %v11819_v0 = vmul.f32 0.70710677, %v11796_v38  ;;  %v6546_v59 = vpack.c.bf16 %v12896_v45, %v12895_v4  ;;  %v7145_v41 = vpop.eup %7144 }
 0x557   : > { %v4491_v62 = vmul.f32 %v7141_v17, %v3906_v22  ;;  %v3798_v54 = vadd.f32 0.2548296, %v3681_v43  ;;  %7148 = vpow2.f32 %v4346_v24  ;;  %v2997_v56 = vmul.f32 1.0614054, %v11811_v19  ;;  %v12898_v17 = vld [vmem:[#allocation79_spill] sm:$0xff] }
 0x558   : > { %v3339_v14 = vadd.f32 1.4214138, %v3222_v61  ;;  %v4364_v40 = vmul.f32 1.442695, %v4167_v15  ;;  %v4059_v36 = vmul.f32 %v2421_v2, %v2421_v2  ;;  %v11825_v1 = vand.u32 2147483647, %v11809_v26  ;;  %6547 = vmatprep.subr.bf16.mxu1 %v6546_v59 }
 0x559   : > { %v4950_v7 = vsel %vm4716_vm15, %v4599_v55, %v4833_v60  ;;  %v4608_v53 = vsub.f32 1.0, %v4491_v62  ;;  %v3915_v6 = vmul.f32 %v11740_v50, %v3798_v54  ;;  %v3114_v49 = vadd.f32 -1.4531521, %v2997_v56  ;;  %v12900_v60 = vld [vmem:[#allocation70_spill] sm:$0xff]  ;;  %v12901_v43 = vld [vmem:[#allocation47_spill] sm:$0xff] }
 0x55a   : > { %v12899_v52 = vpack.c.bf16 %v12897_v35, %v12898_v17  ;;  %v5138_v24 = vadd.f32 1.0, %v5021_v47  ;;  %v3456_v22 = vmul.f32 %v11780_v58, %v3339_v14  ;;  %v2547_v2 = vmul.f32 0.3275911, %v11825_v1 }
 0x55b   : > { %v11836_v15 = vand.u32 2147483647, %v11819_v0  ;;  %v4842_v9 = vsub.f32 0.0, %v4608_v53  ;;  %v4500_v55 = vmul.f32 %v7145_v41, %v3915_v6  ;;  %v3231_v50 = vmul.f32 %v11811_v19, %v3114_v49  ;;  %v12902_v6 = vld [vmem:[#allocation18_spill] sm:$0xff]  ;;  %v12903_v49 = vld [vmem:[#allocation32_spill] sm:$0xff] }
 0x55c   : > { %6549 = vmatpush1.bf16.msra.mxu1 %v12899_v52  ;;  %v6566_v61 = vpack.c.bf16 %v12901_v43, %v12900_v60  ;;  %v5067_v4 = vadd.f32 1.0, %v4950_v7  ;;  %v3573_v45 = vadd.f32 -0.28449672, %v3456_v22  ;;  %v2664_v47 = vadd.f32 1.0, %v2547_v2 }
 0x55d   : > { %6262 = vmatprep.subr.msk.mxu1 %vm5328_vm6, %v11560_v31  ;;  %v2556_v59 = vmul.f32 0.3275911, %v11836_v15  ;;  %v4959_v62 = vsel %vm4725_vm0, %v4608_v53, %v4842_v9  ;;  %v3348_v54 = vadd.f32 1.4214138, %v3231_v50  ;;  %7150 = vpow2.f32 %v4364_v40 }
 0x55e   : > { %v4176_v56 = vsub.f32 0.0, %v4059_v36  ;;  %6567 = vmatprep.subr.bf16.mxu0 %v6566_v61  ;;  %v11848_v31 = vpop.eup %7146  ;;  %v5076_v41 = vadd.f32 1.0, %v4959_v62  ;;  %v4617_v14 = vsub.f32 1.0, %v4500_v55  ;;  %v3690_v7 = vmul.f32 %v11780_v58, %v3573_v45 }
 0x55f   : > { %7152 = vrcp.f32 %v2664_v47  ;;  %v12904_v35 = vpack.c.bf16 %v12902_v6, %v12903_v49  ;;  %v3465_v36 = vmul.f32 %v11811_v19, %v3348_v54  ;;  %v3006_v53 = vmul.f32 1.0614054, %v11848_v31 }
 0x560   : > { %6263 = vmatpush1.msk.msra.mxu1 %vm5328_vm6, %v11528_v46  ;;  %v12905_v46 = vld [vmem:[#allocation26_spill] sm:$0xff]  ;;  %v2673_v17 = vadd.f32 1.0, %v2556_v59  ;;  %v12906_v52 = vmov 0.0|0.0   ;;  %v5137_v22 = vadd.f32 1.0, %v11803_v20  ;;  %v5184_v2 = vmul.f32 %v5067_v4, %v11679_v3  ;;  %v12908_v4 = vld [vmem:[#allocation88_spill] sm:$0xff] }
 0x561   : > { %6569 = vmatpush1.bf16.msra.mxu0 %v12904_v35  ;;  %6264 = vmatmul.mubr.msk.f32.vlgmr.msra.gmra.mrb[82].mxu1 %vm5306_vm13, %v11857_v16  ;;  %v5246_v40 = vmul.f32 %v11682_v57, %v12905_v46  ;;  %v5193_v9 = vmul.f32 %v5076_v41, %v11710_v18  ;;  %v3807_v55 = vadd.f32 0.2548296, %v3690_v7  ;;  %v7149_v57 = vpop.eup %7148  ;;  %v3582_v50 = vadd.f32 -0.28449672, %v3465_v36  ;;  %v11879_v18 = vld [vmem:[%s12319_s5 + $0x8] sm:$0xff] }
 0x562   : > { %5640 = vmatprep.mubr.f32.mxu1 %v12793_v12  ;;  %6574 = vmatprep.subr.bf16.mxu1 %v12906_v52  ;;  %v3123_v60 = vadd.f32 -1.4531521, %v3006_v53  ;;  %v4382_v43 = vmul.f32 1.442695, %v4176_v56  ;;  %7154 = vrcp.f32 %v2673_v17  ;;  %v5255_v61 = vmul.f32 %v5138_v24, %v11571_v44 }
 0x563   : > { %6576 = vmatpush3.bf16.msra.mxu1 %v6575_v33  ;;  %v6581_v45 = vpack.c.bf16 %v5193_v9, %v5184_v2  ;;  %v4851_v20 = vsub.f32 0.0, %v4617_v14  ;;  %v3924_v3 = vmul.f32 %v11780_v58, %v3807_v55  ;;  %v3699_v39 = vmul.f32 %v11811_v19, %v3582_v50  ;;  %v12907_v33 = vld [vmem:[#allocation69_spill] sm:$0xff]  ;;  %v12909_v58 = vld [vmem:[#allocation59_spill] sm:$0xff] }
 0x564   : > { %6577 = vmatprep.subr.bf16.mxu1 %v12906_v52  ;;  %v3240_v10 = vmul.f32 %v11848_v31, %v3123_v60  ;;  %v11887_v47 = vadd.f32 %v12908_v4, %v12907_v33  ;;  %v6570_v44 = vpack.c.bf16 %v5246_v40, %v11598_v23  ;;  %v2212_v24 = vmul.f32 0.5, %v12909_v58 }
 0x565   : > { %6265 = vmatmul.mubr.msk.f32.gmra.mrb[84].mxu1 %vm5306_vm13, %v11879_v18  ;;  %v4509_v59 = vmul.f32 %v7149_v57, %v3924_v3  ;;  %v4068_v62 = vmul.f32 %v11825_v1, %v11825_v1  ;;  %vm4734_vm1 = vcmp.ge.f32.partialorder %v11638_v32, 0.0  ;;  %v3816_v54 = vadd.f32 0.2548296, %v3699_v39  ;;  %v11910_v32 = vld [vmem:[%s12319_s5 + $0x10] sm:$0xff]  ;;  %v11946_v39 = vld [vmem:[%s12319_s5 + $0x20] sm:$0xff] }
 0x566   : > { %5646 = vmatprep.mubr.f32.mxu1 %v12793_v12  ;;  %v3357_v56 = vadd.f32 1.4214138, %v3240_v10  ;;  %7156 = vpow2.f32 %v4382_v43  ;;  %6571 = vmatprep.subr.bf16.mxu0 %v6570_v44  ;;  %v4968_v23 = vsel %vm4734_vm1, %v4617_v14, %v4851_v20  ;;  %v4077_v7 = vmul.f32 %v11836_v15, %v11836_v15 }
 0x567   : > { %6579 = vmatpush3.bf16.msra.mxu1 %v6578_v48  ;;  %v4626_v41 = vsub.f32 1.0, %v4509_v59  ;;  %v11902_v6 = vmul.f32 0.70710677, %v11887_v47  ;;  %6573 = vmatpush1.bf16.msra.mxu0 %v6572_v51  ;;  %v7151_v27 = vpop.eup %7150  ;;  %v5254_v21 = vmul.f32 %v5137_v22, %v2212_v24  ;;  %v2160_v48 = vmul.f32 0.5, %v11626_v34 }
 0x568   : > { %6580 = vmatprep.subr.bf16.mxu1 %v12906_v52  ;;  %v3933_v1 = vmul.f32 %v11811_v19, %v3816_v54  ;;  %v3474_v15 = vmul.f32 %v11848_v31, %v3357_v56  ;;  %6271 = vmatprep.subr.msk.mxu0 %vm5328_vm6, %v5255_v61  ;;  %vm4743_vm2 = vcmp.ge.f32.partialorder %v11689_v42, 0.0  ;;  %v4185_v51 = vsub.f32 0.0, %v4068_v62  ;;  %v11930_v42 = vld [vmem:[%s12319_s5 + $0x18] sm:$0xff] }
 0x569   : > { %6266 = vmatmul.mubr.msk.f32.gmra.mrb[86].mxu1 %vm5306_vm13, %v11910_v32  ;;  %v11919_v63 = vpop.eup %7152  ;;  %v4860_v29 = vsub.f32 0.0, %v4626_v41  ;;  %v2448_v14 = vand.u32 2147483647, %v11902_v6  ;;  %v5085_v49 = vadd.f32 1.0, %v4968_v23  ;;  %v2169_v46 = vmul.f32 0.5, %v11666_v11 }
 0x56a   : > { %5652 = vmatprep.mubr.f32.mxu1 %v12793_v12  ;;  %v4518_v35 = vmul.f32 %v7151_v27, %v3933_v1  ;;  %v3591_v34 = vadd.f32 -0.28449672, %v3474_v15  ;;  %v3015_v19 = vmul.f32 1.0614054, %v11919_v63  ;;  %v4194_v36 = vsub.f32 0.0, %v4077_v7 }
 0x56b   : > { %6582 = vmatpush3.bf16.msra.mxu1 %v6581_v45  ;;  %v4977_v40 = vsel %vm4743_vm2, %v4626_v41, %v4860_v29  ;;  %v2565_v53 = vmul.f32 0.3275911, %v2448_v14  ;;  %6272 = vmatpush1.msk.msra.mxu0 %vm5328_vm6, %v5254_v21  ;;  %v4400_v55 = vmul.f32 1.442695, %v4185_v51  ;;  %v5202_v60 = vmul.f32 %v5085_v49, %v2160_v48 }
 0x56c   : > { %6583 = vmatprep.subr.bf16.mxu1 %v12906_v52  ;;  %v11934_v17 = vpop.eup %7154  ;;  %v5094_v22 = vadd.f32 1.0, %v4977_v40  ;;  %v4635_v2 = vsub.f32 1.0, %v4518_v35  ;;  %v3708_v9 = vmul.f32 %v11848_v31, %v3591_v34  ;;  %v3132_v11 = vadd.f32 -1.4531521, %v3015_v19  ;;  %6273 = vmatmul.mubr.msk.f32.vlgmr.msra.gmra.mrb[94].mxu0 %vm5306_vm13, %v11857_v16 }
 0x56d   : > { %6267 = vmatmul.mubr.msk.f32.gmra.mrb[88].mxu1 %vm5306_vm13, %v11930_v42  ;;  %v3024_v57 = vmul.f32 1.0614054, %v11934_v17  ;;  %v2682_v50 = vadd.f32 1.0, %v2565_v53  ;;  %5747 = vmatprep.mubr.f32.mxu0 %v12793_v12  ;;  %v4418_v3 = vmul.f32 1.442695, %v4194_v36  ;;  %vm4752_vm3 = vcmp.ge.f32.partialorder %v11720_v28, 0.0 }
 0x56e   : > { %5658 = vmatprep.mubr.f32.mxu1 %v12793_v12  ;;  %v5211_v43 = vmul.f32 %v5094_v22, %v2169_v46  ;;  %v3825_v61 = vadd.f32 0.2548296, %v3708_v9  ;;  %v3249_v45 = vmul.f32 %v11919_v63, %v3132_v11  ;;  %v4869_v4 = vsub.f32 0.0, %v4635_v2 }
 0x56f   : > { %v3141_v20 = vadd.f32 -1.4531521, %v3024_v57  ;;  %7158 = vrcp.f32 %v2682_v50  ;;  %v4086_v7 = vmul.f32 %v2448_v14, %v2448_v14  ;;  %vm4761_vm4 = vcmp.ge.f32.partialorder %v11757_v5, 0.0  ;;  %v7171_v50 = vld [vmem:[%s12319_s5 + $0x28] sm:$0xff] }
 0x570   : > { %v7157_v10 = vpop.eup %7156  ;;  %v6584_v33 = vpack.c.bf16 %v5211_v43, %v5202_v60  ;;  %v3942_v44 = vmul.f32 %v11848_v31, %v3825_v61  ;;  %v3366_v58 = vadd.f32 1.4214138, %v3249_v45  ;;  %6274 = vmatmul.mubr.msk.f32.gmra.mrb[96].mxu0 %vm5306_vm13, %v11879_v18  ;;  %7160 = vpow2.f32 %v4400_v55 }
 0x571   : > { %6268 = vmatmul.mubr.msk.f32.gmra.mrb[90].mxu1 %vm5306_vm13, %v11946_v39  ;;  %v3258_v24 = vmul.f32 %v11934_v17, %v3141_v20  ;;  %5753 = vmatprep.mubr.f32.mxu0 %v12793_v12  ;;  %v4986_v31 = vsel %vm4752_vm3, %v4635_v2, %v4869_v4  ;;  %7162 = vpow2.f32 %v4418_v3  ;;  %v2178_v48 = vmul.f32 0.5, %v11704_v13  ;;  %v7172_v3 = vld [vmem:[%s12319_s5 + $0x30] sm:$0x1] }
 0x572   : > { %5664 = vmatprep.mubr.f32.mxu1 %v12793_v12  ;;  %v4527_v59 = vmul.f32 %v7157_v10, %v3942_v44  ;;  %v3483_v62 = vmul.f32 %v11919_v63, %v3366_v58  ;;  %6585 = vmatpush3.bf16.msra.mxu1 %v6584_v33  ;;  %v2187_v51 = vmul.f32 0.5, %v11745_v37  ;;  %v4203_v49 = vsub.f32 0.0, %v4086_v7 }
 0x573   : > { %v3375_v54 = vadd.f32 1.4214138, %v3258_v24  ;;  %6586 = vmatprep.subr.bf16.mxu1 %v12906_v52  ;;  %vm4770_vm5 = vcmp.ge.f32.partialorder %v11809_v26, 0.0  ;;  %vm4779_vm8 = vcmp.ge.f32.partialorder %v11819_v0, 0.0  ;;  %v2196_v26 = vmul.f32 0.5, %v11788_v25 }
 0x574   : > { %v4644_v56 = vsub.f32 1.0, %v4527_v59  ;;  %v3600_v23 = vadd.f32 -0.28449672, %v3483_v62  ;;  %6275 = vmatmul.mubr.msk.f32.gmra.mrb[98].mxu0 %vm5306_vm13, %v11910_v32  ;;  %v4436_v22 = vmul.f32 1.442695, %v4203_v49  ;;  %v2205_v10 = vmul.f32 0.5, %v11796_v38 }
 0x575   : > { %6269 = vmatmul.mubr.msk.f32.gmra.mrb[92].mxu1 %vm5306_vm13, %v11431_v30  ;;  %v3492_v41 = vmul.f32 %v11934_v17, %v3375_v54  ;;  %5759 = vmatprep.mubr.f32.mxu0 %v12793_v12  ;;  %v5103_v30 = vadd.f32 1.0, %v4986_v31  ;;  %vm4788_vm9 = vcmp.ge.f32.partialorder %v11902_v6, 0.0  ;;  %v2214_v25 = vmul.f32 0.5, %v11887_v47 }
 0x576   : > { %5670 = vmatprep.mubr.f32.mxu1 %v12793_v12  ;;  %v4878_v28 = vsub.f32 0.0, %v4644_v56  ;;  %v3717_v27 = vmul.f32 %v11919_v63, %v3600_v23  ;;  %7164 = vpow2.f32 %v4436_v22 }
 0x577   : > { %v3609_v21 = vadd.f32 -0.28449672, %v3492_v41  ;;  %v5220_v34 = vmul.f32 %v5103_v30, %v2178_v48 }
 0x578   : > { %v4995_v1 = vsel %vm4761_vm4, %v4644_v56, %v4878_v28  ;;  %v3834_v15 = vadd.f32 0.2548296, %v3717_v27  ;;  %6276 = vmatmul.mubr.msk.f32.gmra.mrb[100].mxu0 %vm5306_vm13, %v11930_v42 }
 0x579   : > { %6270 = vmatmul.mubr.msk.f32.gmra.mrb[94].mxu1 %vm5306_vm13, %v12878_v8  ;;  %v7159_v29 = vpop.eup %7158  ;;  %v5112_v14 = vadd.f32 1.0, %v4995_v1  ;;  %v3726_v5 = vmul.f32 %v11934_v17, %v3609_v21  ;;  %5765 = vmatprep.mubr.f32.mxu0 %v12793_v12 }
 0x57a   : > { %6408 = vmatprep.mubr.msk.f32.mxu1 %vm7201_vm7, %v12793_v12  ;;  %v3951_v8 = vmul.f32 %v11919_v63, %v3834_v15  ;;  %v3033_v13 = vmul.f32 1.0614054, %v7159_v29  ;;  %v7161_v35 = vpop.eup %7160 }
 0x57b   : > { %v5229_v19 = vmul.f32 %v5112_v14, %v2187_v51  ;;  %v3843_v46 = vadd.f32 0.2548296, %v3726_v5  ;;  %v7163_v2 = vpop.eup %7162 }
 0x57c   : > { %v4536_v40 = vmul.f32 %v7161_v35, %v3951_v8  ;;  %v3150_v36 = vadd.f32 -1.4531521, %v3033_v13  ;;  %6277 = vmatmul.mubr.msk.f32.gmra.mrb[102].mxu0 %vm5306_vm13, %v11946_v39 }
 0x57d   : > { %v6587_v53 = vpack.c.bf16 %v5229_v19, %v5220_v34  ;;  %v3960_v37 = vmul.f32 %v11934_v17, %v3843_v46  ;;  %5771 = vmatprep.mubr.f32.mxu0 %v12793_v12 }
 0x57e   : > { %v4653_v9 = vsub.f32 1.0, %v4536_v40  ;;  %v3267_v11 = vmul.f32 %v7159_v29, %v3150_v36 }
 0x57f   : > { %v4545_v63 = vmul.f32 %v7163_v2, %v3960_v37  ;;  %6588 = vmatpush3.bf16.msra.mxu1 %v6587_v53 }
 0x580   : > { %v4887_v55 = vsub.f32 0.0, %v4653_v9  ;;  %v3384_v57 = vadd.f32 1.4214138, %v3267_v11  ;;  %6278 = vmatmul.mubr.msk.f32.gmra.mrb[104].mxu0 %vm5306_vm13, %v7171_v50  ;;  %6589 = vmatprep.subr.bf16.mxu1 %v12906_v52  ;;  %v7165_v0 = vpop.eup %7164 }
 0x581   : > { %v4662_v17 = vsub.f32 1.0, %v4545_v63  ;;  %5777 = vmatprep.mubr.f32.mxu0 %v12793_v12 }
 0x582   : > { %v5004_v60 = vsel %vm4770_vm5, %v4653_v9, %v4887_v55  ;;  %v3501_v43 = vmul.f32 %v7159_v29, %v3384_v57 }
 0x583   : > { %v4896_v61 = vsub.f32 0.0, %v4662_v17  ;;  %v5121_v45 = vadd.f32 1.0, %v5004_v60 }
 0x584   : > { %v3618_v20 = vadd.f32 -0.28449672, %v3501_v43  ;;  %6279 = vmatmul.mubr.msk.f32.gmra.mrb[106].mxu0 %vm5306_vm13, %v7172_v3 }
 0x585   : > { %v5013_v52 = vsel %vm4779_vm8, %v4662_v17, %v4896_v61  ;;  %v5238_v44 = vmul.f32 %v5121_v45, %v2196_v26 }
 0x586   : > { %v5130_v33 = vadd.f32 1.0, %v5013_v52  ;;  %v3735_v4 = vmul.f32 %v7159_v29, %v3618_v20 }
 0x588   : > { %v5247_v58 = vmul.f32 %v5130_v33, %v2205_v10  ;;  %v3852_v24 = vadd.f32 0.2548296, %v3735_v4 }
 0x58a   : > { %v6590_v59 = vpack.c.bf16 %v5247_v58, %v5238_v44  ;;  %v3969_v62 = vmul.f32 %v7159_v29, %v3852_v24 }
 0x58c   : > { %v4554_v54 = vmul.f32 %v7165_v0, %v3969_v62  ;;  %6591 = vmatpush3.bf16.msra.mxu1 %v6590_v59 }
 0x58d   : > { %6406 = vmatprep.subr.mxu1 %v12793_v12 }
 0x58e   : > { %v4671_v31 = vsub.f32 1.0, %v4554_v54 }
 0x590   : > { %v4905_v56 = vsub.f32 0.0, %v4671_v31 }
 0x592   : > { %v5022_v23 = vsel %vm4788_vm9, %v4671_v31, %v4905_v56 }
 0x593   : > { %v5139_v38 = vadd.f32 1.0, %v5022_v23 }
 0x595   : > { %v5256_v41 = vmul.f32 %v5139_v38, %v2214_v25 }
 0x597   : > { %6407 = vmatpush3.msk.msra.mxu1 %vm5328_vm6, %v5256_v41 }
 0x598   : > { %6409 = vmatmul.mubr.msk.f32.vlgmr.msra.gmra.mrb[96].mxu1 %vm5306_vm13, %v11857_v16  ;;  %v12027_v16 = vpop.permute.xlu1 %5273 }
 0x599   : > { %6411 = vmatprep.mubr.msk.f32.mxu1 %vm7201_vm7, %v12793_v12 }
 0x59c   : > { %6412 = vmatmul.mubr.msk.f32.gmra.mrb[98].mxu1 %vm5306_vm13, %v11879_v18  ;;  %v12040_v27 = vpop.permute.xlu1 %5283 }
 0x59d   : > { %6414 = vmatprep.mubr.msk.f32.mxu1 %vm7201_vm7, %v12793_v12 }
 0x5a0   : > { %6415 = vmatmul.mubr.msk.f32.gmra.mrb[100].mxu1 %vm5306_vm13, %v11910_v32  ;;  %v12052_v49 = vpop.permute.xlu1 %5293 }
 0x5a1   : > { %6417 = vmatprep.mubr.msk.f32.mxu1 %vm7201_vm7, %v12793_v12 }
 0x5a4   : > { %6418 = vmatmul.mubr.msk.f32.gmra.mrb[102].mxu1 %vm5306_vm13, %v11930_v42  ;;  %v12064_v37 = vpop.permute.xlu1 %5303 }
 0x5a5   : > { %6420 = vmatprep.mubr.msk.f32.mxu1 %vm7201_vm7, %v12793_v12 }
 0x5a8   : > { %6421 = vmatmul.mubr.msk.f32.gmra.mrb[104].mxu1 %vm5306_vm13, %v11946_v39 }
 0x5a9   : > { %6423 = vmatprep.mubr.msk.f32.mxu1 %vm7201_vm7, %v12793_v12 }
 0x5ac   : > { %6424 = vmatmul.mubr.msk.f32.gmra.mrb[106].mxu1 %vm5306_vm13, %v7171_v50 }
 0x5ad   : > { %6426 = vmatprep.mubr.msk.f32.mxu1 %vm7201_vm7, %v12793_v12  ;;  %v12035_v12 = vpop.permute.xlu0 %5278 }
 0x5b0   : > { %6427 = vmatmul.mubr.msk.f32.gmra.mrb[108].mxu1 %vm5306_vm13, %v7172_v3 }
 0x5b1   : > { %v12046_v15 = vpop.permute.xlu0 %5288 }
 0x5b5   : > { %v12058_v19 = vpop.permute.xlu0 %5298 }
 0x5c9   : > { %v5422_v18 = vpop.f32.mrb[66].mxu0 }
 0x5ca   : > { %v5423_v47 = vadd.f32 %v5422_v18, %v12027_v16  ;;  %v5424_v6 = vpop.f32.mrb[67].mxu0 }
 0x5cb   : > { %v5425_v32 = vadd.f32 %v5424_v6, %v12027_v16 }
 0x5cc   : > { %5884 = vst [vmem:[%s12031_s18] sm:$0xff] %v5423_v47 }
 0x5cd   : > { %5885 = vst [vmem:[%s12031_s18 + $0x8] sm:$0xff] %v5425_v32  ;;  %v5428_v42 = vpop.f32.mrb[68].mxu0 }
 0x5ce   : > { %v5429_v39 = vadd.f32 %v5428_v42, %v12035_v12  ;;  %v5430_v7 = vpop.f32.mrb[69].mxu0 }
 0x5cf   : > { %v5431_v28 = vadd.f32 %v5430_v7, %v12035_v12 }
 0x5d0   : > { %5893 = vst [vmem:[%s12031_s18 + $0x48] sm:$0xff] %v5429_v39 }
 0x5d1   : > { %5894 = vst [vmem:[%s12031_s18 + $0x50] sm:$0xff] %v5431_v28  ;;  %v5434_v30 = vpop.f32.mrb[70].mxu0 }
 0x5d2   : > { %v5435_v21 = vadd.f32 %v5434_v30, %v12040_v27  ;;  %v5436_v48 = vpop.f32.mrb[71].mxu0 }
 0x5d3   : > { %v5437_v1 = vadd.f32 %v5436_v48, %v12040_v27 }
 0x5d4   : > { %5902 = vst [vmem:[%s12031_s18 + $0x90] sm:$0xff] %v5435_v21 }
 0x5d5   : > { %5903 = vst [vmem:[%s12031_s18 + $0x98] sm:$0xff] %v5437_v1  ;;  %v5440_v29 = vpop.f32.mrb[72].mxu0 }
 0x5d6   : > { %v5441_v51 = vadd.f32 %v5440_v29, %v12046_v15  ;;  %v5442_v14 = vpop.f32.mrb[73].mxu0 }
 0x5d7   : > { %v5443_v5 = vadd.f32 %v5442_v14, %v12046_v15 }
 0x5d8   : > { %5911 = vst [vmem:[%s12031_s18 + $0xd8] sm:$0xff] %v5441_v51 }
 0x5d9   : > { %5912 = vst [vmem:[%s12031_s18 + $0xe0] sm:$0xff] %v5443_v5  ;;  %v5446_v8 = vpop.f32.mrb[74].mxu0 }
 0x5da   : > { %v5447_v13 = vadd.f32 %v5446_v8, %v12052_v49  ;;  %v5448_v35 = vpop.f32.mrb[75].mxu0 }
 0x5db   : > { %v5449_v34 = vadd.f32 %v5448_v35, %v12052_v49 }
 0x5dc   : > { %5920 = vst [vmem:[%s12031_s18 + $0x120] sm:$0xff] %v5447_v13 }
 0x5dd   : > { %5921 = vst [vmem:[%s12031_s18 + $0x128] sm:$0xff] %v5449_v34  ;;  %v5452_v46 = vpop.f32.mrb[76].mxu0 }
 0x5de   : > { %v5453_v40 = vadd.f32 %v5452_v46, %v12058_v19  ;;  %v5454_v36 = vpop.f32.mrb[77].mxu0 }
 0x5df   : > { %v5455_v53 = vadd.f32 %v5454_v36, %v12058_v19 }
 0x5e0   : > { %5929 = vst [vmem:[%s12031_s18 + $0x168] sm:$0xff] %v5453_v40 }
 0x5e1   : > { %5930 = vst [vmem:[%s12031_s18 + $0x170] sm:$0xff] %v5455_v53 }
 0x5e2   : > { %v5458_v22 = vpop.f32.mrb[78].mxu0 }
 0x5e3   : > { %v5459_v2 = vadd.f32 %v5458_v22, %v12064_v37  ;;  %v5460_v9 = vpop.f32.mrb[79].mxu0 }
 0x5e4   : > { %v5461_v11 = vadd.f32 %v5460_v9, %v12064_v37 }
 0x5e5   : > { %5938 = vst [vmem:[%s12031_s18 + $0x1b0] sm:$0x1] %v5459_v2 }
 0x5e6   : > { %5939 = vst [vmem:[%s12031_s18 + $0x1b8] sm:$0x1] %v5461_v11 }
 0x602   : > { %v5529_v63 = vpop.f32.mrb[80].mxu0 }
 0x603   : > { %v5530_v55 = vadd.f32 %v5529_v63, %v12027_v16  ;;  %v5531_v57 = vpop.f32.mrb[81].mxu0 }
 0x604   : > { %v5532_v50 = vadd.f32 %v5531_v57, %v12027_v16 }
 0x605   : > { %5886 = vst [vmem:[%s12031_s18 + $0x10] sm:$0xff] %v5530_v55 }
 0x606   : > { %5887 = vst [vmem:[%s12031_s18 + $0x18] sm:$0xff] %v5532_v50  ;;  %v5535_v17 = vpop.f32.mrb[82].mxu0 }
 0x607   : > { %v5536_v60 = vadd.f32 %v5535_v17, %v12035_v12  ;;  %v5537_v43 = vpop.f32.mrb[83].mxu0 }
 0x608   : > { %v5538_v61 = vadd.f32 %v5537_v43, %v12035_v12 }
 0x609   : > { %5895 = vst [vmem:[%s12031_s18 + $0x58] sm:$0xff] %v5536_v60 }
 0x60a   : > { %5896 = vst [vmem:[%s12031_s18 + $0x60] sm:$0xff] %v5538_v61  ;;  %v5541_v45 = vpop.f32.mrb[84].mxu0 }
 0x60b   : > { %v5542_v20 = vadd.f32 %v5541_v45, %v12040_v27  ;;  %v5543_v3 = vpop.f32.mrb[85].mxu0 }
 0x60c   : > { %v5544_v52 = vadd.f32 %v5543_v3, %v12040_v27 }
 0x60d   : > { %5904 = vst [vmem:[%s12031_s18 + $0xa0] sm:$0xff] %v5542_v20 }
 0x60e   : > { %5905 = vst [vmem:[%s12031_s18 + $0xa8] sm:$0xff] %v5544_v52  ;;  %v5547_v26 = vpop.f32.mrb[86].mxu0 }
 0x60f   : > { %v5548_v10 = vadd.f32 %v5547_v26, %v12046_v15  ;;  %v5549_v33 = vpop.f32.mrb[87].mxu0 }
 0x610   : > { %v5550_v4 = vadd.f32 %v5549_v33, %v12046_v15 }
 0x611   : > { %5913 = vst [vmem:[%s12031_s18 + $0xe8] sm:$0xff] %v5548_v10 }
 0x612   : > { %5914 = vst [vmem:[%s12031_s18 + $0xf0] sm:$0xff] %v5550_v4  ;;  %v5553_v44 = vpop.f32.mrb[88].mxu0 }
 0x613   : > { %v5554_v58 = vadd.f32 %v5553_v44, %v12052_v49  ;;  %v5555_v24 = vpop.f32.mrb[89].mxu0 }
 0x614   : > { %v5556_v59 = vadd.f32 %v5555_v24, %v12052_v49 }
 0x615   : > { %5922 = vst [vmem:[%s12031_s18 + $0x130] sm:$0xff] %v5554_v58 }
 0x616   : > { %5923 = vst [vmem:[%s12031_s18 + $0x138] sm:$0xff] %v5556_v59  ;;  %v5559_v62 = vpop.f32.mrb[90].mxu0 }
 0x617   : > { %v5560_v0 = vadd.f32 %v5559_v62, %v12058_v19  ;;  %v5561_v54 = vpop.f32.mrb[91].mxu0 }
 0x618   : > { %v5562_v31 = vadd.f32 %v5561_v54, %v12058_v19 }
 0x619   : > { %5931 = vst [vmem:[%s12031_s18 + $0x178] sm:$0xff] %v5560_v0 }
 0x61a   : > { %5932 = vst [vmem:[%s12031_s18 + $0x180] sm:$0xff] %v5562_v31  ;;  %v5565_v56 = vpop.f32.mrb[92].mxu0 }
 0x61b   : > { %v5566_v23 = vadd.f32 %v5565_v56, %v12064_v37  ;;  %v5567_v25 = vpop.f32.mrb[93].mxu0 }
 0x61c   : > { %v5568_v38 = vadd.f32 %v5567_v25, %v12064_v37 }
 0x61d   : > { %5940 = vst [vmem:[%s12031_s18 + $0x1c0] sm:$0x1] %v5566_v23 }
 0x61e   : > { %5941 = vst [vmem:[%s12031_s18 + $0x1c8] sm:$0x1] %v5568_v38 }
 0x634   : > { %v5636_v41 = vpop.f32.mrb[82].mxu1 }
 0x635   : > { %v5637_v18 = vadd.f32 %v5636_v41, %v12027_v16  ;;  %v5638_v47 = vpop.f32.mrb[83].mxu1 }
 0x636   : > { %v5639_v6 = vadd.f32 %v5638_v47, %v12027_v16 }
 0x637   : > { %5888 = vst [vmem:[%s12031_s18 + $0x20] sm:$0xff] %v5637_v18 }
 0x638   : > { %5889 = vst [vmem:[%s12031_s18 + $0x28] sm:$0xff] %v5639_v6  ;;  %v5642_v32 = vpop.f32.mrb[84].mxu1 }
 0x639   : > { %v5643_v42 = vadd.f32 %v5642_v32, %v12035_v12  ;;  %v5644_v39 = vpop.f32.mrb[85].mxu1 }
 0x63a   : > { %v5645_v7 = vadd.f32 %v5644_v39, %v12035_v12 }
 0x63b   : > { %5897 = vst [vmem:[%s12031_s18 + $0x68] sm:$0xff] %v5643_v42 }
 0x63c   : > { %5898 = vst [vmem:[%s12031_s18 + $0x70] sm:$0xff] %v5645_v7  ;;  %v5648_v28 = vpop.f32.mrb[86].mxu1 }
 0x63d   : > { %v5649_v30 = vadd.f32 %v5648_v28, %v12040_v27  ;;  %v5650_v21 = vpop.f32.mrb[87].mxu1 }
 0x63e   : > { %v5651_v48 = vadd.f32 %v5650_v21, %v12040_v27 }
 0x63f   : > { %5906 = vst [vmem:[%s12031_s18 + $0xb0] sm:$0xff] %v5649_v30  ;;  %v5743_v29 = vpop.f32.mrb[94].mxu0 }
 0x640   : > { %5907 = vst [vmem:[%s12031_s18 + $0xb8] sm:$0xff] %v5651_v48  ;;  %v5654_v1 = vpop.f32.mrb[88].mxu1  ;;  %v5744_v5 = vadd.f32 %v5743_v29, %v12027_v16  ;;  %v5745_v8 = vpop.f32.mrb[95].mxu0 }
 0x641   : > { %v5655_v51 = vadd.f32 %v5654_v1, %v12046_v15  ;;  %v5656_v14 = vpop.f32.mrb[89].mxu1  ;;  %v5746_v35 = vadd.f32 %v5745_v8, %v12027_v16  ;;  %v5977_v8 = vld [vmem:[%s12031_s18 + $0x20] sm:$0xff] (%p7272_p5) }
 0x642   : > { %v5657_v13 = vadd.f32 %v5656_v14, %v12046_v15  ;;  %5890 = vst [vmem:[%s12031_s18 + $0x30] sm:$0xff] %v5744_v5  ;;  %5978 = vst [vmem:[%s12182_s17 + $0x20] sm:$0xff] (%p7272_p5), %v5977_v8 }
 0x643   : > { %5915 = vst [vmem:[%s12031_s18 + $0xf8] sm:$0xff] %v5655_v51  ;;  %5891 = vst [vmem:[%s12031_s18 + $0x38] sm:$0xff] %v5746_v35  ;;  %v5749_v46 = vpop.f32.mrb[96].mxu0 }
 0x644   : > { %5916 = vst [vmem:[%s12031_s18 + $0x100] sm:$0xff] %v5657_v13  ;;  %v5660_v34 = vpop.f32.mrb[90].mxu1  ;;  %v5750_v53 = vadd.f32 %v5749_v46, %v12035_v12  ;;  %v5751_v22 = vpop.f32.mrb[97].mxu0  ;;  %v5979_v13 = vld [vmem:[%s12031_s18 + $0x28] sm:$0xff] (%p7272_p5) }
 0x645   : > { %v5661_v40 = vadd.f32 %v5660_v34, %v12052_v49  ;;  %v5662_v36 = vpop.f32.mrb[91].mxu1  ;;  %v5752_v9 = vadd.f32 %v5751_v22, %v12035_v12  ;;  %5980 = vst [vmem:[%s12182_s17 + $0x28] sm:$0xff] (%p7272_p5), %v5979_v13  ;;  %v5993_v22 = vld [vmem:[%s12031_s18 + $0x60] sm:$0xff] (%p7272_p5) }
 0x646   : > { %v5663_v2 = vadd.f32 %v5662_v36, %v12052_v49  ;;  %5899 = vst [vmem:[%s12031_s18 + $0x78] sm:$0xff] %v5750_v53  ;;  %v5989_v36 = vld [vmem:[%s12031_s18 + $0x50] sm:$0xff] (%p7272_p5)  ;;  %v5991_v53 = vld [vmem:[%s12031_s18 + $0x58] sm:$0xff] (%p7272_p5)  ;;  %5994 = vst [vmem:[%s12182_s17 + $0xa8] sm:$0xff] (%p7272_p5), %v5993_v22 }
 0x647   : > { %5924 = vst [vmem:[%s12031_s18 + $0x140] sm:$0xff] %v5661_v40  ;;  %5900 = vst [vmem:[%s12031_s18 + $0x80] sm:$0xff] %v5752_v9  ;;  %v5755_v63 = vpop.f32.mrb[98].mxu0  ;;  %v5987_v40 = vld [vmem:[%s12031_s18 + $0x48] sm:$0xff] (%p7272_p5)  ;;  %v5997_v9 = vld [vmem:[%s12031_s18 + $0x70] sm:$0xff] (%p7272_p5) }
 0x648   : > { %5925 = vst [vmem:[%s12031_s18 + $0x148] sm:$0xff] %v5663_v2  ;;  %v5666_v11 = vpop.f32.mrb[92].mxu1  ;;  %v5756_v50 = vadd.f32 %v5755_v63, %v12040_v27  ;;  %v5757_v17 = vpop.f32.mrb[99].mxu0  ;;  %5988 = vst [vmem:[%s12182_s17 + $0x90] sm:$0xff] (%p7272_p5), %v5987_v40  ;;  %v5995_v2 = vld [vmem:[%s12031_s18 + $0x68] sm:$0xff] (%p7272_p5) }
 0x649   : > { %v5667_v55 = vadd.f32 %v5666_v11, %v12058_v19  ;;  %v5668_v57 = vpop.f32.mrb[93].mxu1  ;;  %v5758_v43 = vadd.f32 %v5757_v17, %v12040_v27  ;;  %v5981_v35 = vld [vmem:[%s12031_s18 + $0x30] sm:$0xff] (%p7272_p5)  ;;  %5990 = vst [vmem:[%s12182_s17 + $0x98] sm:$0xff] (%p7272_p5), %v5989_v36  ;;  %5992 = vst [vmem:[%s12182_s17 + $0xa0] sm:$0xff] (%p7272_p5), %v5991_v53  ;;  %v6009_v17 = vld [vmem:[%s12031_s18 + $0xa0] sm:$0xff] (%p7272_p5) }
 0x64a   : > { %v5669_v60 = vadd.f32 %v5668_v57, %v12058_v19  ;;  %5908 = vst [vmem:[%s12031_s18 + $0xc0] sm:$0xff] %v5756_v50  ;;  %v5983_v34 = vld [vmem:[%s12031_s18 + $0x38] sm:$0xff] (%p7272_p5)  ;;  %5982 = vst [vmem:[%s12182_s17 + $0x30] sm:$0xff] (%p7272_p5), %v5981_v35  ;;  %v6005_v57 = vld [vmem:[%s12031_s18 + $0x90] sm:$0xff] (%p7272_p5) }
 0x64b   : > { %5933 = vst [vmem:[%s12031_s18 + $0x188] sm:$0xff] %v5667_v55  ;;  %5909 = vst [vmem:[%s12031_s18 + $0xc8] sm:$0xff] %v5758_v43  ;;  %v5761_v45 = vpop.f32.mrb[100].mxu0  ;;  %v6007_v50 = vld [vmem:[%s12031_s18 + $0x98] sm:$0xff] (%p7272_p5)  ;;  %v6013_v43 = vld [vmem:[%s12031_s18 + $0xb0] sm:$0xff] (%p7272_p5) }
 0x64c   : > { %5934 = vst [vmem:[%s12031_s18 + $0x190] sm:$0xff] %v5669_v60  ;;  %v5672_v61 = vpop.f32.mrb[94].mxu1  ;;  %v5762_v52 = vadd.f32 %v5761_v45, %v12046_v15  ;;  %v5763_v26 = vpop.f32.mrb[101].mxu0  ;;  %5984 = vst [vmem:[%s12182_s17 + $0x38] sm:$0xff] (%p7272_p5), %v5983_v34  ;;  %v6011_v60 = vld [vmem:[%s12031_s18 + $0xa8] sm:$0xff] (%p7272_p5) }
 0x64d   : > { %v5673_v20 = vadd.f32 %v5672_v61, %v12064_v37  ;;  %v5674_v3 = vpop.f32.mrb[95].mxu1  ;;  %v5764_v33 = vadd.f32 %v5763_v26, %v12046_v15  ;;  %5996 = vst [vmem:[%s12182_s17 + $0xb0] sm:$0xff] (%p7272_p5), %v5995_v2  ;;  %5998 = vst [vmem:[%s12182_s17 + $0xb8] sm:$0xff] (%p7272_p5), %v5997_v9  ;;  %v5999_v11 = vld [vmem:[%s12031_s18 + $0x78] sm:$0xff] (%p7272_p5)  ;;  %v6025_v26 = vld [vmem:[%s12031_s18 + $0xe0] sm:$0xff] (%p7272_p5) }
 0x64e   : > { %v5675_v10 = vadd.f32 %v5674_v3, %v12064_v37  ;;  %5917 = vst [vmem:[%s12031_s18 + $0x108] sm:$0xff] %v5762_v52  ;;  %v6001_v63 = vld [vmem:[%s12031_s18 + $0x80] sm:$0xff] (%p7272_p5)  ;;  %6000 = vst [vmem:[%s12182_s17 + $0xc0] sm:$0xff] (%p7272_p5), %v5999_v11  ;;  %v6015_v61 = vld [vmem:[%s12031_s18 + $0xb8] sm:$0xff] (%p7272_p5) }
 0x64f   : > { %5942 = vst [vmem:[%s12031_s18 + $0x1d0] sm:$0x1] %v5673_v20  ;;  %5918 = vst [vmem:[%s12031_s18 + $0x110] sm:$0xff] %v5764_v33  ;;  %v5767_v4 = vpop.f32.mrb[102].mxu0  ;;  %v6023_v52 = vld [vmem:[%s12031_s18 + $0xd8] sm:$0xff] (%p7272_p5)  ;;  %v6029_v33 = vld [vmem:[%s12031_s18 + $0xf0] sm:$0xff] (%p7272_p5) }
 0x650   : > { %5943 = vst [vmem:[%s12031_s18 + $0x1d8] sm:$0x1] %v5675_v10  ;;  %v5768_v44 = vadd.f32 %v5767_v4, %v12052_v49  ;;  %v5769_v58 = vpop.f32.mrb[103].mxu0  ;;  %6002 = vst [vmem:[%s12182_s17 + $0xc8] sm:$0xff] (%p7272_p5), %v6001_v63  ;;  %v6027_v10 = vld [vmem:[%s12031_s18 + $0xe8] sm:$0xff] (%p7272_p5)  ;;  %v6031_v4 = vld [vmem:[%s12031_s18 + $0xf8] sm:$0xff] (%p7272_p5) }
 0x651   : > { %v5770_v24 = vadd.f32 %v5769_v58, %v12052_v49  ;;  %6006 = vst [vmem:[%s12182_s17 + $0x120] sm:$0xff] (%p7272_p5), %v6005_v57  ;;  %6008 = vst [vmem:[%s12182_s17 + $0x128] sm:$0xff] (%p7272_p5), %v6007_v50  ;;  %v6017_v45 = vld [vmem:[%s12031_s18 + $0xc0] sm:$0xff] (%p7272_p5) }
 0x652   : > { %5926 = vst [vmem:[%s12031_s18 + $0x150] sm:$0xff] %v5768_v44  ;;  %6010 = vst [vmem:[%s12182_s17 + $0x130] sm:$0xff] (%p7272_p5), %v6009_v17  ;;  %v6019_v20 = vld [vmem:[%s12031_s18 + $0xc8] sm:$0xff] (%p7272_p5)  ;;  %v6033_v44 = vld [vmem:[%s12031_s18 + $0x100] sm:$0xff] (%p7272_p5) }
 0x653   : > { %5927 = vst [vmem:[%s12031_s18 + $0x158] sm:$0xff] %v5770_v24  ;;  %v5773_v59 = vpop.f32.mrb[104].mxu0  ;;  %6012 = vst [vmem:[%s12182_s17 + $0x138] sm:$0xff] (%p7272_p5), %v6011_v60 }
 0x654   : > { %v5774_v62 = vadd.f32 %v5773_v59, %v12058_v19  ;;  %v5775_v0 = vpop.f32.mrb[105].mxu0  ;;  %6014 = vst [vmem:[%s12182_s17 + $0x140] sm:$0xff] (%p7272_p5), %v6013_v43  ;;  %6016 = vst [vmem:[%s12182_s17 + $0x148] sm:$0xff] (%p7272_p5), %v6015_v61 }
 0x655   : > { %v5776_v54 = vadd.f32 %v5775_v0, %v12058_v19  ;;  %6018 = vst [vmem:[%s12182_s17 + $0x150] sm:$0xff] (%p7272_p5), %v6017_v45  ;;  %6020 = vst [vmem:[%s12182_s17 + $0x158] sm:$0xff] (%p7272_p5), %v6019_v20  ;;  %v6035_v58 = vld [vmem:[%s12031_s18 + $0x108] sm:$0xff] (%p7272_p5) }
 0x656   : > { %5935 = vst [vmem:[%s12031_s18 + $0x198] sm:$0xff] %v5774_v62  ;;  %6024 = vst [vmem:[%s12182_s17 + $0x1b0] sm:$0xff] (%p7272_p5), %v6023_v52  ;;  %v6037_v24 = vld [vmem:[%s12031_s18 + $0x110] sm:$0xff] (%p7272_p5)  ;;  %v6041_v62 = vld [vmem:[%s12031_s18 + $0x120] sm:$0xff] (%p7272_p5) }
 0x657   : > { %5936 = vst [vmem:[%s12031_s18 + $0x1a0] sm:$0xff] %v5776_v54  ;;  %v5779_v31 = vpop.f32.mrb[106].mxu0  ;;  %6026 = vst [vmem:[%s12182_s17 + $0x1b8] sm:$0xff] (%p7272_p5), %v6025_v26  ;;  %v6043_v0 = vld [vmem:[%s12031_s18 + $0x128] sm:$0xff] (%p7272_p5)  ;;  %v6045_v54 = vld [vmem:[%s12031_s18 + $0x130] sm:$0xff] (%p7272_p5) }
 0x658   : > { %v5780_v56 = vadd.f32 %v5779_v31, %v12064_v37  ;;  %v5781_v23 = vpop.f32.mrb[107].mxu0  ;;  %6028 = vst [vmem:[%s12182_s17 + $0x1c0] sm:$0xff] (%p7272_p5), %v6027_v10  ;;  %6030 = vst [vmem:[%s12182_s17 + $0x1c8] sm:$0xff] (%p7272_p5), %v6029_v33  ;;  %v6047_v31 = vld [vmem:[%s12031_s18 + $0x138] sm:$0xff] (%p7272_p5) }
 0x659   : > { %v5782_v25 = vadd.f32 %v5781_v23, %v12064_v37  ;;  %6032 = vst [vmem:[%s12182_s17 + $0x1d0] sm:$0xff] (%p7272_p5), %v6031_v4  ;;  %6034 = vst [vmem:[%s12182_s17 + $0x1d8] sm:$0xff] (%p7272_p5), %v6033_v44  ;;  %v6051_v23 = vld [vmem:[%s12031_s18 + $0x148] sm:$0xff] (%p7272_p5) }
 0x65a   : > { %5944 = vst [vmem:[%s12031_s18 + $0x1e0] sm:$0x1] %v5780_v56  ;;  %6036 = vst [vmem:[%s12182_s17 + $0x1e0] sm:$0xff] (%p7272_p5), %v6035_v58  ;;  %v6049_v56 = vld [vmem:[%s12031_s18 + $0x140] sm:$0xff] (%p7272_p5) }
 0x65b   : > { %5945 = vst [vmem:[%s12031_s18 + $0x1e8] sm:$0x1] %v5782_v25  ;;  %6038 = vst [vmem:[%s12182_s17 + $0x1e8] sm:$0xff] (%p7272_p5), %v6037_v24  ;;  %v6053_v25 = vld [vmem:[%s12031_s18 + $0x150] sm:$0xff] (%p7272_p5) }
 0x65c   : > { %6042 = vst [vmem:[%s12182_s17 + $0x240] sm:$0xff] (%p7272_p5), %v6041_v62  ;;  %6044 = vst [vmem:[%s12182_s17 + $0x248] sm:$0xff] (%p7272_p5), %v6043_v0 }
 0x65d   : > { %6046 = vst [vmem:[%s12182_s17 + $0x250] sm:$0xff] (%p7272_p5), %v6045_v54  ;;  %6048 = vst [vmem:[%s12182_s17 + $0x258] sm:$0xff] (%p7272_p5), %v6047_v31 }
 0x65e   : > { %6050 = vst [vmem:[%s12182_s17 + $0x260] sm:$0xff] (%p7272_p5), %v6049_v56  ;;  %6052 = vst [vmem:[%s12182_s17 + $0x268] sm:$0xff] (%p7272_p5), %v6051_v23 }
 0x65f   : > { %6054 = vst [vmem:[%s12182_s17 + $0x270] sm:$0xff] (%p7272_p5), %v6053_v25 }
 0x66b   : > { %v5850_v38 = vpop.f32.mrb[96].mxu1 }
 0x66c   : > { %v5851_v41 = vadd.f32 %v5850_v38, %v12027_v16  ;;  %v6410_v18 = vpop.f32.mrb[97].mxu1  ;;  %v6055_v38 = vld [vmem:[%s12031_s18 + $0x158] sm:$0xff] (%p7272_p5) }
 0x66d   : > { %6056 = vst [vmem:[%s12182_s17 + $0x278] sm:$0xff] (%p7272_p5), %v6055_v38  ;;  %v6059_v18 = vld [vmem:[%s12031_s18 + $0x168] sm:$0xff] (%p7272_p5) }
 0x66e   : > { %5892 = vst [vmem:[%s12031_s18 + $0x40] sm:$0xff] %v5851_v41  ;;  %6060 = vst [vmem:[%s12182_s17 + $0x2d0] sm:$0xff] (%p7272_p5), %v6059_v18 }
 0x66f   : > { %v5855_v47 = vpop.f32.mrb[98].mxu1 }
 0x670   : > { %v5856_v6 = vadd.f32 %v5855_v47, %v12035_v12  ;;  %v6413_v32 = vpop.f32.mrb[99].mxu1  ;;  %v6061_v47 = vld [vmem:[%s12031_s18 + $0x170] sm:$0xff] (%p7272_p5) }
 0x671   : > { %6062 = vst [vmem:[%s12182_s17 + $0x2d8] sm:$0xff] (%p7272_p5), %v6061_v47  ;;  %v6065_v32 = vld [vmem:[%s12031_s18 + $0x180] sm:$0xff] (%p7272_p5) }
 0x672   : > { %5901 = vst [vmem:[%s12031_s18 + $0x88] sm:$0xff] %v5856_v6  ;;  %v6063_v6 = vld [vmem:[%s12031_s18 + $0x178] sm:$0xff] (%p7272_p5)  ;;  %6066 = vst [vmem:[%s12182_s17 + $0x2e8] sm:$0xff] (%p7272_p5), %v6065_v32 }
 0x673   : > { %v5860_v42 = vpop.f32.mrb[100].mxu1  ;;  %6064 = vst [vmem:[%s12182_s17 + $0x2e0] sm:$0xff] (%p7272_p5), %v6063_v6 }
 0x674   : > { %v5861_v39 = vadd.f32 %v5860_v42, %v12040_v27  ;;  %v6416_v7 = vpop.f32.mrb[101].mxu1  ;;  %v6067_v42 = vld [vmem:[%s12031_s18 + $0x188] sm:$0xff] (%p7272_p5) }
 0x675   : > { %v5985_v46 = vld [vmem:[%s12031_s18 + $0x40] sm:$0xff] (%p7272_p5)  ;;  %6068 = vst [vmem:[%s12182_s17 + $0x2f0] sm:$0xff] (%p7272_p5), %v6067_v42  ;;  %v6071_v7 = vld [vmem:[%s12031_s18 + $0x198] sm:$0xff] (%p7272_p5) }
 0x676   : > { %5910 = vst [vmem:[%s12031_s18 + $0xd0] sm:$0xff] %v5861_v39  ;;  %5986 = vst [vmem:[%s12182_s17 + $0x40] sm:$0xff] (%p7272_p5), %v5985_v46  ;;  %v6069_v39 = vld [vmem:[%s12031_s18 + $0x190] sm:$0xff] (%p7272_p5) }
 0x677   : > { %v5865_v28 = vpop.f32.mrb[102].mxu1  ;;  %6070 = vst [vmem:[%s12182_s17 + $0x2f8] sm:$0xff] (%p7272_p5), %v6069_v39  ;;  %6072 = vst [vmem:[%s12182_s17 + $0x300] sm:$0xff] (%p7272_p5), %v6071_v7 }
 0x678   : > { %v5866_v30 = vadd.f32 %v5865_v28, %v12046_v15  ;;  %v6419_v21 = vpop.f32.mrb[103].mxu1  ;;  %v5969_v15 = vld [vmem:[%s12031_s18] sm:$0xff] (%p7272_p5) }
 0x679   : > { %5970 = vst [vmem:[%s12182_s17] sm:$0xff] (%p7272_p5), %v5969_v15  ;;  %v6003_v55 = vld [vmem:[%s12031_s18 + $0x88] sm:$0xff] (%p7272_p5)  ;;  %v6073_v28 = vld [vmem:[%s12031_s18 + $0x1a0] sm:$0xff] (%p7272_p5)  ;;  %v6077_v21 = vld [vmem:[%s12031_s18 + $0x1b0] sm:$0xff] (%p7272_p5) }
 0x67a   : > { %5919 = vst [vmem:[%s12031_s18 + $0x118] sm:$0xff] %v5866_v30  ;;  %6004 = vst [vmem:[%s12182_s17 + $0xd0] sm:$0xff] (%p7272_p5), %v6003_v55 }
 0x67b   : > { %v5870_v16 = vpop.f32.mrb[104].mxu1  ;;  %6074 = vst [vmem:[%s12182_s17 + $0x308] sm:$0xff] (%p7272_p5), %v6073_v28  ;;  %6078 = vst [vmem:[%s12182_s17 + $0x360] sm:$0xff] (%p7272_p5), %v6077_v21 }
 0x67c   : > { %v5871_v48 = vadd.f32 %v5870_v16, %v12052_v49  ;;  %v6422_v1 = vpop.f32.mrb[105].mxu1  ;;  %v5971_v49 = vld [vmem:[%s12031_s18 + $0x8] sm:$0xff] (%p7272_p5)  ;;  %v6079_v16 = vld [vmem:[%s12031_s18 + $0x1b8] sm:$0xff] (%p7272_p5) }
 0x67d   : > { %5972 = vst [vmem:[%s12182_s17 + $0x8] sm:$0xff] (%p7272_p5), %v5971_v49  ;;  %v6021_v3 = vld [vmem:[%s12031_s18 + $0xd0] sm:$0xff] (%p7272_p5)  ;;  %6080 = vst [vmem:[%s12182_s17 + $0x368] sm:$0xff] (%p7272_p5), %v6079_v16  ;;  %v6083_v1 = vld [vmem:[%s12031_s18 + $0x1c8] sm:$0xff] (%p7272_p5) }
 0x67e   : > { %5928 = vst [vmem:[%s12031_s18 + $0x160] sm:$0xff] %v5871_v48  ;;  %6022 = vst [vmem:[%s12182_s17 + $0x160] sm:$0xff] (%p7272_p5), %v6021_v3  ;;  %v6081_v48 = vld [vmem:[%s12031_s18 + $0x1c0] sm:$0xff] (%p7272_p5) }
 0x67f   : > { %v5875_v12 = vpop.f32.mrb[106].mxu1  ;;  %6082 = vst [vmem:[%s12182_s17 + $0x370] sm:$0xff] (%p7272_p5), %v6081_v48  ;;  %6084 = vst [vmem:[%s12182_s17 + $0x378] sm:$0xff] (%p7272_p5), %v6083_v1 }
 0x680   : > { %v5876_v29 = vadd.f32 %v5875_v12, %v12058_v19  ;;  %v6425_v51 = vpop.f32.mrb[107].mxu1  ;;  %5953 = sbr.rel (!%p7272_p5) target bundleno = 1679 (0x68f), region = 75  ;;  %v5973_v19 = vld [vmem:[%s12031_s18 + $0x10] sm:$0xff] (%p7272_p5) }
 0x681   : > { %5974 = vst [vmem:[%s12182_s17 + $0x10] sm:$0xff] (%p7272_p5), %v5973_v19  ;;  %v6039_v59 = vld [vmem:[%s12031_s18 + $0x118] sm:$0xff] (%p7272_p5)  ;;  %v6085_v12 = vld [vmem:[%s12031_s18 + $0x1d0] sm:$0xff] (%p7272_p5)  ;;  %v6089_v51 = vld [vmem:[%s12031_s18 + $0x1e0] sm:$0xff] (%p7272_p5) }
 0x682   : > { %5937 = vst [vmem:[%s12031_s18 + $0x1a8] sm:$0xff] %v5876_v29  ;;  %6040 = vst [vmem:[%s12182_s17 + $0x1f0] sm:$0xff] (%p7272_p5), %v6039_v59  ;;  %v6087_v29 = vld [vmem:[%s12031_s18 + $0x1d8] sm:$0xff] (%p7272_p5) }
 0x683   : > { %v5880_v14 = vpop.f32.mrb[108].mxu1  ;;  %6086 = vst [vmem:[%s12182_s17 + $0x380] sm:$0xff] (%p7272_p5), %v6085_v12  ;;  %6088 = vst [vmem:[%s12182_s17 + $0x388] sm:$0xff] (%p7272_p5), %v6087_v29 }
 0x684   : > { %v5881_v27 = vadd.f32 %v5880_v14, %v12064_v37  ;;  %v6428_v5 = vpop.f32.mrb[109].mxu1  ;;  %v5975_v37 = vld [vmem:[%s12031_s18 + $0x18] sm:$0xff] (%p7272_p5)  ;;  %v6091_v14 = vld [vmem:[%s12031_s18 + $0x1e8] sm:$0xff] (%p7272_p5)  ;;  %6090 = vst [vmem:[%s12182_s17 + $0x390] sm:$0xff] (%p7272_p5), %v6089_v51 }
 0x685   : > { %5976 = vst [vmem:[%s12182_s17 + $0x18] sm:$0xff] (%p7272_p5), %v5975_v37  ;;  %v6057_v41 = vld [vmem:[%s12031_s18 + $0x160] sm:$0xff] (%p7272_p5)  ;;  %6092 = vst [vmem:[%s12182_s17 + $0x398] sm:$0xff] (%p7272_p5), %v6091_v14 }
 0x686   : > { %5946 = vst [vmem:[%s12031_s18 + $0x1f0] sm:$0x1] %v5881_v27  ;;  %6058 = vst [vmem:[%s12182_s17 + $0x280] sm:$0xff] (%p7272_p5), %v6057_v41 }
 0x689   : > { %v6075_v30 = vld [vmem:[%s12031_s18 + $0x1a8] sm:$0xff] }
 0x68a   : > { %6076 = vst [vmem:[%s12182_s17 + $0x310] sm:$0xff] %v6075_v30 }
 0x68d   : > { %v6093_v27 = vld [vmem:[%s12031_s18 + $0x1f0] sm:$0xff] }
 0x68e   : > { %6094 = vst [vmem:[%s12182_s17 + $0x3a0] sm:$0xff] %v6093_v27 }
 0x68f PF: > { %p14_p10 = scmp.ge.s32.totalorder %s7259_s28, 4   ;;  %s12910_s24 = smov %s7191_s25 }
 0x690   : > { %s12911_s25 = smov %s7270_s8  ;;  %s12912_s26 = smov %s7259_s28 }
 0x691   :  { %16 = sbr.rel (!%p14_p10) target bundleno = 2 (0x2), region = 129 }

</bundles_post_ra>
